<compile_context>
chip_gen: v6e
topology: v6e:2x2x1
jax: 0.10.0
libtpu: 0.0.40
codegen_flags: <defaults>
</compile_context>

<pallas_src>
import jax
import jax.numpy as jnp
from jax.experimental import pallas as pl
from jax.experimental.pallas import tpu as pltpu

GRID_SIZE = 5
SPLINE_ORDER = 3
GRID_RANGE = (-1.0, 1.0)
K = GRID_SIZE + SPLINE_ORDER            # 8 spline basis functions per input feature
G = GRID_SIZE + 2 * SPLINE_ORDER + 1    # 12 knots per input feature
LN_EPS = 1e-5
_H = (GRID_RANGE[1] - GRID_RANGE[0]) / GRID_SIZE
# Uniform knots as Python constants (compile-time): kills the grid DMA and all
# Cox-de Boor divides (denominators are k*_H).
_KNOTS = tuple(GRID_RANGE[0] + (j - SPLINE_ORDER) * _H for j in range(G))

LANE = 128          # TPU lane width
SUBLANE = 8         # fp32 sublane granularity
MAX_BATCH_TILE = 128


def _round_up(n, m):
    return (n + m - 1) // m * m


def _silu(x):
    return x * (1.0 / (1.0 + jnp.exp(-x)))


def _spline_bases_concat(x):
    """Cubic B-spline bases on the uniform knot grid, lane-concatenated.

    x: (B, Cin) -> (B, K*Cin) with k as the slow axis, matching the host-side
    spline weight reshape (K, Cin, Cout) -> (K*Cin, Cout)."""
    bases = [
        jnp.where((x >= _KNOTS[j]) & (x < _KNOTS[j + 1]), 1.0, 0.0)
        for j in range(G - 1)
    ]
    for k in range(1, SPLINE_ORDER + 1):
        inv = 1.0 / (k * _H)                      # constant multiply, no divide
        bases = [
            ((x - _KNOTS[j]) * inv) * bases[j]
            + ((_KNOTS[j + k + 1] - x) * inv) * bases[j + 1]
            for j in range(len(bases) - 1)
        ]
    return jnp.concatenate(bases, axis=-1)        # (B, K*Cin)


def _kan_linear(x, bw, sw, dot_dtype):
    """y = silu(x) @ W_base + bases(x) @ W_spline_flat  (two MXU dots)."""
    acc = jnp.dot(_silu(x).astype(dot_dtype), bw.astype(dot_dtype),
                  preferred_element_type=jnp.float32)
    b = _spline_bases_concat(x)
    acc = acc + jnp.dot(b.astype(dot_dtype), sw.astype(dot_dtype),
                        preferred_element_type=jnp.float32)
    return acc


def make_actor_kernel(n_actions, dot_dtype=jnp.float32):
    """Whole actor fused: 4x KANLinear + LayerNorm + masked Softmax."""

    def kernel(x_ref, bw1, sw1, bw2, sw2, lng, lnb, bw3, sw3, bw4, sw4, o_ref):
        h = _kan_linear(x_ref[...], bw1[...], sw1[...], dot_dtype)
        h = _kan_linear(h, bw2[...], sw2[...], dot_dtype)

        # ---- LayerNorm(256) ----
        mean = jnp.mean(h, axis=-1, keepdims=True)
        var = jnp.mean((h - mean) ** 2, axis=-1, keepdims=True)
        h = (h - mean) * jax.lax.rsqrt(var + LN_EPS)
        h = h * lng[...] + lnb[...]

        h = _kan_linear(h, bw3[...], sw3[...], dot_dtype)
        logits = _kan_linear(h, bw4[...], sw4[...], dot_dtype)

        # ---- Softmax over the real n_actions lanes (output is lane-padded) ----
        lane = jax.lax.broadcasted_iota(jnp.int32, logits.shape, 1)
        logits = jnp.where(lane < n_actions, logits, -1e30)
        m = jnp.max(logits, axis=-1, keepdims=True)
        e = jnp.exp(logits - m)
        o_ref[...] = e * pl.reciprocal(jnp.sum(e, axis=-1, keepdims=True),
                                       approx=True)

    return kernel


def kan_actor_forward(packed, state, *, n_actions, dot_dtype=jnp.float32):
    """Returns the Categorical probabilities of KANActorNetwork.forward(state)."""
    B, in_dims = state.shape
    cin0 = packed["bw1"].shape[0]           # lane-padded input width
    nout_pad = packed["bw4"].shape[1]       # lane-padded action width

    # Pad batch to sublane granularity; tile big batches over a parallel grid.
    B_pad = _round_up(B, SUBLANE)
    tb = B_pad if B_pad <= MAX_BATCH_TILE else MAX_BATCH_TILE
    B_pad = _round_up(B_pad, tb)
    x = jnp.zeros((B_pad, cin0), jnp.float32).at[:B, :in_dims].set(state)

    weights = [packed["bw1"], packed["sw1"], packed["bw2"], packed["sw2"],
               packed["ln_gamma"], packed["ln_beta"],
               packed["bw3"], packed["sw3"], packed["bw4"], packed["sw4"]]

    out = pl.pallas_call(
        make_actor_kernel(n_actions, dot_dtype),
        out_shape=jax.ShapeDtypeStruct((B_pad, nout_pad), jnp.float32),
        grid_spec=pltpu.PrefetchScalarGridSpec(
            num_scalar_prefetch=0,
            grid=(B_pad // tb,),
            in_specs=[pl.BlockSpec((tb, cin0), lambda b: (b, 0))]
                     + [pl.BlockSpec(w.shape, lambda b: (0, 0))  # resident weights
                        for w in weights],
            out_specs=pl.BlockSpec((tb, nout_pad), lambda b: (b, 0)),
        ),
        compiler_params=pltpu.CompilerParams(
            dimension_semantics=("parallel",),      # megacore split on v7x
            vmem_limit_bytes=32 * 1024 * 1024),
    )(x, *weights)
    return out[:B, :n_actions]
    # TODO(synk): torch.distributions.Categorical itself has no tensor-level
    # Pallas equivalent; `out` is its probability parameterization.


# ----------------------------- parameter setup ------------------------------

def init_kan_linear(key, in_f, out_f):
    k1, k2 = jax.random.split(key)
    base_w_t = jax.random.normal(k1, (in_f, out_f), jnp.float32) / jnp.sqrt(
        jnp.float32(in_f))
    # (K, in, out) == permuted (out, in, K) scaled_spline_weight of efficient-kan
    spline_w_t = jax.random.normal(k2, (K, in_f, out_f), jnp.float32) * (
        0.1 / jnp.sqrt(jnp.float32(in_f)))
    return dict(base_w_t=base_w_t, spline_w_t=spline_w_t)


def init_actor_params(key, input_dims, n_actions):
    ks = jax.random.split(key, 4)
    return {
        "l1": init_kan_linear(ks[0], input_dims, 128),
        "l2": init_kan_linear(ks[1], 128, 256),
        "l3": init_kan_linear(ks[2], 256, 128),
        "l4": init_kan_linear(ks[3], 128, n_actions),
        "ln_gamma": jnp.ones((1, 256), jnp.float32),   # nn.LayerNorm default init
        "ln_beta": jnp.zeros((1, 256), jnp.float32),
    }


def _pack_layer(p, in_pad=None, out_pad=None):
    """Zero-pad a KANLinear to lane-aligned in/out and flatten the spline weight."""
    bw, sw = p["base_w_t"], p["spline_w_t"]
    in_f, out_f = bw.shape
    in_pad = in_f if in_pad is None else in_pad
    out_pad = out_f if out_pad is None else out_pad
    bw_p = jnp.zeros((in_pad, out_pad), jnp.float32).at[:in_f, :out_f].set(bw)
    sw_p = jnp.zeros((K, in_pad, out_pad), jnp.float32).at[:, :in_f, :out_f].set(sw)
    return bw_p, sw_p.reshape(K * in_pad, out_pad)


def pack_actor_params(params, input_dims, n_actions):
    cin0 = _round_up(max(input_dims, LANE), LANE)
    nout = _round_up(max(n_actions, LANE), LANE)
    bw1, sw1 = _pack_layer(params["l1"], in_pad=cin0)
    bw2, sw2 = _pack_layer(params["l2"])
    bw3, sw3 = _pack_layer(params["l3"])
    bw4, sw4 = _pack_layer(params["l4"], out_pad=nout)
    return dict(bw1=bw1, sw1=sw1, bw2=bw2, sw2=sw2, bw3=bw3, sw3=sw3,
                bw4=bw4, sw4=sw4,
                ln_gamma=params["ln_gamma"], ln_beta=params["ln_beta"])


# --------------------------- plain-JAX reference ----------------------------

_KNOTS_ARR = jnp.asarray(_KNOTS, jnp.float32)


def _ref_kan_linear(x, p):
    out = _silu(x) @ p["base_w_t"]
    t = _KNOTS_ARR
    xs = x[:, :, None]
    bases = ((xs >= t[:-1]) & (xs < t[1:])).astype(x.dtype)
    for k in range(1, SPLINE_ORDER + 1):
        bases = ((xs - t[:-(k + 1)]) / (t[k:-1] - t[:-(k + 1)]) * bases[..., :-1]
                 + (t[k + 1:] - xs) / (t[k + 1:] - t[1:-k]) * bases[..., 1:])
    return out + jnp.einsum("bik,kio->bo", bases, p["spline_w_t"])


def _ref_forward(params, state):
    h = _ref_kan_linear(state, params["l1"])
    h = _ref_kan_linear(h, params["l2"])
    mean = jnp.mean(h, axis=-1, keepdims=True)
    var = jnp.mean((h - mean) ** 2, axis=-1, keepdims=True)
    h = (h - mean) * jax.lax.rsqrt(var + LN_EPS)
    h = h * params["ln_gamma"] + params["ln_beta"]
    h = _ref_kan_linear(h, params["l3"])
    logits = _ref_kan_linear(h, params["l4"])
    return jax.nn.softmax(logits, axis=-1)


# ----------------------------------- main ------------------------------------

if __name__ == "__main__":
    batch, input_dims, n_actions = 2, 8, 4

    key = jax.random.PRNGKey(0)
    kp, kx = jax.random.split(key)
    params = init_actor_params(kp, input_dims, n_actions)
    packed = pack_actor_params(params, input_dims, n_actions)
    # layout: state is (batch, input_dims); feature axis last (lanes).
    state = jax.random.normal(kx, (batch, input_dims), jnp.float32) * 0.5

    fwd = jax.jit(kan_actor_forward, static_argnames=("n_actions", "dot_dtype"))
    probs = fwd(packed, state, n_actions=n_actions)
    jax.block_until_ready(probs)

    ref = _ref_forward(params, state)
    assert probs.shape == (batch, n_actions)
    # Tolerances account for the approx-reciprocal softmax denominator (EUP rcp).
    assert jnp.allclose(jnp.sum(probs, axis=-1), 1.0, atol=2e-3)
    assert jnp.allclose(probs, ref, atol=1e-3, rtol=1e-3), (
        f"max err {jnp.max(jnp.abs(probs - ref))}")

    print("KERNEL_OK")
</pallas_src>

<mosaic_0001>
module attributes {stable_mosaic.version = 11 : i64} {
  func.func @kernel(%arg0: i32, %arg1: memref<8x128xf32, #tpu.memory_space<vmem>>, %arg2: memref<128x128xf32, #tpu.memory_space<vmem>>, %arg3: memref<1024x128xf32, #tpu.memory_space<vmem>>, %arg4: memref<128x256xf32, #tpu.memory_space<vmem>>, %arg5: memref<1024x256xf32, #tpu.memory_space<vmem>>, %arg6: memref<1x256xf32, #tpu.memory_space<vmem>>, %arg7: memref<1x256xf32, #tpu.memory_space<vmem>>, %arg8: memref<256x128xf32, #tpu.memory_space<vmem>>, %arg9: memref<2048x128xf32, #tpu.memory_space<vmem>>, %arg10: memref<128x128xf32, #tpu.memory_space<vmem>>, %arg11: memref<1024x128xf32, #tpu.memory_space<vmem>>, %arg12: memref<8x128xf32, #tpu.memory_space<vmem>>) attributes {dimension_semantics = [#tpu.dimension_semantics<parallel>], iteration_bounds = array<i64: 1>, scalar_prefetch = 0 : i64, scratch_operands = 0 : i64, tpu.core_type = #tpu.core_type<tc>, window_params = [{transform_indices = @transform_0, window_bounds = array<i64: 8, 128>}, {pipeline_mode = #tpu.pipeline_mode<synchronous>, transform_indices = @transform_1, window_bounds = array<i64: 128, 128>}, {pipeline_mode = #tpu.pipeline_mode<synchronous>, transform_indices = @transform_2, window_bounds = array<i64: 1024, 128>}, {pipeline_mode = #tpu.pipeline_mode<synchronous>, transform_indices = @transform_3, window_bounds = array<i64: 128, 256>}, {pipeline_mode = #tpu.pipeline_mode<synchronous>, transform_indices = @transform_4, window_bounds = array<i64: 1024, 256>}, {pipeline_mode = #tpu.pipeline_mode<synchronous>, transform_indices = @transform_5, window_bounds = array<i64: 1, 256>}, {pipeline_mode = #tpu.pipeline_mode<synchronous>, transform_indices = @transform_6, window_bounds = array<i64: 1, 256>}, {pipeline_mode = #tpu.pipeline_mode<synchronous>, transform_indices = @transform_7, window_bounds = array<i64: 256, 128>}, {pipeline_mode = #tpu.pipeline_mode<synchronous>, transform_indices = @transform_8, window_bounds = array<i64: 2048, 128>}, {pipeline_mode = #tpu.pipeline_mode<synchronous>, transform_indices = @transform_9, window_bounds = array<i64: 128, 128>}, {pipeline_mode = #tpu.pipeline_mode<synchronous>, transform_indices = @transform_10, window_bounds = array<i64: 1024, 128>}, {transform_indices = @transform_11, window_bounds = array<i64: 8, 128>}]} {
    %c0 = arith.constant 0 : index
    %c0_0 = arith.constant 0 : index
    %0 = vector.load %arg1[%c0, %c0_0] : memref<8x128xf32, #tpu.memory_space<vmem>>, vector<8x128xf32>
    %c0_1 = arith.constant 0 : index
    %c0_2 = arith.constant 0 : index
    %1 = vector.load %arg2[%c0_1, %c0_2] : memref<128x128xf32, #tpu.memory_space<vmem>>, vector<128x128xf32>
    %c0_3 = arith.constant 0 : index
    %c0_4 = arith.constant 0 : index
    %2 = vector.load %arg3[%c0_3, %c0_4] : memref<1024x128xf32, #tpu.memory_space<vmem>>, vector<1024x128xf32>
    %cst = arith.constant 0.000000e+00 : f32
    %3 = vector.broadcast %cst : f32 to vector<8x128xf32>
    %4 = arith.subf %3, %0 : vector<8x128xf32>
    %5 = math.exp %4 : vector<8x128xf32>
    %cst_5 = arith.constant 1.000000e+00 : f32
    %6 = vector.broadcast %cst_5 : f32 to vector<8x128xf32>
    %7 = arith.addf %6, %5 : vector<8x128xf32>
    %cst_6 = arith.constant 1.000000e+00 : f32
    %8 = vector.broadcast %cst_6 : f32 to vector<8x128xf32>
    %9 = arith.divf %8, %7 : vector<8x128xf32>
    %10 = arith.mulf %0, %9 : vector<8x128xf32>
    %cst_7 = arith.constant dense<0.000000e+00> : vector<8x128xf32>
    %11 = tpu.matmul %10, %1, %cst_7 {dimension_numbers = #tpu.dot_dimension_numbers<[1], [0], [0], [1], [0, 0, 1, 1], [], []>} : vector<8x128xf32>, vector<128x128xf32>, vector<8x128xf32> -> vector<8x128xf32>
    %cst_8 = arith.constant -2.200000e+00 : f32
    %12 = vector.broadcast %cst_8 : f32 to vector<8x128xf32>
    %13 = arith.cmpf oge, %0, %12 : vector<8x128xf32>
    %cst_9 = arith.constant -1.800000e+00 : f32
    %14 = vector.broadcast %cst_9 : f32 to vector<8x128xf32>
    %15 = arith.cmpf olt, %0, %14 : vector<8x128xf32>
    %16 = arith.andi %13, %15 : vector<8x128xi1>
    %cst_10 = arith.constant 1.000000e+00 : f32
    %cst_11 = arith.constant 0.000000e+00 : f32
    %17 = vector.broadcast %cst_10 : f32 to vector<8x128xf32>
    %18 = vector.broadcast %cst_11 : f32 to vector<8x128xf32>
    %19 = arith.select %16, %17, %18 : vector<8x128xi1>, vector<8x128xf32>
    %cst_12 = arith.constant -1.800000e+00 : f32
    %20 = vector.broadcast %cst_12 : f32 to vector<8x128xf32>
    %21 = arith.cmpf oge, %0, %20 : vector<8x128xf32>
    %cst_13 = arith.constant -1.400000e+00 : f32
    %22 = vector.broadcast %cst_13 : f32 to vector<8x128xf32>
    %23 = arith.cmpf olt, %0, %22 : vector<8x128xf32>
    %24 = arith.andi %21, %23 : vector<8x128xi1>
    %cst_14 = arith.constant 1.000000e+00 : f32
    %cst_15 = arith.constant 0.000000e+00 : f32
    %25 = vector.broadcast %cst_14 : f32 to vector<8x128xf32>
    %26 = vector.broadcast %cst_15 : f32 to vector<8x128xf32>
    %27 = arith.select %24, %25, %26 : vector<8x128xi1>, vector<8x128xf32>
    %cst_16 = arith.constant -1.400000e+00 : f32
    %28 = vector.broadcast %cst_16 : f32 to vector<8x128xf32>
    %29 = arith.cmpf oge, %0, %28 : vector<8x128xf32>
    %cst_17 = arith.constant -1.000000e+00 : f32
    %30 = vector.broadcast %cst_17 : f32 to vector<8x128xf32>
    %31 = arith.cmpf olt, %0, %30 : vector<8x128xf32>
    %32 = arith.andi %29, %31 : vector<8x128xi1>
    %cst_18 = arith.constant 1.000000e+00 : f32
    %cst_19 = arith.constant 0.000000e+00 : f32
    %33 = vector.broadcast %cst_18 : f32 to vector<8x128xf32>
    %34 = vector.broadcast %cst_19 : f32 to vector<8x128xf32>
    %35 = arith.select %32, %33, %34 : vector<8x128xi1>, vector<8x128xf32>
    %cst_20 = arith.constant -1.000000e+00 : f32
    %36 = vector.broadcast %cst_20 : f32 to vector<8x128xf32>
    %37 = arith.cmpf oge, %0, %36 : vector<8x128xf32>
    %cst_21 = arith.constant -6.000000e-01 : f32
    %38 = vector.broadcast %cst_21 : f32 to vector<8x128xf32>
    %39 = arith.cmpf olt, %0, %38 : vector<8x128xf32>
    %40 = arith.andi %37, %39 : vector<8x128xi1>
    %cst_22 = arith.constant 1.000000e+00 : f32
    %cst_23 = arith.constant 0.000000e+00 : f32
    %41 = vector.broadcast %cst_22 : f32 to vector<8x128xf32>
    %42 = vector.broadcast %cst_23 : f32 to vector<8x128xf32>
    %43 = arith.select %40, %41, %42 : vector<8x128xi1>, vector<8x128xf32>
    %cst_24 = arith.constant -6.000000e-01 : f32
    %44 = vector.broadcast %cst_24 : f32 to vector<8x128xf32>
    %45 = arith.cmpf oge, %0, %44 : vector<8x128xf32>
    %cst_25 = arith.constant -2.000000e-01 : f32
    %46 = vector.broadcast %cst_25 : f32 to vector<8x128xf32>
    %47 = arith.cmpf olt, %0, %46 : vector<8x128xf32>
    %48 = arith.andi %45, %47 : vector<8x128xi1>
    %cst_26 = arith.constant 1.000000e+00 : f32
    %cst_27 = arith.constant 0.000000e+00 : f32
    %49 = vector.broadcast %cst_26 : f32 to vector<8x128xf32>
    %50 = vector.broadcast %cst_27 : f32 to vector<8x128xf32>
    %51 = arith.select %48, %49, %50 : vector<8x128xi1>, vector<8x128xf32>
    %cst_28 = arith.constant -2.000000e-01 : f32
    %52 = vector.broadcast %cst_28 : f32 to vector<8x128xf32>
    %53 = arith.cmpf oge, %0, %52 : vector<8x128xf32>
    %cst_29 = arith.constant 2.000000e-01 : f32
    %54 = vector.broadcast %cst_29 : f32 to vector<8x128xf32>
    %55 = arith.cmpf olt, %0, %54 : vector<8x128xf32>
    %56 = arith.andi %53, %55 : vector<8x128xi1>
    %cst_30 = arith.constant 1.000000e+00 : f32
    %cst_31 = arith.constant 0.000000e+00 : f32
    %57 = vector.broadcast %cst_30 : f32 to vector<8x128xf32>
    %58 = vector.broadcast %cst_31 : f32 to vector<8x128xf32>
    %59 = arith.select %56, %57, %58 : vector<8x128xi1>, vector<8x128xf32>
    %cst_32 = arith.constant 2.000000e-01 : f32
    %60 = vector.broadcast %cst_32 : f32 to vector<8x128xf32>
    %61 = arith.cmpf oge, %0, %60 : vector<8x128xf32>
    %cst_33 = arith.constant 6.000000e-01 : f32
    %62 = vector.broadcast %cst_33 : f32 to vector<8x128xf32>
    %63 = arith.cmpf olt, %0, %62 : vector<8x128xf32>
    %64 = arith.andi %61, %63 : vector<8x128xi1>
    %cst_34 = arith.constant 1.000000e+00 : f32
    %cst_35 = arith.constant 0.000000e+00 : f32
    %65 = vector.broadcast %cst_34 : f32 to vector<8x128xf32>
    %66 = vector.broadcast %cst_35 : f32 to vector<8x128xf32>
    %67 = arith.select %64, %65, %66 : vector<8x128xi1>, vector<8x128xf32>
    %cst_36 = arith.constant 6.000000e-01 : f32
    %68 = vector.broadcast %cst_36 : f32 to vector<8x128xf32>
    %69 = arith.cmpf oge, %0, %68 : vector<8x128xf32>
    %cst_37 = arith.constant 1.000000e+00 : f32
    %70 = vector.broadcast %cst_37 : f32 to vector<8x128xf32>
    %71 = arith.cmpf olt, %0, %70 : vector<8x128xf32>
    %72 = arith.andi %69, %71 : vector<8x128xi1>
    %cst_38 = arith.constant 1.000000e+00 : f32
    %cst_39 = arith.constant 0.000000e+00 : f32
    %73 = vector.broadcast %cst_38 : f32 to vector<8x128xf32>
    %74 = vector.broadcast %cst_39 : f32 to vector<8x128xf32>
    %75 = arith.select %72, %73, %74 : vector<8x128xi1>, vector<8x128xf32>
    %cst_40 = arith.constant 1.000000e+00 : f32
    %76 = vector.broadcast %cst_40 : f32 to vector<8x128xf32>
    %77 = arith.cmpf oge, %0, %76 : vector<8x128xf32>
    %cst_41 = arith.constant 1.400000e+00 : f32
    %78 = vector.broadcast %cst_41 : f32 to vector<8x128xf32>
    %79 = arith.cmpf olt, %0, %78 : vector<8x128xf32>
    %80 = arith.andi %77, %79 : vector<8x128xi1>
    %cst_42 = arith.constant 1.000000e+00 : f32
    %cst_43 = arith.constant 0.000000e+00 : f32
    %81 = vector.broadcast %cst_42 : f32 to vector<8x128xf32>
    %82 = vector.broadcast %cst_43 : f32 to vector<8x128xf32>
    %83 = arith.select %80, %81, %82 : vector<8x128xi1>, vector<8x128xf32>
    %cst_44 = arith.constant 1.400000e+00 : f32
    %84 = vector.broadcast %cst_44 : f32 to vector<8x128xf32>
    %85 = arith.cmpf oge, %0, %84 : vector<8x128xf32>
    %cst_45 = arith.constant 1.800000e+00 : f32
    %86 = vector.broadcast %cst_45 : f32 to vector<8x128xf32>
    %87 = arith.cmpf olt, %0, %86 : vector<8x128xf32>
    %88 = arith.andi %85, %87 : vector<8x128xi1>
    %cst_46 = arith.constant 1.000000e+00 : f32
    %cst_47 = arith.constant 0.000000e+00 : f32
    %89 = vector.broadcast %cst_46 : f32 to vector<8x128xf32>
    %90 = vector.broadcast %cst_47 : f32 to vector<8x128xf32>
    %91 = arith.select %88, %89, %90 : vector<8x128xi1>, vector<8x128xf32>
    %cst_48 = arith.constant 1.800000e+00 : f32
    %92 = vector.broadcast %cst_48 : f32 to vector<8x128xf32>
    %93 = arith.cmpf oge, %0, %92 : vector<8x128xf32>
    %cst_49 = arith.constant 2.200000e+00 : f32
    %94 = vector.broadcast %cst_49 : f32 to vector<8x128xf32>
    %95 = arith.cmpf olt, %0, %94 : vector<8x128xf32>
    %96 = arith.andi %93, %95 : vector<8x128xi1>
    %cst_50 = arith.constant 1.000000e+00 : f32
    %cst_51 = arith.constant 0.000000e+00 : f32
    %97 = vector.broadcast %cst_50 : f32 to vector<8x128xf32>
    %98 = vector.broadcast %cst_51 : f32 to vector<8x128xf32>
    %99 = arith.select %96, %97, %98 : vector<8x128xi1>, vector<8x128xf32>
    %cst_52 = arith.constant -2.200000e+00 : f32
    %100 = vector.broadcast %cst_52 : f32 to vector<8x128xf32>
    %101 = arith.subf %0, %100 : vector<8x128xf32>
    %cst_53 = arith.constant 2.500000e+00 : f32
    %102 = vector.broadcast %cst_53 : f32 to vector<8x128xf32>
    %103 = arith.mulf %101, %102 : vector<8x128xf32>
    %104 = arith.mulf %103, %19 : vector<8x128xf32>
    %cst_54 = arith.constant -1.400000e+00 : f32
    %105 = vector.broadcast %cst_54 : f32 to vector<8x128xf32>
    %106 = arith.subf %105, %0 : vector<8x128xf32>
    %cst_55 = arith.constant 2.500000e+00 : f32
    %107 = vector.broadcast %cst_55 : f32 to vector<8x128xf32>
    %108 = arith.mulf %106, %107 : vector<8x128xf32>
    %109 = arith.mulf %108, %27 : vector<8x128xf32>
    %110 = arith.addf %104, %109 : vector<8x128xf32>
    %cst_56 = arith.constant -1.800000e+00 : f32
    %111 = vector.broadcast %cst_56 : f32 to vector<8x128xf32>
    %112 = arith.subf %0, %111 : vector<8x128xf32>
    %cst_57 = arith.constant 2.500000e+00 : f32
    %113 = vector.broadcast %cst_57 : f32 to vector<8x128xf32>
    %114 = arith.mulf %112, %113 : vector<8x128xf32>
    %115 = arith.mulf %114, %27 : vector<8x128xf32>
    %cst_58 = arith.constant -1.000000e+00 : f32
    %116 = vector.broadcast %cst_58 : f32 to vector<8x128xf32>
    %117 = arith.subf %116, %0 : vector<8x128xf32>
    %cst_59 = arith.constant 2.500000e+00 : f32
    %118 = vector.broadcast %cst_59 : f32 to vector<8x128xf32>
    %119 = arith.mulf %117, %118 : vector<8x128xf32>
    %120 = arith.mulf %119, %35 : vector<8x128xf32>
    %121 = arith.addf %115, %120 : vector<8x128xf32>
    %cst_60 = arith.constant -1.400000e+00 : f32
    %122 = vector.broadcast %cst_60 : f32 to vector<8x128xf32>
    %123 = arith.subf %0, %122 : vector<8x128xf32>
    %cst_61 = arith.constant 2.500000e+00 : f32
    %124 = vector.broadcast %cst_61 : f32 to vector<8x128xf32>
    %125 = arith.mulf %123, %124 : vector<8x128xf32>
    %126 = arith.mulf %125, %35 : vector<8x128xf32>
    %cst_62 = arith.constant -6.000000e-01 : f32
    %127 = vector.broadcast %cst_62 : f32 to vector<8x128xf32>
    %128 = arith.subf %127, %0 : vector<8x128xf32>
    %cst_63 = arith.constant 2.500000e+00 : f32
    %129 = vector.broadcast %cst_63 : f32 to vector<8x128xf32>
    %130 = arith.mulf %128, %129 : vector<8x128xf32>
    %131 = arith.mulf %130, %43 : vector<8x128xf32>
    %132 = arith.addf %126, %131 : vector<8x128xf32>
    %cst_64 = arith.constant -1.000000e+00 : f32
    %133 = vector.broadcast %cst_64 : f32 to vector<8x128xf32>
    %134 = arith.subf %0, %133 : vector<8x128xf32>
    %cst_65 = arith.constant 2.500000e+00 : f32
    %135 = vector.broadcast %cst_65 : f32 to vector<8x128xf32>
    %136 = arith.mulf %134, %135 : vector<8x128xf32>
    %137 = arith.mulf %136, %43 : vector<8x128xf32>
    %cst_66 = arith.constant -2.000000e-01 : f32
    %138 = vector.broadcast %cst_66 : f32 to vector<8x128xf32>
    %139 = arith.subf %138, %0 : vector<8x128xf32>
    %cst_67 = arith.constant 2.500000e+00 : f32
    %140 = vector.broadcast %cst_67 : f32 to vector<8x128xf32>
    %141 = arith.mulf %139, %140 : vector<8x128xf32>
    %142 = arith.mulf %141, %51 : vector<8x128xf32>
    %143 = arith.addf %137, %142 : vector<8x128xf32>
    %cst_68 = arith.constant -6.000000e-01 : f32
    %144 = vector.broadcast %cst_68 : f32 to vector<8x128xf32>
    %145 = arith.subf %0, %144 : vector<8x128xf32>
    %cst_69 = arith.constant 2.500000e+00 : f32
    %146 = vector.broadcast %cst_69 : f32 to vector<8x128xf32>
    %147 = arith.mulf %145, %146 : vector<8x128xf32>
    %148 = arith.mulf %147, %51 : vector<8x128xf32>
    %cst_70 = arith.constant 2.000000e-01 : f32
    %149 = vector.broadcast %cst_70 : f32 to vector<8x128xf32>
    %150 = arith.subf %149, %0 : vector<8x128xf32>
    %cst_71 = arith.constant 2.500000e+00 : f32
    %151 = vector.broadcast %cst_71 : f32 to vector<8x128xf32>
    %152 = arith.mulf %150, %151 : vector<8x128xf32>
    %153 = arith.mulf %152, %59 : vector<8x128xf32>
    %154 = arith.addf %148, %153 : vector<8x128xf32>
    %cst_72 = arith.constant -2.000000e-01 : f32
    %155 = vector.broadcast %cst_72 : f32 to vector<8x128xf32>
    %156 = arith.subf %0, %155 : vector<8x128xf32>
    %cst_73 = arith.constant 2.500000e+00 : f32
    %157 = vector.broadcast %cst_73 : f32 to vector<8x128xf32>
    %158 = arith.mulf %156, %157 : vector<8x128xf32>
    %159 = arith.mulf %158, %59 : vector<8x128xf32>
    %cst_74 = arith.constant 6.000000e-01 : f32
    %160 = vector.broadcast %cst_74 : f32 to vector<8x128xf32>
    %161 = arith.subf %160, %0 : vector<8x128xf32>
    %cst_75 = arith.constant 2.500000e+00 : f32
    %162 = vector.broadcast %cst_75 : f32 to vector<8x128xf32>
    %163 = arith.mulf %161, %162 : vector<8x128xf32>
    %164 = arith.mulf %163, %67 : vector<8x128xf32>
    %165 = arith.addf %159, %164 : vector<8x128xf32>
    %cst_76 = arith.constant 2.000000e-01 : f32
    %166 = vector.broadcast %cst_76 : f32 to vector<8x128xf32>
    %167 = arith.subf %0, %166 : vector<8x128xf32>
    %cst_77 = arith.constant 2.500000e+00 : f32
    %168 = vector.broadcast %cst_77 : f32 to vector<8x128xf32>
    %169 = arith.mulf %167, %168 : vector<8x128xf32>
    %170 = arith.mulf %169, %67 : vector<8x128xf32>
    %cst_78 = arith.constant 1.000000e+00 : f32
    %171 = vector.broadcast %cst_78 : f32 to vector<8x128xf32>
    %172 = arith.subf %171, %0 : vector<8x128xf32>
    %cst_79 = arith.constant 2.500000e+00 : f32
    %173 = vector.broadcast %cst_79 : f32 to vector<8x128xf32>
    %174 = arith.mulf %172, %173 : vector<8x128xf32>
    %175 = arith.mulf %174, %75 : vector<8x128xf32>
    %176 = arith.addf %170, %175 : vector<8x128xf32>
    %cst_80 = arith.constant 6.000000e-01 : f32
    %177 = vector.broadcast %cst_80 : f32 to vector<8x128xf32>
    %178 = arith.subf %0, %177 : vector<8x128xf32>
    %cst_81 = arith.constant 2.500000e+00 : f32
    %179 = vector.broadcast %cst_81 : f32 to vector<8x128xf32>
    %180 = arith.mulf %178, %179 : vector<8x128xf32>
    %181 = arith.mulf %180, %75 : vector<8x128xf32>
    %cst_82 = arith.constant 1.400000e+00 : f32
    %182 = vector.broadcast %cst_82 : f32 to vector<8x128xf32>
    %183 = arith.subf %182, %0 : vector<8x128xf32>
    %cst_83 = arith.constant 2.500000e+00 : f32
    %184 = vector.broadcast %cst_83 : f32 to vector<8x128xf32>
    %185 = arith.mulf %183, %184 : vector<8x128xf32>
    %186 = arith.mulf %185, %83 : vector<8x128xf32>
    %187 = arith.addf %181, %186 : vector<8x128xf32>
    %cst_84 = arith.constant 1.000000e+00 : f32
    %188 = vector.broadcast %cst_84 : f32 to vector<8x128xf32>
    %189 = arith.subf %0, %188 : vector<8x128xf32>
    %cst_85 = arith.constant 2.500000e+00 : f32
    %190 = vector.broadcast %cst_85 : f32 to vector<8x128xf32>
    %191 = arith.mulf %189, %190 : vector<8x128xf32>
    %192 = arith.mulf %191, %83 : vector<8x128xf32>
    %cst_86 = arith.constant 1.800000e+00 : f32
    %193 = vector.broadcast %cst_86 : f32 to vector<8x128xf32>
    %194 = arith.subf %193, %0 : vector<8x128xf32>
    %cst_87 = arith.constant 2.500000e+00 : f32
    %195 = vector.broadcast %cst_87 : f32 to vector<8x128xf32>
    %196 = arith.mulf %194, %195 : vector<8x128xf32>
    %197 = arith.mulf %196, %91 : vector<8x128xf32>
    %198 = arith.addf %192, %197 : vector<8x128xf32>
    %cst_88 = arith.constant 1.400000e+00 : f32
    %199 = vector.broadcast %cst_88 : f32 to vector<8x128xf32>
    %200 = arith.subf %0, %199 : vector<8x128xf32>
    %cst_89 = arith.constant 2.500000e+00 : f32
    %201 = vector.broadcast %cst_89 : f32 to vector<8x128xf32>
    %202 = arith.mulf %200, %201 : vector<8x128xf32>
    %203 = arith.mulf %202, %91 : vector<8x128xf32>
    %cst_90 = arith.constant 2.200000e+00 : f32
    %204 = vector.broadcast %cst_90 : f32 to vector<8x128xf32>
    %205 = arith.subf %204, %0 : vector<8x128xf32>
    %cst_91 = arith.constant 2.500000e+00 : f32
    %206 = vector.broadcast %cst_91 : f32 to vector<8x128xf32>
    %207 = arith.mulf %205, %206 : vector<8x128xf32>
    %208 = arith.mulf %207, %99 : vector<8x128xf32>
    %209 = arith.addf %203, %208 : vector<8x128xf32>
    %cst_92 = arith.constant -2.200000e+00 : f32
    %210 = vector.broadcast %cst_92 : f32 to vector<8x128xf32>
    %211 = arith.subf %0, %210 : vector<8x128xf32>
    %cst_93 = arith.constant 1.250000e+00 : f32
    %212 = vector.broadcast %cst_93 : f32 to vector<8x128xf32>
    %213 = arith.mulf %211, %212 : vector<8x128xf32>
    %214 = arith.mulf %213, %110 : vector<8x128xf32>
    %cst_94 = arith.constant -1.000000e+00 : f32
    %215 = vector.broadcast %cst_94 : f32 to vector<8x128xf32>
    %216 = arith.subf %215, %0 : vector<8x128xf32>
    %cst_95 = arith.constant 1.250000e+00 : f32
    %217 = vector.broadcast %cst_95 : f32 to vector<8x128xf32>
    %218 = arith.mulf %216, %217 : vector<8x128xf32>
    %219 = arith.mulf %218, %121 : vector<8x128xf32>
    %220 = arith.addf %214, %219 : vector<8x128xf32>
    %cst_96 = arith.constant -1.800000e+00 : f32
    %221 = vector.broadcast %cst_96 : f32 to vector<8x128xf32>
    %222 = arith.subf %0, %221 : vector<8x128xf32>
    %cst_97 = arith.constant 1.250000e+00 : f32
    %223 = vector.broadcast %cst_97 : f32 to vector<8x128xf32>
    %224 = arith.mulf %222, %223 : vector<8x128xf32>
    %225 = arith.mulf %224, %121 : vector<8x128xf32>
    %cst_98 = arith.constant -6.000000e-01 : f32
    %226 = vector.broadcast %cst_98 : f32 to vector<8x128xf32>
    %227 = arith.subf %226, %0 : vector<8x128xf32>
    %cst_99 = arith.constant 1.250000e+00 : f32
    %228 = vector.broadcast %cst_99 : f32 to vector<8x128xf32>
    %229 = arith.mulf %227, %228 : vector<8x128xf32>
    %230 = arith.mulf %229, %132 : vector<8x128xf32>
    %231 = arith.addf %225, %230 : vector<8x128xf32>
    %cst_100 = arith.constant -1.400000e+00 : f32
    %232 = vector.broadcast %cst_100 : f32 to vector<8x128xf32>
    %233 = arith.subf %0, %232 : vector<8x128xf32>
    %cst_101 = arith.constant 1.250000e+00 : f32
    %234 = vector.broadcast %cst_101 : f32 to vector<8x128xf32>
    %235 = arith.mulf %233, %234 : vector<8x128xf32>
    %236 = arith.mulf %235, %132 : vector<8x128xf32>
    %cst_102 = arith.constant -2.000000e-01 : f32
    %237 = vector.broadcast %cst_102 : f32 to vector<8x128xf32>
    %238 = arith.subf %237, %0 : vector<8x128xf32>
    %cst_103 = arith.constant 1.250000e+00 : f32
    %239 = vector.broadcast %cst_103 : f32 to vector<8x128xf32>
    %240 = arith.mulf %238, %239 : vector<8x128xf32>
    %241 = arith.mulf %240, %143 : vector<8x128xf32>
    %242 = arith.addf %236, %241 : vector<8x128xf32>
    %cst_104 = arith.constant -1.000000e+00 : f32
    %243 = vector.broadcast %cst_104 : f32 to vector<8x128xf32>
    %244 = arith.subf %0, %243 : vector<8x128xf32>
    %cst_105 = arith.constant 1.250000e+00 : f32
    %245 = vector.broadcast %cst_105 : f32 to vector<8x128xf32>
    %246 = arith.mulf %244, %245 : vector<8x128xf32>
    %247 = arith.mulf %246, %143 : vector<8x128xf32>
    %cst_106 = arith.constant 2.000000e-01 : f32
    %248 = vector.broadcast %cst_106 : f32 to vector<8x128xf32>
    %249 = arith.subf %248, %0 : vector<8x128xf32>
    %cst_107 = arith.constant 1.250000e+00 : f32
    %250 = vector.broadcast %cst_107 : f32 to vector<8x128xf32>
    %251 = arith.mulf %249, %250 : vector<8x128xf32>
    %252 = arith.mulf %251, %154 : vector<8x128xf32>
    %253 = arith.addf %247, %252 : vector<8x128xf32>
    %cst_108 = arith.constant -6.000000e-01 : f32
    %254 = vector.broadcast %cst_108 : f32 to vector<8x128xf32>
    %255 = arith.subf %0, %254 : vector<8x128xf32>
    %cst_109 = arith.constant 1.250000e+00 : f32
    %256 = vector.broadcast %cst_109 : f32 to vector<8x128xf32>
    %257 = arith.mulf %255, %256 : vector<8x128xf32>
    %258 = arith.mulf %257, %154 : vector<8x128xf32>
    %cst_110 = arith.constant 6.000000e-01 : f32
    %259 = vector.broadcast %cst_110 : f32 to vector<8x128xf32>
    %260 = arith.subf %259, %0 : vector<8x128xf32>
    %cst_111 = arith.constant 1.250000e+00 : f32
    %261 = vector.broadcast %cst_111 : f32 to vector<8x128xf32>
    %262 = arith.mulf %260, %261 : vector<8x128xf32>
    %263 = arith.mulf %262, %165 : vector<8x128xf32>
    %264 = arith.addf %258, %263 : vector<8x128xf32>
    %cst_112 = arith.constant -2.000000e-01 : f32
    %265 = vector.broadcast %cst_112 : f32 to vector<8x128xf32>
    %266 = arith.subf %0, %265 : vector<8x128xf32>
    %cst_113 = arith.constant 1.250000e+00 : f32
    %267 = vector.broadcast %cst_113 : f32 to vector<8x128xf32>
    %268 = arith.mulf %266, %267 : vector<8x128xf32>
    %269 = arith.mulf %268, %165 : vector<8x128xf32>
    %cst_114 = arith.constant 1.000000e+00 : f32
    %270 = vector.broadcast %cst_114 : f32 to vector<8x128xf32>
    %271 = arith.subf %270, %0 : vector<8x128xf32>
    %cst_115 = arith.constant 1.250000e+00 : f32
    %272 = vector.broadcast %cst_115 : f32 to vector<8x128xf32>
    %273 = arith.mulf %271, %272 : vector<8x128xf32>
    %274 = arith.mulf %273, %176 : vector<8x128xf32>
    %275 = arith.addf %269, %274 : vector<8x128xf32>
    %cst_116 = arith.constant 2.000000e-01 : f32
    %276 = vector.broadcast %cst_116 : f32 to vector<8x128xf32>
    %277 = arith.subf %0, %276 : vector<8x128xf32>
    %cst_117 = arith.constant 1.250000e+00 : f32
    %278 = vector.broadcast %cst_117 : f32 to vector<8x128xf32>
    %279 = arith.mulf %277, %278 : vector<8x128xf32>
    %280 = arith.mulf %279, %176 : vector<8x128xf32>
    %cst_118 = arith.constant 1.400000e+00 : f32
    %281 = vector.broadcast %cst_118 : f32 to vector<8x128xf32>
    %282 = arith.subf %281, %0 : vector<8x128xf32>
    %cst_119 = arith.constant 1.250000e+00 : f32
    %283 = vector.broadcast %cst_119 : f32 to vector<8x128xf32>
    %284 = arith.mulf %282, %283 : vector<8x128xf32>
    %285 = arith.mulf %284, %187 : vector<8x128xf32>
    %286 = arith.addf %280, %285 : vector<8x128xf32>
    %cst_120 = arith.constant 6.000000e-01 : f32
    %287 = vector.broadcast %cst_120 : f32 to vector<8x128xf32>
    %288 = arith.subf %0, %287 : vector<8x128xf32>
    %cst_121 = arith.constant 1.250000e+00 : f32
    %289 = vector.broadcast %cst_121 : f32 to vector<8x128xf32>
    %290 = arith.mulf %288, %289 : vector<8x128xf32>
    %291 = arith.mulf %290, %187 : vector<8x128xf32>
    %cst_122 = arith.constant 1.800000e+00 : f32
    %292 = vector.broadcast %cst_122 : f32 to vector<8x128xf32>
    %293 = arith.subf %292, %0 : vector<8x128xf32>
    %cst_123 = arith.constant 1.250000e+00 : f32
    %294 = vector.broadcast %cst_123 : f32 to vector<8x128xf32>
    %295 = arith.mulf %293, %294 : vector<8x128xf32>
    %296 = arith.mulf %295, %198 : vector<8x128xf32>
    %297 = arith.addf %291, %296 : vector<8x128xf32>
    %cst_124 = arith.constant 1.000000e+00 : f32
    %298 = vector.broadcast %cst_124 : f32 to vector<8x128xf32>
    %299 = arith.subf %0, %298 : vector<8x128xf32>
    %cst_125 = arith.constant 1.250000e+00 : f32
    %300 = vector.broadcast %cst_125 : f32 to vector<8x128xf32>
    %301 = arith.mulf %299, %300 : vector<8x128xf32>
    %302 = arith.mulf %301, %198 : vector<8x128xf32>
    %cst_126 = arith.constant 2.200000e+00 : f32
    %303 = vector.broadcast %cst_126 : f32 to vector<8x128xf32>
    %304 = arith.subf %303, %0 : vector<8x128xf32>
    %cst_127 = arith.constant 1.250000e+00 : f32
    %305 = vector.broadcast %cst_127 : f32 to vector<8x128xf32>
    %306 = arith.mulf %304, %305 : vector<8x128xf32>
    %307 = arith.mulf %306, %209 : vector<8x128xf32>
    %308 = arith.addf %302, %307 : vector<8x128xf32>
    %cst_128 = arith.constant -2.200000e+00 : f32
    %309 = vector.broadcast %cst_128 : f32 to vector<8x128xf32>
    %310 = arith.subf %0, %309 : vector<8x128xf32>
    %cst_129 = arith.constant 0.833333313 : f32
    %311 = vector.broadcast %cst_129 : f32 to vector<8x128xf32>
    %312 = arith.mulf %310, %311 : vector<8x128xf32>
    %313 = arith.mulf %312, %220 : vector<8x128xf32>
    %cst_130 = arith.constant -6.000000e-01 : f32
    %314 = vector.broadcast %cst_130 : f32 to vector<8x128xf32>
    %315 = arith.subf %314, %0 : vector<8x128xf32>
    %cst_131 = arith.constant 0.833333313 : f32
    %316 = vector.broadcast %cst_131 : f32 to vector<8x128xf32>
    %317 = arith.mulf %315, %316 : vector<8x128xf32>
    %318 = arith.mulf %317, %231 : vector<8x128xf32>
    %319 = arith.addf %313, %318 : vector<8x128xf32>
    %cst_132 = arith.constant -1.800000e+00 : f32
    %320 = vector.broadcast %cst_132 : f32 to vector<8x128xf32>
    %321 = arith.subf %0, %320 : vector<8x128xf32>
    %cst_133 = arith.constant 0.833333313 : f32
    %322 = vector.broadcast %cst_133 : f32 to vector<8x128xf32>
    %323 = arith.mulf %321, %322 : vector<8x128xf32>
    %324 = arith.mulf %323, %231 : vector<8x128xf32>
    %cst_134 = arith.constant -2.000000e-01 : f32
    %325 = vector.broadcast %cst_134 : f32 to vector<8x128xf32>
    %326 = arith.subf %325, %0 : vector<8x128xf32>
    %cst_135 = arith.constant 0.833333313 : f32
    %327 = vector.broadcast %cst_135 : f32 to vector<8x128xf32>
    %328 = arith.mulf %326, %327 : vector<8x128xf32>
    %329 = arith.mulf %328, %242 : vector<8x128xf32>
    %330 = arith.addf %324, %329 : vector<8x128xf32>
    %cst_136 = arith.constant -1.400000e+00 : f32
    %331 = vector.broadcast %cst_136 : f32 to vector<8x128xf32>
    %332 = arith.subf %0, %331 : vector<8x128xf32>
    %cst_137 = arith.constant 0.833333313 : f32
    %333 = vector.broadcast %cst_137 : f32 to vector<8x128xf32>
    %334 = arith.mulf %332, %333 : vector<8x128xf32>
    %335 = arith.mulf %334, %242 : vector<8x128xf32>
    %cst_138 = arith.constant 2.000000e-01 : f32
    %336 = vector.broadcast %cst_138 : f32 to vector<8x128xf32>
    %337 = arith.subf %336, %0 : vector<8x128xf32>
    %cst_139 = arith.constant 0.833333313 : f32
    %338 = vector.broadcast %cst_139 : f32 to vector<8x128xf32>
    %339 = arith.mulf %337, %338 : vector<8x128xf32>
    %340 = arith.mulf %339, %253 : vector<8x128xf32>
    %341 = arith.addf %335, %340 : vector<8x128xf32>
    %cst_140 = arith.constant -1.000000e+00 : f32
    %342 = vector.broadcast %cst_140 : f32 to vector<8x128xf32>
    %343 = arith.subf %0, %342 : vector<8x128xf32>
    %cst_141 = arith.constant 0.833333313 : f32
    %344 = vector.broadcast %cst_141 : f32 to vector<8x128xf32>
    %345 = arith.mulf %343, %344 : vector<8x128xf32>
    %346 = arith.mulf %345, %253 : vector<8x128xf32>
    %cst_142 = arith.constant 6.000000e-01 : f32
    %347 = vector.broadcast %cst_142 : f32 to vector<8x128xf32>
    %348 = arith.subf %347, %0 : vector<8x128xf32>
    %cst_143 = arith.constant 0.833333313 : f32
    %349 = vector.broadcast %cst_143 : f32 to vector<8x128xf32>
    %350 = arith.mulf %348, %349 : vector<8x128xf32>
    %351 = arith.mulf %350, %264 : vector<8x128xf32>
    %352 = arith.addf %346, %351 : vector<8x128xf32>
    %cst_144 = arith.constant -6.000000e-01 : f32
    %353 = vector.broadcast %cst_144 : f32 to vector<8x128xf32>
    %354 = arith.subf %0, %353 : vector<8x128xf32>
    %cst_145 = arith.constant 0.833333313 : f32
    %355 = vector.broadcast %cst_145 : f32 to vector<8x128xf32>
    %356 = arith.mulf %354, %355 : vector<8x128xf32>
    %357 = arith.mulf %356, %264 : vector<8x128xf32>
    %cst_146 = arith.constant 1.000000e+00 : f32
    %358 = vector.broadcast %cst_146 : f32 to vector<8x128xf32>
    %359 = arith.subf %358, %0 : vector<8x128xf32>
    %cst_147 = arith.constant 0.833333313 : f32
    %360 = vector.broadcast %cst_147 : f32 to vector<8x128xf32>
    %361 = arith.mulf %359, %360 : vector<8x128xf32>
    %362 = arith.mulf %361, %275 : vector<8x128xf32>
    %363 = arith.addf %357, %362 : vector<8x128xf32>
    %cst_148 = arith.constant -2.000000e-01 : f32
    %364 = vector.broadcast %cst_148 : f32 to vector<8x128xf32>
    %365 = arith.subf %0, %364 : vector<8x128xf32>
    %cst_149 = arith.constant 0.833333313 : f32
    %366 = vector.broadcast %cst_149 : f32 to vector<8x128xf32>
    %367 = arith.mulf %365, %366 : vector<8x128xf32>
    %368 = arith.mulf %367, %275 : vector<8x128xf32>
    %cst_150 = arith.constant 1.400000e+00 : f32
    %369 = vector.broadcast %cst_150 : f32 to vector<8x128xf32>
    %370 = arith.subf %369, %0 : vector<8x128xf32>
    %cst_151 = arith.constant 0.833333313 : f32
    %371 = vector.broadcast %cst_151 : f32 to vector<8x128xf32>
    %372 = arith.mulf %370, %371 : vector<8x128xf32>
    %373 = arith.mulf %372, %286 : vector<8x128xf32>
    %374 = arith.addf %368, %373 : vector<8x128xf32>
    %cst_152 = arith.constant 2.000000e-01 : f32
    %375 = vector.broadcast %cst_152 : f32 to vector<8x128xf32>
    %376 = arith.subf %0, %375 : vector<8x128xf32>
    %cst_153 = arith.constant 0.833333313 : f32
    %377 = vector.broadcast %cst_153 : f32 to vector<8x128xf32>
    %378 = arith.mulf %376, %377 : vector<8x128xf32>
    %379 = arith.mulf %378, %286 : vector<8x128xf32>
    %cst_154 = arith.constant 1.800000e+00 : f32
    %380 = vector.broadcast %cst_154 : f32 to vector<8x128xf32>
    %381 = arith.subf %380, %0 : vector<8x128xf32>
    %cst_155 = arith.constant 0.833333313 : f32
    %382 = vector.broadcast %cst_155 : f32 to vector<8x128xf32>
    %383 = arith.mulf %381, %382 : vector<8x128xf32>
    %384 = arith.mulf %383, %297 : vector<8x128xf32>
    %385 = arith.addf %379, %384 : vector<8x128xf32>
    %cst_156 = arith.constant 6.000000e-01 : f32
    %386 = vector.broadcast %cst_156 : f32 to vector<8x128xf32>
    %387 = arith.subf %0, %386 : vector<8x128xf32>
    %cst_157 = arith.constant 0.833333313 : f32
    %388 = vector.broadcast %cst_157 : f32 to vector<8x128xf32>
    %389 = arith.mulf %387, %388 : vector<8x128xf32>
    %390 = arith.mulf %389, %297 : vector<8x128xf32>
    %cst_158 = arith.constant 2.200000e+00 : f32
    %391 = vector.broadcast %cst_158 : f32 to vector<8x128xf32>
    %392 = arith.subf %391, %0 : vector<8x128xf32>
    %cst_159 = arith.constant 0.833333313 : f32
    %393 = vector.broadcast %cst_159 : f32 to vector<8x128xf32>
    %394 = arith.mulf %392, %393 : vector<8x128xf32>
    %395 = arith.mulf %394, %308 : vector<8x128xf32>
    %396 = arith.addf %390, %395 : vector<8x128xf32>
    %397 = tpu.concatenate %319, %330, %341, %352, %363, %374, %385, %396 in 1 : vector<8x128xf32>, vector<8x128xf32>, vector<8x128xf32>, vector<8x128xf32>, vector<8x128xf32>, vector<8x128xf32>, vector<8x128xf32>, vector<8x128xf32> -> vector<8x1024xf32>
    %cst_160 = arith.constant dense<0.000000e+00> : vector<8x128xf32>
    %398 = tpu.matmul %397, %2, %cst_160 {dimension_numbers = #tpu.dot_dimension_numbers<[1], [0], [0], [1], [0, 0, 1, 1], [], []>} : vector<8x1024xf32>, vector<1024x128xf32>, vector<8x128xf32> -> vector<8x128xf32>
    %399 = arith.addf %11, %398 : vector<8x128xf32>
    %c0_161 = arith.constant 0 : index
    %c0_162 = arith.constant 0 : index
    %400 = vector.load %arg4[%c0_161, %c0_162] : memref<128x256xf32, #tpu.memory_space<vmem>>, vector<128x256xf32>
    %c0_163 = arith.constant 0 : index
    %c0_164 = arith.constant 0 : index
    %401 = vector.load %arg5[%c0_163, %c0_164] : memref<1024x256xf32, #tpu.memory_space<vmem>>, vector<1024x256xf32>
    %cst_165 = arith.constant 0.000000e+00 : f32
    %402 = vector.broadcast %cst_165 : f32 to vector<8x128xf32>
    %403 = arith.subf %402, %399 : vector<8x128xf32>
    %404 = math.exp %403 : vector<8x128xf32>
    %cst_166 = arith.constant 1.000000e+00 : f32
    %405 = vector.broadcast %cst_166 : f32 to vector<8x128xf32>
    %406 = arith.addf %405, %404 : vector<8x128xf32>
    %cst_167 = arith.constant 1.000000e+00 : f32
    %407 = vector.broadcast %cst_167 : f32 to vector<8x128xf32>
    %408 = arith.divf %407, %406 : vector<8x128xf32>
    %409 = arith.mulf %399, %408 : vector<8x128xf32>
    %cst_168 = arith.constant dense<0.000000e+00> : vector<8x256xf32>
    %410 = tpu.matmul %409, %400, %cst_168 {dimension_numbers = #tpu.dot_dimension_numbers<[1], [0], [0], [1], [0, 0, 1, 1], [], []>} : vector<8x128xf32>, vector<128x256xf32>, vector<8x256xf32> -> vector<8x256xf32>
    %cst_169 = arith.constant -2.200000e+00 : f32
    %411 = vector.broadcast %cst_169 : f32 to vector<8x128xf32>
    %412 = arith.cmpf oge, %399, %411 : vector<8x128xf32>
    %cst_170 = arith.constant -1.800000e+00 : f32
    %413 = vector.broadcast %cst_170 : f32 to vector<8x128xf32>
    %414 = arith.cmpf olt, %399, %413 : vector<8x128xf32>
    %415 = arith.andi %412, %414 : vector<8x128xi1>
    %cst_171 = arith.constant 1.000000e+00 : f32
    %cst_172 = arith.constant 0.000000e+00 : f32
    %416 = vector.broadcast %cst_171 : f32 to vector<8x128xf32>
    %417 = vector.broadcast %cst_172 : f32 to vector<8x128xf32>
    %418 = arith.select %415, %416, %417 : vector<8x128xi1>, vector<8x128xf32>
    %cst_173 = arith.constant -1.800000e+00 : f32
    %419 = vector.broadcast %cst_173 : f32 to vector<8x128xf32>
    %420 = arith.cmpf oge, %399, %419 : vector<8x128xf32>
    %cst_174 = arith.constant -1.400000e+00 : f32
    %421 = vector.broadcast %cst_174 : f32 to vector<8x128xf32>
    %422 = arith.cmpf olt, %399, %421 : vector<8x128xf32>
    %423 = arith.andi %420, %422 : vector<8x128xi1>
    %cst_175 = arith.constant 1.000000e+00 : f32
    %cst_176 = arith.constant 0.000000e+00 : f32
    %424 = vector.broadcast %cst_175 : f32 to vector<8x128xf32>
    %425 = vector.broadcast %cst_176 : f32 to vector<8x128xf32>
    %426 = arith.select %423, %424, %425 : vector<8x128xi1>, vector<8x128xf32>
    %cst_177 = arith.constant -1.400000e+00 : f32
    %427 = vector.broadcast %cst_177 : f32 to vector<8x128xf32>
    %428 = arith.cmpf oge, %399, %427 : vector<8x128xf32>
    %cst_178 = arith.constant -1.000000e+00 : f32
    %429 = vector.broadcast %cst_178 : f32 to vector<8x128xf32>
    %430 = arith.cmpf olt, %399, %429 : vector<8x128xf32>
    %431 = arith.andi %428, %430 : vector<8x128xi1>
    %cst_179 = arith.constant 1.000000e+00 : f32
    %cst_180 = arith.constant 0.000000e+00 : f32
    %432 = vector.broadcast %cst_179 : f32 to vector<8x128xf32>
    %433 = vector.broadcast %cst_180 : f32 to vector<8x128xf32>
    %434 = arith.select %431, %432, %433 : vector<8x128xi1>, vector<8x128xf32>
    %cst_181 = arith.constant -1.000000e+00 : f32
    %435 = vector.broadcast %cst_181 : f32 to vector<8x128xf32>
    %436 = arith.cmpf oge, %399, %435 : vector<8x128xf32>
    %cst_182 = arith.constant -6.000000e-01 : f32
    %437 = vector.broadcast %cst_182 : f32 to vector<8x128xf32>
    %438 = arith.cmpf olt, %399, %437 : vector<8x128xf32>
    %439 = arith.andi %436, %438 : vector<8x128xi1>
    %cst_183 = arith.constant 1.000000e+00 : f32
    %cst_184 = arith.constant 0.000000e+00 : f32
    %440 = vector.broadcast %cst_183 : f32 to vector<8x128xf32>
    %441 = vector.broadcast %cst_184 : f32 to vector<8x128xf32>
    %442 = arith.select %439, %440, %441 : vector<8x128xi1>, vector<8x128xf32>
    %cst_185 = arith.constant -6.000000e-01 : f32
    %443 = vector.broadcast %cst_185 : f32 to vector<8x128xf32>
    %444 = arith.cmpf oge, %399, %443 : vector<8x128xf32>
    %cst_186 = arith.constant -2.000000e-01 : f32
    %445 = vector.broadcast %cst_186 : f32 to vector<8x128xf32>
    %446 = arith.cmpf olt, %399, %445 : vector<8x128xf32>
    %447 = arith.andi %444, %446 : vector<8x128xi1>
    %cst_187 = arith.constant 1.000000e+00 : f32
    %cst_188 = arith.constant 0.000000e+00 : f32
    %448 = vector.broadcast %cst_187 : f32 to vector<8x128xf32>
    %449 = vector.broadcast %cst_188 : f32 to vector<8x128xf32>
    %450 = arith.select %447, %448, %449 : vector<8x128xi1>, vector<8x128xf32>
    %cst_189 = arith.constant -2.000000e-01 : f32
    %451 = vector.broadcast %cst_189 : f32 to vector<8x128xf32>
    %452 = arith.cmpf oge, %399, %451 : vector<8x128xf32>
    %cst_190 = arith.constant 2.000000e-01 : f32
    %453 = vector.broadcast %cst_190 : f32 to vector<8x128xf32>
    %454 = arith.cmpf olt, %399, %453 : vector<8x128xf32>
    %455 = arith.andi %452, %454 : vector<8x128xi1>
    %cst_191 = arith.constant 1.000000e+00 : f32
    %cst_192 = arith.constant 0.000000e+00 : f32
    %456 = vector.broadcast %cst_191 : f32 to vector<8x128xf32>
    %457 = vector.broadcast %cst_192 : f32 to vector<8x128xf32>
    %458 = arith.select %455, %456, %457 : vector<8x128xi1>, vector<8x128xf32>
    %cst_193 = arith.constant 2.000000e-01 : f32
    %459 = vector.broadcast %cst_193 : f32 to vector<8x128xf32>
    %460 = arith.cmpf oge, %399, %459 : vector<8x128xf32>
    %cst_194 = arith.constant 6.000000e-01 : f32
    %461 = vector.broadcast %cst_194 : f32 to vector<8x128xf32>
    %462 = arith.cmpf olt, %399, %461 : vector<8x128xf32>
    %463 = arith.andi %460, %462 : vector<8x128xi1>
    %cst_195 = arith.constant 1.000000e+00 : f32
    %cst_196 = arith.constant 0.000000e+00 : f32
    %464 = vector.broadcast %cst_195 : f32 to vector<8x128xf32>
    %465 = vector.broadcast %cst_196 : f32 to vector<8x128xf32>
    %466 = arith.select %463, %464, %465 : vector<8x128xi1>, vector<8x128xf32>
    %cst_197 = arith.constant 6.000000e-01 : f32
    %467 = vector.broadcast %cst_197 : f32 to vector<8x128xf32>
    %468 = arith.cmpf oge, %399, %467 : vector<8x128xf32>
    %cst_198 = arith.constant 1.000000e+00 : f32
    %469 = vector.broadcast %cst_198 : f32 to vector<8x128xf32>
    %470 = arith.cmpf olt, %399, %469 : vector<8x128xf32>
    %471 = arith.andi %468, %470 : vector<8x128xi1>
    %cst_199 = arith.constant 1.000000e+00 : f32
    %cst_200 = arith.constant 0.000000e+00 : f32
    %472 = vector.broadcast %cst_199 : f32 to vector<8x128xf32>
    %473 = vector.broadcast %cst_200 : f32 to vector<8x128xf32>
    %474 = arith.select %471, %472, %473 : vector<8x128xi1>, vector<8x128xf32>
    %cst_201 = arith.constant 1.000000e+00 : f32
    %475 = vector.broadcast %cst_201 : f32 to vector<8x128xf32>
    %476 = arith.cmpf oge, %399, %475 : vector<8x128xf32>
    %cst_202 = arith.constant 1.400000e+00 : f32
    %477 = vector.broadcast %cst_202 : f32 to vector<8x128xf32>
    %478 = arith.cmpf olt, %399, %477 : vector<8x128xf32>
    %479 = arith.andi %476, %478 : vector<8x128xi1>
    %cst_203 = arith.constant 1.000000e+00 : f32
    %cst_204 = arith.constant 0.000000e+00 : f32
    %480 = vector.broadcast %cst_203 : f32 to vector<8x128xf32>
    %481 = vector.broadcast %cst_204 : f32 to vector<8x128xf32>
    %482 = arith.select %479, %480, %481 : vector<8x128xi1>, vector<8x128xf32>
    %cst_205 = arith.constant 1.400000e+00 : f32
    %483 = vector.broadcast %cst_205 : f32 to vector<8x128xf32>
    %484 = arith.cmpf oge, %399, %483 : vector<8x128xf32>
    %cst_206 = arith.constant 1.800000e+00 : f32
    %485 = vector.broadcast %cst_206 : f32 to vector<8x128xf32>
    %486 = arith.cmpf olt, %399, %485 : vector<8x128xf32>
    %487 = arith.andi %484, %486 : vector<8x128xi1>
    %cst_207 = arith.constant 1.000000e+00 : f32
    %cst_208 = arith.constant 0.000000e+00 : f32
    %488 = vector.broadcast %cst_207 : f32 to vector<8x128xf32>
    %489 = vector.broadcast %cst_208 : f32 to vector<8x128xf32>
    %490 = arith.select %487, %488, %489 : vector<8x128xi1>, vector<8x128xf32>
    %cst_209 = arith.constant 1.800000e+00 : f32
    %491 = vector.broadcast %cst_209 : f32 to vector<8x128xf32>
    %492 = arith.cmpf oge, %399, %491 : vector<8x128xf32>
    %cst_210 = arith.constant 2.200000e+00 : f32
    %493 = vector.broadcast %cst_210 : f32 to vector<8x128xf32>
    %494 = arith.cmpf olt, %399, %493 : vector<8x128xf32>
    %495 = arith.andi %492, %494 : vector<8x128xi1>
    %cst_211 = arith.constant 1.000000e+00 : f32
    %cst_212 = arith.constant 0.000000e+00 : f32
    %496 = vector.broadcast %cst_211 : f32 to vector<8x128xf32>
    %497 = vector.broadcast %cst_212 : f32 to vector<8x128xf32>
    %498 = arith.select %495, %496, %497 : vector<8x128xi1>, vector<8x128xf32>
    %cst_213 = arith.constant -2.200000e+00 : f32
    %499 = vector.broadcast %cst_213 : f32 to vector<8x128xf32>
    %500 = arith.subf %399, %499 : vector<8x128xf32>
    %cst_214 = arith.constant 2.500000e+00 : f32
    %501 = vector.broadcast %cst_214 : f32 to vector<8x128xf32>
    %502 = arith.mulf %500, %501 : vector<8x128xf32>
    %503 = arith.mulf %502, %418 : vector<8x128xf32>
    %cst_215 = arith.constant -1.400000e+00 : f32
    %504 = vector.broadcast %cst_215 : f32 to vector<8x128xf32>
    %505 = arith.subf %504, %399 : vector<8x128xf32>
    %cst_216 = arith.constant 2.500000e+00 : f32
    %506 = vector.broadcast %cst_216 : f32 to vector<8x128xf32>
    %507 = arith.mulf %505, %506 : vector<8x128xf32>
    %508 = arith.mulf %507, %426 : vector<8x128xf32>
    %509 = arith.addf %503, %508 : vector<8x128xf32>
    %cst_217 = arith.constant -1.800000e+00 : f32
    %510 = vector.broadcast %cst_217 : f32 to vector<8x128xf32>
    %511 = arith.subf %399, %510 : vector<8x128xf32>
    %cst_218 = arith.constant 2.500000e+00 : f32
    %512 = vector.broadcast %cst_218 : f32 to vector<8x128xf32>
    %513 = arith.mulf %511, %512 : vector<8x128xf32>
    %514 = arith.mulf %513, %426 : vector<8x128xf32>
    %cst_219 = arith.constant -1.000000e+00 : f32
    %515 = vector.broadcast %cst_219 : f32 to vector<8x128xf32>
    %516 = arith.subf %515, %399 : vector<8x128xf32>
    %cst_220 = arith.constant 2.500000e+00 : f32
    %517 = vector.broadcast %cst_220 : f32 to vector<8x128xf32>
    %518 = arith.mulf %516, %517 : vector<8x128xf32>
    %519 = arith.mulf %518, %434 : vector<8x128xf32>
    %520 = arith.addf %514, %519 : vector<8x128xf32>
    %cst_221 = arith.constant -1.400000e+00 : f32
    %521 = vector.broadcast %cst_221 : f32 to vector<8x128xf32>
    %522 = arith.subf %399, %521 : vector<8x128xf32>
    %cst_222 = arith.constant 2.500000e+00 : f32
    %523 = vector.broadcast %cst_222 : f32 to vector<8x128xf32>
    %524 = arith.mulf %522, %523 : vector<8x128xf32>
    %525 = arith.mulf %524, %434 : vector<8x128xf32>
    %cst_223 = arith.constant -6.000000e-01 : f32
    %526 = vector.broadcast %cst_223 : f32 to vector<8x128xf32>
    %527 = arith.subf %526, %399 : vector<8x128xf32>
    %cst_224 = arith.constant 2.500000e+00 : f32
    %528 = vector.broadcast %cst_224 : f32 to vector<8x128xf32>
    %529 = arith.mulf %527, %528 : vector<8x128xf32>
    %530 = arith.mulf %529, %442 : vector<8x128xf32>
    %531 = arith.addf %525, %530 : vector<8x128xf32>
    %cst_225 = arith.constant -1.000000e+00 : f32
    %532 = vector.broadcast %cst_225 : f32 to vector<8x128xf32>
    %533 = arith.subf %399, %532 : vector<8x128xf32>
    %cst_226 = arith.constant 2.500000e+00 : f32
    %534 = vector.broadcast %cst_226 : f32 to vector<8x128xf32>
    %535 = arith.mulf %533, %534 : vector<8x128xf32>
    %536 = arith.mulf %535, %442 : vector<8x128xf32>
    %cst_227 = arith.constant -2.000000e-01 : f32
    %537 = vector.broadcast %cst_227 : f32 to vector<8x128xf32>
    %538 = arith.subf %537, %399 : vector<8x128xf32>
    %cst_228 = arith.constant 2.500000e+00 : f32
    %539 = vector.broadcast %cst_228 : f32 to vector<8x128xf32>
    %540 = arith.mulf %538, %539 : vector<8x128xf32>
    %541 = arith.mulf %540, %450 : vector<8x128xf32>
    %542 = arith.addf %536, %541 : vector<8x128xf32>
    %cst_229 = arith.constant -6.000000e-01 : f32
    %543 = vector.broadcast %cst_229 : f32 to vector<8x128xf32>
    %544 = arith.subf %399, %543 : vector<8x128xf32>
    %cst_230 = arith.constant 2.500000e+00 : f32
    %545 = vector.broadcast %cst_230 : f32 to vector<8x128xf32>
    %546 = arith.mulf %544, %545 : vector<8x128xf32>
    %547 = arith.mulf %546, %450 : vector<8x128xf32>
    %cst_231 = arith.constant 2.000000e-01 : f32
    %548 = vector.broadcast %cst_231 : f32 to vector<8x128xf32>
    %549 = arith.subf %548, %399 : vector<8x128xf32>
    %cst_232 = arith.constant 2.500000e+00 : f32
    %550 = vector.broadcast %cst_232 : f32 to vector<8x128xf32>
    %551 = arith.mulf %549, %550 : vector<8x128xf32>
    %552 = arith.mulf %551, %458 : vector<8x128xf32>
    %553 = arith.addf %547, %552 : vector<8x128xf32>
    %cst_233 = arith.constant -2.000000e-01 : f32
    %554 = vector.broadcast %cst_233 : f32 to vector<8x128xf32>
    %555 = arith.subf %399, %554 : vector<8x128xf32>
    %cst_234 = arith.constant 2.500000e+00 : f32
    %556 = vector.broadcast %cst_234 : f32 to vector<8x128xf32>
    %557 = arith.mulf %555, %556 : vector<8x128xf32>
    %558 = arith.mulf %557, %458 : vector<8x128xf32>
    %cst_235 = arith.constant 6.000000e-01 : f32
    %559 = vector.broadcast %cst_235 : f32 to vector<8x128xf32>
    %560 = arith.subf %559, %399 : vector<8x128xf32>
    %cst_236 = arith.constant 2.500000e+00 : f32
    %561 = vector.broadcast %cst_236 : f32 to vector<8x128xf32>
    %562 = arith.mulf %560, %561 : vector<8x128xf32>
    %563 = arith.mulf %562, %466 : vector<8x128xf32>
    %564 = arith.addf %558, %563 : vector<8x128xf32>
    %cst_237 = arith.constant 2.000000e-01 : f32
    %565 = vector.broadcast %cst_237 : f32 to vector<8x128xf32>
    %566 = arith.subf %399, %565 : vector<8x128xf32>
    %cst_238 = arith.constant 2.500000e+00 : f32
    %567 = vector.broadcast %cst_238 : f32 to vector<8x128xf32>
    %568 = arith.mulf %566, %567 : vector<8x128xf32>
    %569 = arith.mulf %568, %466 : vector<8x128xf32>
    %cst_239 = arith.constant 1.000000e+00 : f32
    %570 = vector.broadcast %cst_239 : f32 to vector<8x128xf32>
    %571 = arith.subf %570, %399 : vector<8x128xf32>
    %cst_240 = arith.constant 2.500000e+00 : f32
    %572 = vector.broadcast %cst_240 : f32 to vector<8x128xf32>
    %573 = arith.mulf %571, %572 : vector<8x128xf32>
    %574 = arith.mulf %573, %474 : vector<8x128xf32>
    %575 = arith.addf %569, %574 : vector<8x128xf32>
    %cst_241 = arith.constant 6.000000e-01 : f32
    %576 = vector.broadcast %cst_241 : f32 to vector<8x128xf32>
    %577 = arith.subf %399, %576 : vector<8x128xf32>
    %cst_242 = arith.constant 2.500000e+00 : f32
    %578 = vector.broadcast %cst_242 : f32 to vector<8x128xf32>
    %579 = arith.mulf %577, %578 : vector<8x128xf32>
    %580 = arith.mulf %579, %474 : vector<8x128xf32>
    %cst_243 = arith.constant 1.400000e+00 : f32
    %581 = vector.broadcast %cst_243 : f32 to vector<8x128xf32>
    %582 = arith.subf %581, %399 : vector<8x128xf32>
    %cst_244 = arith.constant 2.500000e+00 : f32
    %583 = vector.broadcast %cst_244 : f32 to vector<8x128xf32>
    %584 = arith.mulf %582, %583 : vector<8x128xf32>
    %585 = arith.mulf %584, %482 : vector<8x128xf32>
    %586 = arith.addf %580, %585 : vector<8x128xf32>
    %cst_245 = arith.constant 1.000000e+00 : f32
    %587 = vector.broadcast %cst_245 : f32 to vector<8x128xf32>
    %588 = arith.subf %399, %587 : vector<8x128xf32>
    %cst_246 = arith.constant 2.500000e+00 : f32
    %589 = vector.broadcast %cst_246 : f32 to vector<8x128xf32>
    %590 = arith.mulf %588, %589 : vector<8x128xf32>
    %591 = arith.mulf %590, %482 : vector<8x128xf32>
    %cst_247 = arith.constant 1.800000e+00 : f32
    %592 = vector.broadcast %cst_247 : f32 to vector<8x128xf32>
    %593 = arith.subf %592, %399 : vector<8x128xf32>
    %cst_248 = arith.constant 2.500000e+00 : f32
    %594 = vector.broadcast %cst_248 : f32 to vector<8x128xf32>
    %595 = arith.mulf %593, %594 : vector<8x128xf32>
    %596 = arith.mulf %595, %490 : vector<8x128xf32>
    %597 = arith.addf %591, %596 : vector<8x128xf32>
    %cst_249 = arith.constant 1.400000e+00 : f32
    %598 = vector.broadcast %cst_249 : f32 to vector<8x128xf32>
    %599 = arith.subf %399, %598 : vector<8x128xf32>
    %cst_250 = arith.constant 2.500000e+00 : f32
    %600 = vector.broadcast %cst_250 : f32 to vector<8x128xf32>
    %601 = arith.mulf %599, %600 : vector<8x128xf32>
    %602 = arith.mulf %601, %490 : vector<8x128xf32>
    %cst_251 = arith.constant 2.200000e+00 : f32
    %603 = vector.broadcast %cst_251 : f32 to vector<8x128xf32>
    %604 = arith.subf %603, %399 : vector<8x128xf32>
    %cst_252 = arith.constant 2.500000e+00 : f32
    %605 = vector.broadcast %cst_252 : f32 to vector<8x128xf32>
    %606 = arith.mulf %604, %605 : vector<8x128xf32>
    %607 = arith.mulf %606, %498 : vector<8x128xf32>
    %608 = arith.addf %602, %607 : vector<8x128xf32>
    %cst_253 = arith.constant -2.200000e+00 : f32
    %609 = vector.broadcast %cst_253 : f32 to vector<8x128xf32>
    %610 = arith.subf %399, %609 : vector<8x128xf32>
    %cst_254 = arith.constant 1.250000e+00 : f32
    %611 = vector.broadcast %cst_254 : f32 to vector<8x128xf32>
    %612 = arith.mulf %610, %611 : vector<8x128xf32>
    %613 = arith.mulf %612, %509 : vector<8x128xf32>
    %cst_255 = arith.constant -1.000000e+00 : f32
    %614 = vector.broadcast %cst_255 : f32 to vector<8x128xf32>
    %615 = arith.subf %614, %399 : vector<8x128xf32>
    %cst_256 = arith.constant 1.250000e+00 : f32
    %616 = vector.broadcast %cst_256 : f32 to vector<8x128xf32>
    %617 = arith.mulf %615, %616 : vector<8x128xf32>
    %618 = arith.mulf %617, %520 : vector<8x128xf32>
    %619 = arith.addf %613, %618 : vector<8x128xf32>
    %cst_257 = arith.constant -1.800000e+00 : f32
    %620 = vector.broadcast %cst_257 : f32 to vector<8x128xf32>
    %621 = arith.subf %399, %620 : vector<8x128xf32>
    %cst_258 = arith.constant 1.250000e+00 : f32
    %622 = vector.broadcast %cst_258 : f32 to vector<8x128xf32>
    %623 = arith.mulf %621, %622 : vector<8x128xf32>
    %624 = arith.mulf %623, %520 : vector<8x128xf32>
    %cst_259 = arith.constant -6.000000e-01 : f32
    %625 = vector.broadcast %cst_259 : f32 to vector<8x128xf32>
    %626 = arith.subf %625, %399 : vector<8x128xf32>
    %cst_260 = arith.constant 1.250000e+00 : f32
    %627 = vector.broadcast %cst_260 : f32 to vector<8x128xf32>
    %628 = arith.mulf %626, %627 : vector<8x128xf32>
    %629 = arith.mulf %628, %531 : vector<8x128xf32>
    %630 = arith.addf %624, %629 : vector<8x128xf32>
    %cst_261 = arith.constant -1.400000e+00 : f32
    %631 = vector.broadcast %cst_261 : f32 to vector<8x128xf32>
    %632 = arith.subf %399, %631 : vector<8x128xf32>
    %cst_262 = arith.constant 1.250000e+00 : f32
    %633 = vector.broadcast %cst_262 : f32 to vector<8x128xf32>
    %634 = arith.mulf %632, %633 : vector<8x128xf32>
    %635 = arith.mulf %634, %531 : vector<8x128xf32>
    %cst_263 = arith.constant -2.000000e-01 : f32
    %636 = vector.broadcast %cst_263 : f32 to vector<8x128xf32>
    %637 = arith.subf %636, %399 : vector<8x128xf32>
    %cst_264 = arith.constant 1.250000e+00 : f32
    %638 = vector.broadcast %cst_264 : f32 to vector<8x128xf32>
    %639 = arith.mulf %637, %638 : vector<8x128xf32>
    %640 = arith.mulf %639, %542 : vector<8x128xf32>
    %641 = arith.addf %635, %640 : vector<8x128xf32>
    %cst_265 = arith.constant -1.000000e+00 : f32
    %642 = vector.broadcast %cst_265 : f32 to vector<8x128xf32>
    %643 = arith.subf %399, %642 : vector<8x128xf32>
    %cst_266 = arith.constant 1.250000e+00 : f32
    %644 = vector.broadcast %cst_266 : f32 to vector<8x128xf32>
    %645 = arith.mulf %643, %644 : vector<8x128xf32>
    %646 = arith.mulf %645, %542 : vector<8x128xf32>
    %cst_267 = arith.constant 2.000000e-01 : f32
    %647 = vector.broadcast %cst_267 : f32 to vector<8x128xf32>
    %648 = arith.subf %647, %399 : vector<8x128xf32>
    %cst_268 = arith.constant 1.250000e+00 : f32
    %649 = vector.broadcast %cst_268 : f32 to vector<8x128xf32>
    %650 = arith.mulf %648, %649 : vector<8x128xf32>
    %651 = arith.mulf %650, %553 : vector<8x128xf32>
    %652 = arith.addf %646, %651 : vector<8x128xf32>
    %cst_269 = arith.constant -6.000000e-01 : f32
    %653 = vector.broadcast %cst_269 : f32 to vector<8x128xf32>
    %654 = arith.subf %399, %653 : vector<8x128xf32>
    %cst_270 = arith.constant 1.250000e+00 : f32
    %655 = vector.broadcast %cst_270 : f32 to vector<8x128xf32>
    %656 = arith.mulf %654, %655 : vector<8x128xf32>
    %657 = arith.mulf %656, %553 : vector<8x128xf32>
    %cst_271 = arith.constant 6.000000e-01 : f32
    %658 = vector.broadcast %cst_271 : f32 to vector<8x128xf32>
    %659 = arith.subf %658, %399 : vector<8x128xf32>
    %cst_272 = arith.constant 1.250000e+00 : f32
    %660 = vector.broadcast %cst_272 : f32 to vector<8x128xf32>
    %661 = arith.mulf %659, %660 : vector<8x128xf32>
    %662 = arith.mulf %661, %564 : vector<8x128xf32>
    %663 = arith.addf %657, %662 : vector<8x128xf32>
    %cst_273 = arith.constant -2.000000e-01 : f32
    %664 = vector.broadcast %cst_273 : f32 to vector<8x128xf32>
    %665 = arith.subf %399, %664 : vector<8x128xf32>
    %cst_274 = arith.constant 1.250000e+00 : f32
    %666 = vector.broadcast %cst_274 : f32 to vector<8x128xf32>
    %667 = arith.mulf %665, %666 : vector<8x128xf32>
    %668 = arith.mulf %667, %564 : vector<8x128xf32>
    %cst_275 = arith.constant 1.000000e+00 : f32
    %669 = vector.broadcast %cst_275 : f32 to vector<8x128xf32>
    %670 = arith.subf %669, %399 : vector<8x128xf32>
    %cst_276 = arith.constant 1.250000e+00 : f32
    %671 = vector.broadcast %cst_276 : f32 to vector<8x128xf32>
    %672 = arith.mulf %670, %671 : vector<8x128xf32>
    %673 = arith.mulf %672, %575 : vector<8x128xf32>
    %674 = arith.addf %668, %673 : vector<8x128xf32>
    %cst_277 = arith.constant 2.000000e-01 : f32
    %675 = vector.broadcast %cst_277 : f32 to vector<8x128xf32>
    %676 = arith.subf %399, %675 : vector<8x128xf32>
    %cst_278 = arith.constant 1.250000e+00 : f32
    %677 = vector.broadcast %cst_278 : f32 to vector<8x128xf32>
    %678 = arith.mulf %676, %677 : vector<8x128xf32>
    %679 = arith.mulf %678, %575 : vector<8x128xf32>
    %cst_279 = arith.constant 1.400000e+00 : f32
    %680 = vector.broadcast %cst_279 : f32 to vector<8x128xf32>
    %681 = arith.subf %680, %399 : vector<8x128xf32>
    %cst_280 = arith.constant 1.250000e+00 : f32
    %682 = vector.broadcast %cst_280 : f32 to vector<8x128xf32>
    %683 = arith.mulf %681, %682 : vector<8x128xf32>
    %684 = arith.mulf %683, %586 : vector<8x128xf32>
    %685 = arith.addf %679, %684 : vector<8x128xf32>
    %cst_281 = arith.constant 6.000000e-01 : f32
    %686 = vector.broadcast %cst_281 : f32 to vector<8x128xf32>
    %687 = arith.subf %399, %686 : vector<8x128xf32>
    %cst_282 = arith.constant 1.250000e+00 : f32
    %688 = vector.broadcast %cst_282 : f32 to vector<8x128xf32>
    %689 = arith.mulf %687, %688 : vector<8x128xf32>
    %690 = arith.mulf %689, %586 : vector<8x128xf32>
    %cst_283 = arith.constant 1.800000e+00 : f32
    %691 = vector.broadcast %cst_283 : f32 to vector<8x128xf32>
    %692 = arith.subf %691, %399 : vector<8x128xf32>
    %cst_284 = arith.constant 1.250000e+00 : f32
    %693 = vector.broadcast %cst_284 : f32 to vector<8x128xf32>
    %694 = arith.mulf %692, %693 : vector<8x128xf32>
    %695 = arith.mulf %694, %597 : vector<8x128xf32>
    %696 = arith.addf %690, %695 : vector<8x128xf32>
    %cst_285 = arith.constant 1.000000e+00 : f32
    %697 = vector.broadcast %cst_285 : f32 to vector<8x128xf32>
    %698 = arith.subf %399, %697 : vector<8x128xf32>
    %cst_286 = arith.constant 1.250000e+00 : f32
    %699 = vector.broadcast %cst_286 : f32 to vector<8x128xf32>
    %700 = arith.mulf %698, %699 : vector<8x128xf32>
    %701 = arith.mulf %700, %597 : vector<8x128xf32>
    %cst_287 = arith.constant 2.200000e+00 : f32
    %702 = vector.broadcast %cst_287 : f32 to vector<8x128xf32>
    %703 = arith.subf %702, %399 : vector<8x128xf32>
    %cst_288 = arith.constant 1.250000e+00 : f32
    %704 = vector.broadcast %cst_288 : f32 to vector<8x128xf32>
    %705 = arith.mulf %703, %704 : vector<8x128xf32>
    %706 = arith.mulf %705, %608 : vector<8x128xf32>
    %707 = arith.addf %701, %706 : vector<8x128xf32>
    %cst_289 = arith.constant -2.200000e+00 : f32
    %708 = vector.broadcast %cst_289 : f32 to vector<8x128xf32>
    %709 = arith.subf %399, %708 : vector<8x128xf32>
    %cst_290 = arith.constant 0.833333313 : f32
    %710 = vector.broadcast %cst_290 : f32 to vector<8x128xf32>
    %711 = arith.mulf %709, %710 : vector<8x128xf32>
    %712 = arith.mulf %711, %619 : vector<8x128xf32>
    %cst_291 = arith.constant -6.000000e-01 : f32
    %713 = vector.broadcast %cst_291 : f32 to vector<8x128xf32>
    %714 = arith.subf %713, %399 : vector<8x128xf32>
    %cst_292 = arith.constant 0.833333313 : f32
    %715 = vector.broadcast %cst_292 : f32 to vector<8x128xf32>
    %716 = arith.mulf %714, %715 : vector<8x128xf32>
    %717 = arith.mulf %716, %630 : vector<8x128xf32>
    %718 = arith.addf %712, %717 : vector<8x128xf32>
    %cst_293 = arith.constant -1.800000e+00 : f32
    %719 = vector.broadcast %cst_293 : f32 to vector<8x128xf32>
    %720 = arith.subf %399, %719 : vector<8x128xf32>
    %cst_294 = arith.constant 0.833333313 : f32
    %721 = vector.broadcast %cst_294 : f32 to vector<8x128xf32>
    %722 = arith.mulf %720, %721 : vector<8x128xf32>
    %723 = arith.mulf %722, %630 : vector<8x128xf32>
    %cst_295 = arith.constant -2.000000e-01 : f32
    %724 = vector.broadcast %cst_295 : f32 to vector<8x128xf32>
    %725 = arith.subf %724, %399 : vector<8x128xf32>
    %cst_296 = arith.constant 0.833333313 : f32
    %726 = vector.broadcast %cst_296 : f32 to vector<8x128xf32>
    %727 = arith.mulf %725, %726 : vector<8x128xf32>
    %728 = arith.mulf %727, %641 : vector<8x128xf32>
    %729 = arith.addf %723, %728 : vector<8x128xf32>
    %cst_297 = arith.constant -1.400000e+00 : f32
    %730 = vector.broadcast %cst_297 : f32 to vector<8x128xf32>
    %731 = arith.subf %399, %730 : vector<8x128xf32>
    %cst_298 = arith.constant 0.833333313 : f32
    %732 = vector.broadcast %cst_298 : f32 to vector<8x128xf32>
    %733 = arith.mulf %731, %732 : vector<8x128xf32>
    %734 = arith.mulf %733, %641 : vector<8x128xf32>
    %cst_299 = arith.constant 2.000000e-01 : f32
    %735 = vector.broadcast %cst_299 : f32 to vector<8x128xf32>
    %736 = arith.subf %735, %399 : vector<8x128xf32>
    %cst_300 = arith.constant 0.833333313 : f32
    %737 = vector.broadcast %cst_300 : f32 to vector<8x128xf32>
    %738 = arith.mulf %736, %737 : vector<8x128xf32>
    %739 = arith.mulf %738, %652 : vector<8x128xf32>
    %740 = arith.addf %734, %739 : vector<8x128xf32>
    %cst_301 = arith.constant -1.000000e+00 : f32
    %741 = vector.broadcast %cst_301 : f32 to vector<8x128xf32>
    %742 = arith.subf %399, %741 : vector<8x128xf32>
    %cst_302 = arith.constant 0.833333313 : f32
    %743 = vector.broadcast %cst_302 : f32 to vector<8x128xf32>
    %744 = arith.mulf %742, %743 : vector<8x128xf32>
    %745 = arith.mulf %744, %652 : vector<8x128xf32>
    %cst_303 = arith.constant 6.000000e-01 : f32
    %746 = vector.broadcast %cst_303 : f32 to vector<8x128xf32>
    %747 = arith.subf %746, %399 : vector<8x128xf32>
    %cst_304 = arith.constant 0.833333313 : f32
    %748 = vector.broadcast %cst_304 : f32 to vector<8x128xf32>
    %749 = arith.mulf %747, %748 : vector<8x128xf32>
    %750 = arith.mulf %749, %663 : vector<8x128xf32>
    %751 = arith.addf %745, %750 : vector<8x128xf32>
    %cst_305 = arith.constant -6.000000e-01 : f32
    %752 = vector.broadcast %cst_305 : f32 to vector<8x128xf32>
    %753 = arith.subf %399, %752 : vector<8x128xf32>
    %cst_306 = arith.constant 0.833333313 : f32
    %754 = vector.broadcast %cst_306 : f32 to vector<8x128xf32>
    %755 = arith.mulf %753, %754 : vector<8x128xf32>
    %756 = arith.mulf %755, %663 : vector<8x128xf32>
    %cst_307 = arith.constant 1.000000e+00 : f32
    %757 = vector.broadcast %cst_307 : f32 to vector<8x128xf32>
    %758 = arith.subf %757, %399 : vector<8x128xf32>
    %cst_308 = arith.constant 0.833333313 : f32
    %759 = vector.broadcast %cst_308 : f32 to vector<8x128xf32>
    %760 = arith.mulf %758, %759 : vector<8x128xf32>
    %761 = arith.mulf %760, %674 : vector<8x128xf32>
    %762 = arith.addf %756, %761 : vector<8x128xf32>
    %cst_309 = arith.constant -2.000000e-01 : f32
    %763 = vector.broadcast %cst_309 : f32 to vector<8x128xf32>
    %764 = arith.subf %399, %763 : vector<8x128xf32>
    %cst_310 = arith.constant 0.833333313 : f32
    %765 = vector.broadcast %cst_310 : f32 to vector<8x128xf32>
    %766 = arith.mulf %764, %765 : vector<8x128xf32>
    %767 = arith.mulf %766, %674 : vector<8x128xf32>
    %cst_311 = arith.constant 1.400000e+00 : f32
    %768 = vector.broadcast %cst_311 : f32 to vector<8x128xf32>
    %769 = arith.subf %768, %399 : vector<8x128xf32>
    %cst_312 = arith.constant 0.833333313 : f32
    %770 = vector.broadcast %cst_312 : f32 to vector<8x128xf32>
    %771 = arith.mulf %769, %770 : vector<8x128xf32>
    %772 = arith.mulf %771, %685 : vector<8x128xf32>
    %773 = arith.addf %767, %772 : vector<8x128xf32>
    %cst_313 = arith.constant 2.000000e-01 : f32
    %774 = vector.broadcast %cst_313 : f32 to vector<8x128xf32>
    %775 = arith.subf %399, %774 : vector<8x128xf32>
    %cst_314 = arith.constant 0.833333313 : f32
    %776 = vector.broadcast %cst_314 : f32 to vector<8x128xf32>
    %777 = arith.mulf %775, %776 : vector<8x128xf32>
    %778 = arith.mulf %777, %685 : vector<8x128xf32>
    %cst_315 = arith.constant 1.800000e+00 : f32
    %779 = vector.broadcast %cst_315 : f32 to vector<8x128xf32>
    %780 = arith.subf %779, %399 : vector<8x128xf32>
    %cst_316 = arith.constant 0.833333313 : f32
    %781 = vector.broadcast %cst_316 : f32 to vector<8x128xf32>
    %782 = arith.mulf %780, %781 : vector<8x128xf32>
    %783 = arith.mulf %782, %696 : vector<8x128xf32>
    %784 = arith.addf %778, %783 : vector<8x128xf32>
    %cst_317 = arith.constant 6.000000e-01 : f32
    %785 = vector.broadcast %cst_317 : f32 to vector<8x128xf32>
    %786 = arith.subf %399, %785 : vector<8x128xf32>
    %cst_318 = arith.constant 0.833333313 : f32
    %787 = vector.broadcast %cst_318 : f32 to vector<8x128xf32>
    %788 = arith.mulf %786, %787 : vector<8x128xf32>
    %789 = arith.mulf %788, %696 : vector<8x128xf32>
    %cst_319 = arith.constant 2.200000e+00 : f32
    %790 = vector.broadcast %cst_319 : f32 to vector<8x128xf32>
    %791 = arith.subf %790, %399 : vector<8x128xf32>
    %cst_320 = arith.constant 0.833333313 : f32
    %792 = vector.broadcast %cst_320 : f32 to vector<8x128xf32>
    %793 = arith.mulf %791, %792 : vector<8x128xf32>
    %794 = arith.mulf %793, %707 : vector<8x128xf32>
    %795 = arith.addf %789, %794 : vector<8x128xf32>
    %796 = tpu.concatenate %718, %729, %740, %751, %762, %773, %784, %795 in 1 : vector<8x128xf32>, vector<8x128xf32>, vector<8x128xf32>, vector<8x128xf32>, vector<8x128xf32>, vector<8x128xf32>, vector<8x128xf32>, vector<8x128xf32> -> vector<8x1024xf32>
    %cst_321 = arith.constant dense<0.000000e+00> : vector<8x256xf32>
    %797 = tpu.matmul %796, %401, %cst_321 {dimension_numbers = #tpu.dot_dimension_numbers<[1], [0], [0], [1], [0, 0, 1, 1], [], []>} : vector<8x1024xf32>, vector<1024x256xf32>, vector<8x256xf32> -> vector<8x256xf32>
    %798 = arith.addf %410, %797 : vector<8x256xf32>
    %cst_322 = arith.constant dense<0.000000e+00> : vector<8xf32>
    %799 = vector.multi_reduction <add>, %798, %cst_322 [1] : vector<8x256xf32> to vector<8xf32>
    %800 = vector.shape_cast %799 : vector<8xf32> to vector<8x1xf32>
    %cst_323 = arith.constant 2.560000e+02 : f32
    %801 = vector.broadcast %cst_323 : f32 to vector<8x1xf32>
    %802 = arith.divf %800, %801 : vector<8x1xf32>
    %803 = vector.broadcast %802 : vector<8x1xf32> to vector<8x256xf32>
    %804 = arith.subf %798, %803 : vector<8x256xf32>
    %805 = arith.mulf %804, %804 : vector<8x256xf32>
    %cst_324 = arith.constant dense<0.000000e+00> : vector<8xf32>
    %806 = vector.multi_reduction <add>, %805, %cst_324 [1] : vector<8x256xf32> to vector<8xf32>
    %807 = vector.shape_cast %806 : vector<8xf32> to vector<8x1xf32>
    %cst_325 = arith.constant 2.560000e+02 : f32
    %808 = vector.broadcast %cst_325 : f32 to vector<8x1xf32>
    %809 = arith.divf %807, %808 : vector<8x1xf32>
    %810 = vector.broadcast %802 : vector<8x1xf32> to vector<8x256xf32>
    %811 = arith.subf %798, %810 : vector<8x256xf32>
    %cst_326 = arith.constant 9.99999974E-6 : f32
    %812 = vector.broadcast %cst_326 : f32 to vector<8x1xf32>
    %813 = arith.addf %809, %812 : vector<8x1xf32>
    %814 = math.rsqrt %813 : vector<8x1xf32>
    %815 = vector.broadcast %814 : vector<8x1xf32> to vector<8x256xf32>
    %816 = arith.mulf %811, %815 : vector<8x256xf32>
    %c0_327 = arith.constant 0 : index
    %c0_328 = arith.constant 0 : index
    %817 = vector.load %arg6[%c0_327, %c0_328] : memref<1x256xf32, #tpu.memory_space<vmem>>, vector<1x256xf32>
    %818 = vector.broadcast %817 : vector<1x256xf32> to vector<8x256xf32>
    %819 = arith.mulf %816, %818 : vector<8x256xf32>
    %c0_329 = arith.constant 0 : index
    %c0_330 = arith.constant 0 : index
    %820 = vector.load %arg7[%c0_329, %c0_330] : memref<1x256xf32, #tpu.memory_space<vmem>>, vector<1x256xf32>
    %821 = vector.broadcast %820 : vector<1x256xf32> to vector<8x256xf32>
    %822 = arith.addf %819, %821 : vector<8x256xf32>
    %c0_331 = arith.constant 0 : index
    %c0_332 = arith.constant 0 : index
    %823 = vector.load %arg8[%c0_331, %c0_332] : memref<256x128xf32, #tpu.memory_space<vmem>>, vector<256x128xf32>
    %c0_333 = arith.constant 0 : index
    %c0_334 = arith.constant 0 : index
    %824 = vector.load %arg9[%c0_333, %c0_334] : memref<2048x128xf32, #tpu.memory_space<vmem>>, vector<2048x128xf32>
    %cst_335 = arith.constant 0.000000e+00 : f32
    %825 = vector.broadcast %cst_335 : f32 to vector<8x256xf32>
    %826 = arith.subf %825, %822 : vector<8x256xf32>
    %827 = math.exp %826 : vector<8x256xf32>
    %cst_336 = arith.constant 1.000000e+00 : f32
    %828 = vector.broadcast %cst_336 : f32 to vector<8x256xf32>
    %829 = arith.addf %828, %827 : vector<8x256xf32>
    %cst_337 = arith.constant 1.000000e+00 : f32
    %830 = vector.broadcast %cst_337 : f32 to vector<8x256xf32>
    %831 = arith.divf %830, %829 : vector<8x256xf32>
    %832 = arith.mulf %822, %831 : vector<8x256xf32>
    %cst_338 = arith.constant dense<0.000000e+00> : vector<8x128xf32>
    %833 = tpu.matmul %832, %823, %cst_338 {dimension_numbers = #tpu.dot_dimension_numbers<[1], [0], [0], [1], [0, 0, 1, 1], [], []>} : vector<8x256xf32>, vector<256x128xf32>, vector<8x128xf32> -> vector<8x128xf32>
    %cst_339 = arith.constant -2.200000e+00 : f32
    %834 = vector.broadcast %cst_339 : f32 to vector<8x256xf32>
    %835 = arith.cmpf oge, %822, %834 : vector<8x256xf32>
    %cst_340 = arith.constant -1.800000e+00 : f32
    %836 = vector.broadcast %cst_340 : f32 to vector<8x256xf32>
    %837 = arith.cmpf olt, %822, %836 : vector<8x256xf32>
    %838 = arith.andi %835, %837 : vector<8x256xi1>
    %cst_341 = arith.constant 1.000000e+00 : f32
    %cst_342 = arith.constant 0.000000e+00 : f32
    %839 = vector.broadcast %cst_341 : f32 to vector<8x256xf32>
    %840 = vector.broadcast %cst_342 : f32 to vector<8x256xf32>
    %841 = arith.select %838, %839, %840 : vector<8x256xi1>, vector<8x256xf32>
    %cst_343 = arith.constant -1.800000e+00 : f32
    %842 = vector.broadcast %cst_343 : f32 to vector<8x256xf32>
    %843 = arith.cmpf oge, %822, %842 : vector<8x256xf32>
    %cst_344 = arith.constant -1.400000e+00 : f32
    %844 = vector.broadcast %cst_344 : f32 to vector<8x256xf32>
    %845 = arith.cmpf olt, %822, %844 : vector<8x256xf32>
    %846 = arith.andi %843, %845 : vector<8x256xi1>
    %cst_345 = arith.constant 1.000000e+00 : f32
    %cst_346 = arith.constant 0.000000e+00 : f32
    %847 = vector.broadcast %cst_345 : f32 to vector<8x256xf32>
    %848 = vector.broadcast %cst_346 : f32 to vector<8x256xf32>
    %849 = arith.select %846, %847, %848 : vector<8x256xi1>, vector<8x256xf32>
    %cst_347 = arith.constant -1.400000e+00 : f32
    %850 = vector.broadcast %cst_347 : f32 to vector<8x256xf32>
    %851 = arith.cmpf oge, %822, %850 : vector<8x256xf32>
    %cst_348 = arith.constant -1.000000e+00 : f32
    %852 = vector.broadcast %cst_348 : f32 to vector<8x256xf32>
    %853 = arith.cmpf olt, %822, %852 : vector<8x256xf32>
    %854 = arith.andi %851, %853 : vector<8x256xi1>
    %cst_349 = arith.constant 1.000000e+00 : f32
    %cst_350 = arith.constant 0.000000e+00 : f32
    %855 = vector.broadcast %cst_349 : f32 to vector<8x256xf32>
    %856 = vector.broadcast %cst_350 : f32 to vector<8x256xf32>
    %857 = arith.select %854, %855, %856 : vector<8x256xi1>, vector<8x256xf32>
    %cst_351 = arith.constant -1.000000e+00 : f32
    %858 = vector.broadcast %cst_351 : f32 to vector<8x256xf32>
    %859 = arith.cmpf oge, %822, %858 : vector<8x256xf32>
    %cst_352 = arith.constant -6.000000e-01 : f32
    %860 = vector.broadcast %cst_352 : f32 to vector<8x256xf32>
    %861 = arith.cmpf olt, %822, %860 : vector<8x256xf32>
    %862 = arith.andi %859, %861 : vector<8x256xi1>
    %cst_353 = arith.constant 1.000000e+00 : f32
    %cst_354 = arith.constant 0.000000e+00 : f32
    %863 = vector.broadcast %cst_353 : f32 to vector<8x256xf32>
    %864 = vector.broadcast %cst_354 : f32 to vector<8x256xf32>
    %865 = arith.select %862, %863, %864 : vector<8x256xi1>, vector<8x256xf32>
    %cst_355 = arith.constant -6.000000e-01 : f32
    %866 = vector.broadcast %cst_355 : f32 to vector<8x256xf32>
    %867 = arith.cmpf oge, %822, %866 : vector<8x256xf32>
    %cst_356 = arith.constant -2.000000e-01 : f32
    %868 = vector.broadcast %cst_356 : f32 to vector<8x256xf32>
    %869 = arith.cmpf olt, %822, %868 : vector<8x256xf32>
    %870 = arith.andi %867, %869 : vector<8x256xi1>
    %cst_357 = arith.constant 1.000000e+00 : f32
    %cst_358 = arith.constant 0.000000e+00 : f32
    %871 = vector.broadcast %cst_357 : f32 to vector<8x256xf32>
    %872 = vector.broadcast %cst_358 : f32 to vector<8x256xf32>
    %873 = arith.select %870, %871, %872 : vector<8x256xi1>, vector<8x256xf32>
    %cst_359 = arith.constant -2.000000e-01 : f32
    %874 = vector.broadcast %cst_359 : f32 to vector<8x256xf32>
    %875 = arith.cmpf oge, %822, %874 : vector<8x256xf32>
    %cst_360 = arith.constant 2.000000e-01 : f32
    %876 = vector.broadcast %cst_360 : f32 to vector<8x256xf32>
    %877 = arith.cmpf olt, %822, %876 : vector<8x256xf32>
    %878 = arith.andi %875, %877 : vector<8x256xi1>
    %cst_361 = arith.constant 1.000000e+00 : f32
    %cst_362 = arith.constant 0.000000e+00 : f32
    %879 = vector.broadcast %cst_361 : f32 to vector<8x256xf32>
    %880 = vector.broadcast %cst_362 : f32 to vector<8x256xf32>
    %881 = arith.select %878, %879, %880 : vector<8x256xi1>, vector<8x256xf32>
    %cst_363 = arith.constant 2.000000e-01 : f32
    %882 = vector.broadcast %cst_363 : f32 to vector<8x256xf32>
    %883 = arith.cmpf oge, %822, %882 : vector<8x256xf32>
    %cst_364 = arith.constant 6.000000e-01 : f32
    %884 = vector.broadcast %cst_364 : f32 to vector<8x256xf32>
    %885 = arith.cmpf olt, %822, %884 : vector<8x256xf32>
    %886 = arith.andi %883, %885 : vector<8x256xi1>
    %cst_365 = arith.constant 1.000000e+00 : f32
    %cst_366 = arith.constant 0.000000e+00 : f32
    %887 = vector.broadcast %cst_365 : f32 to vector<8x256xf32>
    %888 = vector.broadcast %cst_366 : f32 to vector<8x256xf32>
    %889 = arith.select %886, %887, %888 : vector<8x256xi1>, vector<8x256xf32>
    %cst_367 = arith.constant 6.000000e-01 : f32
    %890 = vector.broadcast %cst_367 : f32 to vector<8x256xf32>
    %891 = arith.cmpf oge, %822, %890 : vector<8x256xf32>
    %cst_368 = arith.constant 1.000000e+00 : f32
    %892 = vector.broadcast %cst_368 : f32 to vector<8x256xf32>
    %893 = arith.cmpf olt, %822, %892 : vector<8x256xf32>
    %894 = arith.andi %891, %893 : vector<8x256xi1>
    %cst_369 = arith.constant 1.000000e+00 : f32
    %cst_370 = arith.constant 0.000000e+00 : f32
    %895 = vector.broadcast %cst_369 : f32 to vector<8x256xf32>
    %896 = vector.broadcast %cst_370 : f32 to vector<8x256xf32>
    %897 = arith.select %894, %895, %896 : vector<8x256xi1>, vector<8x256xf32>
    %cst_371 = arith.constant 1.000000e+00 : f32
    %898 = vector.broadcast %cst_371 : f32 to vector<8x256xf32>
    %899 = arith.cmpf oge, %822, %898 : vector<8x256xf32>
    %cst_372 = arith.constant 1.400000e+00 : f32
    %900 = vector.broadcast %cst_372 : f32 to vector<8x256xf32>
    %901 = arith.cmpf olt, %822, %900 : vector<8x256xf32>
    %902 = arith.andi %899, %901 : vector<8x256xi1>
    %cst_373 = arith.constant 1.000000e+00 : f32
    %cst_374 = arith.constant 0.000000e+00 : f32
    %903 = vector.broadcast %cst_373 : f32 to vector<8x256xf32>
    %904 = vector.broadcast %cst_374 : f32 to vector<8x256xf32>
    %905 = arith.select %902, %903, %904 : vector<8x256xi1>, vector<8x256xf32>
    %cst_375 = arith.constant 1.400000e+00 : f32
    %906 = vector.broadcast %cst_375 : f32 to vector<8x256xf32>
    %907 = arith.cmpf oge, %822, %906 : vector<8x256xf32>
    %cst_376 = arith.constant 1.800000e+00 : f32
    %908 = vector.broadcast %cst_376 : f32 to vector<8x256xf32>
    %909 = arith.cmpf olt, %822, %908 : vector<8x256xf32>
    %910 = arith.andi %907, %909 : vector<8x256xi1>
    %cst_377 = arith.constant 1.000000e+00 : f32
    %cst_378 = arith.constant 0.000000e+00 : f32
    %911 = vector.broadcast %cst_377 : f32 to vector<8x256xf32>
    %912 = vector.broadcast %cst_378 : f32 to vector<8x256xf32>
    %913 = arith.select %910, %911, %912 : vector<8x256xi1>, vector<8x256xf32>
    %cst_379 = arith.constant 1.800000e+00 : f32
    %914 = vector.broadcast %cst_379 : f32 to vector<8x256xf32>
    %915 = arith.cmpf oge, %822, %914 : vector<8x256xf32>
    %cst_380 = arith.constant 2.200000e+00 : f32
    %916 = vector.broadcast %cst_380 : f32 to vector<8x256xf32>
    %917 = arith.cmpf olt, %822, %916 : vector<8x256xf32>
    %918 = arith.andi %915, %917 : vector<8x256xi1>
    %cst_381 = arith.constant 1.000000e+00 : f32
    %cst_382 = arith.constant 0.000000e+00 : f32
    %919 = vector.broadcast %cst_381 : f32 to vector<8x256xf32>
    %920 = vector.broadcast %cst_382 : f32 to vector<8x256xf32>
    %921 = arith.select %918, %919, %920 : vector<8x256xi1>, vector<8x256xf32>
    %cst_383 = arith.constant -2.200000e+00 : f32
    %922 = vector.broadcast %cst_383 : f32 to vector<8x256xf32>
    %923 = arith.subf %822, %922 : vector<8x256xf32>
    %cst_384 = arith.constant 2.500000e+00 : f32
    %924 = vector.broadcast %cst_384 : f32 to vector<8x256xf32>
    %925 = arith.mulf %923, %924 : vector<8x256xf32>
    %926 = arith.mulf %925, %841 : vector<8x256xf32>
    %cst_385 = arith.constant -1.400000e+00 : f32
    %927 = vector.broadcast %cst_385 : f32 to vector<8x256xf32>
    %928 = arith.subf %927, %822 : vector<8x256xf32>
    %cst_386 = arith.constant 2.500000e+00 : f32
    %929 = vector.broadcast %cst_386 : f32 to vector<8x256xf32>
    %930 = arith.mulf %928, %929 : vector<8x256xf32>
    %931 = arith.mulf %930, %849 : vector<8x256xf32>
    %932 = arith.addf %926, %931 : vector<8x256xf32>
    %cst_387 = arith.constant -1.800000e+00 : f32
    %933 = vector.broadcast %cst_387 : f32 to vector<8x256xf32>
    %934 = arith.subf %822, %933 : vector<8x256xf32>
    %cst_388 = arith.constant 2.500000e+00 : f32
    %935 = vector.broadcast %cst_388 : f32 to vector<8x256xf32>
    %936 = arith.mulf %934, %935 : vector<8x256xf32>
    %937 = arith.mulf %936, %849 : vector<8x256xf32>
    %cst_389 = arith.constant -1.000000e+00 : f32
    %938 = vector.broadcast %cst_389 : f32 to vector<8x256xf32>
    %939 = arith.subf %938, %822 : vector<8x256xf32>
    %cst_390 = arith.constant 2.500000e+00 : f32
    %940 = vector.broadcast %cst_390 : f32 to vector<8x256xf32>
    %941 = arith.mulf %939, %940 : vector<8x256xf32>
    %942 = arith.mulf %941, %857 : vector<8x256xf32>
    %943 = arith.addf %937, %942 : vector<8x256xf32>
    %cst_391 = arith.constant -1.400000e+00 : f32
    %944 = vector.broadcast %cst_391 : f32 to vector<8x256xf32>
    %945 = arith.subf %822, %944 : vector<8x256xf32>
    %cst_392 = arith.constant 2.500000e+00 : f32
    %946 = vector.broadcast %cst_392 : f32 to vector<8x256xf32>
    %947 = arith.mulf %945, %946 : vector<8x256xf32>
    %948 = arith.mulf %947, %857 : vector<8x256xf32>
    %cst_393 = arith.constant -6.000000e-01 : f32
    %949 = vector.broadcast %cst_393 : f32 to vector<8x256xf32>
    %950 = arith.subf %949, %822 : vector<8x256xf32>
    %cst_394 = arith.constant 2.500000e+00 : f32
    %951 = vector.broadcast %cst_394 : f32 to vector<8x256xf32>
    %952 = arith.mulf %950, %951 : vector<8x256xf32>
    %953 = arith.mulf %952, %865 : vector<8x256xf32>
    %954 = arith.addf %948, %953 : vector<8x256xf32>
    %cst_395 = arith.constant -1.000000e+00 : f32
    %955 = vector.broadcast %cst_395 : f32 to vector<8x256xf32>
    %956 = arith.subf %822, %955 : vector<8x256xf32>
    %cst_396 = arith.constant 2.500000e+00 : f32
    %957 = vector.broadcast %cst_396 : f32 to vector<8x256xf32>
    %958 = arith.mulf %956, %957 : vector<8x256xf32>
    %959 = arith.mulf %958, %865 : vector<8x256xf32>
    %cst_397 = arith.constant -2.000000e-01 : f32
    %960 = vector.broadcast %cst_397 : f32 to vector<8x256xf32>
    %961 = arith.subf %960, %822 : vector<8x256xf32>
    %cst_398 = arith.constant 2.500000e+00 : f32
    %962 = vector.broadcast %cst_398 : f32 to vector<8x256xf32>
    %963 = arith.mulf %961, %962 : vector<8x256xf32>
    %964 = arith.mulf %963, %873 : vector<8x256xf32>
    %965 = arith.addf %959, %964 : vector<8x256xf32>
    %cst_399 = arith.constant -6.000000e-01 : f32
    %966 = vector.broadcast %cst_399 : f32 to vector<8x256xf32>
    %967 = arith.subf %822, %966 : vector<8x256xf32>
    %cst_400 = arith.constant 2.500000e+00 : f32
    %968 = vector.broadcast %cst_400 : f32 to vector<8x256xf32>
    %969 = arith.mulf %967, %968 : vector<8x256xf32>
    %970 = arith.mulf %969, %873 : vector<8x256xf32>
    %cst_401 = arith.constant 2.000000e-01 : f32
    %971 = vector.broadcast %cst_401 : f32 to vector<8x256xf32>
    %972 = arith.subf %971, %822 : vector<8x256xf32>
    %cst_402 = arith.constant 2.500000e+00 : f32
    %973 = vector.broadcast %cst_402 : f32 to vector<8x256xf32>
    %974 = arith.mulf %972, %973 : vector<8x256xf32>
    %975 = arith.mulf %974, %881 : vector<8x256xf32>
    %976 = arith.addf %970, %975 : vector<8x256xf32>
    %cst_403 = arith.constant -2.000000e-01 : f32
    %977 = vector.broadcast %cst_403 : f32 to vector<8x256xf32>
    %978 = arith.subf %822, %977 : vector<8x256xf32>
    %cst_404 = arith.constant 2.500000e+00 : f32
    %979 = vector.broadcast %cst_404 : f32 to vector<8x256xf32>
    %980 = arith.mulf %978, %979 : vector<8x256xf32>
    %981 = arith.mulf %980, %881 : vector<8x256xf32>
    %cst_405 = arith.constant 6.000000e-01 : f32
    %982 = vector.broadcast %cst_405 : f32 to vector<8x256xf32>
    %983 = arith.subf %982, %822 : vector<8x256xf32>
    %cst_406 = arith.constant 2.500000e+00 : f32
    %984 = vector.broadcast %cst_406 : f32 to vector<8x256xf32>
    %985 = arith.mulf %983, %984 : vector<8x256xf32>
    %986 = arith.mulf %985, %889 : vector<8x256xf32>
    %987 = arith.addf %981, %986 : vector<8x256xf32>
    %cst_407 = arith.constant 2.000000e-01 : f32
    %988 = vector.broadcast %cst_407 : f32 to vector<8x256xf32>
    %989 = arith.subf %822, %988 : vector<8x256xf32>
    %cst_408 = arith.constant 2.500000e+00 : f32
    %990 = vector.broadcast %cst_408 : f32 to vector<8x256xf32>
    %991 = arith.mulf %989, %990 : vector<8x256xf32>
    %992 = arith.mulf %991, %889 : vector<8x256xf32>
    %cst_409 = arith.constant 1.000000e+00 : f32
    %993 = vector.broadcast %cst_409 : f32 to vector<8x256xf32>
    %994 = arith.subf %993, %822 : vector<8x256xf32>
    %cst_410 = arith.constant 2.500000e+00 : f32
    %995 = vector.broadcast %cst_410 : f32 to vector<8x256xf32>
    %996 = arith.mulf %994, %995 : vector<8x256xf32>
    %997 = arith.mulf %996, %897 : vector<8x256xf32>
    %998 = arith.addf %992, %997 : vector<8x256xf32>
    %cst_411 = arith.constant 6.000000e-01 : f32
    %999 = vector.broadcast %cst_411 : f32 to vector<8x256xf32>
    %1000 = arith.subf %822, %999 : vector<8x256xf32>
    %cst_412 = arith.constant 2.500000e+00 : f32
    %1001 = vector.broadcast %cst_412 : f32 to vector<8x256xf32>
    %1002 = arith.mulf %1000, %1001 : vector<8x256xf32>
    %1003 = arith.mulf %1002, %897 : vector<8x256xf32>
    %cst_413 = arith.constant 1.400000e+00 : f32
    %1004 = vector.broadcast %cst_413 : f32 to vector<8x256xf32>
    %1005 = arith.subf %1004, %822 : vector<8x256xf32>
    %cst_414 = arith.constant 2.500000e+00 : f32
    %1006 = vector.broadcast %cst_414 : f32 to vector<8x256xf32>
    %1007 = arith.mulf %1005, %1006 : vector<8x256xf32>
    %1008 = arith.mulf %1007, %905 : vector<8x256xf32>
    %1009 = arith.addf %1003, %1008 : vector<8x256xf32>
    %cst_415 = arith.constant 1.000000e+00 : f32
    %1010 = vector.broadcast %cst_415 : f32 to vector<8x256xf32>
    %1011 = arith.subf %822, %1010 : vector<8x256xf32>
    %cst_416 = arith.constant 2.500000e+00 : f32
    %1012 = vector.broadcast %cst_416 : f32 to vector<8x256xf32>
    %1013 = arith.mulf %1011, %1012 : vector<8x256xf32>
    %1014 = arith.mulf %1013, %905 : vector<8x256xf32>
    %cst_417 = arith.constant 1.800000e+00 : f32
    %1015 = vector.broadcast %cst_417 : f32 to vector<8x256xf32>
    %1016 = arith.subf %1015, %822 : vector<8x256xf32>
    %cst_418 = arith.constant 2.500000e+00 : f32
    %1017 = vector.broadcast %cst_418 : f32 to vector<8x256xf32>
    %1018 = arith.mulf %1016, %1017 : vector<8x256xf32>
    %1019 = arith.mulf %1018, %913 : vector<8x256xf32>
    %1020 = arith.addf %1014, %1019 : vector<8x256xf32>
    %cst_419 = arith.constant 1.400000e+00 : f32
    %1021 = vector.broadcast %cst_419 : f32 to vector<8x256xf32>
    %1022 = arith.subf %822, %1021 : vector<8x256xf32>
    %cst_420 = arith.constant 2.500000e+00 : f32
    %1023 = vector.broadcast %cst_420 : f32 to vector<8x256xf32>
    %1024 = arith.mulf %1022, %1023 : vector<8x256xf32>
    %1025 = arith.mulf %1024, %913 : vector<8x256xf32>
    %cst_421 = arith.constant 2.200000e+00 : f32
    %1026 = vector.broadcast %cst_421 : f32 to vector<8x256xf32>
    %1027 = arith.subf %1026, %822 : vector<8x256xf32>
    %cst_422 = arith.constant 2.500000e+00 : f32
    %1028 = vector.broadcast %cst_422 : f32 to vector<8x256xf32>
    %1029 = arith.mulf %1027, %1028 : vector<8x256xf32>
    %1030 = arith.mulf %1029, %921 : vector<8x256xf32>
    %1031 = arith.addf %1025, %1030 : vector<8x256xf32>
    %cst_423 = arith.constant -2.200000e+00 : f32
    %1032 = vector.broadcast %cst_423 : f32 to vector<8x256xf32>
    %1033 = arith.subf %822, %1032 : vector<8x256xf32>
    %cst_424 = arith.constant 1.250000e+00 : f32
    %1034 = vector.broadcast %cst_424 : f32 to vector<8x256xf32>
    %1035 = arith.mulf %1033, %1034 : vector<8x256xf32>
    %1036 = arith.mulf %1035, %932 : vector<8x256xf32>
    %cst_425 = arith.constant -1.000000e+00 : f32
    %1037 = vector.broadcast %cst_425 : f32 to vector<8x256xf32>
    %1038 = arith.subf %1037, %822 : vector<8x256xf32>
    %cst_426 = arith.constant 1.250000e+00 : f32
    %1039 = vector.broadcast %cst_426 : f32 to vector<8x256xf32>
    %1040 = arith.mulf %1038, %1039 : vector<8x256xf32>
    %1041 = arith.mulf %1040, %943 : vector<8x256xf32>
    %1042 = arith.addf %1036, %1041 : vector<8x256xf32>
    %cst_427 = arith.constant -1.800000e+00 : f32
    %1043 = vector.broadcast %cst_427 : f32 to vector<8x256xf32>
    %1044 = arith.subf %822, %1043 : vector<8x256xf32>
    %cst_428 = arith.constant 1.250000e+00 : f32
    %1045 = vector.broadcast %cst_428 : f32 to vector<8x256xf32>
    %1046 = arith.mulf %1044, %1045 : vector<8x256xf32>
    %1047 = arith.mulf %1046, %943 : vector<8x256xf32>
    %cst_429 = arith.constant -6.000000e-01 : f32
    %1048 = vector.broadcast %cst_429 : f32 to vector<8x256xf32>
    %1049 = arith.subf %1048, %822 : vector<8x256xf32>
    %cst_430 = arith.constant 1.250000e+00 : f32
    %1050 = vector.broadcast %cst_430 : f32 to vector<8x256xf32>
    %1051 = arith.mulf %1049, %1050 : vector<8x256xf32>
    %1052 = arith.mulf %1051, %954 : vector<8x256xf32>
    %1053 = arith.addf %1047, %1052 : vector<8x256xf32>
    %cst_431 = arith.constant -1.400000e+00 : f32
    %1054 = vector.broadcast %cst_431 : f32 to vector<8x256xf32>
    %1055 = arith.subf %822, %1054 : vector<8x256xf32>
    %cst_432 = arith.constant 1.250000e+00 : f32
    %1056 = vector.broadcast %cst_432 : f32 to vector<8x256xf32>
    %1057 = arith.mulf %1055, %1056 : vector<8x256xf32>
    %1058 = arith.mulf %1057, %954 : vector<8x256xf32>
    %cst_433 = arith.constant -2.000000e-01 : f32
    %1059 = vector.broadcast %cst_433 : f32 to vector<8x256xf32>
    %1060 = arith.subf %1059, %822 : vector<8x256xf32>
    %cst_434 = arith.constant 1.250000e+00 : f32
    %1061 = vector.broadcast %cst_434 : f32 to vector<8x256xf32>
    %1062 = arith.mulf %1060, %1061 : vector<8x256xf32>
    %1063 = arith.mulf %1062, %965 : vector<8x256xf32>
    %1064 = arith.addf %1058, %1063 : vector<8x256xf32>
    %cst_435 = arith.constant -1.000000e+00 : f32
    %1065 = vector.broadcast %cst_435 : f32 to vector<8x256xf32>
    %1066 = arith.subf %822, %1065 : vector<8x256xf32>
    %cst_436 = arith.constant 1.250000e+00 : f32
    %1067 = vector.broadcast %cst_436 : f32 to vector<8x256xf32>
    %1068 = arith.mulf %1066, %1067 : vector<8x256xf32>
    %1069 = arith.mulf %1068, %965 : vector<8x256xf32>
    %cst_437 = arith.constant 2.000000e-01 : f32
    %1070 = vector.broadcast %cst_437 : f32 to vector<8x256xf32>
    %1071 = arith.subf %1070, %822 : vector<8x256xf32>
    %cst_438 = arith.constant 1.250000e+00 : f32
    %1072 = vector.broadcast %cst_438 : f32 to vector<8x256xf32>
    %1073 = arith.mulf %1071, %1072 : vector<8x256xf32>
    %1074 = arith.mulf %1073, %976 : vector<8x256xf32>
    %1075 = arith.addf %1069, %1074 : vector<8x256xf32>
    %cst_439 = arith.constant -6.000000e-01 : f32
    %1076 = vector.broadcast %cst_439 : f32 to vector<8x256xf32>
    %1077 = arith.subf %822, %1076 : vector<8x256xf32>
    %cst_440 = arith.constant 1.250000e+00 : f32
    %1078 = vector.broadcast %cst_440 : f32 to vector<8x256xf32>
    %1079 = arith.mulf %1077, %1078 : vector<8x256xf32>
    %1080 = arith.mulf %1079, %976 : vector<8x256xf32>
    %cst_441 = arith.constant 6.000000e-01 : f32
    %1081 = vector.broadcast %cst_441 : f32 to vector<8x256xf32>
    %1082 = arith.subf %1081, %822 : vector<8x256xf32>
    %cst_442 = arith.constant 1.250000e+00 : f32
    %1083 = vector.broadcast %cst_442 : f32 to vector<8x256xf32>
    %1084 = arith.mulf %1082, %1083 : vector<8x256xf32>
    %1085 = arith.mulf %1084, %987 : vector<8x256xf32>
    %1086 = arith.addf %1080, %1085 : vector<8x256xf32>
    %cst_443 = arith.constant -2.000000e-01 : f32
    %1087 = vector.broadcast %cst_443 : f32 to vector<8x256xf32>
    %1088 = arith.subf %822, %1087 : vector<8x256xf32>
    %cst_444 = arith.constant 1.250000e+00 : f32
    %1089 = vector.broadcast %cst_444 : f32 to vector<8x256xf32>
    %1090 = arith.mulf %1088, %1089 : vector<8x256xf32>
    %1091 = arith.mulf %1090, %987 : vector<8x256xf32>
    %cst_445 = arith.constant 1.000000e+00 : f32
    %1092 = vector.broadcast %cst_445 : f32 to vector<8x256xf32>
    %1093 = arith.subf %1092, %822 : vector<8x256xf32>
    %cst_446 = arith.constant 1.250000e+00 : f32
    %1094 = vector.broadcast %cst_446 : f32 to vector<8x256xf32>
    %1095 = arith.mulf %1093, %1094 : vector<8x256xf32>
    %1096 = arith.mulf %1095, %998 : vector<8x256xf32>
    %1097 = arith.addf %1091, %1096 : vector<8x256xf32>
    %cst_447 = arith.constant 2.000000e-01 : f32
    %1098 = vector.broadcast %cst_447 : f32 to vector<8x256xf32>
    %1099 = arith.subf %822, %1098 : vector<8x256xf32>
    %cst_448 = arith.constant 1.250000e+00 : f32
    %1100 = vector.broadcast %cst_448 : f32 to vector<8x256xf32>
    %1101 = arith.mulf %1099, %1100 : vector<8x256xf32>
    %1102 = arith.mulf %1101, %998 : vector<8x256xf32>
    %cst_449 = arith.constant 1.400000e+00 : f32
    %1103 = vector.broadcast %cst_449 : f32 to vector<8x256xf32>
    %1104 = arith.subf %1103, %822 : vector<8x256xf32>
    %cst_450 = arith.constant 1.250000e+00 : f32
    %1105 = vector.broadcast %cst_450 : f32 to vector<8x256xf32>
    %1106 = arith.mulf %1104, %1105 : vector<8x256xf32>
    %1107 = arith.mulf %1106, %1009 : vector<8x256xf32>
    %1108 = arith.addf %1102, %1107 : vector<8x256xf32>
    %cst_451 = arith.constant 6.000000e-01 : f32
    %1109 = vector.broadcast %cst_451 : f32 to vector<8x256xf32>
    %1110 = arith.subf %822, %1109 : vector<8x256xf32>
    %cst_452 = arith.constant 1.250000e+00 : f32
    %1111 = vector.broadcast %cst_452 : f32 to vector<8x256xf32>
    %1112 = arith.mulf %1110, %1111 : vector<8x256xf32>
    %1113 = arith.mulf %1112, %1009 : vector<8x256xf32>
    %cst_453 = arith.constant 1.800000e+00 : f32
    %1114 = vector.broadcast %cst_453 : f32 to vector<8x256xf32>
    %1115 = arith.subf %1114, %822 : vector<8x256xf32>
    %cst_454 = arith.constant 1.250000e+00 : f32
    %1116 = vector.broadcast %cst_454 : f32 to vector<8x256xf32>
    %1117 = arith.mulf %1115, %1116 : vector<8x256xf32>
    %1118 = arith.mulf %1117, %1020 : vector<8x256xf32>
    %1119 = arith.addf %1113, %1118 : vector<8x256xf32>
    %cst_455 = arith.constant 1.000000e+00 : f32
    %1120 = vector.broadcast %cst_455 : f32 to vector<8x256xf32>
    %1121 = arith.subf %822, %1120 : vector<8x256xf32>
    %cst_456 = arith.constant 1.250000e+00 : f32
    %1122 = vector.broadcast %cst_456 : f32 to vector<8x256xf32>
    %1123 = arith.mulf %1121, %1122 : vector<8x256xf32>
    %1124 = arith.mulf %1123, %1020 : vector<8x256xf32>
    %cst_457 = arith.constant 2.200000e+00 : f32
    %1125 = vector.broadcast %cst_457 : f32 to vector<8x256xf32>
    %1126 = arith.subf %1125, %822 : vector<8x256xf32>
    %cst_458 = arith.constant 1.250000e+00 : f32
    %1127 = vector.broadcast %cst_458 : f32 to vector<8x256xf32>
    %1128 = arith.mulf %1126, %1127 : vector<8x256xf32>
    %1129 = arith.mulf %1128, %1031 : vector<8x256xf32>
    %1130 = arith.addf %1124, %1129 : vector<8x256xf32>
    %cst_459 = arith.constant -2.200000e+00 : f32
    %1131 = vector.broadcast %cst_459 : f32 to vector<8x256xf32>
    %1132 = arith.subf %822, %1131 : vector<8x256xf32>
    %cst_460 = arith.constant 0.833333313 : f32
    %1133 = vector.broadcast %cst_460 : f32 to vector<8x256xf32>
    %1134 = arith.mulf %1132, %1133 : vector<8x256xf32>
    %1135 = arith.mulf %1134, %1042 : vector<8x256xf32>
    %cst_461 = arith.constant -6.000000e-01 : f32
    %1136 = vector.broadcast %cst_461 : f32 to vector<8x256xf32>
    %1137 = arith.subf %1136, %822 : vector<8x256xf32>
    %cst_462 = arith.constant 0.833333313 : f32
    %1138 = vector.broadcast %cst_462 : f32 to vector<8x256xf32>
    %1139 = arith.mulf %1137, %1138 : vector<8x256xf32>
    %1140 = arith.mulf %1139, %1053 : vector<8x256xf32>
    %1141 = arith.addf %1135, %1140 : vector<8x256xf32>
    %cst_463 = arith.constant -1.800000e+00 : f32
    %1142 = vector.broadcast %cst_463 : f32 to vector<8x256xf32>
    %1143 = arith.subf %822, %1142 : vector<8x256xf32>
    %cst_464 = arith.constant 0.833333313 : f32
    %1144 = vector.broadcast %cst_464 : f32 to vector<8x256xf32>
    %1145 = arith.mulf %1143, %1144 : vector<8x256xf32>
    %1146 = arith.mulf %1145, %1053 : vector<8x256xf32>
    %cst_465 = arith.constant -2.000000e-01 : f32
    %1147 = vector.broadcast %cst_465 : f32 to vector<8x256xf32>
    %1148 = arith.subf %1147, %822 : vector<8x256xf32>
    %cst_466 = arith.constant 0.833333313 : f32
    %1149 = vector.broadcast %cst_466 : f32 to vector<8x256xf32>
    %1150 = arith.mulf %1148, %1149 : vector<8x256xf32>
    %1151 = arith.mulf %1150, %1064 : vector<8x256xf32>
    %1152 = arith.addf %1146, %1151 : vector<8x256xf32>
    %cst_467 = arith.constant -1.400000e+00 : f32
    %1153 = vector.broadcast %cst_467 : f32 to vector<8x256xf32>
    %1154 = arith.subf %822, %1153 : vector<8x256xf32>
    %cst_468 = arith.constant 0.833333313 : f32
    %1155 = vector.broadcast %cst_468 : f32 to vector<8x256xf32>
    %1156 = arith.mulf %1154, %1155 : vector<8x256xf32>
    %1157 = arith.mulf %1156, %1064 : vector<8x256xf32>
    %cst_469 = arith.constant 2.000000e-01 : f32
    %1158 = vector.broadcast %cst_469 : f32 to vector<8x256xf32>
    %1159 = arith.subf %1158, %822 : vector<8x256xf32>
    %cst_470 = arith.constant 0.833333313 : f32
    %1160 = vector.broadcast %cst_470 : f32 to vector<8x256xf32>
    %1161 = arith.mulf %1159, %1160 : vector<8x256xf32>
    %1162 = arith.mulf %1161, %1075 : vector<8x256xf32>
    %1163 = arith.addf %1157, %1162 : vector<8x256xf32>
    %cst_471 = arith.constant -1.000000e+00 : f32
    %1164 = vector.broadcast %cst_471 : f32 to vector<8x256xf32>
    %1165 = arith.subf %822, %1164 : vector<8x256xf32>
    %cst_472 = arith.constant 0.833333313 : f32
    %1166 = vector.broadcast %cst_472 : f32 to vector<8x256xf32>
    %1167 = arith.mulf %1165, %1166 : vector<8x256xf32>
    %1168 = arith.mulf %1167, %1075 : vector<8x256xf32>
    %cst_473 = arith.constant 6.000000e-01 : f32
    %1169 = vector.broadcast %cst_473 : f32 to vector<8x256xf32>
    %1170 = arith.subf %1169, %822 : vector<8x256xf32>
    %cst_474 = arith.constant 0.833333313 : f32
    %1171 = vector.broadcast %cst_474 : f32 to vector<8x256xf32>
    %1172 = arith.mulf %1170, %1171 : vector<8x256xf32>
    %1173 = arith.mulf %1172, %1086 : vector<8x256xf32>
    %1174 = arith.addf %1168, %1173 : vector<8x256xf32>
    %cst_475 = arith.constant -6.000000e-01 : f32
    %1175 = vector.broadcast %cst_475 : f32 to vector<8x256xf32>
    %1176 = arith.subf %822, %1175 : vector<8x256xf32>
    %cst_476 = arith.constant 0.833333313 : f32
    %1177 = vector.broadcast %cst_476 : f32 to vector<8x256xf32>
    %1178 = arith.mulf %1176, %1177 : vector<8x256xf32>
    %1179 = arith.mulf %1178, %1086 : vector<8x256xf32>
    %cst_477 = arith.constant 1.000000e+00 : f32
    %1180 = vector.broadcast %cst_477 : f32 to vector<8x256xf32>
    %1181 = arith.subf %1180, %822 : vector<8x256xf32>
    %cst_478 = arith.constant 0.833333313 : f32
    %1182 = vector.broadcast %cst_478 : f32 to vector<8x256xf32>
    %1183 = arith.mulf %1181, %1182 : vector<8x256xf32>
    %1184 = arith.mulf %1183, %1097 : vector<8x256xf32>
    %1185 = arith.addf %1179, %1184 : vector<8x256xf32>
    %cst_479 = arith.constant -2.000000e-01 : f32
    %1186 = vector.broadcast %cst_479 : f32 to vector<8x256xf32>
    %1187 = arith.subf %822, %1186 : vector<8x256xf32>
    %cst_480 = arith.constant 0.833333313 : f32
    %1188 = vector.broadcast %cst_480 : f32 to vector<8x256xf32>
    %1189 = arith.mulf %1187, %1188 : vector<8x256xf32>
    %1190 = arith.mulf %1189, %1097 : vector<8x256xf32>
    %cst_481 = arith.constant 1.400000e+00 : f32
    %1191 = vector.broadcast %cst_481 : f32 to vector<8x256xf32>
    %1192 = arith.subf %1191, %822 : vector<8x256xf32>
    %cst_482 = arith.constant 0.833333313 : f32
    %1193 = vector.broadcast %cst_482 : f32 to vector<8x256xf32>
    %1194 = arith.mulf %1192, %1193 : vector<8x256xf32>
    %1195 = arith.mulf %1194, %1108 : vector<8x256xf32>
    %1196 = arith.addf %1190, %1195 : vector<8x256xf32>
    %cst_483 = arith.constant 2.000000e-01 : f32
    %1197 = vector.broadcast %cst_483 : f32 to vector<8x256xf32>
    %1198 = arith.subf %822, %1197 : vector<8x256xf32>
    %cst_484 = arith.constant 0.833333313 : f32
    %1199 = vector.broadcast %cst_484 : f32 to vector<8x256xf32>
    %1200 = arith.mulf %1198, %1199 : vector<8x256xf32>
    %1201 = arith.mulf %1200, %1108 : vector<8x256xf32>
    %cst_485 = arith.constant 1.800000e+00 : f32
    %1202 = vector.broadcast %cst_485 : f32 to vector<8x256xf32>
    %1203 = arith.subf %1202, %822 : vector<8x256xf32>
    %cst_486 = arith.constant 0.833333313 : f32
    %1204 = vector.broadcast %cst_486 : f32 to vector<8x256xf32>
    %1205 = arith.mulf %1203, %1204 : vector<8x256xf32>
    %1206 = arith.mulf %1205, %1119 : vector<8x256xf32>
    %1207 = arith.addf %1201, %1206 : vector<8x256xf32>
    %cst_487 = arith.constant 6.000000e-01 : f32
    %1208 = vector.broadcast %cst_487 : f32 to vector<8x256xf32>
    %1209 = arith.subf %822, %1208 : vector<8x256xf32>
    %cst_488 = arith.constant 0.833333313 : f32
    %1210 = vector.broadcast %cst_488 : f32 to vector<8x256xf32>
    %1211 = arith.mulf %1209, %1210 : vector<8x256xf32>
    %1212 = arith.mulf %1211, %1119 : vector<8x256xf32>
    %cst_489 = arith.constant 2.200000e+00 : f32
    %1213 = vector.broadcast %cst_489 : f32 to vector<8x256xf32>
    %1214 = arith.subf %1213, %822 : vector<8x256xf32>
    %cst_490 = arith.constant 0.833333313 : f32
    %1215 = vector.broadcast %cst_490 : f32 to vector<8x256xf32>
    %1216 = arith.mulf %1214, %1215 : vector<8x256xf32>
    %1217 = arith.mulf %1216, %1130 : vector<8x256xf32>
    %1218 = arith.addf %1212, %1217 : vector<8x256xf32>
    %1219 = tpu.concatenate %1141, %1152, %1163, %1174, %1185, %1196, %1207, %1218 in 1 : vector<8x256xf32>, vector<8x256xf32>, vector<8x256xf32>, vector<8x256xf32>, vector<8x256xf32>, vector<8x256xf32>, vector<8x256xf32>, vector<8x256xf32> -> vector<8x2048xf32>
    %cst_491 = arith.constant dense<0.000000e+00> : vector<8x128xf32>
    %1220 = tpu.matmul %1219, %824, %cst_491 {dimension_numbers = #tpu.dot_dimension_numbers<[1], [0], [0], [1], [0, 0, 1, 1], [], []>} : vector<8x2048xf32>, vector<2048x128xf32>, vector<8x128xf32> -> vector<8x128xf32>
    %1221 = arith.addf %833, %1220 : vector<8x128xf32>
    %c0_492 = arith.constant 0 : index
    %c0_493 = arith.constant 0 : index
    %1222 = vector.load %arg10[%c0_492, %c0_493] : memref<128x128xf32, #tpu.memory_space<vmem>>, vector<128x128xf32>
    %c0_494 = arith.constant 0 : index
    %c0_495 = arith.constant 0 : index
    %1223 = vector.load %arg11[%c0_494, %c0_495] : memref<1024x128xf32, #tpu.memory_space<vmem>>, vector<1024x128xf32>
    %cst_496 = arith.constant 0.000000e+00 : f32
    %1224 = vector.broadcast %cst_496 : f32 to vector<8x128xf32>
    %1225 = arith.subf %1224, %1221 : vector<8x128xf32>
    %1226 = math.exp %1225 : vector<8x128xf32>
    %cst_497 = arith.constant 1.000000e+00 : f32
    %1227 = vector.broadcast %cst_497 : f32 to vector<8x128xf32>
    %1228 = arith.addf %1227, %1226 : vector<8x128xf32>
    %cst_498 = arith.constant 1.000000e+00 : f32
    %1229 = vector.broadcast %cst_498 : f32 to vector<8x128xf32>
    %1230 = arith.divf %1229, %1228 : vector<8x128xf32>
    %1231 = arith.mulf %1221, %1230 : vector<8x128xf32>
    %cst_499 = arith.constant dense<0.000000e+00> : vector<8x128xf32>
    %1232 = tpu.matmul %1231, %1222, %cst_499 {dimension_numbers = #tpu.dot_dimension_numbers<[1], [0], [0], [1], [0, 0, 1, 1], [], []>} : vector<8x128xf32>, vector<128x128xf32>, vector<8x128xf32> -> vector<8x128xf32>
    %cst_500 = arith.constant -2.200000e+00 : f32
    %1233 = vector.broadcast %cst_500 : f32 to vector<8x128xf32>
    %1234 = arith.cmpf oge, %1221, %1233 : vector<8x128xf32>
    %cst_501 = arith.constant -1.800000e+00 : f32
    %1235 = vector.broadcast %cst_501 : f32 to vector<8x128xf32>
    %1236 = arith.cmpf olt, %1221, %1235 : vector<8x128xf32>
    %1237 = arith.andi %1234, %1236 : vector<8x128xi1>
    %cst_502 = arith.constant 1.000000e+00 : f32
    %cst_503 = arith.constant 0.000000e+00 : f32
    %1238 = vector.broadcast %cst_502 : f32 to vector<8x128xf32>
    %1239 = vector.broadcast %cst_503 : f32 to vector<8x128xf32>
    %1240 = arith.select %1237, %1238, %1239 : vector<8x128xi1>, vector<8x128xf32>
    %cst_504 = arith.constant -1.800000e+00 : f32
    %1241 = vector.broadcast %cst_504 : f32 to vector<8x128xf32>
    %1242 = arith.cmpf oge, %1221, %1241 : vector<8x128xf32>
    %cst_505 = arith.constant -1.400000e+00 : f32
    %1243 = vector.broadcast %cst_505 : f32 to vector<8x128xf32>
    %1244 = arith.cmpf olt, %1221, %1243 : vector<8x128xf32>
    %1245 = arith.andi %1242, %1244 : vector<8x128xi1>
    %cst_506 = arith.constant 1.000000e+00 : f32
    %cst_507 = arith.constant 0.000000e+00 : f32
    %1246 = vector.broadcast %cst_506 : f32 to vector<8x128xf32>
    %1247 = vector.broadcast %cst_507 : f32 to vector<8x128xf32>
    %1248 = arith.select %1245, %1246, %1247 : vector<8x128xi1>, vector<8x128xf32>
    %cst_508 = arith.constant -1.400000e+00 : f32
    %1249 = vector.broadcast %cst_508 : f32 to vector<8x128xf32>
    %1250 = arith.cmpf oge, %1221, %1249 : vector<8x128xf32>
    %cst_509 = arith.constant -1.000000e+00 : f32
    %1251 = vector.broadcast %cst_509 : f32 to vector<8x128xf32>
    %1252 = arith.cmpf olt, %1221, %1251 : vector<8x128xf32>
    %1253 = arith.andi %1250, %1252 : vector<8x128xi1>
    %cst_510 = arith.constant 1.000000e+00 : f32
    %cst_511 = arith.constant 0.000000e+00 : f32
    %1254 = vector.broadcast %cst_510 : f32 to vector<8x128xf32>
    %1255 = vector.broadcast %cst_511 : f32 to vector<8x128xf32>
    %1256 = arith.select %1253, %1254, %1255 : vector<8x128xi1>, vector<8x128xf32>
    %cst_512 = arith.constant -1.000000e+00 : f32
    %1257 = vector.broadcast %cst_512 : f32 to vector<8x128xf32>
    %1258 = arith.cmpf oge, %1221, %1257 : vector<8x128xf32>
    %cst_513 = arith.constant -6.000000e-01 : f32
    %1259 = vector.broadcast %cst_513 : f32 to vector<8x128xf32>
    %1260 = arith.cmpf olt, %1221, %1259 : vector<8x128xf32>
    %1261 = arith.andi %1258, %1260 : vector<8x128xi1>
    %cst_514 = arith.constant 1.000000e+00 : f32
    %cst_515 = arith.constant 0.000000e+00 : f32
    %1262 = vector.broadcast %cst_514 : f32 to vector<8x128xf32>
    %1263 = vector.broadcast %cst_515 : f32 to vector<8x128xf32>
    %1264 = arith.select %1261, %1262, %1263 : vector<8x128xi1>, vector<8x128xf32>
    %cst_516 = arith.constant -6.000000e-01 : f32
    %1265 = vector.broadcast %cst_516 : f32 to vector<8x128xf32>
    %1266 = arith.cmpf oge, %1221, %1265 : vector<8x128xf32>
    %cst_517 = arith.constant -2.000000e-01 : f32
    %1267 = vector.broadcast %cst_517 : f32 to vector<8x128xf32>
    %1268 = arith.cmpf olt, %1221, %1267 : vector<8x128xf32>
    %1269 = arith.andi %1266, %1268 : vector<8x128xi1>
    %cst_518 = arith.constant 1.000000e+00 : f32
    %cst_519 = arith.constant 0.000000e+00 : f32
    %1270 = vector.broadcast %cst_518 : f32 to vector<8x128xf32>
    %1271 = vector.broadcast %cst_519 : f32 to vector<8x128xf32>
    %1272 = arith.select %1269, %1270, %1271 : vector<8x128xi1>, vector<8x128xf32>
    %cst_520 = arith.constant -2.000000e-01 : f32
    %1273 = vector.broadcast %cst_520 : f32 to vector<8x128xf32>
    %1274 = arith.cmpf oge, %1221, %1273 : vector<8x128xf32>
    %cst_521 = arith.constant 2.000000e-01 : f32
    %1275 = vector.broadcast %cst_521 : f32 to vector<8x128xf32>
    %1276 = arith.cmpf olt, %1221, %1275 : vector<8x128xf32>
    %1277 = arith.andi %1274, %1276 : vector<8x128xi1>
    %cst_522 = arith.constant 1.000000e+00 : f32
    %cst_523 = arith.constant 0.000000e+00 : f32
    %1278 = vector.broadcast %cst_522 : f32 to vector<8x128xf32>
    %1279 = vector.broadcast %cst_523 : f32 to vector<8x128xf32>
    %1280 = arith.select %1277, %1278, %1279 : vector<8x128xi1>, vector<8x128xf32>
    %cst_524 = arith.constant 2.000000e-01 : f32
    %1281 = vector.broadcast %cst_524 : f32 to vector<8x128xf32>
    %1282 = arith.cmpf oge, %1221, %1281 : vector<8x128xf32>
    %cst_525 = arith.constant 6.000000e-01 : f32
    %1283 = vector.broadcast %cst_525 : f32 to vector<8x128xf32>
    %1284 = arith.cmpf olt, %1221, %1283 : vector<8x128xf32>
    %1285 = arith.andi %1282, %1284 : vector<8x128xi1>
    %cst_526 = arith.constant 1.000000e+00 : f32
    %cst_527 = arith.constant 0.000000e+00 : f32
    %1286 = vector.broadcast %cst_526 : f32 to vector<8x128xf32>
    %1287 = vector.broadcast %cst_527 : f32 to vector<8x128xf32>
    %1288 = arith.select %1285, %1286, %1287 : vector<8x128xi1>, vector<8x128xf32>
    %cst_528 = arith.constant 6.000000e-01 : f32
    %1289 = vector.broadcast %cst_528 : f32 to vector<8x128xf32>
    %1290 = arith.cmpf oge, %1221, %1289 : vector<8x128xf32>
    %cst_529 = arith.constant 1.000000e+00 : f32
    %1291 = vector.broadcast %cst_529 : f32 to vector<8x128xf32>
    %1292 = arith.cmpf olt, %1221, %1291 : vector<8x128xf32>
    %1293 = arith.andi %1290, %1292 : vector<8x128xi1>
    %cst_530 = arith.constant 1.000000e+00 : f32
    %cst_531 = arith.constant 0.000000e+00 : f32
    %1294 = vector.broadcast %cst_530 : f32 to vector<8x128xf32>
    %1295 = vector.broadcast %cst_531 : f32 to vector<8x128xf32>
    %1296 = arith.select %1293, %1294, %1295 : vector<8x128xi1>, vector<8x128xf32>
    %cst_532 = arith.constant 1.000000e+00 : f32
    %1297 = vector.broadcast %cst_532 : f32 to vector<8x128xf32>
    %1298 = arith.cmpf oge, %1221, %1297 : vector<8x128xf32>
    %cst_533 = arith.constant 1.400000e+00 : f32
    %1299 = vector.broadcast %cst_533 : f32 to vector<8x128xf32>
    %1300 = arith.cmpf olt, %1221, %1299 : vector<8x128xf32>
    %1301 = arith.andi %1298, %1300 : vector<8x128xi1>
    %cst_534 = arith.constant 1.000000e+00 : f32
    %cst_535 = arith.constant 0.000000e+00 : f32
    %1302 = vector.broadcast %cst_534 : f32 to vector<8x128xf32>
    %1303 = vector.broadcast %cst_535 : f32 to vector<8x128xf32>
    %1304 = arith.select %1301, %1302, %1303 : vector<8x128xi1>, vector<8x128xf32>
    %cst_536 = arith.constant 1.400000e+00 : f32
    %1305 = vector.broadcast %cst_536 : f32 to vector<8x128xf32>
    %1306 = arith.cmpf oge, %1221, %1305 : vector<8x128xf32>
    %cst_537 = arith.constant 1.800000e+00 : f32
    %1307 = vector.broadcast %cst_537 : f32 to vector<8x128xf32>
    %1308 = arith.cmpf olt, %1221, %1307 : vector<8x128xf32>
    %1309 = arith.andi %1306, %1308 : vector<8x128xi1>
    %cst_538 = arith.constant 1.000000e+00 : f32
    %cst_539 = arith.constant 0.000000e+00 : f32
    %1310 = vector.broadcast %cst_538 : f32 to vector<8x128xf32>
    %1311 = vector.broadcast %cst_539 : f32 to vector<8x128xf32>
    %1312 = arith.select %1309, %1310, %1311 : vector<8x128xi1>, vector<8x128xf32>
    %cst_540 = arith.constant 1.800000e+00 : f32
    %1313 = vector.broadcast %cst_540 : f32 to vector<8x128xf32>
    %1314 = arith.cmpf oge, %1221, %1313 : vector<8x128xf32>
    %cst_541 = arith.constant 2.200000e+00 : f32
    %1315 = vector.broadcast %cst_541 : f32 to vector<8x128xf32>
    %1316 = arith.cmpf olt, %1221, %1315 : vector<8x128xf32>
    %1317 = arith.andi %1314, %1316 : vector<8x128xi1>
    %cst_542 = arith.constant 1.000000e+00 : f32
    %cst_543 = arith.constant 0.000000e+00 : f32
    %1318 = vector.broadcast %cst_542 : f32 to vector<8x128xf32>
    %1319 = vector.broadcast %cst_543 : f32 to vector<8x128xf32>
    %1320 = arith.select %1317, %1318, %1319 : vector<8x128xi1>, vector<8x128xf32>
    %cst_544 = arith.constant -2.200000e+00 : f32
    %1321 = vector.broadcast %cst_544 : f32 to vector<8x128xf32>
    %1322 = arith.subf %1221, %1321 : vector<8x128xf32>
    %cst_545 = arith.constant 2.500000e+00 : f32
    %1323 = vector.broadcast %cst_545 : f32 to vector<8x128xf32>
    %1324 = arith.mulf %1322, %1323 : vector<8x128xf32>
    %1325 = arith.mulf %1324, %1240 : vector<8x128xf32>
    %cst_546 = arith.constant -1.400000e+00 : f32
    %1326 = vector.broadcast %cst_546 : f32 to vector<8x128xf32>
    %1327 = arith.subf %1326, %1221 : vector<8x128xf32>
    %cst_547 = arith.constant 2.500000e+00 : f32
    %1328 = vector.broadcast %cst_547 : f32 to vector<8x128xf32>
    %1329 = arith.mulf %1327, %1328 : vector<8x128xf32>
    %1330 = arith.mulf %1329, %1248 : vector<8x128xf32>
    %1331 = arith.addf %1325, %1330 : vector<8x128xf32>
    %cst_548 = arith.constant -1.800000e+00 : f32
    %1332 = vector.broadcast %cst_548 : f32 to vector<8x128xf32>
    %1333 = arith.subf %1221, %1332 : vector<8x128xf32>
    %cst_549 = arith.constant 2.500000e+00 : f32
    %1334 = vector.broadcast %cst_549 : f32 to vector<8x128xf32>
    %1335 = arith.mulf %1333, %1334 : vector<8x128xf32>
    %1336 = arith.mulf %1335, %1248 : vector<8x128xf32>
    %cst_550 = arith.constant -1.000000e+00 : f32
    %1337 = vector.broadcast %cst_550 : f32 to vector<8x128xf32>
    %1338 = arith.subf %1337, %1221 : vector<8x128xf32>
    %cst_551 = arith.constant 2.500000e+00 : f32
    %1339 = vector.broadcast %cst_551 : f32 to vector<8x128xf32>
    %1340 = arith.mulf %1338, %1339 : vector<8x128xf32>
    %1341 = arith.mulf %1340, %1256 : vector<8x128xf32>
    %1342 = arith.addf %1336, %1341 : vector<8x128xf32>
    %cst_552 = arith.constant -1.400000e+00 : f32
    %1343 = vector.broadcast %cst_552 : f32 to vector<8x128xf32>
    %1344 = arith.subf %1221, %1343 : vector<8x128xf32>
    %cst_553 = arith.constant 2.500000e+00 : f32
    %1345 = vector.broadcast %cst_553 : f32 to vector<8x128xf32>
    %1346 = arith.mulf %1344, %1345 : vector<8x128xf32>
    %1347 = arith.mulf %1346, %1256 : vector<8x128xf32>
    %cst_554 = arith.constant -6.000000e-01 : f32
    %1348 = vector.broadcast %cst_554 : f32 to vector<8x128xf32>
    %1349 = arith.subf %1348, %1221 : vector<8x128xf32>
    %cst_555 = arith.constant 2.500000e+00 : f32
    %1350 = vector.broadcast %cst_555 : f32 to vector<8x128xf32>
    %1351 = arith.mulf %1349, %1350 : vector<8x128xf32>
    %1352 = arith.mulf %1351, %1264 : vector<8x128xf32>
    %1353 = arith.addf %1347, %1352 : vector<8x128xf32>
    %cst_556 = arith.constant -1.000000e+00 : f32
    %1354 = vector.broadcast %cst_556 : f32 to vector<8x128xf32>
    %1355 = arith.subf %1221, %1354 : vector<8x128xf32>
    %cst_557 = arith.constant 2.500000e+00 : f32
    %1356 = vector.broadcast %cst_557 : f32 to vector<8x128xf32>
    %1357 = arith.mulf %1355, %1356 : vector<8x128xf32>
    %1358 = arith.mulf %1357, %1264 : vector<8x128xf32>
    %cst_558 = arith.constant -2.000000e-01 : f32
    %1359 = vector.broadcast %cst_558 : f32 to vector<8x128xf32>
    %1360 = arith.subf %1359, %1221 : vector<8x128xf32>
    %cst_559 = arith.constant 2.500000e+00 : f32
    %1361 = vector.broadcast %cst_559 : f32 to vector<8x128xf32>
    %1362 = arith.mulf %1360, %1361 : vector<8x128xf32>
    %1363 = arith.mulf %1362, %1272 : vector<8x128xf32>
    %1364 = arith.addf %1358, %1363 : vector<8x128xf32>
    %cst_560 = arith.constant -6.000000e-01 : f32
    %1365 = vector.broadcast %cst_560 : f32 to vector<8x128xf32>
    %1366 = arith.subf %1221, %1365 : vector<8x128xf32>
    %cst_561 = arith.constant 2.500000e+00 : f32
    %1367 = vector.broadcast %cst_561 : f32 to vector<8x128xf32>
    %1368 = arith.mulf %1366, %1367 : vector<8x128xf32>
    %1369 = arith.mulf %1368, %1272 : vector<8x128xf32>
    %cst_562 = arith.constant 2.000000e-01 : f32
    %1370 = vector.broadcast %cst_562 : f32 to vector<8x128xf32>
    %1371 = arith.subf %1370, %1221 : vector<8x128xf32>
    %cst_563 = arith.constant 2.500000e+00 : f32
    %1372 = vector.broadcast %cst_563 : f32 to vector<8x128xf32>
    %1373 = arith.mulf %1371, %1372 : vector<8x128xf32>
    %1374 = arith.mulf %1373, %1280 : vector<8x128xf32>
    %1375 = arith.addf %1369, %1374 : vector<8x128xf32>
    %cst_564 = arith.constant -2.000000e-01 : f32
    %1376 = vector.broadcast %cst_564 : f32 to vector<8x128xf32>
    %1377 = arith.subf %1221, %1376 : vector<8x128xf32>
    %cst_565 = arith.constant 2.500000e+00 : f32
    %1378 = vector.broadcast %cst_565 : f32 to vector<8x128xf32>
    %1379 = arith.mulf %1377, %1378 : vector<8x128xf32>
    %1380 = arith.mulf %1379, %1280 : vector<8x128xf32>
    %cst_566 = arith.constant 6.000000e-01 : f32
    %1381 = vector.broadcast %cst_566 : f32 to vector<8x128xf32>
    %1382 = arith.subf %1381, %1221 : vector<8x128xf32>
    %cst_567 = arith.constant 2.500000e+00 : f32
    %1383 = vector.broadcast %cst_567 : f32 to vector<8x128xf32>
    %1384 = arith.mulf %1382, %1383 : vector<8x128xf32>
    %1385 = arith.mulf %1384, %1288 : vector<8x128xf32>
    %1386 = arith.addf %1380, %1385 : vector<8x128xf32>
    %cst_568 = arith.constant 2.000000e-01 : f32
    %1387 = vector.broadcast %cst_568 : f32 to vector<8x128xf32>
    %1388 = arith.subf %1221, %1387 : vector<8x128xf32>
    %cst_569 = arith.constant 2.500000e+00 : f32
    %1389 = vector.broadcast %cst_569 : f32 to vector<8x128xf32>
    %1390 = arith.mulf %1388, %1389 : vector<8x128xf32>
    %1391 = arith.mulf %1390, %1288 : vector<8x128xf32>
    %cst_570 = arith.constant 1.000000e+00 : f32
    %1392 = vector.broadcast %cst_570 : f32 to vector<8x128xf32>
    %1393 = arith.subf %1392, %1221 : vector<8x128xf32>
    %cst_571 = arith.constant 2.500000e+00 : f32
    %1394 = vector.broadcast %cst_571 : f32 to vector<8x128xf32>
    %1395 = arith.mulf %1393, %1394 : vector<8x128xf32>
    %1396 = arith.mulf %1395, %1296 : vector<8x128xf32>
    %1397 = arith.addf %1391, %1396 : vector<8x128xf32>
    %cst_572 = arith.constant 6.000000e-01 : f32
    %1398 = vector.broadcast %cst_572 : f32 to vector<8x128xf32>
    %1399 = arith.subf %1221, %1398 : vector<8x128xf32>
    %cst_573 = arith.constant 2.500000e+00 : f32
    %1400 = vector.broadcast %cst_573 : f32 to vector<8x128xf32>
    %1401 = arith.mulf %1399, %1400 : vector<8x128xf32>
    %1402 = arith.mulf %1401, %1296 : vector<8x128xf32>
    %cst_574 = arith.constant 1.400000e+00 : f32
    %1403 = vector.broadcast %cst_574 : f32 to vector<8x128xf32>
    %1404 = arith.subf %1403, %1221 : vector<8x128xf32>
    %cst_575 = arith.constant 2.500000e+00 : f32
    %1405 = vector.broadcast %cst_575 : f32 to vector<8x128xf32>
    %1406 = arith.mulf %1404, %1405 : vector<8x128xf32>
    %1407 = arith.mulf %1406, %1304 : vector<8x128xf32>
    %1408 = arith.addf %1402, %1407 : vector<8x128xf32>
    %cst_576 = arith.constant 1.000000e+00 : f32
    %1409 = vector.broadcast %cst_576 : f32 to vector<8x128xf32>
    %1410 = arith.subf %1221, %1409 : vector<8x128xf32>
    %cst_577 = arith.constant 2.500000e+00 : f32
    %1411 = vector.broadcast %cst_577 : f32 to vector<8x128xf32>
    %1412 = arith.mulf %1410, %1411 : vector<8x128xf32>
    %1413 = arith.mulf %1412, %1304 : vector<8x128xf32>
    %cst_578 = arith.constant 1.800000e+00 : f32
    %1414 = vector.broadcast %cst_578 : f32 to vector<8x128xf32>
    %1415 = arith.subf %1414, %1221 : vector<8x128xf32>
    %cst_579 = arith.constant 2.500000e+00 : f32
    %1416 = vector.broadcast %cst_579 : f32 to vector<8x128xf32>
    %1417 = arith.mulf %1415, %1416 : vector<8x128xf32>
    %1418 = arith.mulf %1417, %1312 : vector<8x128xf32>
    %1419 = arith.addf %1413, %1418 : vector<8x128xf32>
    %cst_580 = arith.constant 1.400000e+00 : f32
    %1420 = vector.broadcast %cst_580 : f32 to vector<8x128xf32>
    %1421 = arith.subf %1221, %1420 : vector<8x128xf32>
    %cst_581 = arith.constant 2.500000e+00 : f32
    %1422 = vector.broadcast %cst_581 : f32 to vector<8x128xf32>
    %1423 = arith.mulf %1421, %1422 : vector<8x128xf32>
    %1424 = arith.mulf %1423, %1312 : vector<8x128xf32>
    %cst_582 = arith.constant 2.200000e+00 : f32
    %1425 = vector.broadcast %cst_582 : f32 to vector<8x128xf32>
    %1426 = arith.subf %1425, %1221 : vector<8x128xf32>
    %cst_583 = arith.constant 2.500000e+00 : f32
    %1427 = vector.broadcast %cst_583 : f32 to vector<8x128xf32>
    %1428 = arith.mulf %1426, %1427 : vector<8x128xf32>
    %1429 = arith.mulf %1428, %1320 : vector<8x128xf32>
    %1430 = arith.addf %1424, %1429 : vector<8x128xf32>
    %cst_584 = arith.constant -2.200000e+00 : f32
    %1431 = vector.broadcast %cst_584 : f32 to vector<8x128xf32>
    %1432 = arith.subf %1221, %1431 : vector<8x128xf32>
    %cst_585 = arith.constant 1.250000e+00 : f32
    %1433 = vector.broadcast %cst_585 : f32 to vector<8x128xf32>
    %1434 = arith.mulf %1432, %1433 : vector<8x128xf32>
    %1435 = arith.mulf %1434, %1331 : vector<8x128xf32>
    %cst_586 = arith.constant -1.000000e+00 : f32
    %1436 = vector.broadcast %cst_586 : f32 to vector<8x128xf32>
    %1437 = arith.subf %1436, %1221 : vector<8x128xf32>
    %cst_587 = arith.constant 1.250000e+00 : f32
    %1438 = vector.broadcast %cst_587 : f32 to vector<8x128xf32>
    %1439 = arith.mulf %1437, %1438 : vector<8x128xf32>
    %1440 = arith.mulf %1439, %1342 : vector<8x128xf32>
    %1441 = arith.addf %1435, %1440 : vector<8x128xf32>
    %cst_588 = arith.constant -1.800000e+00 : f32
    %1442 = vector.broadcast %cst_588 : f32 to vector<8x128xf32>
    %1443 = arith.subf %1221, %1442 : vector<8x128xf32>
    %cst_589 = arith.constant 1.250000e+00 : f32
    %1444 = vector.broadcast %cst_589 : f32 to vector<8x128xf32>
    %1445 = arith.mulf %1443, %1444 : vector<8x128xf32>
    %1446 = arith.mulf %1445, %1342 : vector<8x128xf32>
    %cst_590 = arith.constant -6.000000e-01 : f32
    %1447 = vector.broadcast %cst_590 : f32 to vector<8x128xf32>
    %1448 = arith.subf %1447, %1221 : vector<8x128xf32>
    %cst_591 = arith.constant 1.250000e+00 : f32
    %1449 = vector.broadcast %cst_591 : f32 to vector<8x128xf32>
    %1450 = arith.mulf %1448, %1449 : vector<8x128xf32>
    %1451 = arith.mulf %1450, %1353 : vector<8x128xf32>
    %1452 = arith.addf %1446, %1451 : vector<8x128xf32>
    %cst_592 = arith.constant -1.400000e+00 : f32
    %1453 = vector.broadcast %cst_592 : f32 to vector<8x128xf32>
    %1454 = arith.subf %1221, %1453 : vector<8x128xf32>
    %cst_593 = arith.constant 1.250000e+00 : f32
    %1455 = vector.broadcast %cst_593 : f32 to vector<8x128xf32>
    %1456 = arith.mulf %1454, %1455 : vector<8x128xf32>
    %1457 = arith.mulf %1456, %1353 : vector<8x128xf32>
    %cst_594 = arith.constant -2.000000e-01 : f32
    %1458 = vector.broadcast %cst_594 : f32 to vector<8x128xf32>
    %1459 = arith.subf %1458, %1221 : vector<8x128xf32>
    %cst_595 = arith.constant 1.250000e+00 : f32
    %1460 = vector.broadcast %cst_595 : f32 to vector<8x128xf32>
    %1461 = arith.mulf %1459, %1460 : vector<8x128xf32>
    %1462 = arith.mulf %1461, %1364 : vector<8x128xf32>
    %1463 = arith.addf %1457, %1462 : vector<8x128xf32>
    %cst_596 = arith.constant -1.000000e+00 : f32
    %1464 = vector.broadcast %cst_596 : f32 to vector<8x128xf32>
    %1465 = arith.subf %1221, %1464 : vector<8x128xf32>
    %cst_597 = arith.constant 1.250000e+00 : f32
    %1466 = vector.broadcast %cst_597 : f32 to vector<8x128xf32>
    %1467 = arith.mulf %1465, %1466 : vector<8x128xf32>
    %1468 = arith.mulf %1467, %1364 : vector<8x128xf32>
    %cst_598 = arith.constant 2.000000e-01 : f32
    %1469 = vector.broadcast %cst_598 : f32 to vector<8x128xf32>
    %1470 = arith.subf %1469, %1221 : vector<8x128xf32>
    %cst_599 = arith.constant 1.250000e+00 : f32
    %1471 = vector.broadcast %cst_599 : f32 to vector<8x128xf32>
    %1472 = arith.mulf %1470, %1471 : vector<8x128xf32>
    %1473 = arith.mulf %1472, %1375 : vector<8x128xf32>
    %1474 = arith.addf %1468, %1473 : vector<8x128xf32>
    %cst_600 = arith.constant -6.000000e-01 : f32
    %1475 = vector.broadcast %cst_600 : f32 to vector<8x128xf32>
    %1476 = arith.subf %1221, %1475 : vector<8x128xf32>
    %cst_601 = arith.constant 1.250000e+00 : f32
    %1477 = vector.broadcast %cst_601 : f32 to vector<8x128xf32>
    %1478 = arith.mulf %1476, %1477 : vector<8x128xf32>
    %1479 = arith.mulf %1478, %1375 : vector<8x128xf32>
    %cst_602 = arith.constant 6.000000e-01 : f32
    %1480 = vector.broadcast %cst_602 : f32 to vector<8x128xf32>
    %1481 = arith.subf %1480, %1221 : vector<8x128xf32>
    %cst_603 = arith.constant 1.250000e+00 : f32
    %1482 = vector.broadcast %cst_603 : f32 to vector<8x128xf32>
    %1483 = arith.mulf %1481, %1482 : vector<8x128xf32>
    %1484 = arith.mulf %1483, %1386 : vector<8x128xf32>
    %1485 = arith.addf %1479, %1484 : vector<8x128xf32>
    %cst_604 = arith.constant -2.000000e-01 : f32
    %1486 = vector.broadcast %cst_604 : f32 to vector<8x128xf32>
    %1487 = arith.subf %1221, %1486 : vector<8x128xf32>
    %cst_605 = arith.constant 1.250000e+00 : f32
    %1488 = vector.broadcast %cst_605 : f32 to vector<8x128xf32>
    %1489 = arith.mulf %1487, %1488 : vector<8x128xf32>
    %1490 = arith.mulf %1489, %1386 : vector<8x128xf32>
    %cst_606 = arith.constant 1.000000e+00 : f32
    %1491 = vector.broadcast %cst_606 : f32 to vector<8x128xf32>
    %1492 = arith.subf %1491, %1221 : vector<8x128xf32>
    %cst_607 = arith.constant 1.250000e+00 : f32
    %1493 = vector.broadcast %cst_607 : f32 to vector<8x128xf32>
    %1494 = arith.mulf %1492, %1493 : vector<8x128xf32>
    %1495 = arith.mulf %1494, %1397 : vector<8x128xf32>
    %1496 = arith.addf %1490, %1495 : vector<8x128xf32>
    %cst_608 = arith.constant 2.000000e-01 : f32
    %1497 = vector.broadcast %cst_608 : f32 to vector<8x128xf32>
    %1498 = arith.subf %1221, %1497 : vector<8x128xf32>
    %cst_609 = arith.constant 1.250000e+00 : f32
    %1499 = vector.broadcast %cst_609 : f32 to vector<8x128xf32>
    %1500 = arith.mulf %1498, %1499 : vector<8x128xf32>
    %1501 = arith.mulf %1500, %1397 : vector<8x128xf32>
    %cst_610 = arith.constant 1.400000e+00 : f32
    %1502 = vector.broadcast %cst_610 : f32 to vector<8x128xf32>
    %1503 = arith.subf %1502, %1221 : vector<8x128xf32>
    %cst_611 = arith.constant 1.250000e+00 : f32
    %1504 = vector.broadcast %cst_611 : f32 to vector<8x128xf32>
    %1505 = arith.mulf %1503, %1504 : vector<8x128xf32>
    %1506 = arith.mulf %1505, %1408 : vector<8x128xf32>
    %1507 = arith.addf %1501, %1506 : vector<8x128xf32>
    %cst_612 = arith.constant 6.000000e-01 : f32
    %1508 = vector.broadcast %cst_612 : f32 to vector<8x128xf32>
    %1509 = arith.subf %1221, %1508 : vector<8x128xf32>
    %cst_613 = arith.constant 1.250000e+00 : f32
    %1510 = vector.broadcast %cst_613 : f32 to vector<8x128xf32>
    %1511 = arith.mulf %1509, %1510 : vector<8x128xf32>
    %1512 = arith.mulf %1511, %1408 : vector<8x128xf32>
    %cst_614 = arith.constant 1.800000e+00 : f32
    %1513 = vector.broadcast %cst_614 : f32 to vector<8x128xf32>
    %1514 = arith.subf %1513, %1221 : vector<8x128xf32>
    %cst_615 = arith.constant 1.250000e+00 : f32
    %1515 = vector.broadcast %cst_615 : f32 to vector<8x128xf32>
    %1516 = arith.mulf %1514, %1515 : vector<8x128xf32>
    %1517 = arith.mulf %1516, %1419 : vector<8x128xf32>
    %1518 = arith.addf %1512, %1517 : vector<8x128xf32>
    %cst_616 = arith.constant 1.000000e+00 : f32
    %1519 = vector.broadcast %cst_616 : f32 to vector<8x128xf32>
    %1520 = arith.subf %1221, %1519 : vector<8x128xf32>
    %cst_617 = arith.constant 1.250000e+00 : f32
    %1521 = vector.broadcast %cst_617 : f32 to vector<8x128xf32>
    %1522 = arith.mulf %1520, %1521 : vector<8x128xf32>
    %1523 = arith.mulf %1522, %1419 : vector<8x128xf32>
    %cst_618 = arith.constant 2.200000e+00 : f32
    %1524 = vector.broadcast %cst_618 : f32 to vector<8x128xf32>
    %1525 = arith.subf %1524, %1221 : vector<8x128xf32>
    %cst_619 = arith.constant 1.250000e+00 : f32
    %1526 = vector.broadcast %cst_619 : f32 to vector<8x128xf32>
    %1527 = arith.mulf %1525, %1526 : vector<8x128xf32>
    %1528 = arith.mulf %1527, %1430 : vector<8x128xf32>
    %1529 = arith.addf %1523, %1528 : vector<8x128xf32>
    %cst_620 = arith.constant -2.200000e+00 : f32
    %1530 = vector.broadcast %cst_620 : f32 to vector<8x128xf32>
    %1531 = arith.subf %1221, %1530 : vector<8x128xf32>
    %cst_621 = arith.constant 0.833333313 : f32
    %1532 = vector.broadcast %cst_621 : f32 to vector<8x128xf32>
    %1533 = arith.mulf %1531, %1532 : vector<8x128xf32>
    %1534 = arith.mulf %1533, %1441 : vector<8x128xf32>
    %cst_622 = arith.constant -6.000000e-01 : f32
    %1535 = vector.broadcast %cst_622 : f32 to vector<8x128xf32>
    %1536 = arith.subf %1535, %1221 : vector<8x128xf32>
    %cst_623 = arith.constant 0.833333313 : f32
    %1537 = vector.broadcast %cst_623 : f32 to vector<8x128xf32>
    %1538 = arith.mulf %1536, %1537 : vector<8x128xf32>
    %1539 = arith.mulf %1538, %1452 : vector<8x128xf32>
    %1540 = arith.addf %1534, %1539 : vector<8x128xf32>
    %cst_624 = arith.constant -1.800000e+00 : f32
    %1541 = vector.broadcast %cst_624 : f32 to vector<8x128xf32>
    %1542 = arith.subf %1221, %1541 : vector<8x128xf32>
    %cst_625 = arith.constant 0.833333313 : f32
    %1543 = vector.broadcast %cst_625 : f32 to vector<8x128xf32>
    %1544 = arith.mulf %1542, %1543 : vector<8x128xf32>
    %1545 = arith.mulf %1544, %1452 : vector<8x128xf32>
    %cst_626 = arith.constant -2.000000e-01 : f32
    %1546 = vector.broadcast %cst_626 : f32 to vector<8x128xf32>
    %1547 = arith.subf %1546, %1221 : vector<8x128xf32>
    %cst_627 = arith.constant 0.833333313 : f32
    %1548 = vector.broadcast %cst_627 : f32 to vector<8x128xf32>
    %1549 = arith.mulf %1547, %1548 : vector<8x128xf32>
    %1550 = arith.mulf %1549, %1463 : vector<8x128xf32>
    %1551 = arith.addf %1545, %1550 : vector<8x128xf32>
    %cst_628 = arith.constant -1.400000e+00 : f32
    %1552 = vector.broadcast %cst_628 : f32 to vector<8x128xf32>
    %1553 = arith.subf %1221, %1552 : vector<8x128xf32>
    %cst_629 = arith.constant 0.833333313 : f32
    %1554 = vector.broadcast %cst_629 : f32 to vector<8x128xf32>
    %1555 = arith.mulf %1553, %1554 : vector<8x128xf32>
    %1556 = arith.mulf %1555, %1463 : vector<8x128xf32>
    %cst_630 = arith.constant 2.000000e-01 : f32
    %1557 = vector.broadcast %cst_630 : f32 to vector<8x128xf32>
    %1558 = arith.subf %1557, %1221 : vector<8x128xf32>
    %cst_631 = arith.constant 0.833333313 : f32
    %1559 = vector.broadcast %cst_631 : f32 to vector<8x128xf32>
    %1560 = arith.mulf %1558, %1559 : vector<8x128xf32>
    %1561 = arith.mulf %1560, %1474 : vector<8x128xf32>
    %1562 = arith.addf %1556, %1561 : vector<8x128xf32>
    %cst_632 = arith.constant -1.000000e+00 : f32
    %1563 = vector.broadcast %cst_632 : f32 to vector<8x128xf32>
    %1564 = arith.subf %1221, %1563 : vector<8x128xf32>
    %cst_633 = arith.constant 0.833333313 : f32
    %1565 = vector.broadcast %cst_633 : f32 to vector<8x128xf32>
    %1566 = arith.mulf %1564, %1565 : vector<8x128xf32>
    %1567 = arith.mulf %1566, %1474 : vector<8x128xf32>
    %cst_634 = arith.constant 6.000000e-01 : f32
    %1568 = vector.broadcast %cst_634 : f32 to vector<8x128xf32>
    %1569 = arith.subf %1568, %1221 : vector<8x128xf32>
    %cst_635 = arith.constant 0.833333313 : f32
    %1570 = vector.broadcast %cst_635 : f32 to vector<8x128xf32>
    %1571 = arith.mulf %1569, %1570 : vector<8x128xf32>
    %1572 = arith.mulf %1571, %1485 : vector<8x128xf32>
    %1573 = arith.addf %1567, %1572 : vector<8x128xf32>
    %cst_636 = arith.constant -6.000000e-01 : f32
    %1574 = vector.broadcast %cst_636 : f32 to vector<8x128xf32>
    %1575 = arith.subf %1221, %1574 : vector<8x128xf32>
    %cst_637 = arith.constant 0.833333313 : f32
    %1576 = vector.broadcast %cst_637 : f32 to vector<8x128xf32>
    %1577 = arith.mulf %1575, %1576 : vector<8x128xf32>
    %1578 = arith.mulf %1577, %1485 : vector<8x128xf32>
    %cst_638 = arith.constant 1.000000e+00 : f32
    %1579 = vector.broadcast %cst_638 : f32 to vector<8x128xf32>
    %1580 = arith.subf %1579, %1221 : vector<8x128xf32>
    %cst_639 = arith.constant 0.833333313 : f32
    %1581 = vector.broadcast %cst_639 : f32 to vector<8x128xf32>
    %1582 = arith.mulf %1580, %1581 : vector<8x128xf32>
    %1583 = arith.mulf %1582, %1496 : vector<8x128xf32>
    %1584 = arith.addf %1578, %1583 : vector<8x128xf32>
    %cst_640 = arith.constant -2.000000e-01 : f32
    %1585 = vector.broadcast %cst_640 : f32 to vector<8x128xf32>
    %1586 = arith.subf %1221, %1585 : vector<8x128xf32>
    %cst_641 = arith.constant 0.833333313 : f32
    %1587 = vector.broadcast %cst_641 : f32 to vector<8x128xf32>
    %1588 = arith.mulf %1586, %1587 : vector<8x128xf32>
    %1589 = arith.mulf %1588, %1496 : vector<8x128xf32>
    %cst_642 = arith.constant 1.400000e+00 : f32
    %1590 = vector.broadcast %cst_642 : f32 to vector<8x128xf32>
    %1591 = arith.subf %1590, %1221 : vector<8x128xf32>
    %cst_643 = arith.constant 0.833333313 : f32
    %1592 = vector.broadcast %cst_643 : f32 to vector<8x128xf32>
    %1593 = arith.mulf %1591, %1592 : vector<8x128xf32>
    %1594 = arith.mulf %1593, %1507 : vector<8x128xf32>
    %1595 = arith.addf %1589, %1594 : vector<8x128xf32>
    %cst_644 = arith.constant 2.000000e-01 : f32
    %1596 = vector.broadcast %cst_644 : f32 to vector<8x128xf32>
    %1597 = arith.subf %1221, %1596 : vector<8x128xf32>
    %cst_645 = arith.constant 0.833333313 : f32
    %1598 = vector.broadcast %cst_645 : f32 to vector<8x128xf32>
    %1599 = arith.mulf %1597, %1598 : vector<8x128xf32>
    %1600 = arith.mulf %1599, %1507 : vector<8x128xf32>
    %cst_646 = arith.constant 1.800000e+00 : f32
    %1601 = vector.broadcast %cst_646 : f32 to vector<8x128xf32>
    %1602 = arith.subf %1601, %1221 : vector<8x128xf32>
    %cst_647 = arith.constant 0.833333313 : f32
    %1603 = vector.broadcast %cst_647 : f32 to vector<8x128xf32>
    %1604 = arith.mulf %1602, %1603 : vector<8x128xf32>
    %1605 = arith.mulf %1604, %1518 : vector<8x128xf32>
    %1606 = arith.addf %1600, %1605 : vector<8x128xf32>
    %cst_648 = arith.constant 6.000000e-01 : f32
    %1607 = vector.broadcast %cst_648 : f32 to vector<8x128xf32>
    %1608 = arith.subf %1221, %1607 : vector<8x128xf32>
    %cst_649 = arith.constant 0.833333313 : f32
    %1609 = vector.broadcast %cst_649 : f32 to vector<8x128xf32>
    %1610 = arith.mulf %1608, %1609 : vector<8x128xf32>
    %1611 = arith.mulf %1610, %1518 : vector<8x128xf32>
    %cst_650 = arith.constant 2.200000e+00 : f32
    %1612 = vector.broadcast %cst_650 : f32 to vector<8x128xf32>
    %1613 = arith.subf %1612, %1221 : vector<8x128xf32>
    %cst_651 = arith.constant 0.833333313 : f32
    %1614 = vector.broadcast %cst_651 : f32 to vector<8x128xf32>
    %1615 = arith.mulf %1613, %1614 : vector<8x128xf32>
    %1616 = arith.mulf %1615, %1529 : vector<8x128xf32>
    %1617 = arith.addf %1611, %1616 : vector<8x128xf32>
    %1618 = tpu.concatenate %1540, %1551, %1562, %1573, %1584, %1595, %1606, %1617 in 1 : vector<8x128xf32>, vector<8x128xf32>, vector<8x128xf32>, vector<8x128xf32>, vector<8x128xf32>, vector<8x128xf32>, vector<8x128xf32>, vector<8x128xf32> -> vector<8x1024xf32>
    %cst_652 = arith.constant dense<0.000000e+00> : vector<8x128xf32>
    %1619 = tpu.matmul %1618, %1223, %cst_652 {dimension_numbers = #tpu.dot_dimension_numbers<[1], [0], [0], [1], [0, 0, 1, 1], [], []>} : vector<8x1024xf32>, vector<1024x128xf32>, vector<8x128xf32> -> vector<8x128xf32>
    %1620 = arith.addf %1232, %1619 : vector<8x128xf32>
    %1621 = tpu.iota {dimensions = array<i32: 1>} : vector<8x128xi32>
    %c4_i32 = arith.constant 4 : i32
    %1622 = vector.broadcast %c4_i32 : i32 to vector<8x128xi32>
    %1623 = arith.cmpi slt, %1621, %1622 : vector<8x128xi32>
    %cst_653 = arith.constant -1.000000e+30 : f32
    %1624 = vector.broadcast %cst_653 : f32 to vector<8x128xf32>
    %1625 = arith.select %1623, %1620, %1624 : vector<8x128xi1>, vector<8x128xf32>
    %cst_654 = arith.constant dense<0xFF800000> : vector<8xf32>
    %1626 = vector.multi_reduction <maximumf>, %1625, %cst_654 [1] : vector<8x128xf32> to vector<8xf32>
    %1627 = vector.shape_cast %1626 : vector<8xf32> to vector<8x1xf32>
    %1628 = vector.broadcast %1627 : vector<8x1xf32> to vector<8x128xf32>
    %1629 = arith.subf %1625, %1628 : vector<8x128xf32>
    %1630 = math.exp %1629 : vector<8x128xf32>
    %cst_655 = arith.constant dense<0.000000e+00> : vector<8xf32>
    %1631 = vector.multi_reduction <add>, %1630, %cst_655 [1] : vector<8x128xf32> to vector<8xf32>
    %1632 = vector.shape_cast %1631 : vector<8xf32> to vector<8x1xf32>
    %1633 = tpu.reciprocal %1632 {approx = true} : vector<8x1xf32> -> vector<8x1xf32>
    %1634 = vector.broadcast %1633 : vector<8x1xf32> to vector<8x128xf32>
    %1635 = arith.mulf %1630, %1634 : vector<8x128xf32>
    %c0_656 = arith.constant 0 : index
    %c0_657 = arith.constant 0 : index
    %1636 = vector.load %arg12[%c0_656, %c0_657] : memref<8x128xf32, #tpu.memory_space<vmem>>, vector<8x128xf32>
    tpu.vector_store %arg12[%c0_656, %c0_657], %1635 {strides = array<i32>} : memref<8x128xf32, #tpu.memory_space<vmem>>, vector<8x128xf32>,
    return
  }
  func.func @transform_0(%arg0: i32) -> (i32, i32) {
    %c0_i32 = arith.constant 0 : i32
    %c0_i32_0 = arith.constant 0 : i32
    return %arg0, %c0_i32 : i32, i32
  }
  func.func @transform_1(%arg0: i32) -> (i32, i32) {
    %c0_i32 = arith.constant 0 : i32
    %c0_i32_0 = arith.constant 0 : i32
    %c0_i32_1 = arith.constant 0 : i32
    return %c0_i32, %c0_i32_0 : i32, i32
  }
  func.func @transform_2(%arg0: i32) -> (i32, i32) {
    %c0_i32 = arith.constant 0 : i32
    %c0_i32_0 = arith.constant 0 : i32
    %c0_i32_1 = arith.constant 0 : i32
    return %c0_i32, %c0_i32_0 : i32, i32
  }
  func.func @transform_3(%arg0: i32) -> (i32, i32) {
    %c0_i32 = arith.constant 0 : i32
    %c0_i32_0 = arith.constant 0 : i32
    %c0_i32_1 = arith.constant 0 : i32
    return %c0_i32, %c0_i32_0 : i32, i32
  }
  func.func @transform_4(%arg0: i32) -> (i32, i32) {
    %c0_i32 = arith.constant 0 : i32
    %c0_i32_0 = arith.constant 0 : i32
    %c0_i32_1 = arith.constant 0 : i32
    return %c0_i32, %c0_i32_0 : i32, i32
  }
  func.func @transform_5(%arg0: i32) -> (i32, i32) {
    %c0_i32 = arith.constant 0 : i32
    %c0_i32_0 = arith.constant 0 : i32
    %c0_i32_1 = arith.constant 0 : i32
    return %c0_i32, %c0_i32_0 : i32, i32
  }
  func.func @transform_6(%arg0: i32) -> (i32, i32) {
    %c0_i32 = arith.constant 0 : i32
    %c0_i32_0 = arith.constant 0 : i32
    %c0_i32_1 = arith.constant 0 : i32
    return %c0_i32, %c0_i32_0 : i32, i32
  }
  func.func @transform_7(%arg0: i32) -> (i32, i32) {
    %c0_i32 = arith.constant 0 : i32
    %c0_i32_0 = arith.constant 0 : i32
    %c0_i32_1 = arith.constant 0 : i32
    return %c0_i32, %c0_i32_0 : i32, i32
  }
  func.func @transform_8(%arg0: i32) -> (i32, i32) {
    %c0_i32 = arith.constant 0 : i32
    %c0_i32_0 = arith.constant 0 : i32
    %c0_i32_1 = arith.constant 0 : i32
    return %c0_i32, %c0_i32_0 : i32, i32
  }
  func.func @transform_9(%arg0: i32) -> (i32, i32) {
    %c0_i32 = arith.constant 0 : i32
    %c0_i32_0 = arith.constant 0 : i32
    %c0_i32_1 = arith.constant 0 : i32
    return %c0_i32, %c0_i32_0 : i32, i32
  }
  func.func @transform_10(%arg0: i32) -> (i32, i32) {
    %c0_i32 = arith.constant 0 : i32
    %c0_i32_0 = arith.constant 0 : i32
    %c0_i32_1 = arith.constant 0 : i32
    return %c0_i32, %c0_i32_0 : i32, i32
  }
  func.func @transform_11(%arg0: i32) -> (i32, i32) {
    %c0_i32 = arith.constant 0 : i32
    %c0_i32_0 = arith.constant 0 : i32
    return %arg0, %c0_i32 : i32, i32
  }
}

</mosaic_0001>

<bundles_post_ra>
// kernel: kan_actor_forward.1
= control target key start
LH: loop header
LB: loop body
LE: loop exit
PB: predicated region body
PF: predicated region fallthrough
CT: control target
= control target key end

     0   :  { %16 = vsyncpa [#allocation3], 0  ;;  %s5774_s0 = inlined_call_operand.vmem [shape: f32[8,128], index: 0, kind: input, shape index: {}]   ;;  %s5775_s1 = inlined_call_operand.hbm [shape: f32[128,128], index: 1, kind: input, shape index: {}]   ;;  %s5776_s2 = inlined_call_operand.hbm [shape: f32[1024,128], index: 2, kind: input, shape index: {}]   ;;  %s5777_s3 = inlined_call_operand.hbm [shape: f32[128,256], index: 3, kind: input, shape index: {}]   ;;  %s5778_s4 = inlined_call_operand.hbm [shape: f32[1024,256], index: 4, kind: input, shape index: {}]   ;;  %s5779_s5 = inlined_call_operand.vmem [shape: f32[1,256], index: 5, kind: input, shape index: {}]   ;;  %s5780_s6 = inlined_call_operand.vmem [shape: f32[1,256], index: 6, kind: input, shape index: {}]   ;;  %s5781_s7 = inlined_call_operand.hbm [shape: f32[256,128], index: 7, kind: input, shape index: {}]   ;;  %s5782_s8 = inlined_call_operand.hbm [shape: f32[2048,128], index: 8, kind: input, shape index: {}]   ;;  %s5783_s9 = inlined_call_operand.hbm [shape: f32[128,128], index: 9, kind: input, shape index: {}]   ;;  %s5784_s10 = inlined_call_operand.hbm [shape: f32[1024,128], index: 10, kind: input, shape index: {}]   ;;  %s5785_s11 = inlined_call_operand.vmem [shape: f32[8,128], index: 11, kind: output, shape index: {}]  }
   0x1   :  { %17 = vsyncpa [#allocation5], 0 }
   0x2   :  { %18 = vsyncpa [#allocation8], 0 }
   0x3   :  { %19 = vsyncpa [#allocation11], 0 }
   0x4   :  { %20 = vsyncpa [#allocation14], 0  ;;  %s4754_s17 = smov [#allocation4]  }
   0x5   :  { %s40_s18 = sshll.u32 %s4754_s17, 4  ;;  %s41_s18 = int_to_ptr.vmem [resolvable:$true] %s40_s18 }
   0x6   :  { %s4592_s19 = scalar_lea.vmem %s41_s18, 16384  ;;  %p4597_p1 = scmp.lt.s32.totalorder %s41_s18, %s41_s18 }
   0x7   :  { %p4593_p0 = scmp.ne.s32.totalorder %s41_s18, %s4592_s19  ;;  %p4598_p2 = scmp.lt.s32.totalorder %s4592_s19, %s4592_s19 }
   0x9   :  { %p4599_p3 = por %p4598_p2, %p4597_p1 }
   0xb   :  { %p4600_p4 = pnand %p4599_p3, %p4593_p0 }
   0xd   :  { %4603 = shalt.err (!%p4600_p4)
}
   0xe   :  { %s4755_s20 = smov 128   ;;  %s4756_s21 = smov 8  }
   0xf   :  { %46 = dma.hbm_to_vmem [thread:$0]  %s5776_s2, 16384, %s41_s18, [#allocation5], %s4755_s20, %s4755_s20, %s4756_s21  }
  0x10   :  { %s4757_s24 = smov [#allocation7]   ;;  %s4758_s26 = smov [#allocation10]  }
  0x11   :  { %s64_s25 = sshll.u32 %s4757_s24, 4  ;;  %s92_s27 = sshll.u32 %s4758_s26, 4  ;;  %s65_s25 = int_to_ptr.vmem [resolvable:$true] %s64_s25  ;;  %s93_s27 = int_to_ptr.vmem [resolvable:$true] %s92_s27 }
  0x12   :  { %s4612_s28 = scalar_lea.vmem %s65_s25, 32768  ;;  %p4617_p6 = scmp.lt.s32.totalorder %s65_s25, %s65_s25 }
  0x13   :  { %p4613_p5 = scmp.ne.s32.totalorder %s65_s25, %s4612_s28  ;;  %p4618_p7 = scmp.lt.s32.totalorder %s4612_s28, %s4612_s28 }
  0x15   :  { %p4619_p8 = por %p4618_p7, %p4617_p6 }
  0x17   :  { %p4620_p9 = pnand %p4619_p8, %p4613_p5 }
  0x19   :  { %4623 = shalt.err (!%p4620_p9)
}
  0x1a   :  { %s4759_s29 = smov 256   ;;  %s4760_s30 = smov 16  }
  0x1b   :  { %70 = dma.hbm_to_vmem [thread:$0]  %s5778_s4, 32768, %s65_s25, [#allocation8], %s4759_s29, %s4759_s29, %s4760_s30  }
  0x1c   :  { %s4632_s2 = scalar_lea.vmem %s93_s27, 32768  ;;  %p4637_p11 = scmp.lt.s32.totalorder %s93_s27, %s93_s27 }
  0x1d   :  { %p4633_p10 = scmp.ne.s32.totalorder %s93_s27, %s4632_s2  ;;  %p4638_p12 = scmp.lt.s32.totalorder %s4632_s2, %s4632_s2 }
  0x1f   :  { %p4639_p13 = por %p4638_p12, %p4637_p11 }
  0x21   :  { %p4640_p0 = pnand %p4639_p13, %p4633_p10 }
  0x23   :  { %4643 = shalt.err (!%p4640_p0)
}
  0x24   :  { %98 = dma.hbm_to_vmem [thread:$0]  %s5782_s8, 32768, %s93_s27, [#allocation11], %s4755_s20, %s4755_s20, %s4756_s21  }
  0x25   :  { %s4761_s16 = smov [#allocation2]   ;;  %s4762_s18 = smov [#allocation6]  }
  0x26   :  { %s28_s17 = sshll.u32 %s4761_s16, 4  ;;  %s52_s4 = sshll.u32 %s4762_s18, 4  ;;  %s29_s17 = int_to_ptr.vmem [resolvable:$true] %s28_s17  ;;  %s53_s4 = int_to_ptr.vmem [resolvable:$true] %s52_s4 }
  0x27   :  { %s4652_s19 = scalar_lea.vmem %s29_s17, 2048  ;;  %p4657_p2 = scmp.lt.s32.totalorder %s29_s17, %s29_s17 }
  0x28   :  { %p4653_p1 = scmp.ne.s32.totalorder %s29_s17, %s4652_s19  ;;  %p4658_p3 = scmp.lt.s32.totalorder %s4652_s19, %s4652_s19 }
  0x2a   :  { %p4659_p4 = por %p4658_p3, %p4657_p2 }
  0x2c   :  { %p4660_p5 = pnand %p4659_p4, %p4653_p1 }
  0x2e   :  { %4663 = shalt.err (!%p4660_p5)
}
  0x2f   :  { %34 = dma.hbm_to_vmem [thread:$0]  %s5775_s1, 2048, %s29_s17, [#allocation3], %s4755_s20, %s4755_s20, %s4756_s21  }
  0x30   :  { %s4672_s8 = scalar_lea.vmem %s53_s4, 4096  ;;  %p4677_p7 = scmp.lt.s32.totalorder %s53_s4, %s53_s4 }
  0x31   :  { %p4673_p6 = scmp.ne.s32.totalorder %s53_s4, %s4672_s8  ;;  %p4678_p8 = scmp.lt.s32.totalorder %s4672_s8, %s4672_s8 }
  0x33   :  { %p4679_p9 = por %p4678_p8, %p4677_p7 }
  0x35   :  { %p4680_p10 = pnand %p4679_p9, %p4673_p6 }
  0x37   :  { %4683 = shalt.err (!%p4680_p10)
}
  0x38   :  { %58 = dma.hbm_to_vmem [thread:$0]  %s5777_s3, 4096, %s53_s4, [#allocation5], %s4759_s29, %s4759_s29, %s4760_s30  }
  0x39   :  { %s4763_s26 = smov [#allocation9]   ;;  %s4764_s28 = smov [#allocation12]  }
  0x3a   :  { %s80_s27 = sshll.u32 %s4763_s26, 4  ;;  %s104_s1 = sshll.u32 %s4764_s28, 4  ;;  %s81_s27 = int_to_ptr.vmem [resolvable:$true] %s80_s27  ;;  %s105_s1 = int_to_ptr.vmem [resolvable:$true] %s104_s1 }
  0x3b   :  { %s4692_s12 = scalar_lea.vmem %s81_s27, 4096  ;;  %p4697_p12 = scmp.lt.s32.totalorder %s81_s27, %s81_s27 }
  0x3c   :  { %p4693_p11 = scmp.ne.s32.totalorder %s81_s27, %s4692_s12  ;;  %p4698_p13 = scmp.lt.s32.totalorder %s4692_s12, %s4692_s12 }
  0x3e   :  { %p4699_p0 = por %p4698_p13, %p4697_p12 }
  0x40   :  { %p4700_p1 = pnand %p4699_p0, %p4693_p11 }
  0x42   :  { %4703 = shalt.err (!%p4700_p1)
}
  0x43   :  { %86 = dma.hbm_to_vmem [thread:$0]  %s5781_s7, 4096, %s81_s27, [#allocation8], %s4755_s20, %s4755_s20, %s4756_s21  }
  0x44   :  { %s4712_s3 = scalar_lea.vmem %s105_s1, 2048  ;;  %p4717_p3 = scmp.lt.s32.totalorder %s105_s1, %s105_s1 }
  0x45   :  { %p4713_p2 = scmp.ne.s32.totalorder %s105_s1, %s4712_s3  ;;  %p4718_p4 = scmp.lt.s32.totalorder %s4712_s3, %s4712_s3 }
  0x47   :  { %p4719_p5 = por %p4718_p4, %p4717_p3 }
  0x49   :  { %p4720_p6 = pnand %p4719_p5, %p4713_p2 }
  0x4b   :  { %4723 = shalt.err (!%p4720_p6)
}
  0x4c   :  { %110 = dma.hbm_to_vmem [thread:$0]  %s5783_s9, 2048, %s105_s1, [#allocation11], %s4755_s20, %s4755_s20, %s4756_s21  }
  0x4d   :  { %s4765_s14 = smov [#allocation13]  }
  0x4e   :  { %s116_s15 = sshll.u32 %s4765_s14, 4  ;;  %s117_s15 = int_to_ptr.vmem [resolvable:$true] %s116_s15 }
  0x4f   :  { %s4732_s16 = scalar_lea.vmem %s117_s15, 16384  ;;  %p4737_p8 = scmp.lt.s32.totalorder %s117_s15, %s117_s15 }
  0x50   :  { %p4733_p7 = scmp.ne.s32.totalorder %s117_s15, %s4732_s16  ;;  %p4738_p9 = scmp.lt.s32.totalorder %s4732_s16, %s4732_s16 }
  0x52   :  { %p4739_p10 = por %p4738_p9, %p4737_p8 }
  0x54   :  { %p4740_p11 = pnand %p4739_p10, %p4733_p7 }
  0x56   :  { %4743 = shalt.err (!%p4740_p11)
}
  0x57   :  { %122 = dma.hbm_to_vmem [thread:$0]  %s5784_s10, 16384, %s117_s15, [#allocation14], %s4755_s20, %s4755_s20, %s4756_s21  }
  0x58   :  { %4744 = dma.done.wait [#allocation3], 2048  }
  0x59   :  { %4745 = vsyncadd [#allocation3], 4294965248 }
  0x5a   :  { %4746 = dma.done.wait [#allocation5], 20480  }
  0x5b   :  { %4747 = vsyncadd [#allocation5], 4294946816 }
  0x5c   :  { %4748 = dma.done.wait [#allocation8], 36864  }
  0x5d   :  { %4749 = vsyncadd [#allocation8], 4294930432 }
  0x5e   :  { %4750 = dma.done.wait [#allocation11], 34816  }
  0x5f   :  { %4751 = vsyncadd [#allocation11], 4294932480 }
  0x60   :  { %4752 = dma.done.wait [#allocation14], 16384  }
  0x61   :  { %4753 = vsyncadd [#allocation14], 4294950912  ;;  %v195_v0 = vld [vmem:[#allocation4 + $0xf8] sm:$0xff]  ;;  %v194_v4 = vld [vmem:[#allocation4 + $0xf0] sm:$0xff]  ;;  %v4766_v60 = vmov 0.0  }
  0x62   :  { %v227_v1 = vld [vmem:[#allocation4 + $0x1f8] sm:$0xff]  ;;  %3845 = vmatprep.subr.mxu0 %v195_v0  ;;  %v226_v5 = vld [vmem:[#allocation4 + $0x1f0] sm:$0xff]  ;;  %v193_v8 = vld [vmem:[#allocation4 + $0xe8] sm:$0xff] }
  0x63   :  { %v179_v2 = vld [vmem:[#allocation4 + $0x78] sm:$0xff]  ;;  %3880 = vmatprep.subr.mxu1 %v227_v1  ;;  %v178_v6 = vld [vmem:[#allocation4 + $0x70] sm:$0xff]  ;;  %v225_v9 = vld [vmem:[#allocation4 + $0x1e8] sm:$0xff] }
  0x64   :  { %v211_v3 = vld [vmem:[#allocation4 + $0x178] sm:$0xff]  ;;  %3846 = vmatpush3.msra.mxu0 %v179_v2  ;;  %v210_v7 = vld [vmem:[#allocation4 + $0x170] sm:$0xff]  ;;  %v177_v10 = vld [vmem:[#allocation4 + $0x68] sm:$0xff] }
  0x65   :  { %3881 = vmatpush3.msra.mxu1 %v211_v3  ;;  %3847 = vmatprep.subr.mxu0 %v194_v4  ;;  %v209_v11 = vld [vmem:[#allocation4 + $0x168] sm:$0xff]  ;;  %v192_v12 = vld [vmem:[#allocation4 + $0xe0] sm:$0xff]  ;;  %v191_v16 = vld [vmem:[#allocation4 + $0xd8] sm:$0xff] }
  0x66   :  { %3882 = vmatprep.subr.mxu1 %v226_v5  ;;  %3848 = vmatpush3.msra.mxu0 %v178_v6  ;;  %v224_v13 = vld [vmem:[#allocation4 + $0x1e0] sm:$0xff]  ;;  %v223_v17 = vld [vmem:[#allocation4 + $0x1d8] sm:$0xff]  ;;  %v190_v20 = vld [vmem:[#allocation4 + $0xd0] sm:$0xff] }
  0x67   :  { %3883 = vmatpush3.msra.mxu1 %v210_v7  ;;  %3849 = vmatprep.subr.mxu0 %v193_v8  ;;  %v176_v14 = vld [vmem:[#allocation4 + $0x60] sm:$0xff]  ;;  %v175_v18 = vld [vmem:[#allocation4 + $0x58] sm:$0xff]  ;;  %v222_v21 = vld [vmem:[#allocation4 + $0x1d0] sm:$0xff] }
  0x68   :  { %3884 = vmatprep.subr.mxu1 %v225_v9  ;;  %v208_v15 = vld [vmem:[#allocation4 + $0x160] sm:$0xff]  ;;  %3850 = vmatpush3.msra.mxu0 %v177_v10  ;;  %v207_v19 = vld [vmem:[#allocation4 + $0x158] sm:$0xff]  ;;  %v174_v22 = vld [vmem:[#allocation4 + $0x50] sm:$0xff] }
  0x69   :  { %3885 = vmatpush3.msra.mxu1 %v209_v11  ;;  %3851 = vmatprep.subr.mxu0 %v192_v12  ;;  %v206_v23 = vld [vmem:[#allocation4 + $0x150] sm:$0xff]  ;;  %v189_v24 = vld [vmem:[#allocation4 + $0xc8] sm:$0xff]  ;;  %v188_v28 = vld [vmem:[#allocation4 + $0xc0] sm:$0xff] }
  0x6a   :  { %3886 = vmatprep.subr.mxu1 %v224_v13  ;;  %3852 = vmatpush3.msra.mxu0 %v176_v14  ;;  %v221_v25 = vld [vmem:[#allocation4 + $0x1c8] sm:$0xff]  ;;  %v220_v29 = vld [vmem:[#allocation4 + $0x1c0] sm:$0xff]  ;;  %v187_v32 = vld [vmem:[#allocation4 + $0xb8] sm:$0xff] }
  0x6b   :  { %3887 = vmatpush3.msra.mxu1 %v208_v15  ;;  %3853 = vmatprep.subr.mxu0 %v191_v16  ;;  %v173_v26 = vld [vmem:[#allocation4 + $0x48] sm:$0xff]  ;;  %v172_v30 = vld [vmem:[#allocation4 + $0x40] sm:$0xff]  ;;  %v219_v33 = vld [vmem:[#allocation4 + $0x1b8] sm:$0xff] }
  0x6c   :  { %3888 = vmatprep.subr.mxu1 %v223_v17  ;;  %3854 = vmatpush3.msra.mxu0 %v175_v18  ;;  %v205_v27 = vld [vmem:[#allocation4 + $0x148] sm:$0xff]  ;;  %v204_v31 = vld [vmem:[#allocation4 + $0x140] sm:$0xff]  ;;  %v171_v34 = vld [vmem:[#allocation4 + $0x38] sm:$0xff] }
  0x6d   :  { %3889 = vmatpush3.msra.mxu1 %v207_v19  ;;  %3855 = vmatprep.subr.mxu0 %v190_v20  ;;  %v203_v35 = vld [vmem:[#allocation4 + $0x138] sm:$0xff]  ;;  %v186_v36 = vld [vmem:[#allocation4 + $0xb0] sm:$0xff]  ;;  %v185_v40 = vld [vmem:[#allocation4 + $0xa8] sm:$0xff] }
  0x6e   :  { %3890 = vmatprep.subr.mxu1 %v222_v21  ;;  %3856 = vmatpush3.msra.mxu0 %v174_v22  ;;  %v218_v37 = vld [vmem:[#allocation4 + $0x1b0] sm:$0xff]  ;;  %v217_v41 = vld [vmem:[#allocation4 + $0x1a8] sm:$0xff]  ;;  %v184_v44 = vld [vmem:[#allocation4 + $0xa0] sm:$0xff] }
  0x6f   :  { %3891 = vmatpush3.msra.mxu1 %v206_v23  ;;  %3857 = vmatprep.subr.mxu0 %v189_v24  ;;  %v170_v38 = vld [vmem:[#allocation4 + $0x30] sm:$0xff]  ;;  %v169_v42 = vld [vmem:[#allocation4 + $0x28] sm:$0xff]  ;;  %v216_v45 = vld [vmem:[#allocation4 + $0x1a0] sm:$0xff] }
  0x70   :  { %3892 = vmatprep.subr.mxu1 %v221_v25  ;;  %3858 = vmatpush3.msra.mxu0 %v173_v26  ;;  %v202_v39 = vld [vmem:[#allocation4 + $0x130] sm:$0xff]  ;;  %v201_v43 = vld [vmem:[#allocation4 + $0x128] sm:$0xff]  ;;  %v168_v46 = vld [vmem:[#allocation4 + $0x20] sm:$0xff] }
  0x71   :  { %3893 = vmatpush3.msra.mxu1 %v205_v27  ;;  %3859 = vmatprep.subr.mxu0 %v188_v28  ;;  %v200_v47 = vld [vmem:[#allocation4 + $0x120] sm:$0xff]  ;;  %v183_v48 = vld [vmem:[#allocation4 + $0x98] sm:$0xff]  ;;  %v182_v53 = vld [vmem:[#allocation4 + $0x90] sm:$0xff] }
  0x72   :  { %3894 = vmatprep.subr.mxu1 %v220_v29  ;;  %3860 = vmatpush3.msra.mxu0 %v172_v30  ;;  %v215_v49 = vld [vmem:[#allocation4 + $0x198] sm:$0xff]  ;;  %v4879_v52 = vld [vmem:[%s5774_s0] sm:$0xff]  ;;  %v214_v54 = vld [vmem:[#allocation4 + $0x190] sm:$0xff] }
  0x73   :  { %3895 = vmatpush3.msra.mxu1 %v204_v31  ;;  %3861 = vmatprep.subr.mxu0 %v187_v32  ;;  %v167_v50 = vld [vmem:[#allocation4 + $0x18] sm:$0xff]  ;;  %vm303_vm0 = vcmp.ge.f32.partialorder %v4879_v52, -1.8  ;;  %vm304_vm1 = vcmp.lt.f32.partialorder %v4879_v52, -1.4  ;;  %v166_v55 = vld [vmem:[#allocation4 + $0x10] sm:$0xff] }
  0x74   :  { %3896 = vmatprep.subr.mxu1 %v219_v33  ;;  %3862 = vmatpush3.msra.mxu0 %v171_v34  ;;  %v199_v51 = vld [vmem:[#allocation4 + $0x118] sm:$0xff]  ;;  %vm307_vm2 = vcmp.ge.f32.partialorder %v4879_v52, -1.4  ;;  %vm4884_vm3 = vmand %vm303_vm0, %vm304_vm1  ;;  %vm308_vm4 = vcmp.lt.f32.partialorder %v4879_v52, -1.0  ;;  %vm311_vm5 = vcmp.ge.f32.partialorder %v4879_v52, -1.0  ;;  %v198_v57 = vld [vmem:[#allocation4 + $0x110] sm:$0xff] }
  0x75   :  { %3897 = vmatpush3.msra.mxu1 %v203_v35  ;;  %3863 = vmatprep.subr.mxu0 %v186_v36  ;;  %vm312_vm6 = vcmp.lt.f32.partialorder %v4879_v52, -0.6  ;;  %vm315_vm7 = vcmp.ge.f32.partialorder %v4879_v52, -0.6  ;;  %v181_v58 = vld [vmem:[#allocation4 + $0x88] sm:$0xff]  ;;  %vm309_vm8 = vmand %vm307_vm2, %vm308_vm4  ;;  %v353_v59 = vsub.f32 -1.0, %v4879_v52 }
  0x76   :  { %3898 = vmatprep.subr.mxu1 %v218_v37  ;;  %3864 = vmatpush3.msra.mxu0 %v170_v38  ;;  %vm316_vm9 = vcmp.lt.f32.partialorder %v4879_v52, -0.2  ;;  %v310_v61 = vsel %vm309_vm8, 1.0, %v4766_v60  ;;  %vm313_vm10 = vmand %vm311_vm5, %vm312_vm6  ;;  %v3796_v62 = vadd.f32 1.8, %v4879_v52  ;;  %v4900_v0 = vadd.f32 1.0, %v4879_v52 }
  0x77   :  { %3899 = vmatpush3.msra.mxu1 %v202_v39  ;;  %3865 = vmatprep.subr.mxu0 %v185_v40  ;;  %v4897_v63 = vadd.f32 1.4, %v4879_v52  ;;  %v213_v1 = vld [vmem:[#allocation4 + $0x188] sm:$0xff]  ;;  %v4905_v2 = vsel %vm4884_vm3, 1.0, %v4766_v60  ;;  %v314_v3 = vsel %vm313_vm10, 1.0, %v4766_v60  ;;  %vm317_vm11 = vmand %vm315_vm7, %vm316_vm9  ;;  %v354_v4 = vmul.f32 2.5, %v353_v59 }
  0x78   :  { %3900 = vmatprep.subr.mxu1 %v217_v41  ;;  %3866 = vmatpush3.msra.mxu0 %v169_v42  ;;  %v4915_v5 = vsub.f32 -0.6, %v4879_v52  ;;  %v165_v6 = vld [vmem:[#allocation4 + $0x8] sm:$0xff]  ;;  %v351_v8 = vmul.f32 2.5, %v3796_v62  ;;  %v365_v10 = vmul.f32 2.5, %v4900_v0  ;;  %v180_v11 = vld [vmem:[#allocation4 + $0x80] sm:$0xff] }
  0x79   :  { %3901 = vmatpush3.msra.mxu1 %v201_v43  ;;  %3867 = vmatprep.subr.mxu0 %v184_v44  ;;  %v197_v7 = vld [vmem:[#allocation4 + $0x108] sm:$0xff]  ;;  %v358_v9 = vmul.f32 2.5, %v4897_v63  ;;  %v212_v12 = vld [vmem:[#allocation4 + $0x180] sm:$0xff]  ;;  %v318_v13 = vsel %vm317_vm11, 1.0, %v4766_v60  ;;  %v355_v14 = vmul.f32 %v354_v4, %v310_v61  ;;  %v367_v16 = vsub.f32 -0.2, %v4879_v52 }
  0x7a   :  { %3902 = vmatprep.subr.mxu1 %v216_v45  ;;  %3868 = vmatpush3.msra.mxu0 %v168_v46  ;;  %v361_v15 = vmul.f32 2.5, %v4915_v5  ;;  %v164_v17 = vld [vmem:[#allocation4] sm:$0xff]  ;;  %v352_v18 = vmul.f32 %v351_v8, %v4905_v2  ;;  %v366_v20 = vmul.f32 %v365_v10, %v314_v3  ;;  %v418_v21 = vmul.f32 1.25, %v3796_v62  ;;  %v259_v27 = vld [vmem:[#allocation4 + $0x2f8] sm:$0xff] }
  0x7b   :  { %3903 = vmatpush3.msra.mxu1 %v200_v47  ;;  %3869 = vmatprep.subr.mxu0 %v183_v48  ;;  %v359_v19 = vmul.f32 %v358_v9, %v310_v61  ;;  %v196_v22 = vld [vmem:[#allocation4 + $0x100] sm:$0xff]  ;;  %v368_v24 = vmul.f32 2.5, %v367_v16  ;;  %v420_v25 = vmul.f32 1.25, %v4915_v5  ;;  %v423_v26 = vmul.f32 1.25, %v4897_v63  ;;  %v291_v28 = vld [vmem:[#allocation4 + $0x3f8] sm:$0xff] }
  0x7c   :  { %3904 = vmatprep.subr.mxu1 %v215_v49  ;;  %3870 = vmatpush3.msra.mxu0 %v167_v50  ;;  %v362_v23 = vmul.f32 %v361_v15, %v314_v3  ;;  %v346_v29 = vsub.f32 -1.4, %v4879_v52  ;;  %v4926_v30 = vadd.f32 %v355_v14, %v352_v18  ;;  %v425_v31 = vmul.f32 1.25, %v367_v16 }
  0x7d   :  { %3905 = vmatpush3.msra.mxu1 %v199_v51  ;;  %3871 = vmatprep.subr.mxu0 %v182_v53  ;;  %v463_v32 = vmul.f32 0.8333333, %v3796_v62  ;;  %v369_v34 = vmul.f32 %v368_v24, %v318_v13  ;;  %vm319_vm12 = vcmp.ge.f32.partialorder %v4879_v52, -0.2  ;;  %vm320_vm13 = vcmp.lt.f32.partialorder %v4879_v52, 0.2 }
  0x7e   :  { %3906 = vmatprep.subr.mxu1 %v214_v54  ;;  %3872 = vmatpush3.msra.mxu0 %v166_v55  ;;  %v363_v33 = vadd.f32 %v362_v23, %v359_v19  ;;  %v419_v35 = vmul.f32 %v418_v21, %v4926_v30  ;;  %vm321_vm14 = vmand %vm319_vm12, %vm320_vm13  ;;  %vm323_vm15 = vcmp.ge.f32.partialorder %v4879_v52, 0.2  ;;  %vm324_vm0 = vcmp.lt.f32.partialorder %v4879_v52, 0.6 }
  0x7f   :  { %3907 = vmatpush3.msra.mxu1 %v198_v57  ;;  %3873 = vmatprep.subr.mxu0 %v181_v58  ;;  %v4934_v36 = vadd.f32 0.6, %v4879_v52  ;;  %v370_v37 = vadd.f32 %v369_v34, %v366_v20  ;;  %v465_v40 = vmul.f32 0.8333333, %v367_v16  ;;  %vm325_vm1 = vmand %vm323_vm15, %vm324_vm0  ;;  %v322_v41 = vsel %vm321_vm14, 1.0, %v4766_v60 }
  0x80   :  { %3908 = vmatprep.subr.mxu1 %v213_v1  ;;  %3874 = vmatpush3.msra.mxu0 %v165_v6  ;;  %v421_v38 = vmul.f32 %v420_v25, %v363_v33  ;;  %v424_v39 = vmul.f32 %v423_v26, %v363_v33  ;;  %v374_v43 = vsub.f32 0.2, %v4879_v52  ;;  %v4940_v44 = vadd.f32 0.2, %v4879_v52 }
  0x81   :  { %3909 = vmatpush3.msra.mxu1 %v197_v7  ;;  %3875 = vmatprep.subr.mxu0 %v180_v11  ;;  %v372_v42 = vmul.f32 2.5, %v4934_v36  ;;  %v426_v46 = vmul.f32 %v425_v31, %v370_v37  ;;  %v4945_v47 = vsel %vm325_vm1, 1.0, %v4766_v60  ;;  %v381_v48 = vsub.f32 0.6, %v4879_v52 }
  0x82   :  { %3910 = vmatprep.subr.mxu1 %v212_v12  ;;  %3876 = vmatpush3.msra.mxu0 %v164_v17  ;;  %v4942_v45 = vadd.f32 %v421_v38, %v419_v35  ;;  %v375_v50 = vmul.f32 2.5, %v374_v43  ;;  %v379_v51 = vmul.f32 2.5, %v4940_v44  ;;  %v428_v53 = vmul.f32 1.25, %v4900_v0  ;;  %v275_v38 = vld [vmem:[#allocation4 + $0x378] sm:$0xff] }
  0x83   :  { %3911 = vmatpush3.msra.mxu1 %v196_v22  ;;  %3915 = vmatprep.subr.mxu0 %v259_v27  ;;  %v373_v49 = vmul.f32 %v372_v42, %v318_v13  ;;  %v427_v54 = vadd.f32 %v426_v46, %v424_v39  ;;  %v382_v56 = vmul.f32 2.5, %v381_v48  ;;  %v430_v61 = vmul.f32 1.25, %v374_v43 }
  0x84   :  { %3950 = vmatprep.subr.mxu1 %v291_v28  ;;  %v464_v55 = vmul.f32 %v463_v32, %v4942_v45  ;;  %v376_v57 = vmul.f32 %v375_v50, %v322_v41  ;;  %v380_v58 = vmul.f32 %v379_v51, %v322_v41  ;;  %v347_v62 = vmul.f32 2.5, %v346_v29  ;;  %v289_v51 = vld [vmem:[#allocation4 + $0x3e8] sm:$0xff] }
  0x85   :  { %v466_v1 = vmul.f32 %v465_v40, %v427_v54  ;;  %v383_v3 = vmul.f32 %v382_v56, %v4945_v47  ;;  %v433_v4 = vmul.f32 1.25, %v4934_v36  ;;  %v4954_v7 = vadd.f32 -0.2, %v4879_v52  ;;  %v290_v40 = vld [vmem:[#allocation4 + $0x3f0] sm:$0xff]  ;;  %v243_v56 = vld [vmem:[#allocation4 + $0x278] sm:$0xff] }
  0x86   :  { %v377_v6 = vadd.f32 %v376_v57, %v373_v49  ;;  %v429_v8 = vmul.f32 %v428_v53, %v370_v37  ;;  %v435_v9 = vmul.f32 1.25, %v381_v48  ;;  %v473_v12 = vmul.f32 0.8333333, %v4900_v0  ;;  %v258_v57 = vld [vmem:[#allocation4 + $0x2f0] sm:$0xff] }
  0x87   :  { %v467_v10 = vadd.f32 %v466_v1, %v464_v55  ;;  %v4956_v11 = vadd.f32 %v383_v3, %v380_v58  ;;  %vm299_vm2 = vcmp.ge.f32.partialorder %v4879_v52, -2.2  ;;  %vm300_vm3 = vcmp.lt.f32.partialorder %v4879_v52, -1.8  ;;  %v288_v58 = vld [vmem:[#allocation4 + $0x3e0] sm:$0xff]  ;;  %v242_v3 = vld [vmem:[#allocation4 + $0x270] sm:$0xff] }
  0x88   :  { %v431_v13 = vmul.f32 %v430_v61, %v377_v6  ;;  %v434_v14 = vmul.f32 %v433_v4, %v377_v6  ;;  %v3795_v15 = vadd.f32 2.2, %v4879_v52  ;;  %v475_v17 = vmul.f32 0.8333333, %v381_v48  ;;  %vm301_vm4 = vmand %vm299_vm2, %vm300_vm3  ;;  %v274_v48 = vld [vmem:[#allocation4 + $0x370] sm:$0xff]  ;;  %v272_v4 = vld [vmem:[#allocation4 + $0x360] sm:$0xff] }
  0x89   :  { %562 = vmatprep.mubr.f32.mxu0 %v467_v10  ;;  %v436_v16 = vmul.f32 %v435_v9, %v4956_v11  ;;  %v415_v18 = vmul.f32 1.25, %v353_v59  ;;  %v468_v19 = vmul.f32 0.8333333, %v4897_v63  ;;  %v348_v0 = vmul.f32 %v347_v62, %v4905_v2  ;;  %v271_v9 = vld [vmem:[#allocation4 + $0x358] sm:$0xff] }
  0x8a   :  { %v432_v20 = vadd.f32 %v431_v13, %v429_v8  ;;  %v302_v21 = vsel %vm301_vm4, 1.0, %v4766_v60  ;;  %v344_v22 = vmul.f32 2.5, %v3795_v15  ;;  %v386_v23 = vmul.f32 2.5, %v4954_v7  ;;  %v287_v8 = vld [vmem:[#allocation4 + $0x3d8] sm:$0xff]  ;;  %v281_v13 = vld [vmem:[#allocation4 + $0x3a8] sm:$0xff] }
  0x8b   :  { %v4969_v24 = vadd.f32 %v436_v16, %v434_v14  ;;  %v413_v25 = vmul.f32 1.25, %v3795_v15  ;;  %v469_v28 = vmul.f32 %v468_v19, %v427_v54  ;;  %v470_v29 = vmul.f32 0.8333333, %v374_v43  ;;  %v257_v19 = vld [vmem:[#allocation4 + $0x2e8] sm:$0xff] }
  0x8c   :  { %v474_v26 = vmul.f32 %v473_v12, %v432_v20  ;;  %v345_v27 = vmul.f32 %v344_v22, %v302_v21  ;;  %v416_v59 = vmul.f32 %v415_v18, %v4926_v30  ;;  %v460_v63 = vmul.f32 0.8333333, %v4915_v5 }
  0x8d   :  { %v476_v31 = vmul.f32 %v475_v17, %v4969_v24  ;;  %vm327_vm5 = vcmp.ge.f32.partialorder %v4879_v52, 0.6  ;;  %v471_v32 = vmul.f32 %v470_v29, %v432_v20  ;;  %vm328_vm6 = vcmp.lt.f32.partialorder %v4879_v52, 1.0 }
  0x8e   :  { %v349_v2 = vadd.f32 %v348_v0, %v345_v27  ;;  %vm331_vm7 = vcmp.ge.f32.partialorder %v4879_v52, 1.0  ;;  %vm332_vm8 = vcmp.lt.f32.partialorder %v4879_v52, 1.4  ;;  %v4979_v34 = vsub.f32 1.0, %v4879_v52  ;;  %vm329_vm9 = vmand %vm327_vm5, %vm328_vm6  ;;  %v286_v0 = vld [vmem:[#allocation4 + $0x3d0] sm:$0xff] }
  0x8f   :  { %v477_v33 = vadd.f32 %v476_v31, %v474_v26  ;;  %v4982_v35 = vadd.f32 -0.6, %v4879_v52  ;;  %v458_v37 = vmul.f32 0.8333333, %v3795_v15  ;;  %v472_v5 = vadd.f32 %v471_v32, %v469_v28  ;;  %vm333_vm10 = vmand %vm331_vm7, %vm332_vm8  ;;  %v270_v26 = vld [vmem:[#allocation4 + $0x350] sm:$0xff] }
  0x90   :  { %v414_v30 = vmul.f32 %v413_v25, %v349_v2  ;;  %v4985_v39 = vsub.f32 1.4, %v4879_v52  ;;  %v389_v41 = vmul.f32 2.5, %v4979_v34  ;;  %v461_v46 = vmul.f32 %v460_v63, %v4942_v45  ;;  %v273_v45 = vld [vmem:[#allocation4 + $0x368] sm:$0xff] }
  0x91   :  { %632 = vmatprep.mubr.f32.mxu1 %v477_v33  ;;  %v393_v42 = vmul.f32 2.5, %v4982_v35  ;;  %v330_v49 = vsel %vm329_vm9, 1.0, %v4766_v60  ;;  %v334_v53 = vsel %vm333_vm10, 1.0, %v4766_v60  ;;  %v387_v54 = vmul.f32 %v386_v23, %v4945_v47  ;;  %v241_v25 = vld [vmem:[#allocation4 + $0x268] sm:$0xff]  ;;  %v240_v33 = vld [vmem:[#allocation4 + $0x260] sm:$0xff] }
  0x92   :  { %v417_v43 = vadd.f32 %v416_v59, %v414_v30  ;;  %633 = vmatmul.mubr.f32.vlgmr.msra.gmra.mxu1 %v472_v5  ;;  %v396_v50 = vmul.f32 2.5, %v4985_v39  ;;  %v390_v61 = vmul.f32 %v389_v41, %v330_v49  ;;  %vm335_vm11 = vcmp.ge.f32.partialorder %v4879_v52, 1.4  ;;  %v256_v59 = vld [vmem:[#allocation4 + $0x2e0] sm:$0xff]  ;;  %v285_v63 = vld [vmem:[#allocation4 + $0x3c8] sm:$0xff] }
  0x93   :  { %3951 = vmatpush3.msra.mxu1 %v275_v38  ;;  %v394_v62 = vmul.f32 %v393_v42, %v330_v49  ;;  %vm336_vm12 = vcmp.lt.f32.partialorder %v4879_v52, 1.8  ;;  %vm339_vm14 = vcmp.ge.f32.partialorder %v4879_v52, 1.8  ;;  %vm340_vm15 = vcmp.lt.f32.partialorder %v4879_v52, 2.2 }
  0x94   :  { %v459_v55 = vmul.f32 %v458_v37, %v417_v43  ;;  %3952 = vmatprep.subr.mxu1 %v290_v40  ;;  %v397_v6 = vmul.f32 %v396_v50, %v334_v53  ;;  %vm5002_vm13 = vmand %vm335_vm11, %vm336_vm12  ;;  %v438_v10 = vmul.f32 1.25, %v4940_v44  ;;  %v440_v12 = vmul.f32 1.25, %v4979_v34  ;;  %v269_v30 = vld [vmem:[#allocation4 + $0x348] sm:$0xff]  ;;  %v255_v38 = vld [vmem:[#allocation4 + $0x2d8] sm:$0xff] }
  0x95   :  { %3953 = vmatpush3.msra.mxu1 %v274_v48  ;;  %vm5010_vm0 = vmand %vm339_vm14, %vm340_vm15  ;;  %v3803_v14 = vadd.f32 -1.0, %v4879_v52  ;;  %v443_v15 = vmul.f32 1.25, %v4954_v7  ;;  %v445_v16 = vmul.f32 1.25, %v4985_v39  ;;  %v5018_v17 = vsub.f32 1.8, %v4879_v52  ;;  %v284_v40 = vld [vmem:[#allocation4 + $0x3c0] sm:$0xff] }
  0x96   :  { %v462_v1 = vadd.f32 %v461_v46, %v459_v55  ;;  %3954 = vmatprep.subr.mxu1 %v289_v51  ;;  %v3804_v18 = vadd.f32 -1.4, %v4879_v52  ;;  %v391_v20 = vadd.f32 %v390_v61, %v387_v54  ;;  %v338_v21 = vsel %vm5002_vm13, 1.0, %v4766_v60  ;;  %v239_v46 = vld [vmem:[#allocation4 + $0x258] sm:$0xff]  ;;  %v268_v48 = vld [vmem:[#allocation4 + $0x340] sm:$0xff]  ;;  %v254_v54 = vld [vmem:[#allocation4 + $0x2d0] sm:$0xff] }
  0x97   :  { %3955 = vmatpush3.msra.mxu1 %v273_v45  ;;  %v400_v22 = vmul.f32 2.5, %v3803_v14  ;;  %v5025_v23 = vsub.f32 2.2, %v4879_v52  ;;  %v398_v27 = vadd.f32 %v397_v6, %v394_v62  ;;  %v342_v28 = vsel %vm5010_vm0, 1.0, %v4766_v60  ;;  %v283_v55 = vld [vmem:[#allocation4 + $0x3b8] sm:$0xff]  ;;  %v253_v62 = vld [vmem:[#allocation4 + $0x2c8] sm:$0xff] }
  0x98   :  { %563 = vmatmul.mubr.f32.vlgmr.msra.gmra.mxu0 %v462_v1  ;;  %3956 = vmatprep.subr.mxu1 %v288_v58  ;;  %v403_v29 = vmul.f32 2.5, %v5018_v17  ;;  %v407_v31 = vmul.f32 2.5, %v3804_v18  ;;  %v439_v41 = vmul.f32 %v438_v10, %v4956_v11  ;;  %v441_v42 = vmul.f32 %v440_v12, %v391_v20  ;;  %v238_v58 = vld [vmem:[#allocation4 + $0x250] sm:$0xff]  ;;  %v267_v61 = vld [vmem:[#allocation4 + $0x338] sm:$0xff]  ;;  %v252_v12 = vld [vmem:[#allocation4 + $0x2c0] sm:$0xff] }
  0x99   :  { %3916 = vmatpush3.msra.mxu0 %v243_v56  ;;  %3957 = vmatpush3.msra.mxu1 %v272_v4  ;;  %v401_v2 = vmul.f32 %v400_v22, %v334_v53  ;;  %v410_v32 = vmul.f32 2.5, %v5025_v23  ;;  %v444_v49 = vmul.f32 %v443_v15, %v391_v20  ;;  %v446_v50 = vmul.f32 %v445_v16, %v398_v27  ;;  %v282_v1 = vld [vmem:[#allocation4 + $0x3b0] sm:$0xff]  ;;  %v237_v4 = vld [vmem:[#allocation4 + $0x248] sm:$0xff]  ;;  %v236_v18 = vld [vmem:[#allocation4 + $0x240] sm:$0xff] }
  0x9a   :  { %3917 = vmatprep.subr.mxu0 %v258_v57  ;;  %3958 = vmatprep.subr.mxu1 %v287_v8  ;;  %v404_v37 = vmul.f32 %v403_v29, %v338_v21  ;;  %v408_v5 = vmul.f32 %v407_v31, %v338_v21  ;;  %v448_v51 = vmul.f32 1.25, %v4982_v35  ;;  %v450_v53 = vmul.f32 1.25, %v5018_v17  ;;  %v266_v6 = vld [vmem:[#allocation4 + $0x330] sm:$0xff]  ;;  %v235_v20 = vld [vmem:[#allocation4 + $0x238] sm:$0xff] }
  0x9b   :  { %3918 = vmatpush3.msra.mxu0 %v242_v3  ;;  %3959 = vmatpush3.msra.mxu1 %v271_v9  ;;  %v411_v43 = vmul.f32 %v410_v32, %v342_v28  ;;  %v453_v57 = vmul.f32 1.25, %v3803_v14  ;;  %v455_v11 = vmul.f32 1.25, %v5025_v23  ;;  %v483_v3 = vmul.f32 0.8333333, %v4940_v44  ;;  %v265_v44 = vld [vmem:[#allocation4 + $0x328] sm:$0xff]  ;;  %v250_v21 = vld [vmem:[#allocation4 + $0x2b0] sm:$0xff] }
  0x9c   :  { %3919 = vmatprep.subr.mxu0 %v257_v19  ;;  %3960 = vmatprep.subr.mxu1 %v286_v0  ;;  %v405_v56 = vadd.f32 %v404_v37, %v401_v2  ;;  %v5037_v47 = vadd.f32 %v441_v42, %v439_v41  ;;  %v447_v8 = vadd.f32 %v446_v50, %v444_v49  ;;  %v485_v9 = vmul.f32 0.8333333, %v4985_v39  ;;  %v251_v19 = vld [vmem:[#allocation4 + $0x2b8] sm:$0xff]  ;;  %v280_v0 = vld [vmem:[#allocation4 + $0x3a0] sm:$0xff]  ;;  %v278_v37 = vld [vmem:[#allocation4 + $0x390] sm:$0xff] }
  0x9d   :  { %3920 = vmatpush3.msra.mxu0 %v241_v25  ;;  %3961 = vmatpush3.msra.mxu1 %v270_v26  ;;  %v412_v45 = vadd.f32 %v411_v43, %v408_v5  ;;  %v449_v10 = vmul.f32 %v448_v51, %v398_v27  ;;  %v264_v39 = vld [vmem:[#allocation4 + $0x320] sm:$0xff]  ;;  %v234_v26 = vld [vmem:[#allocation4 + $0x230] sm:$0xff]  ;;  %v279_v27 = vld [vmem:[#allocation4 + $0x398] sm:$0xff]  ;;  %v493_v31 = vmul.f32 0.8333333, %v4982_v35  ;;  %vm4767_vm1 = vmmov 0  }
  0x9e   :  { %3921 = vmatprep.subr.mxu0 %v256_v59  ;;  %3962 = vmatprep.subr.mxu1 %v285_v63  ;;  %v451_v14 = vmul.f32 %v450_v53, %v405_v56  ;;  %v454_v15 = vmul.f32 %v453_v57, %v405_v56  ;;  %v484_v22 = vmul.f32 %v483_v3, %v5037_v47  ;;  %v495_v59 = vmul.f32 0.8333333, %v5025_v23  ;;  %v263_v63 = vld [vmem:[#allocation4 + $0x318] sm:$0xff]  ;;  %v233_v5 = vld [vmem:[#allocation4 + $0x228] sm:$0xff]  ;;  %v248_v23 = vld [vmem:[#allocation4 + $0x2a0] sm:$0xff] }
  0x9f   :  { %3922 = vmatpush3.msra.mxu0 %v240_v33  ;;  %3963 = vmatpush3.msra.mxu1 %v269_v30  ;;  %v456_v16 = vmul.f32 %v455_v11, %v412_v45  ;;  %v486_v25 = vmul.f32 %v485_v9, %v447_v8  ;;  %v488_v2 = vmul.f32 0.8333333, %v4954_v7  ;;  %v490_v32 = vmul.f32 0.8333333, %v5018_v17  ;;  %v249_v30 = vld [vmem:[#allocation4 + $0x2a8] sm:$0xff]  ;;  %v232_v17 = vld [vmem:[#allocation4 + $0x220] sm:$0xff] }
  0xa0   :  { %3923 = vmatprep.subr.mxu0 %v255_v38  ;;  %3964 = vmatprep.subr.mxu1 %v284_v40  ;;  %v452_v28 = vadd.f32 %v451_v14, %v449_v10  ;;  %v292_v33 = vsub.f32 0.0, %v4879_v52  ;;  %v262_v38 = vld [vmem:[#allocation4 + $0x310] sm:$0xff]  ;;  %v478_v35 = vmul.f32 0.8333333, %v4934_v36  ;;  %v277_v40 = vld [vmem:[#allocation4 + $0x388] sm:$0xff]  ;;  %v247_v50 = vld [vmem:[#allocation4 + $0x298] sm:$0xff] }
  0xa1   :  { %3924 = vmatpush3.msra.mxu0 %v239_v46  ;;  %3965 = vmatpush3.msra.mxu1 %v268_v48  ;;  %v457_v29 = vadd.f32 %v456_v16, %v454_v15  ;;  %v487_v41 = vadd.f32 %v486_v25, %v484_v22  ;;  %v480_v43 = vmul.f32 0.8333333, %v4979_v34  ;;  %v489_v46 = vmul.f32 %v488_v2, %v447_v8  ;;  %v261_v51 = vld [vmem:[#allocation4 + $0x308] sm:$0xff]  ;;  %v231_v36 = vld [vmem:[#allocation4 + $0x218] sm:$0xff]  ;;  %v276_v53 = vld [vmem:[#allocation4 + $0x380] sm:$0xff] }
  0xa2   :  { %3925 = vmatprep.subr.mxu0 %v254_v54  ;;  %3966 = vmatprep.subr.mxu1 %v283_v55  ;;  %v494_v7 = vmul.f32 %v493_v31, %v452_v28  ;;  %v491_v48 = vmul.f32 %v490_v32, %v452_v28  ;;  %v293_v49 = vmul.f32 1.442695, %v292_v33  ;;  %v246_v54 = vld [vmem:[#allocation4 + $0x290] sm:$0xff]  ;;  %v260_v55 = vld [vmem:[#allocation4 + $0x300] sm:$0xff]  ;;  %v479_v45 = vmul.f32 %v478_v35, %v4969_v24  ;;  %v163_v24 = vld [vmem:[#allocation2 + $0x78] sm:$0xff] }
  0xa3   :  { %3926 = vmatpush3.msra.mxu0 %v238_v58  ;;  %3967 = vmatpush3.msra.mxu1 %v267_v61  ;;  %v496_v42 = vmul.f32 %v495_v59, %v457_v29  ;;  %v230_v34 = vld [vmem:[#allocation4 + $0x210] sm:$0xff]  ;;  %v481_v57 = vmul.f32 %v480_v43, %v5037_v47  ;;  %v245_v58 = vld [vmem:[#allocation4 + $0x288] sm:$0xff]  ;;  %v160_v47 = vld [vmem:[#allocation2 + $0x60] sm:$0xff] }
  0xa4   :  { %3927 = vmatprep.subr.mxu0 %v253_v62  ;;  %3968 = vmatprep.subr.mxu1 %v282_v1  ;;  %v492_v11 = vadd.f32 %v491_v48, %v489_v46  ;;  %4558 = vpow2.f32 %v293_v49  ;;  %v229_v61 = vld [vmem:[#allocation4 + $0x208] sm:$0xff]  ;;  %v244_v62 = vld [vmem:[#allocation4 + $0x280] sm:$0xff]  ;;  %v159_v9 = vld [vmem:[#allocation2 + $0x58] sm:$0xff] }
  0xa5   :  { %3928 = vmatpush3.msra.mxu0 %v237_v4  ;;  %3969 = vmatpush3.msra.mxu1 %v266_v6  ;;  %v497_v56 = vadd.f32 %v496_v42, %v494_v7  ;;  %v228_v1 = vld [vmem:[#allocation4 + $0x200] sm:$0xff]  ;;  %v482_v3 = vadd.f32 %v481_v57, %v479_v45  ;;  %v162_v4 = vld [vmem:[#allocation2 + $0x70] sm:$0xff]  ;;  %v161_v6 = vld [vmem:[#allocation2 + $0x68] sm:$0xff] }
  0xa6   :  { %3929 = vmatprep.subr.mxu0 %v252_v12  ;;  %3970 = vmatprep.subr.mxu1 %v281_v13  ;;  %v158_v10 = vld [vmem:[#allocation2 + $0x50] sm:$0xff]  ;;  %v157_v13 = vld [vmem:[#allocation2 + $0x48] sm:$0xff]  ;;  %v156_v14 = vld [vmem:[#allocation2 + $0x40] sm:$0xff] }
  0xa7   :  { %3930 = vmatpush3.msra.mxu0 %v236_v18  ;;  %3971 = vmatpush3.msra.mxu1 %v265_v44  ;;  %v155_v15 = vld [vmem:[#allocation2 + $0x38] sm:$0xff]  ;;  %v154_v16 = vld [vmem:[#allocation2 + $0x30] sm:$0xff]  ;;  %v153_v18 = vld [vmem:[#allocation2 + $0x28] sm:$0xff] }
  0xa8   :  { %3931 = vmatprep.subr.mxu0 %v251_v19  ;;  %3972 = vmatprep.subr.mxu1 %v280_v0  ;;  %v152_v44 = vld [vmem:[#allocation2 + $0x20] sm:$0xff]  ;;  %v151_v19 = vld [vmem:[#allocation2 + $0x18] sm:$0xff]  ;;  %v150_v0 = vld [vmem:[#allocation2 + $0x10] sm:$0xff] }
  0xa9   :  { %3932 = vmatpush3.msra.mxu0 %v235_v20  ;;  %3973 = vmatpush3.msra.mxu1 %v264_v39  ;;  %v148_v39 = vld [vmem:[#allocation2] sm:$0xff]  ;;  %v911_v25 = vld [vmem:[#allocation7 + $0xf8] sm:$0xff]  ;;  %v974_v28 = vld [vmem:[#allocation7 + $0x2f0] sm:$0xff] }
  0xaa   :  { %3933 = vmatprep.subr.mxu0 %v250_v21  ;;  %3974 = vmatprep.subr.mxu1 %v279_v27  ;;  %v149_v21 = vld [vmem:[#allocation2 + $0x8] sm:$0xff]  ;;  %v910_v27 = vld [vmem:[#allocation7 + $0xf0] sm:$0xff]  ;;  %v908_v59 = vld [vmem:[#allocation7 + $0xe0] sm:$0xff] }
  0xab   :  { %3934 = vmatpush3.msra.mxu0 %v234_v26  ;;  %3975 = vmatpush3.msra.mxu1 %v263_v63  ;;  %v975_v26 = vld [vmem:[#allocation7 + $0x2f8] sm:$0xff]  ;;  %v909_v29 = vld [vmem:[#allocation7 + $0xe8] sm:$0xff]  ;;  %v972_v63 = vld [vmem:[#allocation7 + $0x2e0] sm:$0xff] }
  0xac   :  { %3935 = vmatprep.subr.mxu0 %v249_v30  ;;  %3976 = vmatprep.subr.mxu1 %v278_v37  ;;  %v973_v31 = vld [vmem:[#allocation7 + $0x2e8] sm:$0xff]  ;;  %v907_v2 = vld [vmem:[#allocation7 + $0xd8] sm:$0xff]  ;;  %v906_v32 = vld [vmem:[#allocation7 + $0xd0] sm:$0xff] }
  0xad   :  { %3936 = vmatpush3.msra.mxu0 %v233_v5  ;;  %3977 = vmatpush3.msra.mxu1 %v262_v38  ;;  %v970_v33 = vld [vmem:[#allocation7 + $0x2d0] sm:$0xff]  ;;  %v905_v30 = vld [vmem:[#allocation7 + $0xc8] sm:$0xff]  ;;  %v904_v5 = vld [vmem:[#allocation7 + $0xc0] sm:$0xff] }
  0xae   :  { %3937 = vmatprep.subr.mxu0 %v248_v23  ;;  %3978 = vmatprep.subr.mxu1 %v277_v40  ;;  %v969_v37 = vld [vmem:[#allocation7 + $0x2c8] sm:$0xff]  ;;  %v968_v38 = vld [vmem:[#allocation7 + $0x2c0] sm:$0xff]  ;;  %v903_v35 = vld [vmem:[#allocation7 + $0xb8] sm:$0xff] }
  0xaf   :  { %3938 = vmatpush3.msra.mxu0 %v232_v17  ;;  %702 = vmatprep.mubr.f32.mxu0 %v487_v41  ;;  %v967_v23 = vld [vmem:[#allocation7 + $0x2b8] sm:$0xff]  ;;  %v902_v40 = vld [vmem:[#allocation7 + $0xb0] sm:$0xff]  ;;  %v901_v7 = vld [vmem:[#allocation7 + $0xa8] sm:$0xff] }
  0xb0   :  { %3939 = vmatprep.subr.mxu0 %v247_v50  ;;  %3979 = vmatpush3.msra.mxu1 %v261_v51  ;;  %v966_v41 = vld [vmem:[#allocation7 + $0x2b0] sm:$0xff]  ;;  %v965_v42 = vld [vmem:[#allocation7 + $0x2a8] sm:$0xff]  ;;  %v900_v17 = vld [vmem:[#allocation7 + $0xa0] sm:$0xff] }
  0xb1   :  { %3940 = vmatpush3.msra.mxu0 %v231_v36  ;;  %3980 = vmatprep.subr.mxu1 %v276_v53  ;;  %v4559_v8 = vpop.eup %4558  ;;  %v964_v43 = vld [vmem:[#allocation7 + $0x2a0] sm:$0xff]  ;;  %v899_v46 = vld [vmem:[#allocation7 + $0x98] sm:$0xff]  ;;  %v898_v49 = vld [vmem:[#allocation7 + $0x90] sm:$0xff] }
  0xb2   :  { %3941 = vmatprep.subr.mxu0 %v246_v54  ;;  %3981 = vmatpush3.msra.mxu1 %v260_v55  ;;  %v295_v12 = vadd.f32 1.0, %v4559_v8  ;;  %v963_v48 = vld [vmem:[#allocation7 + $0x298] sm:$0xff]  ;;  %v962_v50 = vld [vmem:[#allocation7 + $0x290] sm:$0xff]  ;;  %v897_v51 = vld [vmem:[#allocation7 + $0x88] sm:$0xff] }
  0xb3   :  { %3942 = vmatpush3.msra.mxu0 %v230_v34  ;;  %772 = vmatprep.mubr.f32.mxu1 %v497_v56  ;;  %v961_v36 = vld [vmem:[#allocation7 + $0x288] sm:$0xff]  ;;  %v896_v53 = vld [vmem:[#allocation7 + $0x80] sm:$0xff]  ;;  %v895_v55 = vld [vmem:[#allocation7 + $0x78] sm:$0xff] }
  0xb4   :  { %3943 = vmatprep.subr.mxu0 %v245_v58  ;;  %773 = vmatmul.mubr.f32.vlgmr.msra.gmra.mxu1 %v492_v11  ;;  %4560 = vrcp.f32 %v295_v12  ;;  %v960_v54 = vld [vmem:[#allocation7 + $0x280] sm:$0xff]  ;;  %v959_v56 = vld [vmem:[#allocation7 + $0x278] sm:$0xff]  ;;  %v894_v45 = vld [vmem:[#allocation7 + $0x70] sm:$0xff] }
  0xb5   :  { %3944 = vmatpush3.msra.mxu0 %v229_v61  ;;  %1342 = vmatprep.subr.mxu1 %v911_v25  ;;  %v958_v34 = vld [vmem:[#allocation7 + $0x270] sm:$0xff]  ;;  %v893_v57 = vld [vmem:[#allocation7 + $0x68] sm:$0xff]  ;;  %v892_v58 = vld [vmem:[#allocation7 + $0x60] sm:$0xff] }
  0xb6   :  { %3945 = vmatprep.subr.mxu0 %v244_v62  ;;  %1343 = vmatpush1.msra.mxu1 %v910_v27  ;;  %v957_v11 = vld [vmem:[#allocation7 + $0x268] sm:$0xff]  ;;  %v956_v61 = vld [vmem:[#allocation7 + $0x260] sm:$0xff]  ;;  %v891_v62 = vld [vmem:[#allocation7 + $0x58] sm:$0xff] }
  0xb7   :  { %3946 = vmatpush3.msra.mxu0 %v228_v1  ;;  %1344 = vmatprep.subr.mxu1 %v909_v29  ;;  %v955_v1 = vld [vmem:[#allocation7 + $0x258] sm:$0xff]  ;;  %v952_v8 = vld [vmem:[#allocation7 + $0x240] sm:$0xff]  ;;  %v886_v12 = vld [vmem:[#allocation7 + $0x30] sm:$0xff] }
  0xb8   :  { %703 = vmatmul.mubr.f32.vlgmr.msra.gmra.mxu0 %v482_v3  ;;  %4474 = vmatprep.subr.mxu0 %v4766_v60  ;;  %v890_v3 = vld [vmem:[#allocation7 + $0x50] sm:$0xff]  ;;  %v944_v25 = vld [vmem:[#allocation7 + $0x200] sm:$0xff]  ;;  %v1007_v27 = vld [vmem:[#allocation7 + $0x3f8] sm:$0xff] }
  0xb9   :  { %4475 = vmatpush3.msra.mxu0 %v163_v24  ;;  %4506 = vmatprep.mubr.msk.f32.mxu0 %vm4767_vm1, %v4766_v60  ;;  %v954_v24 = vld [vmem:[#allocation7 + $0x250] sm:$0xff] }
  0xba   :  { %4476 = vmatprep.subr.mxu0 %v4766_v60  ;;  %1345 = vmatpush1.msra.mxu1 %v908_v59  ;;  %v1006_v29 = vld [vmem:[#allocation7 + $0x3f0] sm:$0xff]  ;;  %v1005_v59 = vld [vmem:[#allocation7 + $0x3e8] sm:$0xff] }
  0xbb   :  { %4477 = vmatpush3.msra.mxu0 %v162_v4  ;;  %1346 = vmatprep.subr.mxu1 %v907_v2  ;;  %v889_v4 = vld [vmem:[#allocation7 + $0x48] sm:$0xff]  ;;  %v1004_v2 = vld [vmem:[#allocation7 + $0x3e0] sm:$0xff] }
  0xbc   :  { %4478 = vmatprep.subr.mxu0 %v4766_v60  ;;  %1347 = vmatpush1.msra.mxu1 %v906_v32  ;;  %v1003_v32 = vld [vmem:[#allocation7 + $0x3d8] sm:$0xff] }
  0xbd   :  { %4479 = vmatpush3.msra.mxu0 %v161_v6  ;;  %1348 = vmatprep.subr.mxu1 %v905_v30  ;;  %v953_v6 = vld [vmem:[#allocation7 + $0x248] sm:$0xff]  ;;  %v1002_v30 = vld [vmem:[#allocation7 + $0x3d0] sm:$0xff] }
  0xbe   :  { %4480 = vmatprep.subr.mxu0 %v4766_v60  ;;  %1349 = vmatpush1.msra.mxu1 %v904_v5  ;;  %v1001_v5 = vld [vmem:[#allocation7 + $0x3c8] sm:$0xff] }
  0xbf   :  { %4481 = vmatpush3.msra.mxu0 %v160_v47  ;;  %1350 = vmatprep.subr.mxu1 %v903_v35  ;;  %v888_v47 = vld [vmem:[#allocation7 + $0x40] sm:$0xff] }
  0xc0   :  { %4482 = vmatprep.subr.mxu0 %v4766_v60  ;;  %1351 = vmatpush1.msra.mxu1 %v902_v40  ;;  %v1000_v35 = vld [vmem:[#allocation7 + $0x3c0] sm:$0xff]  ;;  %v999_v40 = vld [vmem:[#allocation7 + $0x3b8] sm:$0xff] }
  0xc1   :  { %4483 = vmatpush3.msra.mxu0 %v159_v9  ;;  %v4561_v20 = vpop.eup %4560  ;;  %1352 = vmatprep.subr.mxu1 %v901_v7  ;;  %v887_v9 = vld [vmem:[#allocation7 + $0x38] sm:$0xff]  ;;  %v998_v7 = vld [vmem:[#allocation7 + $0x3b0] sm:$0xff] }
  0xc2   :  { %4484 = vmatprep.subr.mxu0 %v4766_v60  ;;  %v298_v22 = vmul.f32 %v4561_v20, %v4879_v52  ;;  %v971_v52 = vld [vmem:[#allocation7 + $0x2d8] sm:$0xff]  ;;  %1353 = vmatpush1.msra.mxu1 %v900_v17  ;;  %v946_v20 = vld [vmem:[#allocation7 + $0x210] sm:$0xff]  ;;  %v997_v17 = vld [vmem:[#allocation7 + $0x3a8] sm:$0xff] }
  0xc3   :  { %4485 = vmatpush3.msra.mxu0 %v158_v10  ;;  %1354 = vmatprep.subr.mxu1 %v899_v46  ;;  %v951_v10 = vld [vmem:[#allocation7 + $0x238] sm:$0xff]  ;;  %v996_v46 = vld [vmem:[#allocation7 + $0x3a0] sm:$0xff] }
  0xc4   :  { %4486 = vmatprep.subr.mxu0 %v4766_v60  ;;  %1355 = vmatpush1.msra.mxu1 %v898_v49  ;;  %v995_v49 = vld [vmem:[#allocation7 + $0x398] sm:$0xff] }
  0xc5   :  { %4487 = vmatpush3.msra.mxu0 %v157_v13  ;;  %1356 = vmatprep.subr.mxu1 %v897_v51  ;;  %v950_v13 = vld [vmem:[#allocation7 + $0x230] sm:$0xff] }
  0xc6   :  { %4488 = vmatprep.subr.mxu0 %v4766_v60  ;;  %1357 = vmatpush1.msra.mxu1 %v896_v53  ;;  %v994_v51 = vld [vmem:[#allocation7 + $0x390] sm:$0xff]  ;;  %v993_v53 = vld [vmem:[#allocation7 + $0x388] sm:$0xff] }
  0xc7   :  { %4489 = vmatpush3.msra.mxu0 %v156_v14  ;;  %1358 = vmatprep.subr.mxu1 %v895_v55  ;;  %v885_v14 = vld [vmem:[#allocation7 + $0x28] sm:$0xff]  ;;  %v992_v55 = vld [vmem:[#allocation7 + $0x380] sm:$0xff] }
  0xc8   :  { %4490 = vmatprep.subr.mxu0 %v4766_v60  ;;  %1359 = vmatpush1.msra.mxu1 %v894_v45  ;;  %v991_v45 = vld [vmem:[#allocation7 + $0x378] sm:$0xff] }
  0xc9   :  { %4491 = vmatpush3.msra.mxu0 %v155_v15  ;;  %1360 = vmatprep.subr.mxu1 %v893_v57  ;;  %v949_v15 = vld [vmem:[#allocation7 + $0x228] sm:$0xff]  ;;  %v990_v57 = vld [vmem:[#allocation7 + $0x370] sm:$0xff] }
  0xca   :  { %4492 = vmatprep.subr.mxu0 %v4766_v60  ;;  %1361 = vmatpush1.msra.mxu1 %v892_v58  ;;  %v989_v58 = vld [vmem:[#allocation7 + $0x368] sm:$0xff] }
  0xcb   :  { %4493 = vmatpush3.msra.mxu0 %v154_v16  ;;  %1362 = vmatprep.subr.mxu1 %v891_v62  ;;  %v884_v16 = vld [vmem:[#allocation7 + $0x20] sm:$0xff] }
  0xcc   :  { %4494 = vmatprep.subr.mxu0 %v4766_v60  ;;  %1363 = vmatpush1.msra.mxu1 %v890_v3  ;;  %v988_v62 = vld [vmem:[#allocation7 + $0x360] sm:$0xff]  ;;  %v987_v3 = vld [vmem:[#allocation7 + $0x358] sm:$0xff] }
  0xcd   :  { %4495 = vmatpush3.msra.mxu0 %v153_v18  ;;  %1364 = vmatprep.subr.mxu1 %v889_v4  ;;  %v948_v18 = vld [vmem:[#allocation7 + $0x220] sm:$0xff]  ;;  %v986_v4 = vld [vmem:[#allocation7 + $0x350] sm:$0xff] }
  0xce   :  { %4496 = vmatprep.subr.mxu0 %v4766_v60  ;;  %1365 = vmatpush1.msra.mxu1 %v888_v47  ;;  %v985_v47 = vld [vmem:[#allocation7 + $0x348] sm:$0xff] }
  0xcf   :  { %4497 = vmatpush3.msra.mxu0 %v152_v44  ;;  %1366 = vmatprep.subr.mxu1 %v887_v9  ;;  %v883_v44 = vld [vmem:[#allocation7 + $0x18] sm:$0xff]  ;;  %v984_v9 = vld [vmem:[#allocation7 + $0x340] sm:$0xff] }
  0xd0   :  { %4498 = vmatprep.subr.mxu0 %v4766_v60  ;;  %1367 = vmatpush1.msra.mxu1 %v886_v12  ;;  %v983_v12 = vld [vmem:[#allocation7 + $0x338] sm:$0xff] }
  0xd1   :  { %4499 = vmatpush3.msra.mxu0 %v151_v19  ;;  %v947_v19 = vld [vmem:[#allocation7 + $0x218] sm:$0xff]  ;;  %1368 = vmatprep.subr.mxu1 %v885_v14  ;;  %v982_v14 = vld [vmem:[#allocation7 + $0x330] sm:$0xff] }
  0xd2   :  { %4500 = vmatprep.subr.mxu0 %v4766_v60  ;;  %1369 = vmatpush1.msra.mxu1 %v884_v16  ;;  %v981_v16 = vld [vmem:[#allocation7 + $0x328] sm:$0xff] }
  0xd3   :  { %4501 = vmatpush3.msra.mxu0 %v150_v0  ;;  %v882_v0 = vld [vmem:[#allocation7 + $0x10] sm:$0xff]  ;;  %1370 = vmatprep.subr.mxu1 %v883_v44  ;;  %v980_v44 = vld [vmem:[#allocation7 + $0x320] sm:$0xff] }
  0xd4   :  { %4502 = vmatprep.subr.mxu0 %v4766_v60  ;;  %1371 = vmatpush1.msra.mxu1 %v882_v0  ;;  %v979_v0 = vld [vmem:[#allocation7 + $0x318] sm:$0xff] }
  0xd5   :  { %4503 = vmatpush3.msra.mxu0 %v149_v21  ;;  %v881_v21 = vld [vmem:[#allocation7 + $0x8] sm:$0xff] }
  0xd6   :  { %4504 = vmatprep.subr.mxu0 %v4766_v60  ;;  %1372 = vmatprep.subr.mxu1 %v881_v21  ;;  %v978_v21 = vld [vmem:[#allocation7 + $0x310] sm:$0xff] }
  0xd7   :  { %4505 = vmatpush3.msra.mxu0 %v148_v39  ;;  %v945_v39 = vld [vmem:[#allocation7 + $0x208] sm:$0xff] }
  0xd8   :  { %4507 = vmatmul.mubr.f32.vlgmr.msra.gmra.mxu0 %v298_v22  ;;  %1413 = vmatprep.subr.mxu0 %v975_v26  ;;  %v880_v22 = vld [vmem:[#allocation7] sm:$0xff]  ;;  %v943_v26 = vld [vmem:[#allocation7 + $0x1f8] sm:$0xff] }
  0xd9   :  { %1414 = vmatpush1.msra.mxu0 %v974_v28  ;;  %v942_v28 = vld [vmem:[#allocation7 + $0x1f0] sm:$0xff]  ;;  %1373 = vmatpush1.msra.mxu1 %v880_v22  ;;  %v977_v22 = vld [vmem:[#allocation7 + $0x308] sm:$0xff] }
  0xda   :  { %1415 = vmatprep.subr.mxu0 %v973_v31  ;;  %v941_v31 = vld [vmem:[#allocation7 + $0x1e8] sm:$0xff]  ;;  %1374 = vmatprep.subr.mxu1 %v943_v26  ;;  %v976_v26 = vld [vmem:[#allocation7 + $0x300] sm:$0xff] }
  0xdb   :  { %1416 = vmatpush1.msra.mxu0 %v972_v63  ;;  %v940_v63 = vld [vmem:[#allocation7 + $0x1e0] sm:$0xff]  ;;  %1375 = vmatpush2.msra.mxu1 %v942_v28  ;;  %v1103_v28 = vld [vmem:[#allocation7 + $0x6f8] sm:$0xff] }
  0xdc   :  { %1417 = vmatprep.subr.mxu0 %v971_v52  ;;  %v939_v52 = vld [vmem:[#allocation7 + $0x1d8] sm:$0xff]  ;;  %1376 = vmatprep.subr.mxu1 %v941_v31 }
  0xdd   :  { %1418 = vmatpush1.msra.mxu0 %v970_v33  ;;  %v938_v33 = vld [vmem:[#allocation7 + $0x1d0] sm:$0xff]  ;;  %1377 = vmatpush2.msra.mxu1 %v940_v63 }
  0xde   :  { %1419 = vmatprep.subr.mxu0 %v969_v37  ;;  %v937_v37 = vld [vmem:[#allocation7 + $0x1c8] sm:$0xff]  ;;  %1378 = vmatprep.subr.mxu1 %v939_v52 }
  0xdf   :  { %1420 = vmatpush1.msra.mxu0 %v968_v38  ;;  %v936_v38 = vld [vmem:[#allocation7 + $0x1c0] sm:$0xff]  ;;  %1379 = vmatpush2.msra.mxu1 %v938_v33 }
  0xe0   :  { %1421 = vmatprep.subr.mxu0 %v967_v23  ;;  %v935_v23 = vld [vmem:[#allocation7 + $0x1b8] sm:$0xff]  ;;  %1380 = vmatprep.subr.mxu1 %v937_v37 }
  0xe1   :  { %1422 = vmatpush1.msra.mxu0 %v966_v41  ;;  %v934_v41 = vld [vmem:[#allocation7 + $0x1b0] sm:$0xff]  ;;  %1381 = vmatpush2.msra.mxu1 %v936_v38 }
  0xe2   :  { %1423 = vmatprep.subr.mxu0 %v965_v42  ;;  %v933_v42 = vld [vmem:[#allocation7 + $0x1a8] sm:$0xff]  ;;  %1382 = vmatprep.subr.mxu1 %v935_v23 }
  0xe3   :  { %1424 = vmatpush1.msra.mxu0 %v964_v43  ;;  %v932_v43 = vld [vmem:[#allocation7 + $0x1a0] sm:$0xff]  ;;  %1383 = vmatpush2.msra.mxu1 %v934_v41 }
  0xe4   :  { %1425 = vmatprep.subr.mxu0 %v963_v48  ;;  %v931_v48 = vld [vmem:[#allocation7 + $0x198] sm:$0xff]  ;;  %1384 = vmatprep.subr.mxu1 %v933_v42 }
  0xe5   :  { %1426 = vmatpush1.msra.mxu0 %v962_v50  ;;  %1385 = vmatpush2.msra.mxu1 %v932_v43  ;;  %v930_v50 = vld [vmem:[#allocation7 + $0x190] sm:$0xff] }
  0xe6   :  { %1427 = vmatprep.subr.mxu0 %v961_v36  ;;  %1386 = vmatprep.subr.mxu1 %v931_v48  ;;  %v929_v36 = vld [vmem:[#allocation7 + $0x188] sm:$0xff] }
  0xe7   :  { %1428 = vmatpush1.msra.mxu0 %v960_v54  ;;  %1387 = vmatpush2.msra.mxu1 %v930_v50  ;;  %v928_v54 = vld [vmem:[#allocation7 + $0x180] sm:$0xff] }
  0xe8   :  { %1429 = vmatprep.subr.mxu0 %v959_v56  ;;  %1388 = vmatprep.subr.mxu1 %v929_v36  ;;  %v927_v56 = vld [vmem:[#allocation7 + $0x178] sm:$0xff] }
  0xe9   :  { %1430 = vmatpush1.msra.mxu0 %v958_v34  ;;  %1389 = vmatpush2.msra.mxu1 %v928_v54  ;;  %v926_v34 = vld [vmem:[#allocation7 + $0x170] sm:$0xff] }
  0xea   :  { %1431 = vmatprep.subr.mxu0 %v957_v11  ;;  %1390 = vmatprep.subr.mxu1 %v927_v56  ;;  %v925_v11 = vld [vmem:[#allocation7 + $0x168] sm:$0xff] }
  0xeb   :  { %1432 = vmatpush1.msra.mxu0 %v956_v61  ;;  %1391 = vmatpush2.msra.mxu1 %v926_v34  ;;  %v924_v61 = vld [vmem:[#allocation7 + $0x160] sm:$0xff] }
  0xec   :  { %1433 = vmatprep.subr.mxu0 %v955_v1  ;;  %v923_v1 = vld [vmem:[#allocation7 + $0x158] sm:$0xff]  ;;  %1392 = vmatprep.subr.mxu1 %v925_v11 }
  0xed   :  { %1434 = vmatpush1.msra.mxu0 %v954_v24  ;;  %v922_v24 = vld [vmem:[#allocation7 + $0x150] sm:$0xff]  ;;  %1393 = vmatpush2.msra.mxu1 %v924_v61 }
  0xee   :  { %1435 = vmatprep.subr.mxu0 %v953_v6  ;;  %v921_v6 = vld [vmem:[#allocation7 + $0x148] sm:$0xff]  ;;  %1394 = vmatprep.subr.mxu1 %v923_v1 }
  0xef   :  { %1436 = vmatpush1.msra.mxu0 %v952_v8  ;;  %v920_v8 = vld [vmem:[#allocation7 + $0x140] sm:$0xff]  ;;  %1395 = vmatpush2.msra.mxu1 %v922_v24 }
  0xf0   :  { %1437 = vmatprep.subr.mxu0 %v951_v10  ;;  %v919_v10 = vld [vmem:[#allocation7 + $0x138] sm:$0xff]  ;;  %1396 = vmatprep.subr.mxu1 %v921_v6 }
  0xf1   :  { %1438 = vmatpush1.msra.mxu0 %v950_v13  ;;  %v918_v13 = vld [vmem:[#allocation7 + $0x130] sm:$0xff]  ;;  %1397 = vmatpush2.msra.mxu1 %v920_v8 }
  0xf2   :  { %1439 = vmatprep.subr.mxu0 %v949_v15  ;;  %v917_v15 = vld [vmem:[#allocation7 + $0x128] sm:$0xff]  ;;  %1398 = vmatprep.subr.mxu1 %v919_v10 }
  0xf3   :  { %1440 = vmatpush1.msra.mxu0 %v948_v18  ;;  %v916_v18 = vld [vmem:[#allocation7 + $0x120] sm:$0xff]  ;;  %1399 = vmatpush2.msra.mxu1 %v918_v13 }
  0xf4   :  { %1441 = vmatprep.subr.mxu0 %v947_v19  ;;  %v915_v19 = vld [vmem:[#allocation7 + $0x118] sm:$0xff]  ;;  %1400 = vmatprep.subr.mxu1 %v917_v15 }
  0xf5   :  { %1442 = vmatpush1.msra.mxu0 %v946_v20  ;;  %v914_v20 = vld [vmem:[#allocation7 + $0x110] sm:$0xff]  ;;  %1401 = vmatpush2.msra.mxu1 %v916_v18 }
  0xf6   :  { %1443 = vmatprep.subr.mxu0 %v945_v39  ;;  %v913_v39 = vld [vmem:[#allocation7 + $0x108] sm:$0xff]  ;;  %1402 = vmatprep.subr.mxu1 %v915_v19 }
  0xf7   :  { %1444 = vmatpush1.msra.mxu0 %v944_v25  ;;  %v912_v25 = vld [vmem:[#allocation7 + $0x100] sm:$0xff]  ;;  %1403 = vmatpush2.msra.mxu1 %v914_v20 }
  0xf8   :  { %1445 = vmatprep.subr.mxu0 %v1007_v27  ;;  %1404 = vmatprep.subr.mxu1 %v913_v39  ;;  %v1039_v27 = vld [vmem:[#allocation7 + $0x4f8] sm:$0xff] }
  0xf9   :  { %1446 = vmatpush2.msra.mxu0 %v1006_v29  ;;  %1405 = vmatpush2.msra.mxu1 %v912_v25 }
  0xfa   :  { %1447 = vmatprep.subr.mxu0 %v1005_v59  ;;  %1484 = vmatprep.subr.mxu1 %v1039_v27 }
  0xfb   :  { %1448 = vmatpush2.msra.mxu0 %v1004_v2 }
  0xfc   :  { %1449 = vmatprep.subr.mxu0 %v1003_v32 }
  0xfd   :  { %1450 = vmatpush2.msra.mxu0 %v1002_v30 }
  0xfe   :  { %1451 = vmatprep.subr.mxu0 %v1001_v5 }
  0xff   :  { %1452 = vmatpush2.msra.mxu0 %v1000_v35 }
 0x100   :  { %1453 = vmatprep.subr.mxu0 %v999_v40 }
 0x101   :  { %1454 = vmatpush2.msra.mxu0 %v998_v7 }
 0x102   :  { %1455 = vmatprep.subr.mxu0 %v997_v17 }
 0x103   :  { %1456 = vmatpush2.msra.mxu0 %v996_v46 }
 0x104   :  { %1457 = vmatprep.subr.mxu0 %v995_v49 }
 0x105   :  { %1458 = vmatpush2.msra.mxu0 %v994_v51 }
 0x106   :  { %1459 = vmatprep.subr.mxu0 %v993_v53 }
 0x107   :  { %1460 = vmatpush2.msra.mxu0 %v992_v55 }
 0x108   :  { %1461 = vmatprep.subr.mxu0 %v991_v45 }
 0x109   :  { %1462 = vmatpush2.msra.mxu0 %v990_v57 }
 0x10a   :  { %1463 = vmatprep.subr.mxu0 %v989_v58 }
 0x10b   :  { %1464 = vmatpush2.msra.mxu0 %v988_v62 }
 0x10c   :  { %1465 = vmatprep.subr.mxu0 %v987_v3 }
 0x10d   :  { %1466 = vmatpush2.msra.mxu0 %v986_v4 }
 0x10e   :  { %1467 = vmatprep.subr.mxu0 %v985_v47 }
 0x10f   :  { %1468 = vmatpush2.msra.mxu0 %v984_v9 }
 0x110   :  { %1469 = vmatprep.subr.mxu0 %v983_v12 }
 0x111   :  { %1470 = vmatpush2.msra.mxu0 %v982_v14 }
 0x112   :  { %1471 = vmatprep.subr.mxu0 %v981_v16 }
 0x113   :  { %1472 = vmatpush2.msra.mxu0 %v980_v44 }
 0x114   :  { %1473 = vmatprep.subr.mxu0 %v979_v0 }
 0x115   :  { %1474 = vmatpush2.msra.mxu0 %v978_v21 }
 0x116   :  { %1475 = vmatprep.subr.mxu0 %v977_v22 }
 0x117   :  { %1476 = vmatpush2.msra.mxu0 %v976_v26 }
 0x118   :  { %1555 = vmatprep.subr.mxu0 %v1103_v28 }
 0x152   :  { %v3912_v31 = vpop.f32.mrf.mxu1 }
 0x154   :  { %v3913_v2 = vpop.f32.mrf.mxu1 }
 0x155   :  { %v3914_v30 = vadd.f32 %v3913_v2, %v3912_v31 }
 0x158   :  { %v3877_v29 = vpop.f32.mrf.mxu0 }
 0x15a   :  { %v3878_v59 = vpop.f32.mrf.mxu0 }
 0x15b   :  { %v3879_v33 = vadd.f32 %v3878_v59, %v3877_v29 }
 0x15d   :  { %v635_v38 = vadd.f32 %v3914_v30, %v3879_v33 }
 0x174   :  { %v3982_v32 = vpop.f32.mrf.mxu1 }
 0x176   :  { %v3983_v5 = vpop.f32.mrf.mxu1 }
 0x177   :  { %v3984_v23 = vadd.f32 %v3983_v5, %v3982_v32 }
 0x178   :  { %v3947_v63 = vpop.f32.mrf.mxu0 }
 0x17a   :  { %v3948_v52 = vpop.f32.mrf.mxu0 }
 0x17b   :  { %v3949_v37 = vadd.f32 %v3948_v52, %v3947_v63 }
 0x17d   :  { %v705_v35 = vadd.f32 %v3949_v37, %v635_v38 }
 0x17f   :  { %v775_v40 = vadd.f32 %v3984_v23, %v705_v35 }
 0x198   :  { %v844_v41 = vpop.f32.mrf.mxu0 }
 0x199   :  { %v5069_v7 = vadd.f32 %v844_v41, %v775_v40 }
 0x19a   :  { %v4508_v42 = vpop.f32.mrf.mxu0 }
 0x19b   :  { %vm1147_vm2 = vcmp.ge.f32.partialorder %v5069_v7, -1.8  ;;  %vm1148_vm3 = vcmp.lt.f32.partialorder %v5069_v7, -1.4  ;;  %vm1151_vm4 = vcmp.ge.f32.partialorder %v5069_v7, -1.4 }
 0x19c   :  { %vm1149_vm5 = vmand %vm1147_vm2, %vm1148_vm3  ;;  %vm1152_vm6 = vcmp.lt.f32.partialorder %v5069_v7, -1.0  ;;  %vm1155_vm7 = vcmp.ge.f32.partialorder %v5069_v7, -1.0  ;;  %vm1156_vm8 = vcmp.lt.f32.partialorder %v5069_v7, -0.6  ;;  %vm1159_vm9 = vcmp.ge.f32.partialorder %v5069_v7, -0.6 }
 0x19d   :  { %v1150_v17 = vsel %vm1149_vm5, 1.0, %v4766_v60  ;;  %vm1153_vm10 = vmand %vm1151_vm4, %vm1152_vm6  ;;  %vm1160_vm11 = vcmp.lt.f32.partialorder %v5069_v7, -0.2  ;;  %v1190_v43 = vsub.f32 -1.4, %v5069_v7  ;;  %v1197_v46 = vsub.f32 -1.0, %v5069_v7 }
 0x19e   :  { %v1154_v48 = vsel %vm1153_vm10, 1.0, %v4766_v60  ;;  %vm1157_vm12 = vmand %vm1155_vm7, %vm1156_vm8  ;;  %v3806_v49 = vadd.f32 1.8, %v5069_v7  ;;  %v5085_v50 = vadd.f32 1.4, %v5069_v7  ;;  %v3808_v51 = vadd.f32 1.0, %v5069_v7 }
 0x19f   :  { %v1158_v36 = vsel %vm1157_vm12, 1.0, %v4766_v60  ;;  %vm1161_vm13 = vmand %vm1159_vm9, %vm1160_vm11  ;;  %v1191_v53 = vmul.f32 2.5, %v1190_v43  ;;  %v1198_v54 = vmul.f32 2.5, %v1197_v46  ;;  %v5092_v55 = vsub.f32 -0.6, %v5069_v7 }
 0x1a0   :  { %v1162_v56 = vsel %vm1161_vm13, 1.0, %v4766_v60  ;;  %v1195_v45 = vmul.f32 2.5, %v3806_v49  ;;  %v1202_v34 = vmul.f32 2.5, %v5085_v50  ;;  %v1209_v57 = vmul.f32 2.5, %v3808_v51 }
 0x1a1   :  { %v5096_v11 = vmul.f32 %v1191_v53, %v1150_v17  ;;  %v1199_v58 = vmul.f32 %v1198_v54, %v1154_v48  ;;  %v1205_v61 = vmul.f32 2.5, %v5092_v55  ;;  %v1211_v62 = vsub.f32 -0.2, %v5069_v7 }
 0x1a2   :  { %v1196_v1 = vmul.f32 %v1195_v45, %v1150_v17  ;;  %v1203_v3 = vmul.f32 %v1202_v34, %v1154_v48  ;;  %v1210_v24 = vmul.f32 %v1209_v57, %v1158_v36  ;;  %v1262_v4 = vmul.f32 1.25, %v3806_v49 }
 0x1a3   :  { %v1206_v6 = vmul.f32 %v1205_v61, %v1158_v36  ;;  %v1212_v47 = vmul.f32 2.5, %v1211_v62  ;;  %v1264_v8 = vmul.f32 1.25, %v5092_v55  ;;  %v1267_v9 = vmul.f32 1.25, %v5085_v50 }
 0x1a4   :  { %v1200_v10 = vadd.f32 %v1199_v58, %v1196_v1  ;;  %v1269_v12 = vmul.f32 1.25, %v1211_v62  ;;  %v1307_v13 = vmul.f32 0.8333333, %v3806_v49  ;;  %v1309_v14 = vmul.f32 0.8333333, %v1211_v62 }
 0x1a5   :  { %v1207_v15 = vadd.f32 %v1206_v6, %v1203_v3  ;;  %v1213_v16 = vmul.f32 %v1212_v47, %v1162_v56  ;;  %vm1163_vm14 = vcmp.ge.f32.partialorder %v5069_v7, -0.2  ;;  %vm1164_vm15 = vcmp.lt.f32.partialorder %v5069_v7, 0.2 }
 0x1a6   :  { %v1263_v18 = vmul.f32 %v1262_v4, %v1200_v10  ;;  %vm1165_vm0 = vmand %vm1163_vm14, %vm1164_vm15  ;;  %vm1167_vm2 = vcmp.ge.f32.partialorder %v5069_v7, 0.2  ;;  %vm1168_vm3 = vcmp.lt.f32.partialorder %v5069_v7, 0.6  ;;  %v5107_v44 = vadd.f32 0.6, %v5069_v7 }
 0x1a7   :  { %v1214_v19 = vadd.f32 %v1213_v16, %v1210_v24  ;;  %v1265_v0 = vmul.f32 %v1264_v8, %v1207_v15  ;;  %v1268_v20 = vmul.f32 %v1267_v9, %v1207_v15  ;;  %v1166_v21 = vsel %vm1165_vm0, 1.0, %v4766_v60  ;;  %vm1169_vm4 = vmand %vm1167_vm2, %vm1168_vm3 }
 0x1a8   :  { %v5111_v39 = vsel %vm1169_vm4, 1.0, %v4766_v60  ;;  %v1216_v22 = vmul.f32 2.5, %v5107_v44  ;;  %v1218_v25 = vsub.f32 0.2, %v5069_v7  ;;  %v5116_v26 = vadd.f32 0.2, %v5069_v7 }
 0x1a9   :  { %v1266_v27 = vadd.f32 %v1265_v0, %v1263_v18  ;;  %v1270_v28 = vmul.f32 %v1269_v12, %v1214_v19  ;;  %v1225_v29 = vsub.f32 0.6, %v5069_v7  ;;  %v1272_v31 = vmul.f32 1.25, %v3808_v51 }
 0x1aa   :  { %v1217_v59 = vmul.f32 %v1216_v22, %v1162_v56  ;;  %v1219_v63 = vmul.f32 2.5, %v1218_v25  ;;  %v1223_v2 = vmul.f32 2.5, %v5116_v26  ;;  %v1274_v52 = vmul.f32 1.25, %v1218_v25 }
 0x1ab   :  { %v1271_v32 = vadd.f32 %v1270_v28, %v1268_v20  ;;  %v1308_v33 = vmul.f32 %v1307_v13, %v1266_v27  ;;  %v1226_v30 = vmul.f32 2.5, %v1225_v29  ;;  %v1273_v37 = vmul.f32 %v1272_v31, %v1214_v19  ;;  %v1102_v20 = vld [vmem:[#allocation7 + $0x6f0] sm:$0xff]  ;;  %v1101_v31 = vld [vmem:[#allocation7 + $0x6e8] sm:$0xff] }
 0x1ac   :  { %v1220_v5 = vmul.f32 %v1219_v63, %v1166_v21  ;;  %v1224_v38 = vmul.f32 %v1223_v2, %v1166_v21  ;;  %v1277_v35 = vmul.f32 1.25, %v5107_v44  ;;  %v1279_v23 = vmul.f32 1.25, %v1225_v29 }
 0x1ad   :  { %v1310_v40 = vmul.f32 %v1309_v14, %v1271_v32  ;;  %v1227_v41 = vmul.f32 %v1226_v30, %v5111_v39  ;;  %v1317_v42 = vmul.f32 0.8333333, %v3808_v51  ;;  %v1319_v17 = vmul.f32 0.8333333, %v1225_v29  ;;  %v1037_v30 = vld [vmem:[#allocation7 + $0x4e8] sm:$0xff] }
 0x1ae   :  { %v1221_v43 = vadd.f32 %v1220_v5, %v1217_v59  ;;  %vm1143_vm5 = vcmp.ge.f32.partialorder %v5069_v7, -2.2  ;;  %vm1144_vm6 = vcmp.lt.f32.partialorder %v5069_v7, -1.8  ;;  %v3805_v48 = vadd.f32 2.2, %v5069_v7 }
 0x1af   :  { %v1311_v49 = vadd.f32 %v1310_v40, %v1308_v33  ;;  %v1228_v36 = vadd.f32 %v1227_v41, %v1224_v38  ;;  %vm1145_vm7 = vmand %vm1143_vm5, %vm1144_vm6  ;;  %v1259_v53 = vmul.f32 1.25, %v1197_v46  ;;  %v1304_v54 = vmul.f32 0.8333333, %v5092_v55  ;;  %v1038_v33 = vld [vmem:[#allocation7 + $0x4f0] sm:$0xff] }
 0x1b0   :  { %v1275_v56 = vmul.f32 %v1274_v52, %v1221_v43  ;;  %v1278_v45 = vmul.f32 %v1277_v35, %v1221_v43  ;;  %v1146_v51 = vsel %vm1145_vm7, 1.0, %v4766_v60  ;;  %v1188_v34 = vmul.f32 2.5, %v3805_v48  ;;  %v1097_v43 = vld [vmem:[#allocation7 + $0x6c8] sm:$0xff] }
 0x1b1   :  { %1406 = vmatprep.mubr.f32.mxu1 %v1311_v49  ;;  %v1280_v57 = vmul.f32 %v1279_v23, %v1228_v36  ;;  %v1257_v58 = vmul.f32 1.25, %v3805_v48  ;;  %v1260_v61 = vmul.f32 %v1259_v53, %v1200_v10  ;;  %v1302_v62 = vmul.f32 0.8333333, %v3805_v48  ;;  %v1099_v23 = vld [vmem:[#allocation7 + $0x6d8] sm:$0xff] }
 0x1b2   :  { %v1276_v1 = vadd.f32 %v1275_v56, %v1273_v37  ;;  %v1189_v3 = vmul.f32 %v1188_v34, %v1146_v51  ;;  %v1305_v24 = vmul.f32 %v1304_v54, %v1266_v27  ;;  %v1312_v4 = vmul.f32 0.8333333, %v5085_v50  ;;  %v1035_v54 = vld [vmem:[#allocation7 + $0x4d8] sm:$0xff]  ;;  %v1096_v56 = vld [vmem:[#allocation7 + $0x6c0] sm:$0xff] }
 0x1b3   :  { %v5130_v6 = vadd.f32 %v1280_v57, %v1278_v45  ;;  %v1314_v46 = vmul.f32 0.8333333, %v1218_v25  ;;  %vm1171_vm8 = vcmp.ge.f32.partialorder %v5069_v7, 0.6  ;;  %vm1172_vm9 = vcmp.lt.f32.partialorder %v5069_v7, 1.0 }
 0x1b4   :  { %v1318_v55 = vmul.f32 %v1317_v42, %v1276_v1  ;;  %v1193_v47 = vadd.f32 %v5096_v11, %v1189_v3  ;;  %v1313_v8 = vmul.f32 %v1312_v4, %v1271_v32  ;;  %vm1173_vm10 = vmand %vm1171_vm8, %vm1172_vm9  ;;  %vm1175_vm11 = vcmp.ge.f32.partialorder %v5069_v7, 1.0  ;;  %v1100_v32 = vld [vmem:[#allocation7 + $0x6e0] sm:$0xff] }
 0x1b5   :  { %v1320_v9 = vmul.f32 %v1319_v17, %v5130_v6  ;;  %v1315_v10 = vmul.f32 %v1314_v46, %v1276_v1  ;;  %v1174_v12 = vsel %vm1173_vm10, 1.0, %v4766_v60  ;;  %vm1176_vm12 = vcmp.lt.f32.partialorder %v5069_v7, 1.4  ;;  %v1098_v17 = vld [vmem:[#allocation7 + $0x6d0] sm:$0xff] }
 0x1b6   :  { %v1258_v50 = vmul.f32 %v1257_v58, %v1193_v47  ;;  %vm1177_vm13 = vmand %vm1175_vm11, %vm1176_vm12  ;;  %v5140_v13 = vadd.f32 -0.2, %v5069_v7  ;;  %v5143_v14 = vsub.f32 1.0, %v5069_v7  ;;  %v5146_v11 = vadd.f32 -0.6, %v5069_v7  ;;  %v1095_v58 = vld [vmem:[#allocation7 + $0x6b8] sm:$0xff] }
 0x1b7   :  { %v1321_v15 = vadd.f32 %v1320_v9, %v1318_v55  ;;  %v1316_v16 = vadd.f32 %v1315_v10, %v1313_v8  ;;  %v5149_v18 = vsel %vm1177_vm13, 1.0, %v4766_v60  ;;  %v5152_v19 = vsub.f32 1.4, %v5069_v7  ;;  %v1033_v8 = vld [vmem:[#allocation7 + $0x4c8] sm:$0xff]  ;;  %v1094_v9 = vld [vmem:[#allocation7 + $0x6b0] sm:$0xff] }
 0x1b8   :  { %v1261_v0 = vadd.f32 %v1260_v61, %v1258_v50  ;;  %v1230_v21 = vmul.f32 2.5, %v5140_v13  ;;  %v1233_v22 = vmul.f32 2.5, %v5143_v14  ;;  %v1237_v25 = vmul.f32 2.5, %v5146_v11 }
 0x1b9   :  { %1477 = vmatprep.mubr.f32.mxu0 %v1321_v15  ;;  %v1240_v27 = vmul.f32 2.5, %v5152_v19  ;;  %v1282_v28 = vmul.f32 1.25, %v5116_v26  ;;  %v1284_v29 = vmul.f32 1.25, %v5143_v14  ;;  %v1287_v38 = vmul.f32 1.25, %v5140_v13 }
 0x1ba   :  { %v1303_v59 = vmul.f32 %v1302_v62, %v1261_v0  ;;  %1478 = vmatmul.mubr.f32.vlgmr.msra.gmra.mxu0 %v1316_v16  ;;  %v1231_v63 = vmul.f32 %v1230_v21, %v5111_v39  ;;  %v1234_v2 = vmul.f32 %v1233_v22, %v1174_v12  ;;  %v1238_v52 = vmul.f32 %v1237_v25, %v1174_v12  ;;  %v1036_v39 = vld [vmem:[#allocation7 + $0x4e0] sm:$0xff]  ;;  %v1093_v0 = vld [vmem:[#allocation7 + $0x6a8] sm:$0xff]  ;;  %v1031_v22 = vld [vmem:[#allocation7 + $0x4b8] sm:$0xff] }
 0x1bb   :  { %1556 = vmatpush1.msra.mxu0 %v1102_v20  ;;  %v1241_v37 = vmul.f32 %v1240_v27, %v5149_v18  ;;  %v1283_v5 = vmul.f32 %v1282_v28, %v1228_v36  ;;  %v1289_v35 = vmul.f32 1.25, %v5152_v19  ;;  %v1327_v42 = vmul.f32 0.8333333, %v5116_v26  ;;  %v1032_v16 = vld [vmem:[#allocation7 + $0x4c0] sm:$0xff] }
 0x1bc   :  { %v1306_v40 = vadd.f32 %v1305_v24, %v1303_v59  ;;  %v1235_v41 = vadd.f32 %v1234_v2, %v1231_v63  ;;  %1557 = vmatprep.subr.mxu0 %v1101_v31  ;;  %vm1179_vm14 = vcmp.ge.f32.partialorder %v5069_v7, 1.4  ;;  %vm1180_vm15 = vcmp.lt.f32.partialorder %v5069_v7, 1.8  ;;  %v1034_v24 = vld [vmem:[#allocation7 + $0x4d0] sm:$0xff]  ;;  %v1092_v25 = vld [vmem:[#allocation7 + $0x6a0] sm:$0xff] }
 0x1bd   :  { %v1242_v48 = vadd.f32 %v1241_v37, %v1238_v52  ;;  %vm1183_vm0 = vcmp.ge.f32.partialorder %v5069_v7, 1.8  ;;  %vm1184_vm2 = vcmp.lt.f32.partialorder %v5069_v7, 2.2  ;;  %1558 = vmatpush1.msra.mxu0 %v1100_v32  ;;  %vm1181_vm3 = vmand %vm1179_vm14, %vm1180_vm15  ;;  %v3813_v26 = vadd.f32 -1.0, %v5069_v7  ;;  %v1029_v52 = vld [vmem:[#allocation7 + $0x4a8] sm:$0xff] }
 0x1be   :  { %1407 = vmatmul.mubr.f32.vlgmr.msra.gmra.mxu1 %v1306_v40  ;;  %v1285_v49 = vmul.f32 %v1284_v29, %v1235_v41  ;;  %v1288_v36 = vmul.f32 %v1287_v38, %v1235_v41  ;;  %v5171_v53 = vsub.f32 1.8, %v5069_v7  ;;  %1559 = vmatprep.subr.mxu0 %v1099_v23  ;;  %v1182_v51 = vsel %vm1181_vm3, 1.0, %v4766_v60  ;;  %vm1185_vm4 = vmand %vm1183_vm0, %vm1184_vm2  ;;  %v1091_v32 = vld [vmem:[#allocation7 + $0x698] sm:$0xff]  ;;  %v1090_v38 = vld [vmem:[#allocation7 + $0x690] sm:$0xff] }
 0x1bf   :  { %1485 = vmatpush1.msra.mxu1 %v1038_v33  ;;  %v1290_v45 = vmul.f32 %v1289_v35, %v1242_v48  ;;  %v3814_v34 = vadd.f32 -1.4, %v5069_v7  ;;  %v5178_v57 = vsub.f32 2.2, %v5069_v7  ;;  %1560 = vmatpush1.msra.mxu0 %v1098_v17  ;;  %v1186_v62 = vsel %vm1185_vm4, 1.0, %v4766_v60  ;;  %v1027_v40 = vld [vmem:[#allocation7 + $0x498] sm:$0xff] }
 0x1c0   :  { %1486 = vmatprep.subr.mxu1 %v1037_v30  ;;  %v1286_v61 = vadd.f32 %v1285_v49, %v1283_v5  ;;  %v1244_v1 = vmul.f32 2.5, %v3813_v26  ;;  %v1247_v3 = vmul.f32 2.5, %v5171_v53  ;;  %1561 = vmatprep.subr.mxu0 %v1097_v43  ;;  %v1329_v46 = vmul.f32 0.8333333, %v5152_v19  ;;  %v1028_v5 = vld [vmem:[#allocation7 + $0x4a0] sm:$0xff]  ;;  %v1089_v41 = vld [vmem:[#allocation7 + $0x688] sm:$0xff] }
 0x1c1   :  { %v5182_v4 = vadd.f32 %v1290_v45, %v1288_v36  ;;  %v1251_v55 = vmul.f32 2.5, %v3814_v34  ;;  %v1254_v47 = vmul.f32 2.5, %v5178_v57  ;;  %1487 = vmatpush1.msra.mxu1 %v1036_v39  ;;  %1562 = vmatpush1.msra.mxu0 %v1096_v56  ;;  %v1292_v15 = vmul.f32 1.25, %v5146_v11  ;;  %v1088_v43 = vld [vmem:[#allocation7 + $0x680] sm:$0xff]  ;;  %v1086_v56 = vld [vmem:[#allocation7 + $0x670] sm:$0xff]  ;;  %v1085_v34 = vld [vmem:[#allocation7 + $0x668] sm:$0xff] }
 0x1c2   :  { %v1328_v10 = vmul.f32 %v1327_v42, %v1286_v61  ;;  %v1245_v12 = vmul.f32 %v1244_v1, %v5149_v18  ;;  %v1248_v50 = vmul.f32 %v1247_v3, %v1182_v51  ;;  %1488 = vmatprep.subr.mxu1 %v1035_v54  ;;  %1563 = vmatprep.subr.mxu0 %v1095_v58  ;;  %v1294_v29 = vmul.f32 1.25, %v5171_v53  ;;  %v1030_v18 = vld [vmem:[#allocation7 + $0x4b0] sm:$0xff]  ;;  %v1020_v1 = vld [vmem:[#allocation7 + $0x460] sm:$0xff]  ;;  %v1083_v3 = vld [vmem:[#allocation7 + $0x658] sm:$0xff] }
 0x1c3   :  { %v1330_v20 = vmul.f32 %v1329_v46, %v5182_v4  ;;  %v1252_v19 = vmul.f32 %v1251_v55, %v1182_v51  ;;  %v1255_v21 = vmul.f32 %v1254_v47, %v1186_v62  ;;  %1489 = vmatpush1.msra.mxu1 %v1034_v24  ;;  %v1293_v28 = vmul.f32 %v1292_v15, %v1242_v48  ;;  %v1023_v51 = vld [vmem:[#allocation7 + $0x478] sm:$0xff]  ;;  %v1084_v62 = vld [vmem:[#allocation7 + $0x660] sm:$0xff]  ;;  %v1082_v46 = vld [vmem:[#allocation7 + $0x650] sm:$0xff] }
 0x1c4   :  { %v1249_v27 = vadd.f32 %v1248_v50, %v1245_v12  ;;  %v1297_v31 = vmul.f32 1.25, %v3813_v26  ;;  %1490 = vmatprep.subr.mxu1 %v1033_v8  ;;  %1564 = vmatpush1.msra.mxu0 %v1094_v9  ;;  %v1299_v2 = vmul.f32 1.25, %v5178_v57  ;;  %v1322_v33 = vmul.f32 0.8333333, %v5107_v44  ;;  %v1026_v44 = vld [vmem:[#allocation7 + $0x490] sm:$0xff]  ;;  %v1087_v26 = vld [vmem:[#allocation7 + $0x678] sm:$0xff] }
 0x1c5   :  { %v1331_v59 = vadd.f32 %v1330_v20, %v1328_v10  ;;  %v1256_v63 = vadd.f32 %v1255_v21, %v1252_v19  ;;  %1491 = vmatpush1.msra.mxu1 %v1032_v16  ;;  %1565 = vmatprep.subr.mxu0 %v1093_v0  ;;  %v1324_v35 = vmul.f32 0.8333333, %v5143_v14  ;;  %v1337_v17 = vmul.f32 0.8333333, %v5146_v11  ;;  %v1025_v14 = vld [vmem:[#allocation7 + $0x488] sm:$0xff]  ;;  %v1019_v24 = vld [vmem:[#allocation7 + $0x458] sm:$0xff] }
 0x1c6   :  { %v1295_v30 = vmul.f32 %v1294_v29, %v1249_v27  ;;  %v1298_v37 = vmul.f32 %v1297_v31, %v1249_v27  ;;  %1492 = vmatprep.subr.mxu1 %v1031_v22  ;;  %1566 = vmatpush1.msra.mxu0 %v1092_v25  ;;  %v1323_v42 = vmul.f32 %v1322_v33, %v5130_v6  ;;  %v1339_v36 = vmul.f32 0.8333333, %v5178_v57  ;;  %v1024_v6 = vld [vmem:[#allocation7 + $0x480] sm:$0xff]  ;;  %v1022_v57 = vld [vmem:[#allocation7 + $0x470] sm:$0xff]  ;;  %v1081_v47 = vld [vmem:[#allocation7 + $0x648] sm:$0xff] }
 0x1c7   :  { %1548 = vmatprep.mubr.f32.mxu1 %v1331_v59  ;;  %v1300_v23 = vmul.f32 %v1299_v2, %v1256_v63  ;;  %1493 = vmatpush1.msra.mxu1 %v1030_v18  ;;  %v1325_v48 = vmul.f32 %v1324_v35, %v1286_v61  ;;  %v1021_v61 = vld [vmem:[#allocation7 + $0x468] sm:$0xff]  ;;  %v1018_v55 = vld [vmem:[#allocation7 + $0x450] sm:$0xff]  ;;  %v1080_v9 = vld [vmem:[#allocation7 + $0x640] sm:$0xff] }
 0x1c8   :  { %v5194_v39 = vadd.f32 %v1295_v30, %v1293_v28  ;;  %1494 = vmatprep.subr.mxu1 %v1029_v52  ;;  %1567 = vmatprep.subr.mxu0 %v1091_v32  ;;  %v1017_v8 = vld [vmem:[#allocation7 + $0x448] sm:$0xff]  ;;  %v1016_v10 = vld [vmem:[#allocation7 + $0x440] sm:$0xff]  ;;  %v1079_v12 = vld [vmem:[#allocation7 + $0x638] sm:$0xff] }
 0x1c9   :  { %v1301_v49 = vadd.f32 %v1300_v23, %v1298_v37  ;;  %1495 = vmatpush1.msra.mxu1 %v1028_v5  ;;  %1568 = vmatpush1.msra.mxu0 %v1090_v38  ;;  %v5199_v45 = vadd.f32 %v1325_v48, %v1323_v42  ;;  %v1015_v50 = vld [vmem:[#allocation7 + $0x438] sm:$0xff]  ;;  %v1078_v15 = vld [vmem:[#allocation7 + $0x630] sm:$0xff]  ;;  %v1077_v0 = vld [vmem:[#allocation7 + $0x628] sm:$0xff] }
 0x1ca   :  { %v1338_v54 = vmul.f32 %v1337_v17, %v5194_v39  ;;  %1496 = vmatprep.subr.mxu1 %v1027_v40  ;;  %1569 = vmatprep.subr.mxu0 %v1089_v41  ;;  %v1014_v16 = vld [vmem:[#allocation7 + $0x430] sm:$0xff]  ;;  %v1013_v20 = vld [vmem:[#allocation7 + $0x428] sm:$0xff]  ;;  %v1076_v19 = vld [vmem:[#allocation7 + $0x620] sm:$0xff] }
 0x1cb   :  { %v1340_v11 = vmul.f32 %v1339_v36, %v1301_v49  ;;  %1497 = vmatpush1.msra.mxu1 %v1026_v44  ;;  %1570 = vmatpush1.msra.mxu0 %v1088_v43  ;;  %v1012_v21 = vld [vmem:[#allocation7 + $0x420] sm:$0xff]  ;;  %v1075_v22 = vld [vmem:[#allocation7 + $0x618] sm:$0xff]  ;;  %v1074_v27 = vld [vmem:[#allocation7 + $0x610] sm:$0xff] }
 0x1cc   :  { %1498 = vmatprep.subr.mxu1 %v1025_v14  ;;  %1571 = vmatprep.subr.mxu0 %v1087_v26  ;;  %v1011_v25 = vld [vmem:[#allocation7 + $0x418] sm:$0xff]  ;;  %v1010_v28 = vld [vmem:[#allocation7 + $0x410] sm:$0xff]  ;;  %v1073_v29 = vld [vmem:[#allocation7 + $0x608] sm:$0xff] }
 0x1cd   :  { %v1341_v58 = vadd.f32 %v1340_v11, %v1338_v54  ;;  %1499 = vmatpush1.msra.mxu1 %v1024_v6  ;;  %1572 = vmatpush1.msra.mxu0 %v1086_v56  ;;  %v1009_v31 = vld [vmem:[#allocation7 + $0x408] sm:$0xff]  ;;  %v1072_v18 = vld [vmem:[#allocation7 + $0x600] sm:$0xff]  ;;  %v1135_v63 = vld [vmem:[#allocation7 + $0x7f8] sm:$0xff] }
 0x1ce   :  { %1500 = vmatprep.subr.mxu1 %v1023_v51  ;;  %1573 = vmatprep.subr.mxu0 %v1085_v34  ;;  %v1008_v59 = vld [vmem:[#allocation7 + $0x400] sm:$0xff]  ;;  %v1071_v2 = vld [vmem:[#allocation7 + $0x5f8] sm:$0xff]  ;;  %v1134_v52 = vld [vmem:[#allocation7 + $0x7f0] sm:$0xff] }
 0x1cf   :  { %1619 = vmatprep.mubr.f32.mxu0 %v1341_v58  ;;  %1501 = vmatpush1.msra.mxu1 %v1022_v57  ;;  %v1070_v32 = vld [vmem:[#allocation7 + $0x5f0] sm:$0xff]  ;;  %v1133_v33 = vld [vmem:[#allocation7 + $0x7e8] sm:$0xff]  ;;  %v1132_v37 = vld [vmem:[#allocation7 + $0x7e0] sm:$0xff] }
 0x1d0   :  { %1502 = vmatprep.subr.mxu1 %v1021_v61  ;;  %1574 = vmatpush1.msra.mxu0 %v1084_v62  ;;  %v1069_v30 = vld [vmem:[#allocation7 + $0x5e8] sm:$0xff]  ;;  %v1068_v5 = vld [vmem:[#allocation7 + $0x5e0] sm:$0xff]  ;;  %v1131_v38 = vld [vmem:[#allocation7 + $0x7d8] sm:$0xff] }
 0x1d1   :  { %1503 = vmatpush1.msra.mxu1 %v1020_v1  ;;  %1575 = vmatprep.subr.mxu0 %v1083_v3  ;;  %v1067_v35 = vld [vmem:[#allocation7 + $0x5d8] sm:$0xff]  ;;  %v1130_v23 = vld [vmem:[#allocation7 + $0x7d0] sm:$0xff]  ;;  %v1129_v41 = vld [vmem:[#allocation7 + $0x7c8] sm:$0xff] }
 0x1d2   :  { %1504 = vmatprep.subr.mxu1 %v1019_v24  ;;  %1576 = vmatpush1.msra.mxu0 %v1082_v46  ;;  %v1066_v40 = vld [vmem:[#allocation7 + $0x5d0] sm:$0xff]  ;;  %v1065_v42 = vld [vmem:[#allocation7 + $0x5c8] sm:$0xff]  ;;  %v1128_v17 = vld [vmem:[#allocation7 + $0x7c0] sm:$0xff] }
 0x1d3   :  { %1505 = vmatpush1.msra.mxu1 %v1018_v55  ;;  %1577 = vmatprep.subr.mxu0 %v1081_v47  ;;  %v1064_v44 = vld [vmem:[#allocation7 + $0x5c0] sm:$0xff]  ;;  %v1127_v43 = vld [vmem:[#allocation7 + $0x7b8] sm:$0xff]  ;;  %v1126_v49 = vld [vmem:[#allocation7 + $0x7b0] sm:$0xff] }
 0x1d4   :  { %1506 = vmatprep.subr.mxu1 %v1017_v8  ;;  %1578 = vmatpush1.msra.mxu0 %v1080_v9  ;;  %v1063_v48 = vld [vmem:[#allocation7 + $0x5b8] sm:$0xff]  ;;  %v1062_v36 = vld [vmem:[#allocation7 + $0x5b0] sm:$0xff]  ;;  %v1125_v14 = vld [vmem:[#allocation7 + $0x7a8] sm:$0xff] }
 0x1d5   :  { %1507 = vmatpush1.msra.mxu1 %v1016_v10  ;;  %1579 = vmatprep.subr.mxu0 %v1079_v12  ;;  %v1061_v26 = vld [vmem:[#allocation7 + $0x5a8] sm:$0xff]  ;;  %v1124_v54 = vld [vmem:[#allocation7 + $0x7a0] sm:$0xff]  ;;  %v1123_v56 = vld [vmem:[#allocation7 + $0x798] sm:$0xff] }
 0x1d6   :  { %1508 = vmatprep.subr.mxu1 %v1015_v50  ;;  %1580 = vmatpush1.msra.mxu0 %v1078_v15  ;;  %v1060_v6 = vld [vmem:[#allocation7 + $0x5a0] sm:$0xff]  ;;  %v1059_v11 = vld [vmem:[#allocation7 + $0x598] sm:$0xff]  ;;  %v1122_v51 = vld [vmem:[#allocation7 + $0x790] sm:$0xff] }
 0x1d7   :  { %1509 = vmatpush1.msra.mxu1 %v1014_v16  ;;  %1581 = vmatprep.subr.mxu0 %v1077_v0  ;;  %v1058_v34 = vld [vmem:[#allocation7 + $0x590] sm:$0xff]  ;;  %v1121_v57 = vld [vmem:[#allocation7 + $0x788] sm:$0xff]  ;;  %v1120_v61 = vld [vmem:[#allocation7 + $0x780] sm:$0xff]  ;;  %v1136_v0 = vsub.f32 0.0, %v5069_v7 }
 0x1d8   :  { %1510 = vmatprep.subr.mxu1 %v1013_v20  ;;  %1582 = vmatpush1.msra.mxu0 %v1076_v19  ;;  %v1057_v58 = vld [vmem:[#allocation7 + $0x588] sm:$0xff]  ;;  %v1056_v62 = vld [vmem:[#allocation7 + $0x580] sm:$0xff]  ;;  %v1119_v1 = vld [vmem:[#allocation7 + $0x778] sm:$0xff] }
 0x1d9   :  { %1511 = vmatpush1.msra.mxu1 %v1012_v21  ;;  %1583 = vmatprep.subr.mxu0 %v1075_v22  ;;  %v1055_v3 = vld [vmem:[#allocation7 + $0x578] sm:$0xff]  ;;  %v1118_v24 = vld [vmem:[#allocation7 + $0x770] sm:$0xff]  ;;  %v1117_v55 = vld [vmem:[#allocation7 + $0x768] sm:$0xff] }
 0x1da   :  { %1512 = vmatprep.subr.mxu1 %v1011_v25  ;;  %1584 = vmatpush1.msra.mxu0 %v1074_v27  ;;  %v1054_v46 = vld [vmem:[#allocation7 + $0x570] sm:$0xff]  ;;  %v1053_v47 = vld [vmem:[#allocation7 + $0x568] sm:$0xff]  ;;  %v1116_v8 = vld [vmem:[#allocation7 + $0x760] sm:$0xff] }
 0x1db   :  { %1513 = vmatpush1.msra.mxu1 %v1010_v28  ;;  %1585 = vmatprep.subr.mxu0 %v1073_v29  ;;  %v1052_v9 = vld [vmem:[#allocation7 + $0x560] sm:$0xff]  ;;  %v1115_v10 = vld [vmem:[#allocation7 + $0x758] sm:$0xff]  ;;  %v1114_v50 = vld [vmem:[#allocation7 + $0x750] sm:$0xff] }
 0x1dc   :  { %1514 = vmatprep.subr.mxu1 %v1009_v31  ;;  %1586 = vmatpush1.msra.mxu0 %v1072_v18  ;;  %v1051_v12 = vld [vmem:[#allocation7 + $0x558] sm:$0xff]  ;;  %v1050_v15 = vld [vmem:[#allocation7 + $0x550] sm:$0xff]  ;;  %v1113_v16 = vld [vmem:[#allocation7 + $0x748] sm:$0xff]  ;;  %v1137_v31 = vmul.f32 1.442695, %v1136_v0 }
 0x1dd   :  { %1515 = vmatpush1.msra.mxu1 %v1008_v59  ;;  %1587 = vmatprep.subr.mxu0 %v1135_v63  ;;  %v1049_v20 = vld [vmem:[#allocation7 + $0x548] sm:$0xff]  ;;  %v1112_v19 = vld [vmem:[#allocation7 + $0x740] sm:$0xff]  ;;  %v1111_v22 = vld [vmem:[#allocation7 + $0x738] sm:$0xff]  ;;  %v1332_v63 = vmul.f32 0.8333333, %v5140_v13 }
 0x1de   :  { %1516 = vmatprep.subr.mxu1 %v1071_v2  ;;  %1588 = vmatpush2.msra.mxu0 %v1134_v52  ;;  %v1048_v21 = vld [vmem:[#allocation7 + $0x540] sm:$0xff]  ;;  %v1047_v25 = vld [vmem:[#allocation7 + $0x538] sm:$0xff]  ;;  %v1110_v27 = vld [vmem:[#allocation7 + $0x730] sm:$0xff]  ;;  %v1334_v2 = vmul.f32 0.8333333, %v5171_v53  ;;  %4562 = vpow2.f32 %v1137_v31 }
 0x1df   :  { %1517 = vmatpush2.msra.mxu1 %v1070_v32  ;;  %1589 = vmatprep.subr.mxu0 %v1133_v33  ;;  %v1046_v28 = vld [vmem:[#allocation7 + $0x530] sm:$0xff]  ;;  %v1109_v29 = vld [vmem:[#allocation7 + $0x728] sm:$0xff]  ;;  %v1108_v59 = vld [vmem:[#allocation7 + $0x720] sm:$0xff] }
 0x1e0   :  { %1518 = vmatprep.subr.mxu1 %v1069_v30  ;;  %1590 = vmatpush2.msra.mxu0 %v1132_v37  ;;  %v1045_v18 = vld [vmem:[#allocation7 + $0x528] sm:$0xff]  ;;  %v1044_v52 = vld [vmem:[#allocation7 + $0x520] sm:$0xff]  ;;  %v1107_v32 = vld [vmem:[#allocation7 + $0x718] sm:$0xff]  ;;  %v1333_v37 = vmul.f32 %v1332_v63, %v5182_v4 }
 0x1e1   :  { %1519 = vmatpush2.msra.mxu1 %v1068_v5  ;;  %1591 = vmatprep.subr.mxu0 %v1131_v38  ;;  %v1043_v33 = vld [vmem:[#allocation7 + $0x518] sm:$0xff]  ;;  %v1106_v30 = vld [vmem:[#allocation7 + $0x710] sm:$0xff]  ;;  %v1335_v5 = vmul.f32 %v1334_v2, %v5194_v39  ;;  %v1041_v13 = vld [vmem:[#allocation7 + $0x508] sm:$0xff] }
 0x1e2   :  { %1520 = vmatprep.subr.mxu1 %v1067_v35  ;;  %1592 = vmatpush2.msra.mxu0 %v1130_v23  ;;  %v1042_v38 = vld [vmem:[#allocation7 + $0x510] sm:$0xff]  ;;  %v1105_v35 = vld [vmem:[#allocation7 + $0x708] sm:$0xff]  ;;  %v1104_v53 = vld [vmem:[#allocation7 + $0x700] sm:$0xff] }
 0x1e3   :  { %1521 = vmatpush2.msra.mxu1 %v1066_v40  ;;  %1593 = vmatprep.subr.mxu0 %v1129_v41  ;;  %v1040_v23 = vld [vmem:[#allocation7 + $0x500] sm:$0xff]  ;;  %v1336_v40 = vadd.f32 %v1335_v5, %v1333_v37  ;;  %v879_v41 = vld [vmem:[#allocation6 + $0xf8] sm:$0xff]  ;;  %v878_v4 = vld [vmem:[#allocation6 + $0xf0] sm:$0xff] }
 0x1e4   :  { %1522 = vmatprep.subr.mxu1 %v1065_v42  ;;  %1594 = vmatpush2.msra.mxu0 %v1128_v17  ;;  %v877_v39 = vld [vmem:[#allocation6 + $0xe8] sm:$0xff]  ;;  %v876_v42 = vld [vmem:[#allocation6 + $0xe0] sm:$0xff]  ;;  %v875_v17 = vld [vmem:[#allocation6 + $0xd8] sm:$0xff] }
 0x1e5   :  { %1523 = vmatpush2.msra.mxu1 %v1064_v44  ;;  %1595 = vmatprep.subr.mxu0 %v1127_v43  ;;  %v874_v44 = vld [vmem:[#allocation6 + $0xd0] sm:$0xff]  ;;  %v873_v43 = vld [vmem:[#allocation6 + $0xc8] sm:$0xff] }
 0x1e6   :  { %1524 = vmatprep.subr.mxu1 %v1063_v48  ;;  %1596 = vmatpush2.msra.mxu0 %v1126_v49  ;;  %v872_v48 = vld [vmem:[#allocation6 + $0xc0] sm:$0xff]  ;;  %v871_v49 = vld [vmem:[#allocation6 + $0xb8] sm:$0xff] }
 0x1e7   :  { %1525 = vmatpush2.msra.mxu1 %v1062_v36  ;;  %1597 = vmatprep.subr.mxu0 %v1125_v14  ;;  %v870_v36 = vld [vmem:[#allocation6 + $0xb0] sm:$0xff] }
 0x1e8   :  { %1526 = vmatprep.subr.mxu1 %v1061_v26  ;;  %1598 = vmatpush2.msra.mxu0 %v1124_v54  ;;  %v869_v26 = vld [vmem:[#allocation6 + $0xa8] sm:$0xff]  ;;  %v867_v54 = vld [vmem:[#allocation6 + $0x98] sm:$0xff] }
 0x1e9   :  { %1527 = vmatpush2.msra.mxu1 %v1060_v6  ;;  %1599 = vmatprep.subr.mxu0 %v1123_v56  ;;  %v866_v6 = vld [vmem:[#allocation6 + $0x90] sm:$0xff] }
 0x1ea   :  { %1528 = vmatprep.subr.mxu1 %v1059_v11  ;;  %1600 = vmatpush2.msra.mxu0 %v1122_v51  ;;  %v865_v11 = vld [vmem:[#allocation6 + $0x88] sm:$0xff]  ;;  %v864_v51 = vld [vmem:[#allocation6 + $0x80] sm:$0xff] }
 0x1eb   :  { %1529 = vmatpush2.msra.mxu1 %v1058_v34  ;;  %1601 = vmatprep.subr.mxu0 %v1121_v57  ;;  %v4563_v14 = vpop.eup %4562  ;;  %v863_v34 = vld [vmem:[#allocation6 + $0x78] sm:$0xff]  ;;  %v862_v57 = vld [vmem:[#allocation6 + $0x70] sm:$0xff] }
 0x1ec   :  { %1530 = vmatprep.subr.mxu1 %v1057_v58  ;;  %1602 = vmatpush2.msra.mxu0 %v1120_v61  ;;  %v1139_v56 = vadd.f32 1.0, %v4563_v14  ;;  %v861_v58 = vld [vmem:[#allocation6 + $0x68] sm:$0xff]  ;;  %v860_v61 = vld [vmem:[#allocation6 + $0x60] sm:$0xff] }
 0x1ed   :  { %1531 = vmatpush2.msra.mxu1 %v1056_v62  ;;  %1603 = vmatprep.subr.mxu0 %v1119_v1  ;;  %v859_v62 = vld [vmem:[#allocation6 + $0x58] sm:$0xff]  ;;  %v858_v1 = vld [vmem:[#allocation6 + $0x50] sm:$0xff]  ;;  %v1819_v14 = vld [vmem:[#allocation10 + $0x168] sm:$0xff] }
 0x1ee   :  { %1532 = vmatprep.subr.mxu1 %v1055_v3  ;;  %1604 = vmatpush2.msra.mxu0 %v1118_v24  ;;  %4564 = vrcp.f32 %v1139_v56  ;;  %v857_v3 = vld [vmem:[#allocation6 + $0x48] sm:$0xff]  ;;  %v856_v24 = vld [vmem:[#allocation6 + $0x40] sm:$0xff]  ;;  %v1801_v56 = vld [vmem:[#allocation10 + $0xd8] sm:$0xff] }
 0x1ef   :  { %1533 = vmatpush2.msra.mxu1 %v1054_v46  ;;  %1605 = vmatprep.subr.mxu0 %v1117_v55  ;;  %v855_v46 = vld [vmem:[#allocation6 + $0x38] sm:$0xff]  ;;  %v854_v55 = vld [vmem:[#allocation6 + $0x30] sm:$0xff] }
 0x1f0   :  { %1534 = vmatprep.subr.mxu1 %v1053_v47  ;;  %1606 = vmatpush2.msra.mxu0 %v1116_v8  ;;  %v853_v47 = vld [vmem:[#allocation6 + $0x28] sm:$0xff]  ;;  %v852_v8 = vld [vmem:[#allocation6 + $0x20] sm:$0xff] }
 0x1f1   :  { %1535 = vmatpush2.msra.mxu1 %v1052_v9  ;;  %1607 = vmatprep.subr.mxu0 %v1115_v10  ;;  %v851_v9 = vld [vmem:[#allocation6 + $0x18] sm:$0xff]  ;;  %v850_v10 = vld [vmem:[#allocation6 + $0x10] sm:$0xff] }
 0x1f2   :  { %1536 = vmatprep.subr.mxu1 %v1051_v12  ;;  %1608 = vmatpush2.msra.mxu0 %v1114_v50  ;;  %v849_v50 = vld [vmem:[#allocation6 + $0x8] sm:$0xff] }
 0x1f3   :  { %1537 = vmatpush2.msra.mxu1 %v1050_v15  ;;  %1609 = vmatprep.subr.mxu0 %v1113_v16  ;;  %v848_v15 = vld [vmem:[#allocation6] sm:$0xff] }
 0x1f4   :  { %1538 = vmatprep.subr.mxu1 %v1049_v20  ;;  %1610 = vmatpush2.msra.mxu0 %v1112_v19 }
 0x1f5   :  { %1539 = vmatpush2.msra.mxu1 %v1048_v21  ;;  %1611 = vmatprep.subr.mxu0 %v1111_v22 }
 0x1f6   :  { %1540 = vmatprep.subr.mxu1 %v1047_v25  ;;  %1612 = vmatpush2.msra.mxu0 %v1110_v27 }
 0x1f7   :  { %1541 = vmatpush2.msra.mxu1 %v1046_v28  ;;  %1613 = vmatprep.subr.mxu0 %v1109_v29 }
 0x1f8   :  { %1542 = vmatprep.subr.mxu1 %v1045_v18  ;;  %1614 = vmatpush2.msra.mxu0 %v1108_v59 }
 0x1f9   :  { %1543 = vmatpush2.msra.mxu1 %v1044_v52  ;;  %1615 = vmatprep.subr.mxu0 %v1107_v32 }
 0x1fa   :  { %1544 = vmatprep.subr.mxu1 %v1043_v33  ;;  %1616 = vmatpush2.msra.mxu0 %v1106_v30 }
 0x1fb   :  { %1545 = vmatpush2.msra.mxu1 %v1042_v38  ;;  %1617 = vmatprep.subr.mxu0 %v1105_v35  ;;  %v4565_v12 = vpop.eup %4564 }
 0x1fc   :  { %1546 = vmatprep.subr.mxu1 %v1041_v13  ;;  %1618 = vmatpush2.msra.mxu0 %v1104_v53  ;;  %v1142_v16 = vmul.f32 %v4565_v12, %v5069_v7  ;;  %v1829_v12 = vld [vmem:[#allocation10 + $0x1b8] sm:$0xff] }
 0x1fd   :  { %1547 = vmatpush2.msra.mxu1 %v1040_v23  ;;  %1620 = vmatmul.mubr.f32.vlgmr.msra.gmra.mxu0 %v1336_v40  ;;  %v1805_v40 = vld [vmem:[#allocation10 + $0xf8] sm:$0xff] }
 0x1fe   :  { %1549 = vmatmul.mubr.f32.vlgmr.msra.gmra.mxu1 %v5199_v45  ;;  %1626 = vmatprep.subr.mxu1 %v879_v41  ;;  %v868_v45 = vld [vmem:[#allocation6 + $0xa0] sm:$0xff]  ;;  %v1837_v41 = vld [vmem:[#allocation10 + $0x1f8] sm:$0xff] }
 0x1ff   :  { %1627 = vmatpush1.msra.mxu1 %v878_v4  ;;  %1690 = vmatprep.mubr.f32.mxu1 %v4766_v60  ;;  %v1789_v4 = vld [vmem:[#allocation10 + $0x78] sm:$0xff] }
 0x200   :  { %1628 = vmatprep.subr.mxu1 %v877_v39  ;;  %4002 = vmatprep.subr.mxu0 %v1805_v40  ;;  %v1821_v39 = vld [vmem:[#allocation10 + $0x178] sm:$0xff]  ;;  %v1822_v40 = vld [vmem:[#allocation10 + $0x180] sm:$0xff] }
 0x201   :  { %1629 = vmatpush1.msra.mxu1 %v876_v42  ;;  %v1804_v42 = vld [vmem:[#allocation10 + $0xf0] sm:$0xff]  ;;  %4003 = vmatpush3.msra.mxu0 %v1789_v4  ;;  %v1806_v4 = vld [vmem:[#allocation10 + $0x100] sm:$0xff] }
 0x202   :  { %1630 = vmatprep.subr.mxu1 %v875_v17  ;;  %v1836_v17 = vld [vmem:[#allocation10 + $0x1f0] sm:$0xff]  ;;  %4004 = vmatprep.subr.mxu0 %v1804_v42  ;;  %v1901_v42 = vld [vmem:[#allocation10 + $0x3f8] sm:$0xff] }
 0x203   :  { %1631 = vmatpush1.msra.mxu1 %v874_v44  ;;  %v1788_v44 = vld [vmem:[#allocation10 + $0x70] sm:$0xff] }
 0x204   :  { %1632 = vmatprep.subr.mxu1 %v873_v43  ;;  %v1820_v43 = vld [vmem:[#allocation10 + $0x170] sm:$0xff]  ;;  %4005 = vmatpush3.msra.mxu0 %v1788_v44 }
 0x205   :  { %1633 = vmatpush1.msra.mxu1 %v872_v48  ;;  %v1803_v48 = vld [vmem:[#allocation10 + $0xe8] sm:$0xff] }
 0x206   :  { %1634 = vmatprep.subr.mxu1 %v871_v49  ;;  %v1835_v49 = vld [vmem:[#allocation10 + $0x1e8] sm:$0xff]  ;;  %4006 = vmatprep.subr.mxu0 %v1803_v48  ;;  %v1716_v48 = vlaneseq }
 0x207   :  { %1635 = vmatpush1.msra.mxu1 %v870_v36  ;;  %v1787_v36 = vld [vmem:[#allocation10 + $0x68] sm:$0xff] }
 0x208   :  { %1636 = vmatprep.subr.mxu1 %v869_v26  ;;  %v1802_v26 = vld [vmem:[#allocation10 + $0xe0] sm:$0xff]  ;;  %4007 = vmatpush3.msra.mxu0 %v1787_v36 }
 0x209   :  { %1637 = vmatpush1.msra.mxu1 %v868_v45  ;;  %v1834_v45 = vld [vmem:[#allocation10 + $0x1e0] sm:$0xff]  ;;  %4008 = vmatprep.subr.mxu0 %v1802_v26 }
 0x20a   :  { %1638 = vmatprep.subr.mxu1 %v867_v54  ;;  %v1786_v54 = vld [vmem:[#allocation10 + $0x60] sm:$0xff] }
 0x20b   :  { %1639 = vmatpush1.msra.mxu1 %v866_v6  ;;  %v1818_v6 = vld [vmem:[#allocation10 + $0x160] sm:$0xff]  ;;  %4009 = vmatpush3.msra.mxu0 %v1786_v54 }
 0x20c   :  { %1640 = vmatprep.subr.mxu1 %v865_v11  ;;  %v1833_v11 = vld [vmem:[#allocation10 + $0x1d8] sm:$0xff]  ;;  %4010 = vmatprep.subr.mxu0 %v1801_v56 }
 0x20d   :  { %1641 = vmatpush1.msra.mxu1 %v864_v51  ;;  %v1785_v51 = vld [vmem:[#allocation10 + $0x58] sm:$0xff] }
 0x20e   :  { %1642 = vmatprep.subr.mxu1 %v863_v34  ;;  %v1817_v34 = vld [vmem:[#allocation10 + $0x158] sm:$0xff]  ;;  %4011 = vmatpush3.msra.mxu0 %v1785_v51 }
 0x20f   :  { %1643 = vmatpush1.msra.mxu1 %v862_v57  ;;  %v1800_v57 = vld [vmem:[#allocation10 + $0xd0] sm:$0xff] }
 0x210   :  { %1644 = vmatprep.subr.mxu1 %v861_v58  ;;  %v1832_v58 = vld [vmem:[#allocation10 + $0x1d0] sm:$0xff]  ;;  %4012 = vmatprep.subr.mxu0 %v1800_v57 }
 0x211   :  { %1645 = vmatpush1.msra.mxu1 %v860_v61  ;;  %v1784_v61 = vld [vmem:[#allocation10 + $0x50] sm:$0xff] }
 0x212   :  { %1646 = vmatprep.subr.mxu1 %v859_v62  ;;  %v1816_v62 = vld [vmem:[#allocation10 + $0x150] sm:$0xff]  ;;  %4013 = vmatpush3.msra.mxu0 %v1784_v61 }
 0x213   :  { %1647 = vmatpush1.msra.mxu1 %v858_v1  ;;  %v1799_v1 = vld [vmem:[#allocation10 + $0xc8] sm:$0xff] }
 0x214   :  { %1648 = vmatprep.subr.mxu1 %v857_v3  ;;  %v1831_v3 = vld [vmem:[#allocation10 + $0x1c8] sm:$0xff]  ;;  %4014 = vmatprep.subr.mxu0 %v1799_v1 }
 0x215   :  { %1649 = vmatpush1.msra.mxu1 %v856_v24  ;;  %v1783_v24 = vld [vmem:[#allocation10 + $0x48] sm:$0xff] }
 0x216   :  { %1650 = vmatprep.subr.mxu1 %v855_v46  ;;  %v1815_v46 = vld [vmem:[#allocation10 + $0x148] sm:$0xff]  ;;  %4015 = vmatpush3.msra.mxu0 %v1783_v24 }
 0x217   :  { %1651 = vmatpush1.msra.mxu1 %v854_v55  ;;  %v1798_v55 = vld [vmem:[#allocation10 + $0xc0] sm:$0xff] }
 0x218   :  { %1652 = vmatprep.subr.mxu1 %v853_v47  ;;  %v1830_v47 = vld [vmem:[#allocation10 + $0x1c0] sm:$0xff]  ;;  %4016 = vmatprep.subr.mxu0 %v1798_v55 }
 0x219   :  { %1653 = vmatpush1.msra.mxu1 %v852_v8  ;;  %v1782_v8 = vld [vmem:[#allocation10 + $0x40] sm:$0xff] }
 0x21a   :  { %1654 = vmatprep.subr.mxu1 %v851_v9  ;;  %v1814_v9 = vld [vmem:[#allocation10 + $0x140] sm:$0xff]  ;;  %4017 = vmatpush3.msra.mxu0 %v1782_v8 }
 0x21b   :  { %1655 = vmatpush1.msra.mxu1 %v850_v10  ;;  %v1797_v10 = vld [vmem:[#allocation10 + $0xb8] sm:$0xff] }
 0x21c   :  { %1656 = vmatprep.subr.mxu1 %v849_v50  ;;  %v1781_v50 = vld [vmem:[#allocation10 + $0x38] sm:$0xff]  ;;  %4018 = vmatprep.subr.mxu0 %v1797_v10 }
 0x21d   :  { %1657 = vmatpush1.msra.mxu1 %v848_v15  ;;  %v1813_v15 = vld [vmem:[#allocation10 + $0x138] sm:$0xff]  ;;  %4019 = vmatpush3.msra.mxu0 %v1781_v50 }
 0x21e   :  { %1691 = vmatmul.mubr.f32.vlgmr.msra.gmra.mxu1 %v1142_v16  ;;  %4037 = vmatprep.subr.mxu1 %v1837_v41  ;;  %v1796_v16 = vld [vmem:[#allocation10 + $0xb0] sm:$0xff]  ;;  %v1774_v41 = vld [vmem:[#allocation10] sm:$0xff] }
 0x21f   :  { %4038 = vmatpush3.msra.mxu1 %v1821_v39  ;;  %4020 = vmatprep.subr.mxu0 %v1796_v16  ;;  %v1869_v39 = vld [vmem:[#allocation10 + $0x2f8] sm:$0xff] }
 0x220   :  { %4039 = vmatprep.subr.mxu1 %v1836_v17 }
 0x221   :  { %4040 = vmatpush3.msra.mxu1 %v1820_v43 }
 0x222   :  { %4041 = vmatprep.subr.mxu1 %v1835_v49  ;;  %v1717_v49 = vshrl.u32 %v1716_v48, 7 }
 0x223   :  { %4042 = vmatpush3.msra.mxu1 %v1819_v14  ;;  %v1714_v14 = vld [vmem:[%s5779_s5] sm:$0x3] }
 0x224   :  { %4043 = vmatprep.subr.mxu1 %v1834_v45  ;;  %v1722_v36 = vsub.s32 1, %v1717_v49  ;;  %v1718_v26 = vsub.s32 0, %v1717_v49  ;;  %v1728_v45 = vld [vmem:[%s5780_s6] sm:$0x3] }
 0x225   :  { %4044 = vmatpush3.msra.mxu1 %v1818_v6 }
 0x226   :  { %4045 = vmatprep.subr.mxu1 %v1833_v11  ;;  %v1723_v54 = vrot.slane %v1714_v14, %v1722_v36  ;;  %v1719_v56 = vrot.slane %v1714_v14, %v1718_v26  ;;  %v1737_v11 = vrot.slane %v1728_v45, %v1722_v36 }
 0x227   :  { %4046 = vmatpush3.msra.mxu1 %v1817_v34 }
 0x228   :  { %4047 = vmatprep.subr.mxu1 %v1832_v58  ;;  %v1733_v58 = vrot.slane %v1728_v45, %v1718_v26 }
 0x229   :  { %4048 = vmatpush3.msra.mxu1 %v1816_v62 }
 0x22a   :  { %4049 = vmatprep.subr.mxu1 %v1831_v3 }
 0x22b   :  { %4050 = vmatpush3.msra.mxu1 %v1815_v46 }
 0x22c   :  { %4051 = vmatprep.subr.mxu1 %v1830_v47 }
 0x22d   :  { %4052 = vmatpush3.msra.mxu1 %v1814_v9 }
 0x22e   :  { %4053 = vmatprep.subr.mxu1 %v1829_v12 }
 0x22f   :  { %4054 = vmatpush3.msra.mxu1 %v1813_v15 }
 0x27a   :  { %v1479_v20 = vpop.f32.mrf.mxu0 }
 0x27c   :  { %v1481_v22 = vpop.f32.mrf.mxu0 }
 0x27e   :  { %v1408_v0 = vpop.f32.mrf.mxu1 }
 0x27f   :  { %v1480_v27 = vadd.f32 %v1479_v20, %v1408_v0  ;;  %v1828_v0 = vld [vmem:[#allocation10 + $0x1b0] sm:$0xff] }
 0x280   :  { %v1410_v19 = vpop.f32.mrf.mxu1  ;;  %v1780_v20 = vld [vmem:[#allocation10 + $0x30] sm:$0xff]  ;;  %4055 = vmatprep.subr.mxu1 %v1828_v0 }
 0x281   :  { %v1482_v28 = vadd.f32 %v1481_v22, %v1410_v19  ;;  %v1812_v19 = vld [vmem:[#allocation10 + $0x130] sm:$0xff]  ;;  %v1827_v22 = vld [vmem:[#allocation10 + $0x1a8] sm:$0xff]  ;;  %4021 = vmatpush3.msra.mxu0 %v1780_v20 }
 0x282   :  { %4056 = vmatpush3.msra.mxu1 %v1812_v19 }
 0x283   :  { %4057 = vmatprep.subr.mxu1 %v1827_v22 }
 0x2bd   :  { %v1621_v29 = vpop.f32.mrf.mxu0 }
 0x2be   :  { %v1550_v21 = vpop.f32.mrf.mxu1 }
 0x2bf   :  { %v1551_v31 = vadd.f32 %v1550_v21, %v1480_v27  ;;  %v1623_v59 = vpop.f32.mrf.mxu0  ;;  %v1795_v21 = vld [vmem:[#allocation10 + $0xa8] sm:$0xff] }
 0x2c0   :  { %v1552_v25 = vpop.f32.mrf.mxu1  ;;  %v1811_v27 = vld [vmem:[#allocation10 + $0x128] sm:$0xff]  ;;  %4022 = vmatprep.subr.mxu0 %v1795_v21 }
 0x2c1   :  { %v1553_v18 = vadd.f32 %v1552_v25, %v1482_v28  ;;  %v1622_v2 = vadd.f32 %v1621_v29, %v1551_v31  ;;  %v1779_v25 = vld [vmem:[#allocation10 + $0x28] sm:$0xff]  ;;  %v1794_v28 = vld [vmem:[#allocation10 + $0xa0] sm:$0xff]  ;;  %4058 = vmatpush3.msra.mxu1 %v1811_v27 }
 0x2c2   :  { %v1826_v29 = vld [vmem:[#allocation10 + $0x1a0] sm:$0xff]  ;;  %4023 = vmatpush3.msra.mxu0 %v1779_v25 }
 0x2c3   :  { %v1624_v52 = vadd.f32 %v1623_v59, %v1553_v18  ;;  %v1778_v31 = vld [vmem:[#allocation10 + $0x20] sm:$0xff]  ;;  %v1793_v59 = vld [vmem:[#allocation10 + $0x98] sm:$0xff]  ;;  %4024 = vmatprep.subr.mxu0 %v1794_v28  ;;  %4059 = vmatprep.subr.mxu1 %v1826_v29 }
 0x2c4   :  { %v1810_v18 = vld [vmem:[#allocation10 + $0x120] sm:$0xff]  ;;  %4025 = vmatpush3.msra.mxu0 %v1778_v31 }
 0x2c5   :  { %4060 = vmatpush3.msra.mxu1 %v1810_v18  ;;  %4026 = vmatprep.subr.mxu0 %v1793_v59 }
 0x2de   :  { %v1692_v63 = vpop.f32.mrf.mxu1 }
 0x2df   :  { %v1693_v33 = vadd.f32 %v1692_v63, %v1622_v2  ;;  %v1825_v63 = vld [vmem:[#allocation10 + $0x198] sm:$0xff] }
 0x2e0   :  { %v1694_v32 = vpop.f32.mrf.mxu1  ;;  %v1777_v2 = vld [vmem:[#allocation10 + $0x18] sm:$0xff]  ;;  %4061 = vmatprep.subr.mxu1 %v1825_v63 }
 0x2e1   :  { %v1695_v7 = vadd.f32 %v1694_v32, %v1624_v52  ;;  %v1809_v52 = vld [vmem:[#allocation10 + $0x118] sm:$0xff]  ;;  %v1792_v32 = vld [vmem:[#allocation10 + $0x90] sm:$0xff]  ;;  %4027 = vmatpush3.msra.mxu0 %v1777_v2 }
 0x2e2   :  { %4062 = vmatpush3.msra.mxu1 %v1809_v52  ;;  %4028 = vmatprep.subr.mxu0 %v1792_v32 }
 0x2e3   :  { %v1697_v30 = vadd.f32 %v1695_v7, %v1693_v33 }
 0x2e5   :  { %1698 = vadd.xlane.f32.xlu0 %v1697_v30  ;;  %v1808_v30 = vld [vmem:[#allocation10 + $0x110] sm:$0xff] }
 0x36e   :  { %v1699_v37 = vpop.xlane.xlu0 %1698 }
 0x36f   :  { %v1701_v5 = vmul.f32 0.00390625, %v1699_v37  ;;  %v1791_v37 = vld [vmem:[#allocation10 + $0x88] sm:$0xff] }
 0x371   :  { %v5209_v38 = vsub.f32 %v1693_v33, %v1701_v5  ;;  %v5211_v35 = vsub.f32 %v1695_v7, %v1701_v5  ;;  %v1824_v33 = vld [vmem:[#allocation10 + $0x190] sm:$0xff]  ;;  %v1823_v5 = vld [vmem:[#allocation10 + $0x188] sm:$0xff] }
 0x372   :  { %v1776_v7 = vld [vmem:[#allocation10 + $0x10] sm:$0xff]  ;;  %4063 = vmatprep.subr.mxu1 %v1824_v33 }
 0x373   :  { %v1704_v13 = vmul.f32 %v5209_v38, %v5209_v38  ;;  %v1705_v53 = vmul.f32 %v5211_v35, %v5211_v35  ;;  %4029 = vmatpush3.msra.mxu0 %v1776_v7  ;;  %4064 = vmatpush3.msra.mxu1 %v1808_v30 }
 0x374   :  { %4030 = vmatprep.subr.mxu0 %v1791_v37  ;;  %4065 = vmatprep.subr.mxu1 %v1823_v5 }
 0x375   :  { %v1706_v23 = vadd.f32 %v1705_v53, %v1704_v13  ;;  %v1775_v13 = vld [vmem:[#allocation10 + $0x8] sm:$0xff] }
 0x376   :  { %v1807_v53 = vld [vmem:[#allocation10 + $0x108] sm:$0xff]  ;;  %4031 = vmatpush3.msra.mxu0 %v1775_v13 }
 0x377   :  { %1707 = vadd.xlane.f32.xlu0 %v1706_v23  ;;  %v1790_v23 = vld [vmem:[#allocation10 + $0x80] sm:$0xff]  ;;  %4066 = vmatpush3.msra.mxu1 %v1807_v53 }
 0x378   :  { %4032 = vmatprep.subr.mxu0 %v1790_v23  ;;  %4067 = vmatprep.subr.mxu1 %v1822_v40 }
 0x379   :  { %4033 = vmatpush3.msra.mxu0 %v1774_v41  ;;  %4068 = vmatpush3.msra.mxu1 %v1806_v4 }
 0x37a   :  { %4072 = vmatprep.subr.mxu0 %v1869_v39  ;;  %4107 = vmatprep.subr.mxu1 %v1901_v42 }
 0x400   :  { %v1708_v17 = vpop.xlane.xlu0 %1707 }
 0x401   :  { %v1709_v44 = vmul.f32 0.00390625, %v1708_v17 }
 0x403   :  { %v1710_v43 = vadd.f32 1e-05, %v1709_v44 }
 0x405   :  { %4566 = vrsqrt.f32 %v1710_v43 }
 0x412   :  { %v4567_v6 = vpop.eup %4566 }
 0x413   :  { %v1712_v51 = vmul.f32 %v4567_v6, %v5209_v38  ;;  %v1713_v34 = vmul.f32 %v4567_v6, %v5211_v35 }
 0x415   :  { %v1727_v57 = vmul.f32 %v1723_v54, %v1713_v34  ;;  %v1726_v61 = vmul.f32 %v1719_v56, %v1712_v51 }
 0x417   :  { %v5226_v62 = vadd.f32 %v1737_v11, %v1727_v57  ;;  %v5235_v38 = vadd.f32 %v1733_v58, %v1726_v61 }
 0x419   :  { %vm2045_vm5 = vcmp.ge.f32.partialorder %v5226_v62, -2.2  ;;  %vm2047_vm6 = vcmp.lt.f32.partialorder %v5226_v62, -1.8  ;;  %vm2053_vm7 = vcmp.ge.f32.partialorder %v5226_v62, -1.8 }
 0x41a   :  { %vm2049_vm8 = vmand %vm2045_vm5, %vm2047_vm6  ;;  %vm2055_vm9 = vcmp.lt.f32.partialorder %v5226_v62, -1.4  ;;  %vm2061_vm10 = vcmp.ge.f32.partialorder %v5226_v62, -1.4  ;;  %vm2063_vm11 = vcmp.lt.f32.partialorder %v5226_v62, -1.0  ;;  %vm2069_vm12 = vcmp.ge.f32.partialorder %v5226_v62, -1.0 }
 0x41b   :  { %vm2057_vm13 = vmand %vm2053_vm7, %vm2055_vm9  ;;  %vm2071_vm14 = vcmp.lt.f32.partialorder %v5226_v62, -0.6  ;;  %v3816_v35 = vadd.f32 2.2, %v5226_v62  ;;  %v2153_v1 = vsub.f32 -1.0, %v5226_v62  ;;  %v2051_v3 = vsel %vm2049_vm8, 1.0, %v4766_v60 }
 0x41c   :  { %v2059_v24 = vsel %vm2057_vm13, 1.0, %v4766_v60  ;;  %vm2065_vm15 = vmand %vm2061_vm10, %vm2063_vm11  ;;  %v2139_v46 = vsub.f32 -1.4, %v5226_v62  ;;  %v3818_v55 = vadd.f32 1.8, %v5226_v62  ;;  %v5250_v16 = vadd.f32 1.0, %v5226_v62 }
 0x41d   :  { %v2067_v47 = vsel %vm2065_vm15, 1.0, %v4766_v60  ;;  %vm2073_vm0 = vmand %vm2069_vm12, %vm2071_vm14  ;;  %v2135_v8 = vmul.f32 2.5, %v3816_v35  ;;  %v2155_v9 = vmul.f32 2.5, %v2153_v1  ;;  %v5246_v10 = vadd.f32 1.4, %v5226_v62 }
 0x41e   :  { %v2141_v12 = vmul.f32 2.5, %v2139_v46  ;;  %v2149_v50 = vmul.f32 2.5, %v3818_v55  ;;  %v2167_v15 = vsub.f32 -0.6, %v5226_v62  ;;  %v2075_v0 = vsel %vm2073_vm0, 1.0, %v4766_v60 }
 0x41f   :  { %v2137_v20 = vmul.f32 %v2135_v8, %v2051_v3  ;;  %v2157_v19 = vmul.f32 %v2155_v9, %v2067_v47  ;;  %v2163_v21 = vmul.f32 2.5, %v5246_v10  ;;  %v2273_v28 = vmul.f32 1.25, %v3816_v35 }
 0x420   :  { %v2143_v22 = vmul.f32 %v2141_v12, %v2059_v24  ;;  %v2151_v25 = vmul.f32 %v2149_v50, %v2059_v24  ;;  %v2169_v27 = vmul.f32 2.5, %v2167_v15  ;;  %v2277_v31 = vmul.f32 1.25, %v2153_v1 }
 0x421   :  { %v2165_v29 = vmul.f32 %v2163_v21, %v2067_v47  ;;  %v2283_v18 = vmul.f32 1.25, %v3818_v55  ;;  %v2363_v59 = vmul.f32 0.8333333, %v3816_v35  ;;  %v2367_v32 = vmul.f32 0.8333333, %v2167_v15 }
 0x422   :  { %v2145_v63 = vadd.f32 %v2143_v22, %v2137_v20  ;;  %v2159_v2 = vadd.f32 %v2157_v19, %v2151_v25  ;;  %v2171_v52 = vmul.f32 %v2169_v27, %v2075_v0  ;;  %v2287_v33 = vmul.f32 1.25, %v2167_v15 }
 0x423   :  { %vm2077_vm2 = vcmp.ge.f32.partialorder %v5226_v62, -0.6  ;;  %vm2079_vm3 = vcmp.lt.f32.partialorder %v5226_v62, -0.2  ;;  %v2177_v7 = vmul.f32 2.5, %v5250_v16  ;;  %v2293_v41 = vmul.f32 1.25, %v5246_v10 }
 0x424   :  { %v2173_v30 = vadd.f32 %v2171_v52, %v2165_v29  ;;  %v2275_v37 = vmul.f32 %v2273_v28, %v2145_v63  ;;  %v2279_v5 = vmul.f32 %v2277_v31, %v2159_v2  ;;  %v2285_v13 = vmul.f32 %v2283_v18, %v2159_v2  ;;  %vm2081_vm4 = vmand %vm2077_vm2, %vm2079_vm3 }
 0x425   :  { %v5258_v53 = vsel %vm2081_vm4, 1.0, %v4766_v60  ;;  %v2179_v23 = vmul.f32 %v2177_v7, %v2075_v0  ;;  %v2181_v40 = vsub.f32 -0.2, %v5226_v62  ;;  %v2373_v42 = vmul.f32 0.8333333, %v3818_v55 }
 0x426   :  { %v2281_v4 = vadd.f32 %v2279_v5, %v2275_v37  ;;  %v2289_v39 = vmul.f32 %v2287_v33, %v2173_v30  ;;  %vm2044_vm5 = vcmp.ge.f32.partialorder %v5235_v38, -2.2  ;;  %v2295_v44 = vmul.f32 %v2293_v41, %v2173_v30 }
 0x427   :  { %v2183_v17 = vmul.f32 2.5, %v2181_v40  ;;  %v2297_v43 = vmul.f32 1.25, %v2181_v40  ;;  %vm2046_vm6 = vcmp.lt.f32.partialorder %v5235_v38, -1.8  ;;  %vm2052_vm8 = vcmp.ge.f32.partialorder %v5235_v38, -1.8 }
 0x428   :  { %v2291_v49 = vadd.f32 %v2289_v39, %v2285_v13  ;;  %v2365_v36 = vmul.f32 %v2363_v59, %v2281_v4  ;;  %vm2048_vm7 = vmand %vm2044_vm5, %vm2046_vm6  ;;  %vm2054_vm9 = vcmp.lt.f32.partialorder %v5235_v38, -1.4  ;;  %v2377_v26 = vmul.f32 0.8333333, %v2181_v40 }
 0x429   :  { %v2185_v14 = vmul.f32 %v2183_v17, %v5258_v53  ;;  %vm2056_vm10 = vmand %vm2052_vm8, %vm2054_vm9  ;;  %vm2060_vm11 = vcmp.ge.f32.partialorder %v5235_v38, -1.4  ;;  %vm2062_vm12 = vcmp.lt.f32.partialorder %v5235_v38, -1.0  ;;  %v2050_v6 = vsel %vm2048_vm7, 1.0, %v4766_v60 }
 0x42a   :  { %v2369_v45 = vmul.f32 %v2367_v32, %v2291_v49  ;;  %v2375_v54 = vmul.f32 %v2373_v42, %v2291_v49  ;;  %vm2064_vm13 = vmand %vm2060_vm11, %vm2062_vm12  ;;  %vm2068_vm14 = vcmp.ge.f32.partialorder %v5235_v38, -1.0  ;;  %v2058_v11 = vsel %vm2056_vm10, 1.0, %v4766_v60 }
 0x42b   :  { %v5271_v56 = vadd.f32 %v2185_v14, %v2179_v23  ;;  %vm2070_vm15 = vcmp.lt.f32.partialorder %v5235_v38, -0.6  ;;  %v3815_v51 = vadd.f32 2.2, %v5235_v38  ;;  %v2138_v57 = vsub.f32 -1.4, %v5235_v38 }
 0x42c   :  { %v2371_v34 = vadd.f32 %v2369_v45, %v2365_v36  ;;  %vm2072_vm0 = vmand %vm2068_vm14, %vm2070_vm15  ;;  %v3817_v58 = vadd.f32 1.8, %v5235_v38  ;;  %v2152_v61 = vsub.f32 -1.0, %v5235_v38  ;;  %v2066_v1 = vsel %vm2064_vm13, 1.0, %v4766_v60 }
 0x42d   :  { %v2299_v35 = vmul.f32 %v2297_v43, %v5271_v56  ;;  %v2134_v3 = vmul.f32 2.5, %v3815_v51  ;;  %v5282_v24 = vadd.f32 1.4, %v5235_v38  ;;  %v2140_v46 = vmul.f32 2.5, %v2138_v57 }
 0x42e   :  { %2506 = vmatprep.mubr.f32.mxu0 %v2371_v34  ;;  %v2148_v55 = vmul.f32 2.5, %v3817_v58  ;;  %v2154_v47 = vmul.f32 2.5, %v2152_v61  ;;  %v2166_v8 = vsub.f32 -0.6, %v5235_v38  ;;  %v2074_v12 = vsel %vm2072_vm0, 1.0, %v4766_v60 }
 0x42f   :  { %v5285_v9 = vadd.f32 %v2299_v35, %v2295_v44  ;;  %v2136_v50 = vmul.f32 %v2134_v3, %v2050_v6  ;;  %v2162_v15 = vmul.f32 2.5, %v5282_v24  ;;  %v2142_v0 = vmul.f32 %v2140_v46, %v2058_v11  ;;  %v1853_v35 = vld [vmem:[#allocation10 + $0x278] sm:$0xff] }
 0x430   :  { %v2150_v20 = vmul.f32 %v2148_v55, %v2058_v11  ;;  %v2156_v19 = vmul.f32 %v2154_v47, %v2066_v1  ;;  %v2168_v21 = vmul.f32 2.5, %v2166_v8  ;;  %v2272_v27 = vmul.f32 1.25, %v3815_v51  ;;  %v1868_v55 = vld [vmem:[#allocation10 + $0x2f0] sm:$0xff] }
 0x431   :  { %v2379_v22 = vmul.f32 %v2377_v26, %v5285_v9  ;;  %v2164_v25 = vmul.f32 %v2162_v15, %v2066_v1  ;;  %v2276_v28 = vmul.f32 1.25, %v2152_v61  ;;  %v2144_v29 = vadd.f32 %v2142_v0, %v2136_v50 }
 0x432   :  { %v2158_v31 = vadd.f32 %v2156_v19, %v2150_v20  ;;  %v2170_v18 = vmul.f32 %v2168_v21, %v2074_v12  ;;  %v2282_v59 = vmul.f32 1.25, %v3817_v58  ;;  %v2286_v2 = vmul.f32 1.25, %v2166_v8  ;;  %v1867_v19 = vld [vmem:[#allocation10 + $0x2e8] sm:$0xff] }
 0x433   :  { %v2381_v63 = vadd.f32 %v2379_v22, %v2375_v54  ;;  %vm2076_vm2 = vcmp.ge.f32.partialorder %v5235_v38, -0.6  ;;  %v2274_v32 = vmul.f32 %v2272_v27, %v2144_v29  ;;  %vm2078_vm3 = vcmp.lt.f32.partialorder %v5235_v38, -0.2  ;;  %v1851_v27 = vld [vmem:[#allocation10 + $0x268] sm:$0xff] }
 0x434   :  { %v2172_v52 = vadd.f32 %v2170_v18, %v2164_v25  ;;  %v2278_v33 = vmul.f32 %v2276_v28, %v2158_v31  ;;  %v2284_v7 = vmul.f32 %v2282_v59, %v2158_v31  ;;  %v5293_v30 = vadd.f32 1.0, %v5235_v38  ;;  %vm2080_vm4 = vmand %vm2076_vm2, %vm2078_vm3  ;;  %v1866_v31 = vld [vmem:[#allocation10 + $0x2e0] sm:$0xff] }
 0x435   :  { %2576 = vmatprep.mubr.f32.mxu1 %v2381_v63  ;;  %v2180_v37 = vsub.f32 -0.2, %v5235_v38  ;;  %v2362_v23 = vmul.f32 0.8333333, %v3815_v51  ;;  %v5297_v40 = vsel %vm2080_vm4, 1.0, %v4766_v60  ;;  %v2292_v44 = vmul.f32 1.25, %v5282_v24 }
 0x436   :  { %v2280_v5 = vadd.f32 %v2278_v33, %v2274_v32  ;;  %v2288_v13 = vmul.f32 %v2286_v2, %v2172_v52  ;;  %v2176_v41 = vmul.f32 2.5, %v5293_v30  ;;  %vm2085_vm5 = vcmp.ge.f32.partialorder %v5226_v62, -0.2  ;;  %v1850_v2 = vld [vmem:[#allocation10 + $0x260] sm:$0xff]  ;;  %v1885_v32 = vld [vmem:[#allocation10 + $0x378] sm:$0xff] }
 0x437   :  { %v2182_v4 = vmul.f32 2.5, %v2180_v37  ;;  %v2366_v17 = vmul.f32 0.8333333, %v2166_v8  ;;  %vm2087_vm6 = vcmp.lt.f32.partialorder %v5226_v62, 0.2  ;;  %v2294_v26 = vmul.f32 %v2292_v44, %v2172_v52  ;;  %v1852_v8 = vld [vmem:[#allocation10 + $0x270] sm:$0xff] }
 0x438   :  { %v2290_v39 = vadd.f32 %v2288_v13, %v2284_v7  ;;  %v2364_v42 = vmul.f32 %v2362_v23, %v2280_v5  ;;  %v2178_v43 = vmul.f32 %v2176_v41, %v2074_v12  ;;  %v5305_v36 = vadd.f32 0.6, %v5226_v62  ;;  %vm2089_vm7 = vmand %vm2085_vm5, %vm2087_vm6  ;;  %v1865_v7 = vld [vmem:[#allocation10 + $0x2d8] sm:$0xff] }
 0x439   :  { %v2184_v49 = vmul.f32 %v2182_v4, %v5297_v40  ;;  %v2372_v45 = vmul.f32 0.8333333, %v3817_v58  ;;  %v2195_v54 = vsub.f32 0.2, %v5226_v62  ;;  %v2296_v11 = vmul.f32 1.25, %v2180_v37  ;;  %v1900_v4 = vld [vmem:[#allocation10 + $0x3f0] sm:$0xff] }
 0x43a   :  { %v2368_v14 = vmul.f32 %v2366_v17, %v2290_v39  ;;  %v2091_v51 = vsel %vm2089_vm7, 1.0, %v4766_v60  ;;  %v2191_v34 = vmul.f32 2.5, %v5305_v36  ;;  %v2376_v61 = vmul.f32 0.8333333, %v2180_v37 }
 0x43b   :  { %v5308_v6 = vadd.f32 %v2184_v49, %v2178_v43  ;;  %v2197_v1 = vmul.f32 2.5, %v2195_v54  ;;  %v2374_v46 = vmul.f32 %v2372_v45, %v2290_v39  ;;  %v2303_v47 = vmul.f32 1.25, %v5250_v16  ;;  %v1884_v43 = vld [vmem:[#allocation10 + $0x370] sm:$0xff] }
 0x43c   :  { %v2370_v57 = vadd.f32 %v2368_v14, %v2364_v42  ;;  %v2193_v58 = vmul.f32 %v2191_v34, %v5258_v53  ;;  %vm2093_vm8 = vcmp.ge.f32.partialorder %v5226_v62, 0.2  ;;  %vm2095_vm9 = vcmp.lt.f32.partialorder %v5226_v62, 0.6  ;;  %v1849_v42 = vld [vmem:[#allocation10 + $0x258] sm:$0xff]  ;;  %v1864_v49 = vld [vmem:[#allocation10 + $0x2d0] sm:$0xff] }
 0x43d   :  { %v2298_v3 = vmul.f32 %v2296_v11, %v5308_v6  ;;  %v2199_v12 = vmul.f32 %v2197_v1, %v2091_v51  ;;  %v5318_v50 = vadd.f32 0.2, %v5226_v62  ;;  %v2305_v0 = vmul.f32 %v2303_v47, %v5271_v56  ;;  %vm2097_vm10 = vmand %vm2093_vm8, %vm2095_vm9  ;;  %v1848_v11 = vld [vmem:[#allocation10 + $0x250] sm:$0xff]  ;;  %v1847_v47 = vld [vmem:[#allocation10 + $0x248] sm:$0xff] }
 0x43e   :  { %2507 = vmatmul.mubr.f32.vlgmr.msra.gmra.mxu0 %v2370_v57  ;;  %v2307_v20 = vmul.f32 1.25, %v2195_v54  ;;  %v2209_v53 = vsub.f32 0.6, %v5226_v62  ;;  %v5325_v22 = vsel %vm2097_vm10, 1.0, %v4766_v60  ;;  %vm2084_vm11 = vcmp.ge.f32.partialorder %v5235_v38, -0.2 }
 0x43f   :  { %v5320_v15 = vadd.f32 %v2298_v3, %v2294_v26  ;;  %4073 = vmatpush3.msra.mxu0 %v1853_v35  ;;  %v2201_v21 = vadd.f32 %v2199_v12, %v2193_v58  ;;  %v2205_v25 = vmul.f32 2.5, %v5318_v50  ;;  %v2383_v29 = vmul.f32 0.8333333, %v5246_v10  ;;  %v1898_v3 = vld [vmem:[#allocation10 + $0x3e0] sm:$0xff] }
 0x440   :  { %4074 = vmatprep.subr.mxu0 %v1868_v55  ;;  %v2211_v56 = vmul.f32 2.5, %v2209_v53  ;;  %v2313_v63 = vmul.f32 1.25, %v5305_v36  ;;  %vm2086_vm12 = vcmp.lt.f32.partialorder %v5235_v38, 0.2  ;;  %v5341_v37 = vadd.f32 0.6, %v5235_v38 }
 0x441   :  { %v2378_v28 = vmul.f32 %v2376_v61, %v5320_v15  ;;  %4075 = vmatpush3.msra.mxu0 %v1852_v8  ;;  %v2309_v18 = vmul.f32 %v2307_v20, %v2201_v21  ;;  %v2207_v59 = vmul.f32 %v2205_v25, %v2091_v51  ;;  %vm5336_vm13 = vmand %vm2084_vm11, %vm2086_vm12  ;;  %v5344_v5 = vsub.f32 0.2, %v5235_v38  ;;  %v1883_v61 = vld [vmem:[#allocation10 + $0x368] sm:$0xff]  ;;  %v1882_v58 = vld [vmem:[#allocation10 + $0x360] sm:$0xff] }
 0x442   :  { %4076 = vmatprep.subr.mxu0 %v1867_v19  ;;  %v2213_v33 = vmul.f32 %v2211_v56, %v5325_v22  ;;  %v2385_v23 = vmul.f32 %v2383_v29, %v5285_v9  ;;  %v2387_v41 = vmul.f32 0.8333333, %v2195_v54  ;;  %v2317_v39 = vmul.f32 1.25, %v2209_v53  ;;  %v1899_v54 = vld [vmem:[#allocation10 + $0x3e8] sm:$0xff]  ;;  %v1862_v19 = vld [vmem:[#allocation10 + $0x2c0] sm:$0xff]  ;;  %v1896_v29 = vld [vmem:[#allocation10 + $0x3d0] sm:$0xff] }
 0x443   :  { %v2380_v52 = vadd.f32 %v2378_v28, %v2374_v46  ;;  %4077 = vmatpush3.msra.mxu0 %v1851_v27  ;;  %v2311_v13 = vadd.f32 %v2309_v18, %v2305_v0  ;;  %v2315_v44 = vmul.f32 %v2313_v63, %v2201_v21  ;;  %v2190_v14 = vmul.f32 2.5, %v5341_v37  ;;  %v1846_v25 = vld [vmem:[#allocation10 + $0x240] sm:$0xff]  ;;  %v1880_v18 = vld [vmem:[#allocation10 + $0x350] sm:$0xff] }
 0x444   :  { %4078 = vmatprep.subr.mxu0 %v1866_v31  ;;  %v5347_v17 = vadd.f32 %v2213_v33, %v2207_v59  ;;  %v2196_v26 = vmul.f32 2.5, %v5344_v5  ;;  %v2393_v9 = vmul.f32 0.8333333, %v5250_v16  ;;  %v2090_v51 = vsel %vm5336_vm13, 1.0, %v4766_v60  ;;  %v1863_v16 = vld [vmem:[#allocation10 + $0x2c8] sm:$0xff]  ;;  %v1861_v59 = vld [vmem:[#allocation10 + $0x2b8] sm:$0xff] }
 0x445   :  { %2577 = vmatmul.mubr.f32.vlgmr.msra.gmra.mxu1 %v2380_v52  ;;  %4079 = vmatpush3.msra.mxu0 %v1850_v2  ;;  %v2389_v45 = vmul.f32 %v2387_v41, %v2311_v13  ;;  %v2397_v57 = vmul.f32 0.8333333, %v2209_v53  ;;  %vm2092_vm14 = vcmp.ge.f32.partialorder %v5235_v38, 0.2  ;;  %vm2094_vm15 = vcmp.lt.f32.partialorder %v5235_v38, 0.6 }
 0x446   :  { %4108 = vmatpush3.msra.mxu1 %v1885_v32  ;;  %4080 = vmatprep.subr.mxu0 %v1865_v7  ;;  %v2319_v34 = vmul.f32 %v2317_v39, %v5347_v17  ;;  %v2395_v1 = vmul.f32 %v2393_v9, %v2311_v13  ;;  %v5359_v46 = vadd.f32 0.2, %v5235_v38  ;;  %v2192_v8 = vmul.f32 %v2190_v14, %v5297_v40  ;;  %vm5366_vm0 = vmand %vm2092_vm14, %vm2094_vm15  ;;  %v1897_v53 = vld [vmem:[#allocation10 + $0x3d8] sm:$0xff]  ;;  %v1895_v52 = vld [vmem:[#allocation10 + $0x3c8] sm:$0xff] }
 0x447   :  { %4109 = vmatprep.subr.mxu1 %v1900_v4  ;;  %4081 = vmatpush3.msra.mxu0 %v1849_v42  ;;  %v2391_v35 = vadd.f32 %v2389_v45, %v2385_v23  ;;  %v2198_v12 = vmul.f32 %v2196_v26, %v2090_v51  ;;  %v5371_v20 = vsub.f32 0.6, %v5235_v38  ;;  %vm2101_vm2 = vcmp.ge.f32.partialorder %v5226_v62, 0.6  ;;  %v1881_v40 = vld [vmem:[#allocation10 + $0x358] sm:$0xff]  ;;  %v1879_v13 = vld [vmem:[#allocation10 + $0x348] sm:$0xff] }
 0x448   :  { %4110 = vmatpush3.msra.mxu1 %v1884_v43  ;;  %4082 = vmatprep.subr.mxu0 %v1864_v49  ;;  %v5361_v55 = vadd.f32 %v2319_v34, %v2315_v44  ;;  %v2204_v27 = vmul.f32 2.5, %v5359_v46  ;;  %v5380_v56 = vsel %vm5366_vm0, 1.0, %v4766_v60  ;;  %vm2103_vm3 = vcmp.lt.f32.partialorder %v5226_v62, 1.0  ;;  %v1845_v32 = vld [vmem:[#allocation10 + $0x238] sm:$0xff]  ;;  %v1860_v23 = vld [vmem:[#allocation10 + $0x2b0] sm:$0xff]  ;;  %v1894_v44 = vld [vmem:[#allocation10 + $0x3c0] sm:$0xff] }
 0x449   :  { %4111 = vmatprep.subr.mxu1 %v1899_v54  ;;  %4083 = vmatpush3.msra.mxu0 %v1848_v11  ;;  %v2210_v28 = vmul.f32 2.5, %v5371_v20  ;;  %v5383_v63 = vadd.f32 %v2198_v12, %v2192_v8  ;;  %vm2105_vm4 = vmand %vm2101_vm2, %vm2103_vm3  ;;  %v5388_v2 = vadd.f32 -0.2, %v5226_v62  ;;  %v2302_v33 = vmul.f32 1.25, %v5293_v30  ;;  %v1844_v43 = vld [vmem:[#allocation10 + $0x230] sm:$0xff]  ;;  %v1878_v14 = vld [vmem:[#allocation10 + $0x340] sm:$0xff] }
 0x44a   :  { %2646 = vmatprep.mubr.f32.mxu0 %v2391_v35  ;;  %4112 = vmatpush3.msra.mxu1 %v1883_v61  ;;  %v2399_v21 = vmul.f32 %v2397_v57, %v5361_v55  ;;  %v2306_v7 = vmul.f32 1.25, %v5344_v5  ;;  %v5393_v10 = vsub.f32 1.0, %v5226_v62  ;;  %v2206_v41 = vmul.f32 %v2204_v27, %v2090_v51  ;;  %v1893_v26 = vld [vmem:[#allocation10 + $0x3b8] sm:$0xff]  ;;  %v1859_v45 = vld [vmem:[#allocation10 + $0x2a8] sm:$0xff]  ;;  %v1858_v35 = vld [vmem:[#allocation10 + $0x2a0] sm:$0xff] }
 0x44b   :  { %4113 = vmatprep.subr.mxu1 %v1898_v3  ;;  %4084 = vmatprep.subr.mxu0 %v1863_v16  ;;  %v2212_v4 = vmul.f32 %v2210_v28, %v5380_v56  ;;  %v2107_v39 = vsel %vm2105_vm4, 1.0, %v4766_v60  ;;  %v2219_v42 = vmul.f32 2.5, %v5388_v2  ;;  %v2304_v9 = vmul.f32 %v2302_v33, %v5308_v6  ;;  %v1843_v51 = vld [vmem:[#allocation10 + $0x228] sm:$0xff]  ;;  %v1877_v61 = vld [vmem:[#allocation10 + $0x338] sm:$0xff]  ;;  %v1892_v3 = vld [vmem:[#allocation10 + $0x3b0] sm:$0xff] }
 0x44c   :  { %4114 = vmatpush3.msra.mxu1 %v1882_v58  ;;  %4085 = vmatpush3.msra.mxu0 %v1847_v47  ;;  %v2401_v31 = vadd.f32 %v2399_v21, %v2395_v1  ;;  %v2225_v49 = vmul.f32 2.5, %v5393_v10  ;;  %v2308_v54 = vmul.f32 %v2306_v7, %v5383_v63  ;;  %vm2109_vm5 = vcmp.ge.f32.partialorder %v5226_v62, 1.0  ;;  %v1842_v16 = vld [vmem:[#allocation10 + $0x220] sm:$0xff]  ;;  %v1876_v0 = vld [vmem:[#allocation10 + $0x330] sm:$0xff]  ;;  %v1891_v27 = vld [vmem:[#allocation10 + $0x3a8] sm:$0xff] }
 0x44d   :  { %4115 = vmatprep.subr.mxu1 %v1897_v53  ;;  %4086 = vmatprep.subr.mxu0 %v1862_v19  ;;  %v2221_v11 = vmul.f32 %v2219_v42, %v5325_v22  ;;  %vm2111_vm6 = vcmp.lt.f32.partialorder %v5226_v62, 1.4  ;;  %v5405_v57 = vadd.f32 -0.6, %v5226_v62  ;;  %v5407_v6 = vadd.f32 %v2212_v4, %v2206_v41  ;;  %v1857_v53 = vld [vmem:[#allocation10 + $0x298] sm:$0xff]  ;;  %v1855_v42 = vld [vmem:[#allocation10 + $0x288] sm:$0xff] }
 0x44e   :  { %4116 = vmatpush3.msra.mxu1 %v1881_v40  ;;  %4087 = vmatpush3.msra.mxu0 %v1846_v25  ;;  %v2227_v34 = vmul.f32 %v2225_v49, %v2107_v39  ;;  %v2323_v1 = vmul.f32 1.25, %v5318_v50  ;;  %vm2113_vm7 = vmand %vm2109_vm5, %vm2111_vm6  ;;  %v5411_v22 = vsub.f32 1.4, %v5226_v62  ;;  %v2327_v47 = vmul.f32 1.25, %v5393_v10  ;;  %v1841_v28 = vld [vmem:[#allocation10 + $0x218] sm:$0xff] }
 0x44f   :  { %2716 = vmatprep.mubr.f32.mxu1 %v2401_v31  ;;  %4117 = vmatprep.subr.mxu1 %v1896_v29  ;;  %v5415_v8 = vsel %vm2113_vm7, 1.0, %v4766_v60  ;;  %v2233_v12 = vmul.f32 2.5, %v5405_v57  ;;  %v2312_v19 = vmul.f32 1.25, %v5341_v37  ;;  %v2316_v21 = vmul.f32 1.25, %v5371_v20 }
 0x450   :  { %4118 = vmatpush3.msra.mxu1 %v1880_v18  ;;  %4088 = vmatprep.subr.mxu0 %v1861_v59  ;;  %v2229_v58 = vadd.f32 %v2227_v34, %v2221_v11  ;;  %v2325_v40 = vmul.f32 %v2323_v1, %v5347_v17  ;;  %v2239_v25 = vmul.f32 2.5, %v5411_v22  ;;  %v2310_v29 = vadd.f32 %v2308_v54, %v2304_v9  ;;  %v1875_v59 = vld [vmem:[#allocation10 + $0x328] sm:$0xff] }
 0x451   :  { %4119 = vmatprep.subr.mxu1 %v1895_v52  ;;  %4089 = vmatpush3.msra.mxu0 %v1845_v32  ;;  %v2235_v18 = vmul.f32 %v2233_v12, %v2107_v39  ;;  %v1856_v52 = vld [vmem:[#allocation10 + $0x290] sm:$0xff]  ;;  %v2314_v32 = vmul.f32 %v2312_v19, %v5383_v63  ;;  %v2318_v33 = vmul.f32 %v2316_v21, %v5407_v6  ;;  %v2333_v17 = vmul.f32 1.25, %v5388_v2  ;;  %v1874_v39 = vld [vmem:[#allocation10 + $0x320] sm:$0xff]  ;;  %v1933_v12 = vld [vmem:[#allocation10 + $0x4f8] sm:$0xff] }
 0x452   :  { %4120 = vmatpush3.msra.mxu1 %v1879_v13  ;;  %4090 = vmatprep.subr.mxu0 %v1860_v23  ;;  %v2329_v31 = vmul.f32 %v2327_v47, %v2229_v58  ;;  %v2241_v7 = vmul.f32 %v2239_v25, %v5415_v8  ;;  %v1890_v13 = vld [vmem:[#allocation10 + $0x3a0] sm:$0xff]  ;;  %v1840_v23 = vld [vmem:[#allocation10 + $0x210] sm:$0xff]  ;;  %v2382_v41 = vmul.f32 0.8333333, %v5282_v24  ;;  %v2386_v4 = vmul.f32 0.8333333, %v5344_v5 }
 0x453   :  { %4121 = vmatprep.subr.mxu1 %v1894_v44  ;;  %4091 = vmatpush3.msra.mxu0 %v1844_v43  ;;  %v2335_v43 = vmul.f32 %v2333_v17, %v2229_v58  ;;  %v2337_v49 = vmul.f32 1.25, %v5411_v22  ;;  %v1873_v24 = vld [vmem:[#allocation10 + $0x318] sm:$0xff]  ;;  %v1854_v5 = vld [vmem:[#allocation10 + $0x280] sm:$0xff]  ;;  %v5432_v54 = vadd.f32 %v2318_v33, %v2314_v32  ;;  %v2403_v11 = vmul.f32 0.8333333, %v5305_v36  ;;  %v1887_v36 = vld [vmem:[#allocation10 + $0x388] sm:$0xff] }
 0x454   :  { %4122 = vmatpush3.msra.mxu1 %v1878_v14  ;;  %4092 = vmatprep.subr.mxu0 %v1859_v45  ;;  %v2331_v44 = vadd.f32 %v2329_v31, %v2325_v40  ;;  %v5428_v63 = vadd.f32 %v2241_v7, %v2235_v18  ;;  %v1889_v14 = vld [vmem:[#allocation10 + $0x398] sm:$0xff]  ;;  %v2384_v45 = vmul.f32 %v2382_v41, %v5320_v15  ;;  %v2392_v1 = vmul.f32 0.8333333, %v5293_v30  ;;  %v1872_v15 = vld [vmem:[#allocation10 + $0x310] sm:$0xff]  ;;  %v1871_v30 = vld [vmem:[#allocation10 + $0x308] sm:$0xff] }
 0x455   :  { %4123 = vmatprep.subr.mxu1 %v1893_v26  ;;  %4093 = vmatpush3.msra.mxu0 %v1843_v51  ;;  %v1839_v26 = vld [vmem:[#allocation10 + $0x208] sm:$0xff]  ;;  %v2388_v9 = vmul.f32 %v2386_v4, %v2310_v29  ;;  %v2407_v51 = vmul.f32 0.8333333, %v5393_v10  ;;  %v1917_v21 = vld [vmem:[#allocation10 + $0x478] sm:$0xff]  ;;  %v1964_v18 = vld [vmem:[#allocation10 + $0x5f0] sm:$0xff]  ;;  %vm2102_vm9 = vcmp.lt.f32.partialorder %v5235_v38, 1.0 }
 0x456   :  { %4124 = vmatpush3.msra.mxu1 %v1877_v61  ;;  %4094 = vmatprep.subr.mxu0 %v1858_v35  ;;  %v2339_v34 = vmul.f32 %v2337_v49, %v5428_v63  ;;  %v1888_v61 = vld [vmem:[#allocation10 + $0x390] sm:$0xff]  ;;  %v1838_v35 = vld [vmem:[#allocation10 + $0x200] sm:$0xff]  ;;  %v2394_v19 = vmul.f32 %v2392_v1, %v2310_v29  ;;  %v1949_v29 = vld [vmem:[#allocation10 + $0x578] sm:$0xff]  ;;  %v5447_v17 = vadd.f32 -0.2, %v5235_v38  ;;  %vm2108_vm10 = vcmp.ge.f32.partialorder %v5235_v38, 1.0 }
 0x457   :  { %4125 = vmatprep.subr.mxu1 %v1892_v3  ;;  %4095 = vmatpush3.msra.mxu0 %v1842_v16  ;;  %v2396_v3 = vmul.f32 0.8333333, %v5371_v20  ;;  %v2405_v16 = vmul.f32 %v2403_v11, %v5361_v55  ;;  %v2409_v58 = vmul.f32 %v2407_v51, %v2331_v44  ;;  %v2390_v10 = vadd.f32 %v2388_v9, %v2384_v45  ;;  %v1886_v55 = vld [vmem:[#allocation10 + $0x380] sm:$0xff]  ;;  %v1948_v32 = vld [vmem:[#allocation10 + $0x570] sm:$0xff]  ;;  %v1931_v33 = vld [vmem:[#allocation10 + $0x4e8] sm:$0xff] }
 0x458   :  { %4126 = vmatpush3.msra.mxu1 %v1876_v0  ;;  %4096 = vmatprep.subr.mxu0 %v1857_v53  ;;  %v5440_v47 = vadd.f32 %v2339_v34, %v2335_v43  ;;  %v2413_v0 = vmul.f32 0.8333333, %v5318_v50  ;;  %v2417_v53 = vmul.f32 0.8333333, %v5411_v22  ;;  %v1932_v50 = vld [vmem:[#allocation10 + $0x4f0] sm:$0xff]  ;;  %v1965_v22 = vld [vmem:[#allocation10 + $0x5f8] sm:$0xff] }
 0x459   :  { %4127 = vmatprep.subr.mxu1 %v1891_v27  ;;  %4097 = vmatpush3.msra.mxu0 %v1841_v28  ;;  %v2398_v20 = vmul.f32 %v2396_v3, %v5432_v54  ;;  %v1870_v27 = vld [vmem:[#allocation10 + $0x300] sm:$0xff]  ;;  %v2411_v28 = vadd.f32 %v2409_v58, %v2405_v16  ;;  %v1963_v7 = vld [vmem:[#allocation10 + $0x5e8] sm:$0xff]  ;;  %vm2100_vm8 = vcmp.ge.f32.partialorder %v5235_v38, 0.6  ;;  %vm2110_vm11 = vcmp.lt.f32.partialorder %v5235_v38, 1.4 }
 0x45a   :  { %4128 = vmatpush3.msra.mxu1 %v1875_v59  ;;  %4098 = vmatprep.subr.mxu0 %v1856_v52  ;;  %v2415_v40 = vmul.f32 %v2413_v0, %v2331_v44  ;;  %v2419_v25 = vmul.f32 %v2417_v53, %v5440_v47  ;;  %v1916_v59 = vld [vmem:[#allocation10 + $0x470] sm:$0xff]  ;;  %v1930_v41 = vld [vmem:[#allocation10 + $0x4e0] sm:$0xff]  ;;  %v1929_v43 = vld [vmem:[#allocation10 + $0x4d8] sm:$0xff]  ;;  %v5457_v49 = vadd.f32 -0.6, %v5235_v38  ;;  %v2218_v9 = vmul.f32 2.5, %v5447_v17 }
 0x45b   :  { %4129 = vmatprep.subr.mxu1 %v1890_v13  ;;  %4099 = vmatpush3.msra.mxu0 %v1840_v23  ;;  %v2400_v31 = vadd.f32 %v2398_v20, %v2394_v19  ;;  %v1915_v13 = vld [vmem:[#allocation10 + $0x468] sm:$0xff]  ;;  %v1962_v4 = vld [vmem:[#allocation10 + $0x5e0] sm:$0xff]  ;;  %vm5466_vm12 = vmand %vm2100_vm8, %vm2102_vm9  ;;  %vm2117_vm13 = vcmp.ge.f32.partialorder %v5226_v62, 1.4  ;;  %vm2119_vm14 = vcmp.lt.f32.partialorder %v5226_v62, 1.8 }
 0x45c   :  { %4130 = vmatpush3.msra.mxu1 %v1874_v39  ;;  %4100 = vmatprep.subr.mxu0 %v1855_v42  ;;  %v2421_v52 = vadd.f32 %v2419_v25, %v2415_v40  ;;  %v1947_v23 = vld [vmem:[#allocation10 + $0x568] sm:$0xff]  ;;  %v1914_v39 = vld [vmem:[#allocation10 + $0x460] sm:$0xff]  ;;  %v5452_v42 = vsub.f32 1.0, %v5235_v38  ;;  %vm5480_vm15 = vmand %vm2108_vm10, %vm2110_vm11  ;;  %v5485_v11 = vsub.f32 1.8, %v5226_v62  ;;  %v2106_v3 = vsel %vm5466_vm12, 1.0, %v4766_v60 }
 0x45d   :  { %4131 = vmatprep.subr.mxu1 %v1889_v14  ;;  %4101 = vmatpush3.msra.mxu0 %v1839_v26  ;;  %v1946_v44 = vld [vmem:[#allocation10 + $0x560] sm:$0xff]  ;;  %v5460_v14 = vsub.f32 1.4, %v5235_v38  ;;  %v1961_v26 = vld [vmem:[#allocation10 + $0x5d8] sm:$0xff]  ;;  %vm2125_vm0 = vcmp.ge.f32.partialorder %v5226_v62, 1.8  ;;  %vm5503_vm3 = vmand %vm2117_vm13, %vm2119_vm14  ;;  %v2220_v20 = vmul.f32 %v2218_v9, %v5380_v56 }
 0x45e   :  { %4132 = vmatpush3.msra.mxu1 %v1873_v24  ;;  %4102 = vmatprep.subr.mxu0 %v1854_v5  ;;  %v5474_v24 = vadd.f32 -1.0, %v5226_v62  ;;  %vm2127_vm2 = vcmp.lt.f32.partialorder %v5226_v62, 2.2  ;;  %v1913_v51 = vld [vmem:[#allocation10 + $0x458] sm:$0xff]  ;;  %v2224_v34 = vmul.f32 2.5, %v5452_v42  ;;  %v2232_v16 = vmul.f32 2.5, %v5457_v49 }
 0x45f   :  { %4133 = vmatprep.subr.mxu1 %v1888_v61  ;;  %4103 = vmatpush3.msra.mxu0 %v1838_v35  ;;  %v3834_v61 = vadd.f32 -1.4, %v5226_v62  ;;  %v5492_v35 = vsub.f32 2.2, %v5226_v62  ;;  %v1945_v1 = vld [vmem:[#allocation10 + $0x558] sm:$0xff]  ;;  %v2238_v58 = vmul.f32 2.5, %v5460_v14  ;;  %vm5516_vm4 = vmand %vm2125_vm0, %vm2127_vm2 }
 0x460   :  { %4134 = vmatpush3.msra.mxu1 %v1872_v15  ;;  %2647 = vmatmul.mubr.f32.vlgmr.msra.gmra.mxu0 %v2390_v10  ;;  %v1928_v15 = vld [vmem:[#allocation10 + $0x4d0] sm:$0xff]  ;;  %v5510_v0 = vsel %vm5480_vm15, 1.0, %v4766_v60  ;;  %v1927_v19 = vld [vmem:[#allocation10 + $0x4c8] sm:$0xff]  ;;  %v1926_v56 = vld [vmem:[#allocation10 + $0x4c0] sm:$0xff]  ;;  %vm2116_vm5 = vcmp.ge.f32.partialorder %v5235_v38, 1.4 }
 0x461   :  { %4135 = vmatprep.subr.mxu1 %v1887_v36  ;;  %4142 = vmatprep.subr.mxu0 %v1933_v12  ;;  %v1960_v10 = vld [vmem:[#allocation10 + $0x5d0] sm:$0xff]  ;;  %v1959_v40 = vld [vmem:[#allocation10 + $0x5c8] sm:$0xff]  ;;  %vm2118_vm6 = vcmp.lt.f32.partialorder %v5235_v38, 1.8  ;;  %vm2124_vm7 = vcmp.ge.f32.partialorder %v5235_v38, 1.8 }
 0x462   :  { %4136 = vmatpush3.msra.mxu1 %v1871_v30  ;;  %4143 = vmatpush3.msra.mxu0 %v1917_v21  ;;  %v1912_v12 = vld [vmem:[#allocation10 + $0x450] sm:$0xff]  ;;  %v2247_v21 = vmul.f32 2.5, %v5474_v24  ;;  %v1911_v25 = vld [vmem:[#allocation10 + $0x448] sm:$0xff]  ;;  %vm2126_vm8 = vcmp.lt.f32.partialorder %v5235_v38, 2.2  ;;  %vm5577_vm9 = vmand %vm2116_vm5, %vm2118_vm6 }
 0x463   :  { %4137 = vmatprep.subr.mxu1 %v1886_v55  ;;  %2786 = vmatprep.mubr.f32.mxu0 %v2411_v28  ;;  %v1944_v30 = vld [vmem:[#allocation10 + $0x550] sm:$0xff]  ;;  %v2253_v55 = vmul.f32 2.5, %v5485_v11  ;;  %v2123_v28 = vsel %vm5503_vm3, 1.0, %v4766_v60  ;;  %v1907_v36 = vld [vmem:[#allocation10 + $0x428] sm:$0xff]  ;;  %vm5585_vm10 = vmand %vm2124_vm7, %vm2126_vm8 }
 0x464   :  { %4138 = vmatpush3.msra.mxu1 %v1870_v27  ;;  %4144 = vmatprep.subr.mxu0 %v1932_v50  ;;  %v2226_v27 = vmul.f32 %v2224_v34, %v2106_v3  ;;  %v2261_v50 = vmul.f32 2.5, %v3834_v61  ;;  %v1924_v45 = vld [vmem:[#allocation10 + $0x4b0] sm:$0xff]  ;;  %v2326_v34 = vmul.f32 1.25, %v5452_v42 }
 0x465   :  { %2717 = vmatmul.mubr.f32.vlgmr.msra.gmra.mxu1 %v2400_v31  ;;  %4177 = vmatprep.subr.mxu1 %v1965_v22  ;;  %v2267_v22 = vmul.f32 2.5, %v5492_v35  ;;  %v1943_v31 = vld [vmem:[#allocation10 + $0x548] sm:$0xff]  ;;  %v1956_v5 = vld [vmem:[#allocation10 + $0x5b0] sm:$0xff] }
 0x466   :  { %4178 = vmatpush3.msra.mxu1 %v1949_v29  ;;  %2856 = vmatprep.mubr.f32.mxu1 %v2421_v52  ;;  %v2234_v29 = vmul.f32 %v2232_v16, %v2106_v3  ;;  %v1958_v52 = vld [vmem:[#allocation10 + $0x5c0] sm:$0xff]  ;;  %v1940_v61 = vld [vmem:[#allocation10 + $0x530] sm:$0xff]  ;;  %v2336_v3 = vmul.f32 1.25, %v5460_v14 }
 0x467   :  { %4179 = vmatprep.subr.mxu1 %v1964_v18  ;;  %4145 = vmatpush3.msra.mxu0 %v1916_v59  ;;  %v2240_v18 = vmul.f32 %v2238_v58, %v5510_v0  ;;  %v2131_v59 = vsel %vm5516_vm4, 1.0, %v4766_v60  ;;  %v1955_v58 = vld [vmem:[#allocation10 + $0x5a8] sm:$0xff] }
 0x468   :  { %4180 = vmatpush3.msra.mxu1 %v1948_v32  ;;  %4146 = vmatprep.subr.mxu0 %v1931_v33  ;;  %v1910_v32 = vld [vmem:[#allocation10 + $0x440] sm:$0xff] }
 0x469   :  { %4181 = vmatprep.subr.mxu1 %v1963_v7  ;;  %4147 = vmatpush3.msra.mxu0 %v1915_v13  ;;  %v1942_v33 = vld [vmem:[#allocation10 + $0x540] sm:$0xff]  ;;  %v1925_v7 = vld [vmem:[#allocation10 + $0x4b8] sm:$0xff]  ;;  %v2249_v13 = vmul.f32 %v2247_v21, %v5415_v8  ;;  %v5532_v9 = vadd.f32 %v2240_v18, %v2234_v29  ;;  %v2322_v8 = vmul.f32 1.25, %v5359_v46 }
 0x46a   :  { %4182 = vmatpush3.msra.mxu1 %v1947_v23  ;;  %4148 = vmatprep.subr.mxu0 %v1930_v41  ;;  %v2255_v23 = vmul.f32 %v2253_v55, %v2123_v28  ;;  %v1957_v41 = vld [vmem:[#allocation10 + $0x5b8] sm:$0xff]  ;;  %v2343_v55 = vmul.f32 1.25, %v5405_v57 }
 0x46b   :  { %4183 = vmatprep.subr.mxu1 %v1962_v4  ;;  %4149 = vmatpush3.msra.mxu0 %v1914_v39  ;;  %v1909_v4 = vld [vmem:[#allocation10 + $0x438] sm:$0xff]  ;;  %v2228_v39 = vadd.f32 %v2226_v27, %v2220_v20  ;;  %v2338_v21 = vmul.f32 %v2336_v3, %v5532_v9  ;;  %v1906_v27 = vld [vmem:[#allocation10 + $0x420] sm:$0xff] }
 0x46c   :  { %4184 = vmatpush3.msra.mxu1 %v1946_v44  ;;  %4150 = vmatprep.subr.mxu0 %v1929_v43  ;;  %v2263_v44 = vmul.f32 %v2261_v50, %v2123_v28  ;;  %v2269_v43 = vmul.f32 %v2267_v22, %v2131_v59  ;;  %v2257_v16 = vadd.f32 %v2255_v23, %v2249_v13  ;;  %v2353_v28 = vmul.f32 1.25, %v5474_v24  ;;  %v1938_v50 = vld [vmem:[#allocation10 + $0x520] sm:$0xff]  ;;  %v1921_v22 = vld [vmem:[#allocation10 + $0x498] sm:$0xff]  ;;  %v1952_v23 = vld [vmem:[#allocation10 + $0x590] sm:$0xff] }
 0x46d   :  { %4185 = vmatprep.subr.mxu1 %v1961_v26  ;;  %4151 = vmatpush3.msra.mxu0 %v1913_v51  ;;  %v1941_v26 = vld [vmem:[#allocation10 + $0x538] sm:$0xff]  ;;  %v1908_v51 = vld [vmem:[#allocation10 + $0x430] sm:$0xff] }
 0x46e   :  { %4186 = vmatpush3.msra.mxu1 %v1945_v1  ;;  %4152 = vmatprep.subr.mxu0 %v1928_v15  ;;  %v1923_v1 = vld [vmem:[#allocation10 + $0x4a8] sm:$0xff]  ;;  %v2332_v15 = vmul.f32 1.25, %v5447_v17  ;;  %v2271_v53 = vadd.f32 %v2269_v43, %v2263_v44  ;;  %v1953_v29 = vld [vmem:[#allocation10 + $0x598] sm:$0xff]  ;;  %v2412_v43 = vmul.f32 0.8333333, %v5359_v46 }
 0x46f   :  { %4187 = vmatprep.subr.mxu1 %v1960_v10  ;;  %4153 = vmatpush3.msra.mxu0 %v1912_v12  ;;  %v2324_v10 = vmul.f32 %v2322_v8, %v5407_v6  ;;  %v2328_v12 = vmul.f32 %v2326_v34, %v2228_v39  ;;  %v2357_v6 = vmul.f32 1.25, %v5492_v35  ;;  %v1905_v18 = vld [vmem:[#allocation10 + $0x418] sm:$0xff]  ;;  %v1919_v44 = vld [vmem:[#allocation10 + $0x488] sm:$0xff]  ;;  %v2423_v46 = vmul.f32 0.8333333, %v5388_v2 }
 0x470   :  { %4188 = vmatpush3.msra.mxu1 %v1944_v30  ;;  %4154 = vmatprep.subr.mxu0 %v1927_v19  ;;  %v1939_v30 = vld [vmem:[#allocation10 + $0x528] sm:$0xff]  ;;  %v1922_v19 = vld [vmem:[#allocation10 + $0x4a0] sm:$0xff]  ;;  %v2334_v20 = vmul.f32 %v2332_v15, %v2228_v39  ;;  %v1937_v24 = vld [vmem:[#allocation10 + $0x518] sm:$0xff] }
 0x471   :  { %4189 = vmatprep.subr.mxu1 %v1959_v40  ;;  %4155 = vmatpush3.msra.mxu0 %v1911_v25  ;;  %v2347_v40 = vmul.f32 1.25, %v5485_v11  ;;  %v1954_v25 = vld [vmem:[#allocation10 + $0x5a0] sm:$0xff]  ;;  %v2330_v59 = vadd.f32 %v2328_v12, %v2324_v10  ;;  %v1936_v39 = vld [vmem:[#allocation10 + $0x510] sm:$0xff]  ;;  %v2425_v12 = vmul.f32 %v2423_v46, %v5440_v47  ;;  %v1997_v2 = vld [vmem:[#allocation10 + $0x6f8] sm:$0xff] }
 0x472   :  { %4190 = vmatpush3.msra.mxu1 %v1943_v31  ;;  %4156 = vmatprep.subr.mxu0 %v1926_v56  ;;  %v2345_v31 = vmul.f32 %v2343_v55, %v5428_v63  ;;  %v5546_v13 = vadd.f32 %v2338_v21, %v2334_v20  ;;  %v1904_v63 = vld [vmem:[#allocation10 + $0x410] sm:$0xff]  ;;  %v1934_v10 = vld [vmem:[#allocation10 + $0x500] sm:$0xff]  ;;  %v2029_v21 = vld [vmem:[#allocation10 + $0x7f8] sm:$0xff] }
 0x473   :  { %4191 = vmatprep.subr.mxu1 %v1958_v52  ;;  %4157 = vmatpush3.msra.mxu0 %v1910_v32  ;;  %v2349_v56 = vmul.f32 %v2347_v40, %v2257_v16  ;;  %v2355_v52 = vmul.f32 %v2353_v28, %v2257_v16  ;;  %v2359_v32 = vmul.f32 %v2357_v6, %v2271_v53  ;;  %v1950_v16 = vld [vmem:[#allocation10 + $0x580] sm:$0xff]  ;;  %v1996_v47 = vld [vmem:[#allocation10 + $0x6f0] sm:$0xff]  ;;  %v1995_v6 = vld [vmem:[#allocation10 + $0x6e8] sm:$0xff] }
 0x474   :  { %4192 = vmatpush3.msra.mxu1 %v1942_v33  ;;  %4158 = vmatprep.subr.mxu0 %v1925_v7  ;;  %v2031_v33 = vsub.f32 0.0, %v5226_v62  ;;  %v1920_v7 = vld [vmem:[#allocation10 + $0x490] sm:$0xff]  ;;  %v2414_v15 = vmul.f32 %v2412_v43, %v2330_v59  ;;  %v2009_v43 = vld [vmem:[#allocation10 + $0x758] sm:$0xff] }
 0x475   :  { %4193 = vmatprep.subr.mxu1 %v1957_v41  ;;  %4159 = vmatpush3.msra.mxu0 %v1909_v4  ;;  %v2402_v41 = vmul.f32 0.8333333, %v5341_v37  ;;  %v2406_v4 = vmul.f32 0.8333333, %v5452_v42  ;;  %v1935_v42 = vld [vmem:[#allocation10 + $0x508] sm:$0xff]  ;;  %v2028_v40 = vld [vmem:[#allocation10 + $0x7f0] sm:$0xff] }
 0x476   :  { %4194 = vmatpush3.msra.mxu1 %v1941_v26  ;;  %4160 = vmatprep.subr.mxu0 %v1924_v45  ;;  %v2416_v26 = vmul.f32 0.8333333, %v5460_v14  ;;  %v2351_v45 = vadd.f32 %v2349_v56, %v2345_v31  ;;  %v2034_v37 = vmul.f32 1.442695, %v2031_v33  ;;  %v2427_v14 = vmul.f32 0.8333333, %v5485_v11 }
 0x477   :  { %4195 = vmatprep.subr.mxu1 %v1956_v5  ;;  %4161 = vmatpush3.msra.mxu0 %v1908_v51  ;;  %v1951_v5 = vld [vmem:[#allocation10 + $0x588] sm:$0xff]  ;;  %v2404_v8 = vmul.f32 %v2402_v41, %v5432_v54  ;;  %v2408_v34 = vmul.f32 %v2406_v4, %v2330_v59  ;;  %v2433_v54 = vmul.f32 0.8333333, %v5405_v57  ;;  %v1981_v57 = vld [vmem:[#allocation10 + $0x678] sm:$0xff]  ;;  %v2012_v28 = vld [vmem:[#allocation10 + $0x770] sm:$0xff]  ;;  %v5562_v31 = vadd.f32 -1.0, %v5235_v38 }
 0x478   :  { %4196 = vmatpush3.msra.mxu1 %v1940_v61  ;;  %4162 = vmatprep.subr.mxu0 %v1923_v1  ;;  %v1903_v51 = vld [vmem:[#allocation10 + $0x408] sm:$0xff]  ;;  %v2361_v61 = vadd.f32 %v2359_v32, %v2355_v52  ;;  %v1918_v1 = vld [vmem:[#allocation10 + $0x480] sm:$0xff]  ;;  %v2418_v3 = vmul.f32 %v2416_v26, %v5546_v13  ;;  %v2429_v53 = vmul.f32 %v2427_v14, %v2351_v45  ;;  %4568 = vpow2.f32 %v2034_v37  ;;  %v2025_v41 = vld [vmem:[#allocation10 + $0x7d8] sm:$0xff] }
 0x479   :  { %4197 = vmatprep.subr.mxu1 %v1955_v58  ;;  %4163 = vmatpush3.msra.mxu0 %v1907_v36  ;;  %v1902_v58 = vld [vmem:[#allocation10 + $0x400] sm:$0xff]  ;;  %v2437_v36 = vmul.f32 0.8333333, %v5492_v35  ;;  %v2013_v35 = vld [vmem:[#allocation10 + $0x778] sm:$0xff]  ;;  %v5565_v56 = vsub.f32 1.8, %v5235_v38 }
 0x47a   :  { %4198 = vmatpush3.msra.mxu1 %v1939_v30  ;;  %4164 = vmatprep.subr.mxu0 %v1922_v19  ;;  %v2410_v30 = vadd.f32 %v2408_v34, %v2404_v8  ;;  %v2435_v19 = vmul.f32 %v2433_v54, %v2351_v45  ;;  %v2420_v20 = vadd.f32 %v2418_v3, %v2414_v15  ;;  %v3833_v59 = vadd.f32 -1.4, %v5235_v38  ;;  %v2026_v32 = vld [vmem:[#allocation10 + $0x7e0] sm:$0xff]  ;;  %v1977_v4 = vld [vmem:[#allocation10 + $0x658] sm:$0xff]  ;;  %v1992_v26 = vld [vmem:[#allocation10 + $0x6d0] sm:$0xff] }
 0x47b   :  { %4199 = vmatprep.subr.mxu1 %v1954_v25  ;;  %4165 = vmatpush3.msra.mxu0 %v1906_v27  ;;  %v2439_v11 = vmul.f32 %v2437_v36, %v2361_v61  ;;  %v2431_v55 = vadd.f32 %v2429_v53, %v2425_v12  ;;  %v1980_v25 = vld [vmem:[#allocation10 + $0x670] sm:$0xff]  ;;  %v5571_v52 = vsub.f32 2.2, %v5235_v38  ;;  %v1978_v33 = vld [vmem:[#allocation10 + $0x660] sm:$0xff]  ;;  %v2122_v45 = vsel %vm5577_vm9, 1.0, %v4766_v60  ;;  %v2023_v15 = vld [vmem:[#allocation10 + $0x7c8] sm:$0xff] }
 0x47c   :  { %4200 = vmatpush3.msra.mxu1 %v1938_v50  ;;  %4166 = vmatprep.subr.mxu0 %v1921_v22  ;;  %v2027_v50 = vld [vmem:[#allocation10 + $0x7e8] sm:$0xff]  ;;  %v2024_v8 = vld [vmem:[#allocation10 + $0x7d0] sm:$0xff]  ;;  %v2130_v61 = vsel %vm5585_vm10, 1.0, %v4766_v60  ;;  %v1974_v12 = vld [vmem:[#allocation10 + $0x640] sm:$0xff] }
 0x47d   :  { %4201 = vmatprep.subr.mxu1 %v1953_v29  ;;  %4167 = vmatpush3.msra.mxu0 %v1905_v18  ;;  %v2441_v27 = vadd.f32 %v2439_v11, %v2435_v19  ;;  %v1979_v22 = vld [vmem:[#allocation10 + $0x668] sm:$0xff]  ;;  %v1994_v18 = vld [vmem:[#allocation10 + $0x6e0] sm:$0xff]  ;;  %v1976_v34 = vld [vmem:[#allocation10 + $0x650] sm:$0xff] }
 0x47e   :  { %4202 = vmatpush3.msra.mxu1 %v1937_v24  ;;  %4168 = vmatprep.subr.mxu0 %v1920_v7  ;;  %v2011_v29 = vld [vmem:[#allocation10 + $0x768] sm:$0xff]  ;;  %v2010_v7 = vld [vmem:[#allocation10 + $0x760] sm:$0xff]  ;;  %v2021_v19 = vld [vmem:[#allocation10 + $0x7b8] sm:$0xff] }
 0x47f   :  { %4203 = vmatprep.subr.mxu1 %v1952_v23  ;;  %4169 = vmatpush3.msra.mxu0 %v1904_v63  ;;  %v1993_v23 = vld [vmem:[#allocation10 + $0x6d8] sm:$0xff]  ;;  %v1975_v3 = vld [vmem:[#allocation10 + $0x648] sm:$0xff]  ;;  %v2002_v63 = vld [vmem:[#allocation10 + $0x720] sm:$0xff] }
 0x480   :  { %4204 = vmatpush3.msra.mxu1 %v1936_v39  ;;  %4170 = vmatprep.subr.mxu0 %v1919_v44  ;;  %v2246_v39 = vmul.f32 2.5, %v5562_v31  ;;  %v2252_v44 = vmul.f32 2.5, %v5565_v56 }
 0x481   :  { %4205 = vmatprep.subr.mxu1 %v1951_v5  ;;  %4171 = vmatpush3.msra.mxu0 %v1903_v51  ;;  %v2260_v5 = vmul.f32 2.5, %v3833_v59  ;;  %v2266_v51 = vmul.f32 2.5, %v5571_v52  ;;  %v2003_v59 = vld [vmem:[#allocation10 + $0x728] sm:$0xff] }
 0x482   :  { %4206 = vmatpush3.msra.mxu1 %v1935_v42  ;;  %4172 = vmatprep.subr.mxu0 %v1918_v1  ;;  %v2008_v42 = vld [vmem:[#allocation10 + $0x750] sm:$0xff]  ;;  %v1991_v1 = vld [vmem:[#allocation10 + $0x6c8] sm:$0xff]  ;;  %v2248_v46 = vmul.f32 %v2246_v39, %v5510_v0  ;;  %v2254_v14 = vmul.f32 %v2252_v44, %v2122_v45  ;;  %v1973_v0 = vld [vmem:[#allocation10 + $0x638] sm:$0xff] }
 0x483   :  { %4207 = vmatprep.subr.mxu1 %v1950_v16  ;;  %4173 = vmatpush3.msra.mxu0 %v1902_v58  ;;  %v2007_v16 = vld [vmem:[#allocation10 + $0x748] sm:$0xff]  ;;  %v1990_v58 = vld [vmem:[#allocation10 + $0x6c0] sm:$0xff]  ;;  %v2262_v54 = vmul.f32 %v2260_v5, %v2122_v45  ;;  %v2268_v36 = vmul.f32 %v2266_v51, %v2130_v61  ;;  %v2001_v44 = vld [vmem:[#allocation10 + $0x718] sm:$0xff] }
 0x484   :  { %4208 = vmatpush3.msra.mxu1 %v1934_v10  ;;  %2787 = vmatmul.mubr.f32.vlgmr.msra.gmra.mxu0 %v2410_v30  ;;  %v2022_v10 = vld [vmem:[#allocation10 + $0x7c0] sm:$0xff]  ;;  %v2256_v11 = vadd.f32 %v2254_v14, %v2248_v46  ;;  %v2016_v5 = vld [vmem:[#allocation10 + $0x790] sm:$0xff] }
 0x485   :  { %2857 = vmatmul.mubr.f32.vlgmr.msra.gmra.mxu1 %v2420_v20  ;;  %4212 = vmatprep.subr.mxu0 %v1997_v2  ;;  %v4569_v37 = vpop.eup %4568  ;;  %v2006_v30 = vld [vmem:[#allocation10 + $0x740] sm:$0xff]  ;;  %v1989_v2 = vld [vmem:[#allocation10 + $0x6b8] sm:$0xff]  ;;  %v1968_v51 = vld [vmem:[#allocation10 + $0x610] sm:$0xff] }
 0x486   :  { %4247 = vmatprep.subr.mxu1 %v2029_v21  ;;  %4213 = vmatpush3.msra.mxu0 %v1981_v57  ;;  %v2037_v53 = vadd.f32 1.0, %v4569_v37  ;;  %v2005_v20 = vld [vmem:[#allocation10 + $0x738] sm:$0xff]  ;;  %v1988_v21 = vld [vmem:[#allocation10 + $0x6b0] sm:$0xff]  ;;  %v2270_v57 = vadd.f32 %v2268_v36, %v2262_v54  ;;  %v1983_v37 = vld [vmem:[#allocation10 + $0x688] sm:$0xff] }
 0x487   :  { %2926 = vmatprep.mubr.f32.mxu0 %v2431_v55  ;;  %4248 = vmatpush3.msra.mxu1 %v2013_v35  ;;  %v2020_v35 = vld [vmem:[#allocation10 + $0x7b0] sm:$0xff]  ;;  %v2014_v54 = vld [vmem:[#allocation10 + $0x780] sm:$0xff] }
 0x488   :  { %2996 = vmatprep.mubr.f32.mxu1 %v2441_v27  ;;  %4214 = vmatprep.subr.mxu0 %v1996_v47  ;;  %v1972_v55 = vld [vmem:[#allocation10 + $0x630] sm:$0xff]  ;;  %v2342_v47 = vmul.f32 1.25, %v5457_v49  ;;  %4570 = vrcp.f32 %v2037_v53  ;;  %v1987_v27 = vld [vmem:[#allocation10 + $0x6a8] sm:$0xff]  ;;  %v1757_v53 = vld [vmem:[#allocation9 + $0x78] sm:$0xff] }
 0x489   :  { %4249 = vmatprep.subr.mxu1 %v2028_v40  ;;  %4215 = vmatpush3.msra.mxu0 %v1980_v25  ;;  %v2346_v40 = vmul.f32 1.25, %v5565_v56  ;;  %v2004_v25 = vld [vmem:[#allocation10 + $0x730] sm:$0xff] }
 0x48a   :  { %4250 = vmatpush3.msra.mxu1 %v2012_v28  ;;  %4216 = vmatprep.subr.mxu0 %v1995_v6  ;;  %v2352_v28 = vmul.f32 1.25, %v5562_v31  ;;  %v2356_v6 = vmul.f32 1.25, %v5571_v52  ;;  %v2018_v31 = vld [vmem:[#allocation10 + $0x7a0] sm:$0xff]  ;;  %v2000_v61 = vld [vmem:[#allocation10 + $0x710] sm:$0xff] }
 0x48b   :  { %4251 = vmatprep.subr.mxu1 %v2027_v50  ;;  %4217 = vmatpush3.msra.mxu0 %v1979_v22  ;;  %v2019_v50 = vld [vmem:[#allocation10 + $0x7a8] sm:$0xff] }
 0x48c   :  { %4252 = vmatpush3.msra.mxu1 %v2011_v29  ;;  %4218 = vmatprep.subr.mxu0 %v1994_v18  ;;  %v1971_v22 = vld [vmem:[#allocation10 + $0x628] sm:$0xff]  ;;  %v2344_v29 = vmul.f32 %v2342_v47, %v5532_v9  ;;  %v2348_v18 = vmul.f32 %v2346_v40, %v2256_v11  ;;  %v2358_v24 = vmul.f32 %v2356_v6, %v2270_v57  ;;  %v2017_v9 = vld [vmem:[#allocation10 + $0x798] sm:$0xff]  ;;  %v1752_v47 = vld [vmem:[#allocation9 + $0x50] sm:$0xff] }
 0x48d   :  { %4253 = vmatprep.subr.mxu1 %v2026_v32  ;;  %4219 = vmatpush3.msra.mxu0 %v1978_v33  ;;  %v1986_v32 = vld [vmem:[#allocation10 + $0x6a0] sm:$0xff]  ;;  %v2354_v33 = vmul.f32 %v2352_v28, %v2256_v11  ;;  %v1755_v11 = vld [vmem:[#allocation9 + $0x68] sm:$0xff]  ;;  %v1769_v57 = vld [vmem:[#allocation9 + $0xd8] sm:$0xff] }
 0x48e   :  { %4254 = vmatpush3.msra.mxu1 %v2010_v7  ;;  %4220 = vmatprep.subr.mxu0 %v1993_v23  ;;  %v2030_v7 = vsub.f32 0.0, %v5235_v38  ;;  %v1970_v23 = vld [vmem:[#allocation10 + $0x620] sm:$0xff]  ;;  %v2350_v39 = vadd.f32 %v2348_v18, %v2344_v29  ;;  %v1767_v40 = vld [vmem:[#allocation9 + $0xc8] sm:$0xff]  ;;  %v1764_v29 = vld [vmem:[#allocation9 + $0xb0] sm:$0xff] }
 0x48f   :  { %4255 = vmatprep.subr.mxu1 %v2025_v41  ;;  %4221 = vmatpush3.msra.mxu0 %v1977_v4  ;;  %v1985_v41 = vld [vmem:[#allocation10 + $0x698] sm:$0xff]  ;;  %v1766_v28 = vld [vmem:[#allocation9 + $0xc0] sm:$0xff]  ;;  %v1748_v18 = vld [vmem:[#allocation9 + $0x30] sm:$0xff] }
 0x490   :  { %4256 = vmatpush3.msra.mxu1 %v2009_v43  ;;  %4222 = vmatprep.subr.mxu0 %v1992_v26  ;;  %v1969_v4 = vld [vmem:[#allocation10 + $0x618] sm:$0xff]  ;;  %v1984_v43 = vld [vmem:[#allocation10 + $0x690] sm:$0xff]  ;;  %v2360_v26 = vadd.f32 %v2358_v24, %v2354_v33  ;;  %v2032_v45 = vmul.f32 1.442695, %v2030_v7  ;;  %v1750_v6 = vld [vmem:[#allocation9 + $0x40] sm:$0xff] }
 0x491   :  { %4257 = vmatprep.subr.mxu1 %v2024_v8  ;;  %4223 = vmatpush3.msra.mxu0 %v1976_v34  ;;  %v2422_v8 = vmul.f32 0.8333333, %v5447_v17  ;;  %v2426_v34 = vmul.f32 0.8333333, %v5565_v56  ;;  %v1999_v17 = vld [vmem:[#allocation10 + $0x708] sm:$0xff]  ;;  %v1762_v33 = vld [vmem:[#allocation9 + $0xa0] sm:$0xff] }
 0x492   :  { %4258 = vmatpush3.msra.mxu1 %v2008_v42  ;;  %4224 = vmatprep.subr.mxu0 %v1991_v1  ;;  %v2432_v42 = vmul.f32 0.8333333, %v5457_v49  ;;  %v2436_v1 = vmul.f32 0.8333333, %v5571_v52  ;;  %4572 = vpow2.f32 %v2032_v45  ;;  %v1966_v49 = vld [vmem:[#allocation10 + $0x600] sm:$0xff]  ;;  %v1761_v7 = vld [vmem:[#allocation9 + $0x98] sm:$0xff] }
 0x493   :  { %4259 = vmatprep.subr.mxu1 %v2023_v15  ;;  %4225 = vmatpush3.msra.mxu0 %v1975_v3  ;;  %v2015_v15 = vld [vmem:[#allocation10 + $0x788] sm:$0xff]  ;;  %v2424_v46 = vmul.f32 %v2422_v8, %v5546_v13  ;;  %v2428_v14 = vmul.f32 %v2426_v34, %v2350_v39  ;;  %v1998_v52 = vld [vmem:[#allocation10 + $0x700] sm:$0xff]  ;;  %v1773_v13 = vld [vmem:[#allocation9 + $0xf8] sm:$0xff] }
 0x494   :  { %4260 = vmatpush3.msra.mxu1 %v2007_v16  ;;  %4226 = vmatprep.subr.mxu0 %v1990_v58  ;;  %v1967_v3 = vld [vmem:[#allocation10 + $0x608] sm:$0xff]  ;;  %v1982_v16 = vld [vmem:[#allocation10 + $0x680] sm:$0xff]  ;;  %v2434_v56 = vmul.f32 %v2432_v42, %v2350_v39  ;;  %v2438_v58 = vmul.f32 %v2436_v1, %v2360_v26  ;;  %v3119_v26 = vld [vmem:[#allocation13 + $0xf8] sm:$0xff] }
 0x495   :  { %4261 = vmatprep.subr.mxu1 %v2022_v10  ;;  %4227 = vmatpush3.msra.mxu0 %v1974_v12  ;;  %v4571_v36 = vpop.eup %4570  ;;  %v2430_v10 = vadd.f32 %v2428_v14, %v2424_v46  ;;  %v1746_v24 = vld [vmem:[#allocation9 + $0x20] sm:$0xff]  ;;  %v3151_v45 = vld [vmem:[#allocation13 + $0x1f8] sm:$0xff]  ;;  %v3118_v8 = vld [vmem:[#allocation13 + $0xf0] sm:$0xff] }
 0x496   :  { %4262 = vmatpush3.msra.mxu1 %v2006_v30  ;;  %4228 = vmatprep.subr.mxu0 %v1989_v2  ;;  %v2440_v12 = vadd.f32 %v2438_v58, %v2434_v56  ;;  %v2043_v30 = vmul.f32 %v4571_v36, %v5226_v62  ;;  %v1772_v2 = vld [vmem:[#allocation9 + $0xf0] sm:$0xff]  ;;  %v1758_v39 = vld [vmem:[#allocation9 + $0x80] sm:$0xff]  ;;  %v3117_v42 = vld [vmem:[#allocation13 + $0xe8] sm:$0xff] }
 0x497   :  { %4263 = vmatprep.subr.mxu1 %v2021_v19  ;;  %4229 = vmatpush3.msra.mxu0 %v1973_v0  ;;  %v1756_v19 = vld [vmem:[#allocation9 + $0x70] sm:$0xff]  ;;  %v1771_v0 = vld [vmem:[#allocation9 + $0xe8] sm:$0xff]  ;;  %v3148_v46 = vld [vmem:[#allocation13 + $0x1e0] sm:$0xff] }
 0x498   :  { %4264 = vmatpush3.msra.mxu1 %v2005_v20  ;;  %4230 = vmatprep.subr.mxu0 %v1988_v21  ;;  %v1770_v20 = vld [vmem:[#allocation9 + $0xe0] sm:$0xff]  ;;  %v1768_v62 = vld [vmem:[#allocation9 + $0xd0] sm:$0xff]  ;;  %v3149_v1 = vld [vmem:[#allocation13 + $0x1e8] sm:$0xff] }
 0x499   :  { %4265 = vmatprep.subr.mxu1 %v2020_v35  ;;  %4231 = vmatpush3.msra.mxu0 %v1972_v55  ;;  %v1754_v21 = vld [vmem:[#allocation9 + $0x60] sm:$0xff]  ;;  %v1753_v35 = vld [vmem:[#allocation9 + $0x58] sm:$0xff]  ;;  %v3150_v34 = vld [vmem:[#allocation13 + $0x1f0] sm:$0xff] }
 0x49a   :  { %4266 = vmatpush3.msra.mxu1 %v2004_v25  ;;  %4232 = vmatprep.subr.mxu0 %v1987_v27  ;;  %v1751_v25 = vld [vmem:[#allocation9 + $0x48] sm:$0xff]  ;;  %v3100_v14 = vld [vmem:[#allocation13 + $0x60] sm:$0xff]  ;;  %v3147_v56 = vld [vmem:[#allocation13 + $0x1d8] sm:$0xff] }
 0x49b   :  { %4267 = vmatprep.subr.mxu1 %v2019_v50  ;;  %4233 = vmatpush3.msra.mxu0 %v1971_v22  ;;  %v1765_v50 = vld [vmem:[#allocation9 + $0xb8] sm:$0xff]  ;;  %v3146_v36 = vld [vmem:[#allocation13 + $0x1d0] sm:$0xff] }
 0x49c   :  { %4268 = vmatpush3.msra.mxu1 %v2003_v59  ;;  %4234 = vmatprep.subr.mxu0 %v1986_v32  ;;  %v1749_v22 = vld [vmem:[#allocation9 + $0x38] sm:$0xff]  ;;  %v1763_v59 = vld [vmem:[#allocation9 + $0xa8] sm:$0xff] }
 0x49d   :  { %4269 = vmatprep.subr.mxu1 %v2018_v31  ;;  %4235 = vmatpush3.msra.mxu0 %v1970_v23  ;;  %v1747_v32 = vld [vmem:[#allocation9 + $0x28] sm:$0xff]  ;;  %v1745_v31 = vld [vmem:[#allocation9 + $0x18] sm:$0xff]  ;;  %v1760_v23 = vld [vmem:[#allocation9 + $0x90] sm:$0xff] }
 0x49e   :  { %4270 = vmatpush3.msra.mxu1 %v2002_v63  ;;  %4236 = vmatprep.subr.mxu0 %v1985_v41  ;;  %v1744_v63 = vld [vmem:[#allocation9 + $0x10] sm:$0xff]  ;;  %v1759_v41 = vld [vmem:[#allocation9 + $0x88] sm:$0xff]  ;;  %v3099_v58 = vld [vmem:[#allocation13 + $0x58] sm:$0xff] }
 0x49f   :  { %4271 = vmatprep.subr.mxu1 %v2017_v9  ;;  %4237 = vmatpush3.msra.mxu0 %v1969_v4  ;;  %v4573_v55 = vpop.eup %4572  ;;  %v1743_v9 = vld [vmem:[#allocation9 + $0x8] sm:$0xff] }
 0x4a0   :  { %4272 = vmatpush3.msra.mxu1 %v2001_v44  ;;  %4238 = vmatprep.subr.mxu0 %v1984_v43  ;;  %v2036_v27 = vadd.f32 1.0, %v4573_v55  ;;  %v1742_v44 = vld [vmem:[#allocation9] sm:$0xff]  ;;  %v3110_v55 = vld [vmem:[#allocation13 + $0xb0] sm:$0xff] }
 0x4a1   :  { %4273 = vmatprep.subr.mxu1 %v2016_v5  ;;  %4239 = vmatpush3.msra.mxu0 %v1968_v51  ;;  %v3103_v5 = vld [vmem:[#allocation13 + $0x78] sm:$0xff] }
 0x4a2   :  { %4274 = vmatpush3.msra.mxu1 %v2000_v61  ;;  %4240 = vmatprep.subr.mxu0 %v1983_v37  ;;  %4574 = vrcp.f32 %v2036_v27  ;;  %v3135_v51 = vld [vmem:[#allocation13 + $0x178] sm:$0xff]  ;;  %v3102_v61 = vld [vmem:[#allocation13 + $0x70] sm:$0xff]  ;;  %v3141_v27 = vld [vmem:[#allocation13 + $0x1a8] sm:$0xff] }
 0x4a3   :  { %4275 = vmatprep.subr.mxu1 %v2015_v15  ;;  %4241 = vmatpush3.msra.mxu0 %v1967_v3  ;;  %v3134_v37 = vld [vmem:[#allocation13 + $0x170] sm:$0xff]  ;;  %v3101_v15 = vld [vmem:[#allocation13 + $0x68] sm:$0xff]  ;;  %v3116_v3 = vld [vmem:[#allocation13 + $0xe0] sm:$0xff] }
 0x4a4   :  { %4276 = vmatpush3.msra.mxu1 %v1999_v17  ;;  %4242 = vmatprep.subr.mxu0 %v1982_v16  ;;  %v3132_v17 = vld [vmem:[#allocation13 + $0x160] sm:$0xff]  ;;  %v3115_v16 = vld [vmem:[#allocation13 + $0xd8] sm:$0xff] }
 0x4a5   :  { %4277 = vmatprep.subr.mxu1 %v2014_v54  ;;  %4243 = vmatpush3.msra.mxu0 %v1966_v49  ;;  %v3131_v54 = vld [vmem:[#allocation13 + $0x158] sm:$0xff]  ;;  %v3114_v49 = vld [vmem:[#allocation13 + $0xd0] sm:$0xff] }
 0x4a6   :  { %4278 = vmatpush3.msra.mxu1 %v1998_v52  ;;  %2927 = vmatmul.mubr.f32.vlgmr.msra.gmra.mxu0 %v2430_v10  ;;  %v3098_v52 = vld [vmem:[#allocation13 + $0x50] sm:$0xff] }
 0x4a7   :  { %2997 = vmatmul.mubr.f32.vlgmr.msra.gmra.mxu1 %v2440_v12  ;;  %4282 = vmatprep.subr.mxu0 %v1773_v13  ;;  %v3130_v10 = vld [vmem:[#allocation13 + $0x150] sm:$0xff]  ;;  %v3113_v13 = vld [vmem:[#allocation13 + $0xc8] sm:$0xff] }
 0x4a8   :  { %4283 = vmatpush3.msra.mxu0 %v1757_v53  ;;  %3066 = vmatprep.mubr.f32.mxu0 %v2043_v30  ;;  %v3145_v12 = vld [vmem:[#allocation13 + $0x1c8] sm:$0xff] }
 0x4a9   :  { %4284 = vmatprep.subr.mxu0 %v1772_v2  ;;  %4317 = vmatprep.subr.mxu1 %v3119_v26  ;;  %v3097_v53 = vld [vmem:[#allocation13 + $0x48] sm:$0xff]  ;;  %v3112_v2 = vld [vmem:[#allocation13 + $0xc0] sm:$0xff] }
 0x4aa   :  { %4285 = vmatpush3.msra.mxu0 %v1756_v19  ;;  %4318 = vmatpush3.msra.mxu1 %v3103_v5  ;;  %v3129_v30 = vld [vmem:[#allocation13 + $0x148] sm:$0xff]  ;;  %v3144_v19 = vld [vmem:[#allocation13 + $0x1c0] sm:$0xff]  ;;  %v3183_v5 = vld [vmem:[#allocation13 + $0x2f8] sm:$0xff] }
 0x4ab   :  { %4286 = vmatprep.subr.mxu0 %v1771_v0  ;;  %4319 = vmatprep.subr.mxu1 %v3118_v8  ;;  %v3096_v0 = vld [vmem:[#allocation13 + $0x40] sm:$0xff] }
 0x4ac   :  { %4287 = vmatpush3.msra.mxu0 %v1755_v11  ;;  %4320 = vmatpush3.msra.mxu1 %v3102_v61  ;;  %v3128_v11 = vld [vmem:[#allocation13 + $0x140] sm:$0xff] }
 0x4ad   :  { %4288 = vmatprep.subr.mxu0 %v1770_v20  ;;  %4321 = vmatprep.subr.mxu1 %v3117_v42  ;;  %v3111_v20 = vld [vmem:[#allocation13 + $0xb8] sm:$0xff]  ;;  %v3088_v26 = vld [vmem:[#allocation13] sm:$0xff] }
 0x4ae   :  { %4289 = vmatpush3.msra.mxu0 %v1754_v21  ;;  %4322 = vmatpush3.msra.mxu1 %v3101_v15  ;;  %v3143_v21 = vld [vmem:[#allocation13 + $0x1b8] sm:$0xff] }
 0x4af   :  { %4290 = vmatprep.subr.mxu0 %v1769_v57  ;;  %v4575_v4 = vpop.eup %4574  ;;  %4323 = vmatprep.subr.mxu1 %v3116_v3  ;;  %v3095_v57 = vld [vmem:[#allocation13 + $0x38] sm:$0xff] }
 0x4b0   :  { %4291 = vmatpush3.msra.mxu0 %v1753_v35  ;;  %v2042_v43 = vmul.f32 %v4575_v4, %v5235_v38  ;;  %v3133_v38 = vld [vmem:[#allocation13 + $0x168] sm:$0xff]  ;;  %4324 = vmatpush3.msra.mxu1 %v3100_v14  ;;  %v3127_v35 = vld [vmem:[#allocation13 + $0x138] sm:$0xff] }
 0x4b1   :  { %4292 = vmatprep.subr.mxu0 %v1768_v62  ;;  %4325 = vmatprep.subr.mxu1 %v3115_v16  ;;  %v3142_v62 = vld [vmem:[#allocation13 + $0x1b0] sm:$0xff]  ;;  %v3089_v4 = vld [vmem:[#allocation13 + $0x8] sm:$0xff] }
 0x4b2   :  { %4293 = vmatpush3.msra.mxu0 %v1752_v47  ;;  %4326 = vmatpush3.msra.mxu1 %v3099_v58  ;;  %v3094_v47 = vld [vmem:[#allocation13 + $0x30] sm:$0xff] }
 0x4b3   :  { %4294 = vmatprep.subr.mxu0 %v1767_v40  ;;  %4327 = vmatprep.subr.mxu1 %v3114_v49  ;;  %v3126_v40 = vld [vmem:[#allocation13 + $0x130] sm:$0xff] }
 0x4b4   :  { %4295 = vmatpush3.msra.mxu0 %v1751_v25  ;;  %4328 = vmatpush3.msra.mxu1 %v3098_v52  ;;  %v3109_v25 = vld [vmem:[#allocation13 + $0xa8] sm:$0xff] }
 0x4b5   :  { %4296 = vmatprep.subr.mxu0 %v1766_v28  ;;  %4329 = vmatprep.subr.mxu1 %v3113_v13  ;;  %v3093_v28 = vld [vmem:[#allocation13 + $0x28] sm:$0xff] }
 0x4b6   :  { %4297 = vmatpush3.msra.mxu0 %v1750_v6  ;;  %4330 = vmatpush3.msra.mxu1 %v3097_v53  ;;  %v3125_v6 = vld [vmem:[#allocation13 + $0x128] sm:$0xff] }
 0x4b7   :  { %4298 = vmatprep.subr.mxu0 %v1765_v50  ;;  %4331 = vmatprep.subr.mxu1 %v3112_v2  ;;  %v3108_v50 = vld [vmem:[#allocation13 + $0xa0] sm:$0xff] }
 0x4b8   :  { %4299 = vmatpush3.msra.mxu0 %v1749_v22  ;;  %4332 = vmatpush3.msra.mxu1 %v3096_v0  ;;  %v3140_v22 = vld [vmem:[#allocation13 + $0x1a0] sm:$0xff] }
 0x4b9   :  { %4300 = vmatprep.subr.mxu0 %v1764_v29  ;;  %4333 = vmatprep.subr.mxu1 %v3111_v20  ;;  %v3092_v29 = vld [vmem:[#allocation13 + $0x20] sm:$0xff] }
 0x4ba   :  { %4301 = vmatpush3.msra.mxu0 %v1748_v18  ;;  %4334 = vmatpush3.msra.mxu1 %v3095_v57  ;;  %v3124_v18 = vld [vmem:[#allocation13 + $0x120] sm:$0xff] }
 0x4bb   :  { %4302 = vmatprep.subr.mxu0 %v1763_v59  ;;  %4335 = vmatprep.subr.mxu1 %v3110_v55  ;;  %v3107_v59 = vld [vmem:[#allocation13 + $0x98] sm:$0xff] }
 0x4bc   :  { %4303 = vmatpush3.msra.mxu0 %v1747_v32  ;;  %4336 = vmatpush3.msra.mxu1 %v3094_v47  ;;  %v3139_v32 = vld [vmem:[#allocation13 + $0x198] sm:$0xff] }
 0x4bd   :  { %4304 = vmatprep.subr.mxu0 %v1762_v33  ;;  %4337 = vmatprep.subr.mxu1 %v3109_v25  ;;  %v3091_v33 = vld [vmem:[#allocation13 + $0x18] sm:$0xff] }
 0x4be   :  { %4305 = vmatpush3.msra.mxu0 %v1746_v24  ;;  %4338 = vmatpush3.msra.mxu1 %v3093_v28  ;;  %v3123_v24 = vld [vmem:[#allocation13 + $0x118] sm:$0xff] }
 0x4bf   :  { %4306 = vmatprep.subr.mxu0 %v1761_v7  ;;  %4339 = vmatprep.subr.mxu1 %v3108_v50  ;;  %v3106_v7 = vld [vmem:[#allocation13 + $0x90] sm:$0xff] }
 0x4c0   :  { %4307 = vmatpush3.msra.mxu0 %v1745_v31  ;;  %4340 = vmatpush3.msra.mxu1 %v3092_v29  ;;  %v3138_v31 = vld [vmem:[#allocation13 + $0x190] sm:$0xff] }
 0x4c1   :  { %4308 = vmatprep.subr.mxu0 %v1760_v23  ;;  %4341 = vmatprep.subr.mxu1 %v3107_v59  ;;  %v3090_v23 = vld [vmem:[#allocation13 + $0x10] sm:$0xff] }
 0x4c2   :  { %4309 = vmatpush3.msra.mxu0 %v1744_v63  ;;  %v3122_v63 = vld [vmem:[#allocation13 + $0x110] sm:$0xff]  ;;  %4342 = vmatpush3.msra.mxu1 %v3091_v33 }
 0x4c3   :  { %4310 = vmatprep.subr.mxu0 %v1759_v41  ;;  %v3105_v41 = vld [vmem:[#allocation13 + $0x88] sm:$0xff]  ;;  %4343 = vmatprep.subr.mxu1 %v3106_v7 }
 0x4c4   :  { %4311 = vmatpush3.msra.mxu0 %v1743_v9  ;;  %v3137_v9 = vld [vmem:[#allocation13 + $0x188] sm:$0xff]  ;;  %4344 = vmatpush3.msra.mxu1 %v3090_v23 }
 0x4c5   :  { %4312 = vmatprep.subr.mxu0 %v1758_v39  ;;  %v3121_v39 = vld [vmem:[#allocation13 + $0x108] sm:$0xff]  ;;  %4345 = vmatprep.subr.mxu1 %v3105_v41 }
 0x4c6   :  { %4313 = vmatpush3.msra.mxu0 %v1742_v44  ;;  %v3104_v44 = vld [vmem:[#allocation13 + $0x80] sm:$0xff]  ;;  %4346 = vmatpush3.msra.mxu1 %v3089_v4 }
 0x4c7   :  { %3067 = vmatmul.mubr.f32.vlgmr.msra.gmra.mxu0 %v2042_v43  ;;  %4352 = vmatprep.subr.mxu0 %v3151_v45  ;;  %v3136_v43 = vld [vmem:[#allocation13 + $0x180] sm:$0xff] }
 0x4c8   :  { %4353 = vmatpush3.msra.mxu0 %v3135_v51  ;;  %v3120_v45 = vld [vmem:[#allocation13 + $0x100] sm:$0xff]  ;;  %4347 = vmatprep.subr.mxu1 %v3104_v44  ;;  %v3215_v51 = vld [vmem:[#allocation13 + $0x3f8] sm:$0xff] }
 0x4c9   :  { %4354 = vmatprep.subr.mxu0 %v3150_v34  ;;  %4348 = vmatpush3.msra.mxu1 %v3088_v26 }
 0x4ca   :  { %4355 = vmatpush3.msra.mxu0 %v3134_v37  ;;  %4387 = vmatprep.subr.mxu1 %v3183_v5 }
 0x4cb   :  { %4356 = vmatprep.subr.mxu0 %v3149_v1 }
 0x4cc   :  { %4357 = vmatpush3.msra.mxu0 %v3133_v38 }
 0x4cd   :  { %4358 = vmatprep.subr.mxu0 %v3148_v46 }
 0x4ce   :  { %4359 = vmatpush3.msra.mxu0 %v3132_v17 }
 0x4cf   :  { %4360 = vmatprep.subr.mxu0 %v3147_v56 }
 0x4d0   :  { %4361 = vmatpush3.msra.mxu0 %v3131_v54 }
 0x4d1   :  { %4362 = vmatprep.subr.mxu0 %v3146_v36 }
 0x4d2   :  { %4363 = vmatpush3.msra.mxu0 %v3130_v10 }
 0x4d3   :  { %4364 = vmatprep.subr.mxu0 %v3145_v12 }
 0x4d4   :  { %4365 = vmatpush3.msra.mxu0 %v3129_v30 }
 0x4d5   :  { %4366 = vmatprep.subr.mxu0 %v3144_v19 }
 0x4d6   :  { %4367 = vmatpush3.msra.mxu0 %v3128_v11 }
 0x4d7   :  { %4368 = vmatprep.subr.mxu0 %v3143_v21 }
 0x4d8   :  { %4369 = vmatpush3.msra.mxu0 %v3127_v35 }
 0x4d9   :  { %4370 = vmatprep.subr.mxu0 %v3142_v62 }
 0x4da   :  { %4371 = vmatpush3.msra.mxu0 %v3126_v40 }
 0x4db   :  { %4372 = vmatprep.subr.mxu0 %v3141_v27 }
 0x4dc   :  { %4373 = vmatpush3.msra.mxu0 %v3125_v6 }
 0x4dd   :  { %4374 = vmatprep.subr.mxu0 %v3140_v22 }
 0x4de   :  { %4375 = vmatpush3.msra.mxu0 %v3124_v18 }
 0x4df   :  { %4376 = vmatprep.subr.mxu0 %v3139_v32 }
 0x4e0   :  { %4377 = vmatpush3.msra.mxu0 %v3123_v24 }
 0x4e1   :  { %4378 = vmatprep.subr.mxu0 %v3138_v31 }
 0x4e2   :  { %4379 = vmatpush3.msra.mxu0 %v3122_v63 }
 0x4e3   :  { %4380 = vmatprep.subr.mxu0 %v3137_v9 }
 0x4e4   :  { %4381 = vmatpush3.msra.mxu0 %v3121_v39 }
 0x4e5   :  { %4382 = vmatprep.subr.mxu0 %v3136_v43 }
 0x4e6   :  { %4383 = vmatpush3.msra.mxu0 %v3120_v45 }
 0x4e7   :  { %4422 = vmatprep.subr.mxu0 %v3215_v51 }
 0x4fe   :  { %v4034_v8 = vpop.f32.mrf.mxu0 }
 0x500   :  { %v4035_v61 = vpop.f32.mrf.mxu0 }
 0x501   :  { %v4036_v15 = vadd.f32 %v4035_v61, %v4034_v8 }
 0x505   :  { %v4069_v34 = vpop.f32.mrf.mxu1 }
 0x507   :  { %v4070_v42 = vpop.f32.mrf.mxu1 }
 0x508   :  { %v4071_v38 = vadd.f32 %v4070_v42, %v4069_v34 }
 0x50a   :  { %v2579_v17 = vadd.f32 %v4071_v38, %v4036_v15 }
 0x520   :  { %v4104_v37 = vpop.f32.mrf.mxu0 }
 0x522   :  { %v4105_v1 = vpop.f32.mrf.mxu0 }
 0x523   :  { %v4106_v14 = vadd.f32 %v4105_v1, %v4104_v37 }
 0x525   :  { %v4139_v3 = vpop.f32.mrf.mxu1  ;;  %v2649_v58 = vadd.f32 %v4106_v14, %v2579_v17 }
 0x527   :  { %v4140_v16 = vpop.f32.mrf.mxu1 }
 0x528   :  { %v4141_v36 = vadd.f32 %v4140_v16, %v4139_v3 }
 0x52a   :  { %v2719_v10 = vadd.f32 %v4141_v36, %v2649_v58 }
 0x544   :  { %v4174_v46 = vpop.f32.mrf.mxu0 }
 0x545   :  { %v4209_v54 = vpop.f32.mrf.mxu1 }
 0x546   :  { %v4175_v56 = vpop.f32.mrf.mxu0 }
 0x547   :  { %v4176_v52 = vadd.f32 %v4175_v56, %v4174_v46  ;;  %v4210_v13 = vpop.f32.mrf.mxu1 }
 0x548   :  { %v4211_v2 = vadd.f32 %v4210_v13, %v4209_v54 }
 0x549   :  { %v2789_v53 = vadd.f32 %v4176_v52, %v2719_v10 }
 0x54b   :  { %v2859_v0 = vadd.f32 %v4211_v2, %v2789_v53 }
 0x566   :  { %v4244_v49 = vpop.f32.mrf.mxu0 }
 0x567   :  { %v4279_v30 = vpop.f32.mrf.mxu1 }
 0x568   :  { %v4245_v12 = vpop.f32.mrf.mxu0 }
 0x569   :  { %v4246_v19 = vadd.f32 %v4245_v12, %v4244_v49  ;;  %v4280_v11 = vpop.f32.mrf.mxu1 }
 0x56a   :  { %v4281_v57 = vadd.f32 %v4280_v11, %v4279_v30 }
 0x56b   :  { %v2929_v20 = vadd.f32 %v4246_v19, %v2859_v0 }
 0x56d   :  { %v2999_v55 = vadd.f32 %v4281_v57, %v2929_v20 }
 0x587   :  { %v4314_v21 = vpop.f32.mrf.mxu0 }
 0x589   :  { %v4315_v35 = vpop.f32.mrf.mxu0 }
 0x58a   :  { %v4316_v62 = vadd.f32 %v4315_v35, %v4314_v21 }
 0x58c   :  { %v5612_v47 = vadd.f32 %v4316_v62, %v2999_v55 }
 0x58e   :  { %vm3227_vm11 = vcmp.ge.f32.partialorder %v5612_v47, -1.8  ;;  %vm3228_vm12 = vcmp.lt.f32.partialorder %v5612_v47, -1.4  ;;  %vm3231_vm13 = vcmp.ge.f32.partialorder %v5612_v47, -1.4 }
 0x58f   :  { %vm3229_vm14 = vmand %vm3227_vm11, %vm3228_vm12  ;;  %vm3232_vm15 = vcmp.lt.f32.partialorder %v5612_v47, -1.0  ;;  %vm3235_vm0 = vcmp.ge.f32.partialorder %v5612_v47, -1.0  ;;  %vm3236_vm2 = vcmp.lt.f32.partialorder %v5612_v47, -0.6  ;;  %vm3239_vm3 = vcmp.ge.f32.partialorder %v5612_v47, -0.6 }
 0x590   :  { %v3230_v40 = vsel %vm3229_vm14, 1.0, %v4766_v60  ;;  %vm3233_vm4 = vmand %vm3231_vm13, %vm3232_vm15  ;;  %vm3240_vm5 = vcmp.lt.f32.partialorder %v5612_v47, -0.2  ;;  %v3270_v25 = vsub.f32 -1.4, %v5612_v47  ;;  %v3277_v27 = vsub.f32 -1.0, %v5612_v47 }
 0x591   :  { %v3234_v28 = vsel %vm3233_vm4, 1.0, %v4766_v60  ;;  %vm3237_vm6 = vmand %vm3235_vm0, %vm3236_vm2  ;;  %v3836_v6 = vadd.f32 1.8, %v5612_v47  ;;  %v5628_v50 = vadd.f32 1.4, %v5612_v47  ;;  %v3838_v22 = vadd.f32 1.0, %v5612_v47 }
 0x592   :  { %v3238_v29 = vsel %vm3237_vm6, 1.0, %v4766_v60  ;;  %vm3241_vm7 = vmand %vm3239_vm3, %vm3240_vm5  ;;  %v3271_v18 = vmul.f32 2.5, %v3270_v25  ;;  %v3278_v59 = vmul.f32 2.5, %v3277_v27  ;;  %v5635_v32 = vsub.f32 -0.6, %v5612_v47 }
 0x593   :  { %v3242_v33 = vsel %vm3241_vm7, 1.0, %v4766_v60  ;;  %v3275_v24 = vmul.f32 2.5, %v3836_v6  ;;  %v3282_v7 = vmul.f32 2.5, %v5628_v50  ;;  %v3289_v31 = vmul.f32 2.5, %v3838_v22 }
 0x594   :  { %v5639_v23 = vmul.f32 %v3271_v18, %v3230_v40  ;;  %v3279_v63 = vmul.f32 %v3278_v59, %v3234_v28  ;;  %v3285_v41 = vmul.f32 2.5, %v5635_v32  ;;  %v3291_v9 = vsub.f32 -0.2, %v5612_v47 }
 0x595   :  { %v3276_v4 = vmul.f32 %v3275_v24, %v3230_v40  ;;  %v3283_v39 = vmul.f32 %v3282_v7, %v3234_v28  ;;  %v3290_v44 = vmul.f32 %v3289_v31, %v3238_v29  ;;  %v3342_v43 = vmul.f32 1.25, %v3836_v6 }
 0x596   :  { %v3286_v26 = vmul.f32 %v3285_v41, %v3238_v29  ;;  %v3292_v45 = vmul.f32 2.5, %v3291_v9  ;;  %v3344_v5 = vmul.f32 1.25, %v5635_v32  ;;  %v3347_v51 = vmul.f32 1.25, %v5628_v50 }
 0x597   :  { %v3280_v8 = vadd.f32 %v3279_v63, %v3276_v4  ;;  %v3349_v34 = vmul.f32 1.25, %v3291_v9  ;;  %v3387_v61 = vmul.f32 0.8333333, %v3836_v6  ;;  %v3389_v37 = vmul.f32 0.8333333, %v3291_v9 }
 0x598   :  { %v3287_v42 = vadd.f32 %v3286_v26, %v3283_v39  ;;  %v3293_v1 = vmul.f32 %v3292_v45, %v3242_v33  ;;  %vm3243_vm8 = vcmp.ge.f32.partialorder %v5612_v47, -0.2  ;;  %vm3244_vm9 = vcmp.lt.f32.partialorder %v5612_v47, 0.2 }
 0x599   :  { %v3343_v15 = vmul.f32 %v3342_v43, %v3280_v8  ;;  %vm3245_vm10 = vmand %vm3243_vm8, %vm3244_vm9  ;;  %vm3247_vm11 = vcmp.ge.f32.partialorder %v5612_v47, 0.2  ;;  %vm3248_vm12 = vcmp.lt.f32.partialorder %v5612_v47, 0.6  ;;  %v5650_v38 = vadd.f32 0.6, %v5612_v47 }
 0x59a   :  { %v3294_v3 = vadd.f32 %v3293_v1, %v3290_v44  ;;  %v3345_v46 = vmul.f32 %v3344_v5, %v3287_v42  ;;  %v3348_v14 = vmul.f32 %v3347_v51, %v3287_v42  ;;  %v3246_v17 = vsel %vm3245_vm10, 1.0, %v4766_v60  ;;  %vm3249_vm13 = vmand %vm3247_vm11, %vm3248_vm12 }
 0x59b   :  { %v5654_v16 = vsel %vm3249_vm13, 1.0, %v4766_v60  ;;  %v3296_v56 = vmul.f32 2.5, %v5650_v38  ;;  %v3298_v58 = vsub.f32 0.2, %v5612_v47  ;;  %v5659_v54 = vadd.f32 0.2, %v5612_v47 }
 0x59c   :  { %v3346_v49 = vadd.f32 %v3345_v46, %v3343_v15  ;;  %v3350_v36 = vmul.f32 %v3349_v34, %v3294_v3  ;;  %v3305_v52 = vsub.f32 0.6, %v5612_v47  ;;  %v3352_v10 = vmul.f32 1.25, %v3838_v22 }
 0x59d   :  { %v3297_v13 = vmul.f32 %v3296_v56, %v3242_v33  ;;  %v3299_v12 = vmul.f32 2.5, %v3298_v58  ;;  %v3303_v53 = vmul.f32 2.5, %v5659_v54  ;;  %v3354_v30 = vmul.f32 1.25, %v3298_v58 }
 0x59e   :  { %v3351_v2 = vadd.f32 %v3350_v36, %v3348_v14  ;;  %v3388_v19 = vmul.f32 %v3387_v61, %v3346_v49  ;;  %v3306_v0 = vmul.f32 2.5, %v3305_v52  ;;  %v3353_v11 = vmul.f32 %v3352_v10, %v3294_v3 }
 0x59f   :  { %v3300_v20 = vmul.f32 %v3299_v12, %v3246_v17  ;;  %v3304_v21 = vmul.f32 %v3303_v53, %v3246_v17  ;;  %v3357_v57 = vmul.f32 1.25, %v5650_v38  ;;  %v3359_v35 = vmul.f32 1.25, %v3305_v52  ;;  %v3199_v17 = vld [vmem:[#allocation13 + $0x378] sm:$0xff] }
 0x5a0   :  { %v3390_v55 = vmul.f32 %v3389_v37, %v3351_v2  ;;  %v3307_v62 = vmul.f32 %v3306_v0, %v5654_v16  ;;  %v3397_v40 = vmul.f32 0.8333333, %v3838_v22  ;;  %v3399_v25 = vmul.f32 0.8333333, %v3305_v52  ;;  %v3167_v0 = vld [vmem:[#allocation13 + $0x278] sm:$0xff] }
 0x5a1   :  { %v3301_v28 = vadd.f32 %v3300_v20, %v3297_v13  ;;  %vm3223_vm14 = vcmp.ge.f32.partialorder %v5612_v47, -2.2  ;;  %vm3224_vm15 = vcmp.lt.f32.partialorder %v5612_v47, -1.8  ;;  %v3835_v6 = vadd.f32 2.2, %v5612_v47 }
 0x5a2   :  { %v3391_v29 = vadd.f32 %v3390_v55, %v3388_v19  ;;  %v3308_v18 = vadd.f32 %v3307_v62, %v3304_v21  ;;  %vm3225_vm0 = vmand %vm3223_vm14, %vm3224_vm15  ;;  %v3339_v59 = vmul.f32 1.25, %v3277_v27  ;;  %v3384_v33 = vmul.f32 0.8333333, %v5635_v32  ;;  %v3214_v13 = vld [vmem:[#allocation13 + $0x3f0] sm:$0xff]  ;;  %v3213_v55 = vld [vmem:[#allocation13 + $0x3e8] sm:$0xff] }
 0x5a3   :  { %v3355_v24 = vmul.f32 %v3354_v30, %v3301_v28  ;;  %v3358_v7 = vmul.f32 %v3357_v57, %v3301_v28  ;;  %v3226_v22 = vsel %vm3225_vm0, 1.0, %v4766_v60  ;;  %v3268_v31 = vmul.f32 2.5, %v3835_v6  ;;  %v3198_v19 = vld [vmem:[#allocation13 + $0x370] sm:$0xff]  ;;  %v3197_v28 = vld [vmem:[#allocation13 + $0x368] sm:$0xff] }
 0x5a4   :  { %3486 = vmatprep.mubr.f32.mxu1 %v3391_v29  ;;  %v3360_v63 = vmul.f32 %v3359_v35, %v3308_v18  ;;  %v3337_v41 = vmul.f32 1.25, %v3835_v6  ;;  %v3340_v9 = vmul.f32 %v3339_v59, %v3280_v8  ;;  %v3382_v4 = vmul.f32 0.8333333, %v3835_v6  ;;  %v3212_v6 = vld [vmem:[#allocation13 + $0x3e0] sm:$0xff] }
 0x5a5   :  { %v3356_v39 = vadd.f32 %v3355_v24, %v3353_v11  ;;  %v3269_v44 = vmul.f32 %v3268_v31, %v3226_v22  ;;  %v3385_v43 = vmul.f32 %v3384_v33, %v3346_v49  ;;  %v3392_v26 = vmul.f32 0.8333333, %v5628_v50  ;;  %v3182_v11 = vld [vmem:[#allocation13 + $0x2f0] sm:$0xff]  ;;  %v3181_v24 = vld [vmem:[#allocation13 + $0x2e8] sm:$0xff] }
 0x5a6   :  { %v5673_v45 = vadd.f32 %v3360_v63, %v3358_v7  ;;  %v3394_v27 = vmul.f32 0.8333333, %v3298_v58  ;;  %vm3251_vm2 = vcmp.ge.f32.partialorder %v5612_v47, 0.6  ;;  %vm3252_vm3 = vcmp.lt.f32.partialorder %v5612_v47, 1.0  ;;  %v3196_v7 = vld [vmem:[#allocation13 + $0x360] sm:$0xff] }
 0x5a7   :  { %v3398_v32 = vmul.f32 %v3397_v40, %v3356_v39  ;;  %v3273_v5 = vadd.f32 %v5639_v23, %v3269_v44  ;;  %v3393_v51 = vmul.f32 %v3392_v26, %v3351_v2  ;;  %vm3253_vm4 = vmand %vm3251_vm2, %vm3252_vm3  ;;  %vm3255_vm5 = vcmp.ge.f32.partialorder %v5612_v47, 1.0  ;;  %v3165_v26 = vld [vmem:[#allocation13 + $0x268] sm:$0xff] }
 0x5a8   :  { %v3400_v8 = vmul.f32 %v3399_v25, %v5673_v45  ;;  %v3395_v34 = vmul.f32 %v3394_v27, %v3356_v39  ;;  %v3254_v61 = vsel %vm3253_vm4, 1.0, %v4766_v60  ;;  %vm3256_vm6 = vcmp.lt.f32.partialorder %v5612_v47, 1.4 }
 0x5a9   :  { %v3338_v50 = vmul.f32 %v3337_v41, %v3273_v5  ;;  %vm3257_vm7 = vmand %vm3255_vm5, %vm3256_vm6  ;;  %v5683_v37 = vadd.f32 -0.2, %v5612_v47  ;;  %v5686_v42 = vsub.f32 1.0, %v5612_v47  ;;  %v5689_v23 = vadd.f32 -0.6, %v5612_v47 }
 0x5aa   :  { %v3401_v1 = vadd.f32 %v3400_v8, %v3398_v32  ;;  %v3396_v15 = vadd.f32 %v3395_v34, %v3393_v51  ;;  %v5692_v3 = vsel %vm3257_vm7, 1.0, %v4766_v60  ;;  %v5695_v46 = vsub.f32 1.4, %v5612_v47  ;;  %v3180_v8 = vld [vmem:[#allocation13 + $0x2e0] sm:$0xff]  ;;  %v3195_v34 = vld [vmem:[#allocation13 + $0x358] sm:$0xff] }
 0x5ab   :  { %v3341_v14 = vadd.f32 %v3340_v9, %v3338_v50  ;;  %v3310_v56 = vmul.f32 2.5, %v5683_v37  ;;  %v3313_v58 = vmul.f32 2.5, %v5686_v42  ;;  %v3317_v49 = vmul.f32 2.5, %v5689_v23  ;;  %v3211_v9 = vld [vmem:[#allocation13 + $0x3d8] sm:$0xff] }
 0x5ac   :  { %3556 = vmatprep.mubr.f32.mxu0 %v3401_v1  ;;  %v3320_v36 = vmul.f32 2.5, %v5695_v46  ;;  %v3362_v52 = vmul.f32 1.25, %v5659_v54  ;;  %v3364_v10 = vmul.f32 1.25, %v5686_v42  ;;  %v3367_v57 = vmul.f32 1.25, %v5683_v37 }
 0x5ad   :  { %v3383_v12 = vmul.f32 %v3382_v4, %v3341_v14  ;;  %3557 = vmatmul.mubr.f32.vlgmr.msra.gmra.mxu0 %v3396_v15  ;;  %v3311_v53 = vmul.f32 %v3310_v56, %v5654_v16  ;;  %v3314_v30 = vmul.f32 %v3313_v58, %v3254_v61  ;;  %v3318_v2 = vmul.f32 %v3317_v49, %v3254_v61  ;;  %v3166_v16 = vld [vmem:[#allocation13 + $0x270] sm:$0xff]  ;;  %v3164_v14 = vld [vmem:[#allocation13 + $0x260] sm:$0xff]  ;;  %v3179_v49 = vld [vmem:[#allocation13 + $0x2d8] sm:$0xff] }
 0x5ae   :  { %4423 = vmatpush3.msra.mxu0 %v3199_v17  ;;  %v3321_v20 = vmul.f32 %v3320_v36, %v5692_v3  ;;  %v3363_v21 = vmul.f32 %v3362_v52, %v3308_v18  ;;  %v3369_v35 = vmul.f32 1.25, %v5695_v46  ;;  %v3407_v25 = vmul.f32 0.8333333, %v5659_v54  ;;  %v3210_v17 = vld [vmem:[#allocation13 + $0x3d0] sm:$0xff] }
 0x5af   :  { %v3386_v62 = vadd.f32 %v3385_v43, %v3383_v12  ;;  %v3315_v40 = vadd.f32 %v3314_v30, %v3311_v53  ;;  %4424 = vmatprep.subr.mxu0 %v3214_v13  ;;  %vm3259_vm8 = vcmp.ge.f32.partialorder %v5612_v47, 1.4  ;;  %vm3260_vm9 = vcmp.lt.f32.partialorder %v5612_v47, 1.8  ;;  %v3194_v36 = vld [vmem:[#allocation13 + $0x350] sm:$0xff] }
 0x5b0   :  { %v3322_v29 = vadd.f32 %v3321_v20, %v3318_v2  ;;  %vm3263_vm10 = vcmp.ge.f32.partialorder %v5612_v47, 1.8  ;;  %vm3264_vm11 = vcmp.lt.f32.partialorder %v5612_v47, 2.2  ;;  %4425 = vmatpush3.msra.mxu0 %v3198_v19  ;;  %vm3261_vm12 = vmand %vm3259_vm8, %vm3260_vm9  ;;  %v3843_v54 = vadd.f32 -1.0, %v5612_v47  ;;  %v3178_v19 = vld [vmem:[#allocation13 + $0x2d0] sm:$0xff] }
 0x5b1   :  { %3487 = vmatmul.mubr.f32.vlgmr.msra.gmra.mxu1 %v3386_v62  ;;  %v3365_v18 = vmul.f32 %v3364_v10, %v3315_v40  ;;  %v3368_v59 = vmul.f32 %v3367_v57, %v3315_v40  ;;  %v5714_v33 = vsub.f32 1.8, %v5612_v47  ;;  %4426 = vmatprep.subr.mxu0 %v3213_v55  ;;  %v3262_v31 = vsel %vm3261_vm12, 1.0, %v4766_v60  ;;  %vm3265_vm13 = vmand %vm3263_vm10, %vm3264_vm11  ;;  %v3193_v57 = vld [vmem:[#allocation13 + $0x348] sm:$0xff]  ;;  %v3208_v62 = vld [vmem:[#allocation13 + $0x3c0] sm:$0xff] }
 0x5b2   :  { %4388 = vmatpush3.msra.mxu1 %v3167_v0  ;;  %v3370_v22 = vmul.f32 %v3369_v35, %v3322_v29  ;;  %v3844_v63 = vadd.f32 -1.4, %v5612_v47  ;;  %v5721_v41 = vsub.f32 2.2, %v5612_v47  ;;  %4427 = vmatpush3.msra.mxu0 %v3197_v28  ;;  %v3266_v39 = vsel %vm3265_vm13, 1.0, %v4766_v60  ;;  %v3209_v0 = vld [vmem:[#allocation13 + $0x3c8] sm:$0xff] }
 0x5b3   :  { %4389 = vmatprep.subr.mxu1 %v3182_v11  ;;  %v5723_v4 = vadd.f32 %v3365_v18, %v3363_v21  ;;  %v3324_v44 = vmul.f32 2.5, %v3843_v54  ;;  %v3327_v43 = vmul.f32 2.5, %v5714_v33  ;;  %4428 = vmatprep.subr.mxu0 %v3212_v6  ;;  %v3409_v32 = vmul.f32 0.8333333, %v5695_v46  ;;  %v3162_v21 = vld [vmem:[#allocation13 + $0x250] sm:$0xff]  ;;  %v3177_v55 = vld [vmem:[#allocation13 + $0x2c8] sm:$0xff] }
 0x5b4   :  { %v5727_v27 = vadd.f32 %v3370_v22, %v3368_v59  ;;  %v3331_v5 = vmul.f32 2.5, %v3844_v63  ;;  %v3334_v51 = vmul.f32 2.5, %v5721_v41  ;;  %4390 = vmatpush3.msra.mxu1 %v3166_v16  ;;  %4429 = vmatpush3.msra.mxu0 %v3196_v7  ;;  %v3372_v15 = vmul.f32 1.25, %v5689_v23  ;;  %v3161_v16 = vld [vmem:[#allocation13 + $0x248] sm:$0xff]  ;;  %v3192_v28 = vld [vmem:[#allocation13 + $0x340] sm:$0xff]  ;;  %v3207_v59 = vld [vmem:[#allocation13 + $0x3b8] sm:$0xff] }
 0x5b5   :  { %v3408_v61 = vmul.f32 %v3407_v25, %v5723_v4  ;;  %v3325_v50 = vmul.f32 %v3324_v44, %v5692_v3  ;;  %v3328_v1 = vmul.f32 %v3327_v43, %v3262_v31  ;;  %4391 = vmatprep.subr.mxu1 %v3181_v24  ;;  %4430 = vmatprep.subr.mxu0 %v3211_v9  ;;  %v3374_v13 = vmul.f32 1.25, %v5714_v33  ;;  %v3163_v3 = vld [vmem:[#allocation13 + $0x258] sm:$0xff]  ;;  %v3176_v18 = vld [vmem:[#allocation13 + $0x2c0] sm:$0xff]  ;;  %v3158_v44 = vld [vmem:[#allocation13 + $0x230] sm:$0xff] }
 0x5b6   :  { %v3410_v46 = vmul.f32 %v3409_v32, %v5727_v27  ;;  %v3332_v56 = vmul.f32 %v3331_v5, %v3262_v31  ;;  %v3335_v58 = vmul.f32 %v3334_v51, %v3266_v39  ;;  %4392 = vmatpush3.msra.mxu1 %v3165_v26  ;;  %v3373_v10 = vmul.f32 %v3372_v15, %v3322_v29  ;;  %v3160_v24 = vld [vmem:[#allocation13 + $0x240] sm:$0xff]  ;;  %v3191_v7 = vld [vmem:[#allocation13 + $0x338] sm:$0xff]  ;;  %v3206_v31 = vld [vmem:[#allocation13 + $0x3b0] sm:$0xff] }
 0x5b7   :  { %v3329_v52 = vadd.f32 %v3328_v1, %v3325_v50  ;;  %v3377_v12 = vmul.f32 1.25, %v3843_v54  ;;  %4393 = vmatprep.subr.mxu1 %v3180_v8  ;;  %4431 = vmatpush3.msra.mxu0 %v3195_v34  ;;  %v3379_v2 = vmul.f32 1.25, %v5721_v41  ;;  %v3417_v25 = vmul.f32 0.8333333, %v5689_v23  ;;  %v3175_v23 = vld [vmem:[#allocation13 + $0x2b8] sm:$0xff]  ;;  %v3190_v39 = vld [vmem:[#allocation13 + $0x330] sm:$0xff] }
 0x5b8   :  { %v3411_v53 = vadd.f32 %v3410_v46, %v3408_v61  ;;  %v3336_v30 = vadd.f32 %v3335_v58, %v3332_v56  ;;  %4394 = vmatpush3.msra.mxu1 %v3164_v14  ;;  %4432 = vmatprep.subr.mxu0 %v3210_v17  ;;  %v3419_v29 = vmul.f32 0.8333333, %v5721_v41  ;;  %v3159_v63 = vld [vmem:[#allocation13 + $0x238] sm:$0xff]  ;;  %v3174_v41 = vld [vmem:[#allocation13 + $0x2b0] sm:$0xff]  ;;  %v3205_v43 = vld [vmem:[#allocation13 + $0x3a8] sm:$0xff]  ;;  %v3216_v8 = vsub.f32 0.0, %v5612_v47 }
 0x5b9   :  { %v3375_v11 = vmul.f32 %v3374_v13, %v3329_v52  ;;  %v3378_v20 = vmul.f32 %v3377_v12, %v3329_v52  ;;  %4395 = vmatprep.subr.mxu1 %v3179_v49  ;;  %4433 = vmatpush3.msra.mxu0 %v3194_v36  ;;  %v3173_v26 = vld [vmem:[#allocation13 + $0x2a8] sm:$0xff]  ;;  %v3204_v51 = vld [vmem:[#allocation13 + $0x3a0] sm:$0xff]  ;;  %v3203_v1 = vld [vmem:[#allocation13 + $0x398] sm:$0xff]  ;;  %v3412_v36 = vmul.f32 0.8333333, %v5683_v37 }
 0x5ba   :  { %3626 = vmatprep.mubr.f32.mxu1 %v3411_v53  ;;  %v3380_v35 = vmul.f32 %v3379_v2, %v3336_v30  ;;  %4396 = vmatpush3.msra.mxu1 %v3163_v3  ;;  %v3189_v32 = vld [vmem:[#allocation13 + $0x328] sm:$0xff]  ;;  %v3172_v34 = vld [vmem:[#allocation13 + $0x2a0] sm:$0xff]  ;;  %v3171_v15 = vld [vmem:[#allocation13 + $0x298] sm:$0xff]  ;;  %v3217_v56 = vmul.f32 1.442695, %v3216_v8 }
 0x5bb   :  { %v5737_v40 = vadd.f32 %v3375_v11, %v3373_v10  ;;  %4397 = vmatprep.subr.mxu1 %v3178_v19  ;;  %4434 = vmatprep.subr.mxu0 %v3209_v0  ;;  %v3157_v5 = vld [vmem:[#allocation13 + $0x228] sm:$0xff]  ;;  %v3188_v61 = vld [vmem:[#allocation13 + $0x320] sm:$0xff]  ;;  %v3187_v14 = vld [vmem:[#allocation13 + $0x318] sm:$0xff]  ;;  %v3414_v52 = vmul.f32 0.8333333, %v5714_v33  ;;  %v3413_v2 = vmul.f32 %v3412_v36, %v5727_v27 }
 0x5bc   :  { %v3381_v6 = vadd.f32 %v3380_v35, %v3378_v20  ;;  %4398 = vmatpush3.msra.mxu1 %v3162_v21  ;;  %4435 = vmatpush3.msra.mxu0 %v3193_v57  ;;  %v3156_v50 = vld [vmem:[#allocation13 + $0x220] sm:$0xff]  ;;  %v3155_v17 = vld [vmem:[#allocation13 + $0x218] sm:$0xff]  ;;  %v3202_v46 = vld [vmem:[#allocation13 + $0x390] sm:$0xff]  ;;  %v3402_v12 = vmul.f32 0.8333333, %v5650_v38  ;;  %4576 = vpow2.f32 %v3217_v56 }
 0x5bd   :  { %v3418_v54 = vmul.f32 %v3417_v25, %v5737_v40  ;;  %4399 = vmatprep.subr.mxu1 %v3177_v55  ;;  %4436 = vmatprep.subr.mxu0 %v3208_v62  ;;  %v3170_v58 = vld [vmem:[#allocation13 + $0x290] sm:$0xff]  ;;  %v3201_v13 = vld [vmem:[#allocation13 + $0x388] sm:$0xff]  ;;  %v3404_v3 = vmul.f32 0.8333333, %v5686_v42  ;;  %v3415_v19 = vmul.f32 %v3414_v52, %v5737_v40  ;;  %v3200_v33 = vld [vmem:[#allocation13 + $0x380] sm:$0xff] }
 0x5be   :  { %v3420_v22 = vmul.f32 %v3419_v29, %v3381_v6  ;;  %4400 = vmatpush3.msra.mxu1 %v3161_v16  ;;  %4437 = vmatpush3.msra.mxu0 %v3192_v28  ;;  %v3186_v49 = vld [vmem:[#allocation13 + $0x310] sm:$0xff]  ;;  %v3169_v53 = vld [vmem:[#allocation13 + $0x288] sm:$0xff]  ;;  %v3403_v0 = vmul.f32 %v3402_v12, %v5673_v45  ;;  %v3168_v38 = vld [vmem:[#allocation13 + $0x280] sm:$0xff] }
 0x5bf   :  { %4401 = vmatprep.subr.mxu1 %v3176_v18  ;;  %4438 = vmatprep.subr.mxu0 %v3207_v59  ;;  %v3154_v10 = vld [vmem:[#allocation13 + $0x210] sm:$0xff]  ;;  %v3185_v30 = vld [vmem:[#allocation13 + $0x308] sm:$0xff]  ;;  %v3405_v11 = vmul.f32 %v3404_v3, %v5723_v4  ;;  %v3184_v42 = vld [vmem:[#allocation13 + $0x300] sm:$0xff]  ;;  %v3416_v27 = vadd.f32 %v3415_v19, %v3413_v2 }
 0x5c0   :  { %v3421_v9 = vadd.f32 %v3420_v22, %v3418_v54  ;;  %4402 = vmatpush3.msra.mxu1 %v3160_v24  ;;  %4439 = vmatpush3.msra.mxu0 %v3191_v7  ;;  %v3153_v37 = vld [vmem:[#allocation13 + $0x208] sm:$0xff]  ;;  %v3152_v20 = vld [vmem:[#allocation13 + $0x200] sm:$0xff]  ;;  %v3087_v57 = vld [vmem:[#allocation12 + $0x78] sm:$0xff] }
 0x5c1   :  { %4403 = vmatprep.subr.mxu1 %v3175_v23  ;;  %4440 = vmatprep.subr.mxu0 %v3206_v31  ;;  %v3406_v21 = vadd.f32 %v3405_v11, %v3403_v0  ;;  %v3086_v45 = vld [vmem:[#allocation12 + $0x70] sm:$0xff]  ;;  %v3085_v4 = vld [vmem:[#allocation12 + $0x68] sm:$0xff]  ;;  %v3084_v35 = vld [vmem:[#allocation12 + $0x60] sm:$0xff] }
 0x5c2   :  { %3696 = vmatprep.mubr.f32.mxu0 %v3421_v9  ;;  %4404 = vmatpush3.msra.mxu1 %v3159_v63  ;;  %v3083_v55 = vld [vmem:[#allocation12 + $0x58] sm:$0xff]  ;;  %v3082_v40 = vld [vmem:[#allocation12 + $0x50] sm:$0xff]  ;;  %v3081_v25 = vld [vmem:[#allocation12 + $0x48] sm:$0xff] }
 0x5c3   :  { %4405 = vmatprep.subr.mxu1 %v3174_v41  ;;  %4441 = vmatpush3.msra.mxu0 %v3190_v39  ;;  %v3080_v28 = vld [vmem:[#allocation12 + $0x40] sm:$0xff]  ;;  %v3079_v6 = vld [vmem:[#allocation12 + $0x38] sm:$0xff]  ;;  %v3078_v29 = vld [vmem:[#allocation12 + $0x30] sm:$0xff] }
 0x5c4   :  { %4406 = vmatpush3.msra.mxu1 %v3158_v44  ;;  %4442 = vmatprep.subr.mxu0 %v3205_v43  ;;  %v3077_v18 = vld [vmem:[#allocation12 + $0x28] sm:$0xff]  ;;  %v3076_v59 = vld [vmem:[#allocation12 + $0x20] sm:$0xff]  ;;  %v3075_v54 = vld [vmem:[#allocation12 + $0x18] sm:$0xff] }
 0x5c5   :  { %4407 = vmatprep.subr.mxu1 %v3173_v26  ;;  %4443 = vmatpush3.msra.mxu0 %v3189_v32  ;;  %v3074_v24 = vld [vmem:[#allocation12 + $0x10] sm:$0xff]  ;;  %v3073_v7 = vld [vmem:[#allocation12 + $0x8] sm:$0xff]  ;;  %v3072_v23 = vld [vmem:[#allocation12] sm:$0xff] }
 0x5c6   :  { %4408 = vmatpush3.msra.mxu1 %v3157_v5  ;;  %4444 = vmatprep.subr.mxu0 %v3204_v51 }
 0x5c7   :  { %4409 = vmatprep.subr.mxu1 %v3172_v34  ;;  %4445 = vmatpush3.msra.mxu0 %v3188_v61 }
 0x5c8   :  { %4410 = vmatpush3.msra.mxu1 %v3156_v50  ;;  %4446 = vmatprep.subr.mxu0 %v3203_v1  ;;  %v3773_v50 = vand.u32 127, %v1716_v48 }
 0x5c9   :  { %4411 = vmatprep.subr.mxu1 %v3171_v15  ;;  %4447 = vmatpush3.msra.mxu0 %v3187_v14  ;;  %v4577_v62 = vpop.eup %4576 }
 0x5ca   :  { %4412 = vmatpush3.msra.mxu1 %v3155_v17  ;;  %4448 = vmatprep.subr.mxu0 %v3202_v46  ;;  %v3219_v16 = vadd.f32 1.0, %v4577_v62 }
 0x5cb   :  { %4413 = vmatprep.subr.mxu1 %v3170_v58  ;;  %4449 = vmatpush3.msra.mxu0 %v3186_v49 }
 0x5cc   :  { %4414 = vmatpush3.msra.mxu1 %v3154_v10  ;;  %4450 = vmatprep.subr.mxu0 %v3201_v13  ;;  %4578 = vrcp.f32 %v3219_v16 }
 0x5cd   :  { %4415 = vmatprep.subr.mxu1 %v3169_v53  ;;  %4451 = vmatpush3.msra.mxu0 %v3185_v30 }
 0x5ce   :  { %4416 = vmatpush3.msra.mxu1 %v3153_v37  ;;  %4452 = vmatprep.subr.mxu0 %v3200_v33 }
 0x5cf   :  { %4417 = vmatprep.subr.mxu1 %v3168_v38  ;;  %4453 = vmatpush3.msra.mxu0 %v3184_v42 }
 0x5d0   :  { %4418 = vmatpush3.msra.mxu1 %v3152_v20  ;;  %3697 = vmatmul.mubr.f32.vlgmr.msra.gmra.mxu0 %v3416_v27 }
 0x5d1   :  { %3627 = vmatmul.mubr.f32.vlgmr.msra.gmra.mxu1 %v3406_v21  ;;  %4509 = vmatprep.subr.mxu1 %v4766_v60 }
 0x5d2   :  { %4510 = vmatpush3.msra.mxu1 %v3087_v57  ;;  %4541 = vmatprep.mubr.msk.f32.mxu1 %vm4767_vm1, %v4766_v60  ;;  %vm3774_vm1 = vcmp.lt.s32.totalorder %v3773_v50, 4 }
 0x5d3   :  { %4511 = vmatprep.subr.mxu1 %v4766_v60 }
 0x5d4   :  { %4512 = vmatpush3.msra.mxu1 %v3086_v45 }
 0x5d5   :  { %4513 = vmatprep.subr.mxu1 %v4766_v60 }
 0x5d6   :  { %4514 = vmatpush3.msra.mxu1 %v3085_v4 }
 0x5d7   :  { %4515 = vmatprep.subr.mxu1 %v4766_v60 }
 0x5d8   :  { %4516 = vmatpush3.msra.mxu1 %v3084_v35 }
 0x5d9   :  { %4517 = vmatprep.subr.mxu1 %v4766_v60  ;;  %v4579_v22 = vpop.eup %4578 }
 0x5da   :  { %4518 = vmatpush3.msra.mxu1 %v3083_v55  ;;  %v3222_v31 = vmul.f32 %v4579_v22, %v5612_v47 }
 0x5db   :  { %4519 = vmatprep.subr.mxu1 %v4766_v60 }
 0x5dc   :  { %4520 = vmatpush3.msra.mxu1 %v3082_v40 }
 0x5dd   :  { %4521 = vmatprep.subr.mxu1 %v4766_v60 }
 0x5de   :  { %4522 = vmatpush3.msra.mxu1 %v3081_v25 }
 0x5df   :  { %4523 = vmatprep.subr.mxu1 %v4766_v60 }
 0x5e0   :  { %4524 = vmatpush3.msra.mxu1 %v3080_v28 }
 0x5e1   :  { %4525 = vmatprep.subr.mxu1 %v4766_v60 }
 0x5e2   :  { %4526 = vmatpush3.msra.mxu1 %v3079_v6 }
 0x5e3   :  { %4527 = vmatprep.subr.mxu1 %v4766_v60 }
 0x5e4   :  { %4528 = vmatpush3.msra.mxu1 %v3078_v29 }
 0x5e5   :  { %4529 = vmatprep.subr.mxu1 %v4766_v60 }
 0x5e6   :  { %4530 = vmatpush3.msra.mxu1 %v3077_v18 }
 0x5e7   :  { %4531 = vmatprep.subr.mxu1 %v4766_v60 }
 0x5e8   :  { %4532 = vmatpush3.msra.mxu1 %v3076_v59 }
 0x5e9   :  { %4533 = vmatprep.subr.mxu1 %v4766_v60 }
 0x5ea   :  { %4534 = vmatpush3.msra.mxu1 %v3075_v54 }
 0x5eb   :  { %4535 = vmatprep.subr.mxu1 %v4766_v60 }
 0x5ec   :  { %4536 = vmatpush3.msra.mxu1 %v3074_v24 }
 0x5ed   :  { %4537 = vmatprep.subr.mxu1 %v4766_v60 }
 0x5ee   :  { %4538 = vmatpush3.msra.mxu1 %v3073_v7 }
 0x5ef   :  { %4539 = vmatprep.subr.mxu1 %v4766_v60 }
 0x5f0   :  { %4540 = vmatpush3.msra.mxu1 %v3072_v23 }
 0x5f1   :  { %4542 = vmatmul.mubr.f32.vlgmr.msra.gmra.mxu1 %v3222_v31 }
 0x66d   :  { %v4384_v9 = vpop.f32.mrf.mxu0 }
 0x66f   :  { %v4385_v44 = vpop.f32.mrf.mxu0 }
 0x670   :  { %v4386_v32 = vadd.f32 %v4385_v44, %v4384_v9 }
 0x671   :  { %v4349_v63 = vpop.f32.mrf.mxu1 }
 0x673   :  { %v4350_v41 = vpop.f32.mrf.mxu1 }
 0x674   :  { %v4351_v26 = vadd.f32 %v4350_v41, %v4349_v63 }
 0x676   :  { %v3559_v8 = vadd.f32 %v4386_v32, %v4351_v26 }
 0x690   :  { %v4454_v5 = vpop.f32.mrf.mxu0 }
 0x691   :  { %v4419_v39 = vpop.f32.mrf.mxu1 }
 0x692   :  { %v4455_v34 = vpop.f32.mrf.mxu0 }
 0x693   :  { %v4420_v43 = vpop.f32.mrf.mxu1  ;;  %v4456_v60 = vadd.f32 %v4455_v34, %v4454_v5 }
 0x694   :  { %v4421_v51 = vadd.f32 %v4420_v43, %v4419_v39 }
 0x696   :  { %v3629_v61 = vadd.f32 %v4421_v51, %v3559_v8 }
 0x698   :  { %v3699_v1 = vadd.f32 %v4456_v60, %v3629_v61 }
 0x6b1   :  { %v3768_v47 = vpop.f32.mrf.mxu1 }
 0x6b2   :  { %v3769_v15 = vadd.f32 %v3768_v47, %v3699_v1 }
 0x6b3   :  { %v4543_v14 = vpop.f32.mrf.mxu1 }
 0x6b4   :  { %v3775_v17 = vsel %vm3774_vm1, %v3769_v15, -1e+30 }
 0x6b5   :  { %3776 = vmax.xlane.f32.xlu1 %v3775_v17 }
 0x73e   :  { %v3777_v46 = vpop.xlane.xlu1 %3776 }
 0x73f   :  { %v3778_v56 = vsub.f32 %v3775_v17, %v3777_v46 }
 0x741   :  { %v3779_v58 = vmul.f32 1.442695, %v3778_v56 }
 0x743   :  { %4580 = vpow2.f32 %v3779_v58 }
 0x750   :  { %v4581_v49 = vpop.eup %4580 }
 0x751   :  { %3781 = vadd.xlane.f32.xlu1 %v4581_v49 }
 0x7da   :  { %v3782_v36 = vpop.xlane.xlu1 %3781 }
 0x7db   :  { %4582 = vrcp.f32 %v3782_v36 }
 0x7e8   :  { %v4583_v52 = vpop.eup %4582 }
 0x7e9   :  { %v3784_v10 = vmul.f32 %v4583_v52, %v4581_v49 }
 0x7eb   :  { %3785 = vst [vmem:[%s5785_s11] sm:$0xff] %v3784_v10 }
 0x7ec   :  { %3790 = vsyncpa [#allocation3], 1 }
 0x7ed   :  { %3791 = vsyncpa [#allocation5], 1 }
 0x7ee   :  { %3792 = vsyncpa [#allocation8], 1 }
 0x7ef   :  { %3793 = vsyncpa [#allocation11], 1 }
 0x7f0   :  { %3794 = vsyncpa [#allocation14], 1 }

</bundles_post_ra>
